<compile_context>
chip_gen: v5e
topology: v5e:2x2
jax: 0.10.0
libtpu: 0.0.40
codegen_flags: <defaults>
</compile_context>

<pallas_src>
import math
import jax
import jax.numpy as jnp
from jax.experimental import pallas as pl
from jax.experimental.pallas import tpu as pltpu  # noqa: F401  (TPU backend assumed)

# ----------------------- model hyper-parameters (small) -----------------------
B        = 2
N_WIN    = 16            # window_size (sequence length)
K_FEAT   = 8             # n_features
KSIZE    = 7             # conv kernel size
PAD      = (KSIZE - 1) // 2
D_MODEL  = 2 * K_FEAT    # 16
N_HEADS  = 8
D_K      = D_MODEL // N_HEADS   # 2
D_FF     = 4 * D_MODEL   # 64
N_LAYERS = 2
ALPHA    = 0.2           # LeakyReLU slope in GAT
E_GAT    = 2 * N_WIN     # GATv2 embedding dim (window_size * 2) = 32
LN_EPS   = 1e-6
NEG_INF  = -1e9
SCALE    = 1.0 / math.sqrt(D_K)

IM2COL_C = KSIZE * K_FEAT        # 56
ROWS     = B * N_WIN             # 32

# ---- packed-slab row offsets ----
# p8 slab (lane width = K_FEAT = 8)
P8_CONVW   = 0                   # rows 0:57   conv weight (56) + conv bias row
P8_CONVW_N = IM2COL_C + 1        # 57
P8_FINW    = 64                  # rows 64:80  final linear weight (16,8)   (8-aligned)
P8_GATB    = 80                  # rows 80:88  GAT bias (8,8)
P8_FINB    = 88                  # row  88     final linear bias (1,8)
P8_ROWS    = 89

# g16 slab (lane width = D_MODEL = 16)
G16_PE   = 0                     # rows 0:32   positional encoding tiled to (B*n, d)
G16_LNFG = ROWS                  # 32          final encoder LN gain
G16_LNFB = ROWS + 1              # 33          final encoder LN bias
G16_ROWS = ROWS + 2

# per-layer fl16 slab (lane width = D_MODEL = 16)
FL_W2   = 0                      # rows 0:64   ff_w2
FL_B2   = D_FF                   # 64          ff_b2
FL_LN1G = D_FF + 1               # 65
FL_LN1B = D_FF + 2               # 66
FL_LN2G = D_FF + 3               # 67
FL_LN2B = D_FF + 4               # 68
FL_ROWS = D_FF + 5               # 69


# ------------------------------- fused Pallas kernel --------------------------

def graph_transformer_kernel(
    xslab_ref, mask_ref, p8_ref, gat_wT_ref, gat_aux_ref, g16_ref,
    wqo_ref, wkvT_ref, ffw1_ref, fl16_ref,
    o_ref,
):
    f32 = jnp.float32

    # ---- packed slabs: loaded once, sliced as values (static, aligned slices) ----
    xslab = xslab_ref[...]                            # (B, n + k, 57)
    p8 = p8_ref[...]                                  # (89, 8)
    g16 = g16_ref[...]                                # (34, 16)
    gat_aux = gat_aux_ref[...]                        # (2, 32)
    mask_add = mask_ref[...]                          # (B, n, 1, n) additive mask (hoisted)

    im2col = xslab[:, :N_WIN, :]                      # (B, n, 57)  lane 56 == 1.0
    conv_wT = xslab[:, N_WIN:, :]                     # (B, k, 57)  lane 56 == conv bias

    conv_w = p8[P8_CONVW:P8_CONVW_N, :]               # (57, 8)  bias-augmented
    final_w = p8[P8_FINW:P8_FINW + D_MODEL, :]        # (16, 8)
    gat_bias = p8[P8_GATB:P8_GATB + K_FEAT, :]        # (8, 8)
    final_b = p8[P8_FINB:P8_FINB + 1, :]              # (1, 8)

    # ---------------- ConvLayer (pad + im2col built in wrapper) ----------------
    # Row layout (B*n, k): ONE (32,57)x(57,8) MXU matmul; bias folded via the ones lane.
    x_conv = jnp.maximum(
        jnp.dot(im2col.reshape(ROWS, IM2COL_C + 1), conv_w,
                preferred_element_type=f32), 0.0)                          # (32, 8)
    xc3 = x_conv.reshape(B, N_WIN, K_FEAT)                                  # (B, n, k)

    # Transposed layout (B, k, n) produced directly on the MXU (no XLU transpose).
    xcT3 = jnp.maximum(
        jnp.einsum('bkc,btc->bkt', conv_wT, im2col,
                   preferred_element_type=f32), 0.0)                        # (B, k, n)

    # ---------------- FeatureAttentionLayer (GATv2, nodes = features), batched ----
    # left/right embeddings for every (batch, node) in ONE contract-last-dim matmul.
    lr = jnp.einsum('bkt,bet->bke', xcT3, gat_wT_ref[...],
                    preferred_element_type=f32)                             # (B, k, 2e)
    left = lr[:, :, :E_GAT]                                                 # (B, k, e)
    right = lr[:, :, E_GAT:]                                                # (B, k, e)
    lb = gat_aux[0:1, :]                                                    # (1, e)
    a_vec = gat_aux[1:2, :]                                                 # (1, e)

    z = left[:, :, None, :] + right[:, None, :, :] + lb                     # (B, k, k, e)
    z = jnp.where(z >= 0.0, z, ALPHA * z)                                   # LeakyReLU
    logits = jnp.sum(z * a_vec, axis=-1) + gat_bias                         # (B, k, k)
    logits = logits - jnp.max(logits, axis=-1, keepdims=True)               # softmax dim 2
    att = jnp.exp(logits)
    att = att / jnp.sum(att, axis=-1, keepdims=True)

    # h_feat back in row layout: hf[b,t,i] = sigmoid(sum_j att[b,i,j] * x[b,t,j]).
    hf3 = jax.nn.sigmoid(
        jnp.einsum('btj,bij->bti', xc3, att, preferred_element_type=f32))   # (B, n, k)

    # h_cat + positional encoding (PE pre-tiled to (B*n, d) in the wrapper).
    h = jnp.concatenate([xc3, hf3], axis=-1).reshape(ROWS, D_MODEL)         # (32, 16)
    h = h + g16[G16_PE:G16_PE + ROWS, :]

    # Annotated-Transformer LayerNorm: unbiased std, eps OUTSIDE the sqrt
    # (matches the custom LayerNorm of the reference, not torch.nn.LayerNorm).
    def layer_norm(t, g, bb):
        mean = jnp.mean(t, axis=-1, keepdims=True)
        diff = t - mean
        var = jnp.sum(diff * diff, axis=-1, keepdims=True) * (1.0 / (D_MODEL - 1))
        return g * diff / (jnp.sqrt(var) + LN_EPS) + bb

    # ---------------- Transformer encoder: N pre-norm layers (static unroll) ------
    for l in range(N_LAYERS):
        wqo_l = wqo_ref[l]                            # (2, 17, 16): [Wq+bq ; Wo+bo]
        wkvT_l = wkvT_ref[l]                          # (B, 32, 17): [Wk^T;Wv^T | bias]
        ffw1_l = ffw1_ref[l]                          # (17, 64):    [ff_w1 ; ff_b1]
        fl16_l = fl16_ref[l]                          # (69, 16):    [ff_w2; ff_b2; LNs]

        # ---- self-attention sublayer ----
        hn = layer_norm(h, fl16_l[FL_LN1G:FL_LN1G + 1, :], fl16_l[FL_LN1B:FL_LN1B + 1, :])
        hn3 = hn.reshape(B, N_WIN, D_MODEL)

        # Q in row layout (head-permuted columns): one (32,16)x(16,16) matmul.
        q = jnp.dot(hn, wqo_l[0, :D_MODEL, :], preferred_element_type=f32) \
            + wqo_l[0, D_MODEL:, :]
        q0 = q[:, :N_HEADS].reshape(B, N_WIN, N_HEADS)                      # (B, n, H)
        q1 = q[:, N_HEADS:].reshape(B, N_WIN, N_HEADS)

        # K and V directly in (B, head-dim, n) layout: batched MXU contraction over the
        # model axis -> keys/values land with n on the lane axis, no in-kernel transpose.
        kvT = jnp.einsum('brd,bnd->brn', wkvT_l[:, :, :D_MODEL], hn3,
                         preferred_element_type=f32) + wkvT_l[:, :, D_MODEL:]  # (B,32,n)
        k0 = kvT[:, 0:N_HEADS, :]                                           # (B, H, n)
        k1 = kvT[:, N_HEADS:2 * N_HEADS, :]
        v0 = kvT[:, 2 * N_HEADS:3 * N_HEADS, :]
        v1 = kvT[:, 3 * N_HEADS:, :]

        # Scores (B, n_q, H, n_k): keys on lanes -> softmax is a last-axis lane reduce.
        # d_k == 2, so scores / P@V are cheap VPU broadcast multiply-adds.
        s = (q0[:, :, :, None] * k0[:, None, :, :]
             + q1[:, :, :, None] * k1[:, None, :, :]) * SCALE + mask_add
        s = s - jnp.max(s, axis=-1, keepdims=True)
        p = jnp.exp(s)
        p = p / jnp.sum(p, axis=-1, keepdims=True)

        c0 = jnp.sum(p * v0[:, None, :, :], axis=-1)                        # (B, n, H)
        c1 = jnp.sum(p * v1[:, None, :, :], axis=-1)
        ctx = jnp.concatenate([c0, c1], axis=-1).reshape(ROWS, D_MODEL)     # (32, 16)

        # Head concat folded into ONE output projection (Wo rows pre-permuted).
        h = h + jnp.dot(ctx, wqo_l[1, :D_MODEL, :], preferred_element_type=f32) \
              + wqo_l[1, D_MODEL:, :]

        # ---- position-wise feed-forward sublayer ----
        hn = layer_norm(h, fl16_l[FL_LN2G:FL_LN2G + 1, :], fl16_l[FL_LN2B:FL_LN2B + 1, :])
        mid = jnp.maximum(
            jnp.dot(hn, ffw1_l[:D_MODEL, :], preferred_element_type=f32)
            + ffw1_l[D_MODEL:, :], 0.0)                                     # (32, 64)
        h = h + jnp.dot(mid, fl16_l[FL_W2:FL_W2 + D_FF, :], preferred_element_type=f32) \
              + fl16_l[FL_B2:FL_B2 + 1, :]

    # ---- final encoder LayerNorm + output linear: single contiguous store ----
    h = layer_norm(h, g16[G16_LNFG:G16_LNFG + 1, :], g16[G16_LNFB:G16_LNFB + 1, :])
    o_ref[...] = jnp.dot(h, final_w, preferred_element_type=f32) + final_b  # (32, 8)


# ------------------------------ pallas_call wrapper ----------------------------

def graph_transformer_forward(x, src_mask, p):
    f32 = jnp.float32

    # Fold the PyTorch head interleaving (column 2h+d) into a column permutation of
    # Q/K/V and the matching row permutation of Wo, so the kernel uses contiguous
    # per-head-dim slices.  Pure-JAX reshuffles of tiny weights.
    def perm_cols(w):
        return jnp.concatenate([w[..., 0::2], w[..., 1::2]], axis=-1)

    def perm_rows(w):
        return jnp.concatenate([w[0::2, :], w[1::2, :]], axis=0)

    L = p["layers"]

    # ---- per-layer packed slabs ----
    wqo = jnp.stack([
        jnp.stack([
            jnp.concatenate([perm_cols(lp["wq"]), perm_cols(lp["bq"])], axis=0),
            jnp.concatenate([perm_rows(lp["wo"]), lp["bo"]], axis=0),
        ], axis=0)
        for lp in L], axis=0)                                            # (L, 2, 17, 16)

    def kvt(lp):
        w = jnp.concatenate([perm_cols(lp["wk"]).T, perm_cols(lp["wv"]).T], axis=0)  # (32,16)
        bias = jnp.concatenate([perm_cols(lp["bk"]), perm_cols(lp["bv"])],
                               axis=-1).reshape(2 * D_MODEL, 1)                       # (32,1)
        return jnp.concatenate([w, bias], axis=-1)                                    # (32,17)
    wkvT = jnp.stack([kvt(lp) for lp in L], axis=0)                      # (L, 32, 17)
    wkvT = jnp.broadcast_to(wkvT[:, None], (N_LAYERS, B, 2 * D_MODEL, D_MODEL + 1))

    ffw1 = jnp.stack(
        [jnp.concatenate([lp["ff_w1"], lp["ff_b1"]], axis=0) for lp in L], axis=0)  # (L,17,64)

    fl16 = jnp.stack([
        jnp.concatenate([lp["ff_w2"], lp["ff_b2"], lp["ln1_g"], lp["ln1_b"],
                         lp["ln2_g"], lp["ln2_b"]], axis=0)
        for lp in L], axis=0)                                            # (L, 69, 16)

    # ---- global packed slabs ----
    conv_w2d = p["conv_w"].reshape(IM2COL_C, K_FEAT)                     # (56, 8)
    conv_w_aug = jnp.concatenate([conv_w2d, p["conv_b"]], axis=0)        # (57, 8)
    p8 = jnp.concatenate([
        conv_w_aug,
        jnp.zeros((P8_FINW - P8_CONVW_N, K_FEAT), f32),                  # pad to row 64
        p["final_w"],                                                    # (16, 8)
        p["gat_bias"],                                                   # (8, 8)
        p["final_b"],                                                    # (1, 8)
    ], axis=0)                                                           # (89, 8)

    gat_w = jnp.concatenate([p["gat_w1"], p["gat_w2"]], axis=1)          # (16, 64)
    gat_wT = jnp.broadcast_to(gat_w.T, (B, 2 * E_GAT, N_WIN))            # (B, 64, 16)
    gat_aux = jnp.concatenate([p["gat_lb"], p["gat_a"]], axis=0)         # (2, 32)

    g16 = jnp.concatenate(
        [jnp.tile(p["pe"], (B, 1)), p["lnf_g"], p["lnf_b"]], axis=0)     # (34, 16)

    # ---- input prep hoisted out of the kernel (pad, im2col, additive mask) ----
    xp = jnp.pad(x, ((0, 0), (PAD, PAD), (0, 0)))
    im2col = jnp.concatenate([xp[:, j:j + N_WIN, :] for j in range(KSIZE)], axis=-1)
    im2col = jnp.concatenate([im2col, jnp.ones((B, N_WIN, 1), f32)], axis=-1)   # (B,n,57)
    conv_wT_aug = jnp.concatenate([conv_w2d.T, p["conv_b"].reshape(K_FEAT, 1)], axis=-1)
    xslab = jnp.concatenate(
        [im2col, jnp.broadcast_to(conv_wT_aug, (B, K_FEAT, IM2COL_C + 1))], axis=1)  # (B,24,57)

    mask_add = jnp.where(src_mask == 0.0, NEG_INF, 0.0).astype(f32)
    mask_add = mask_add.reshape(B, N_WIN, 1, N_WIN)

    # Single fused kernel, no grid: every operand is a whole-array VMEM block
    # (total resident data is tens of KiB << VMEM on v5e/v6e/v7x).
    out = pl.pallas_call(
        graph_transformer_kernel,
        out_shape=jax.ShapeDtypeStruct((ROWS, K_FEAT), f32),
    )(xslab, mask_add, p8, gat_wT, gat_aux, g16, wqo, wkvT, ffw1, fl16)

    return out.reshape(B, N_WIN, K_FEAT)


# ------------------------------ parameters -------------------------------------

def init_params(key):
    keys = list(jax.random.split(key, 64))
    it = iter(keys)

    def nxt():
        return next(it)

    def uinit(shape, lim):
        return jax.random.uniform(nxt(), shape, jnp.float32, -lim, lim)

    def xavier(shape, gain=1.0):          # weights stored as (in_dim, out_dim)
        lim = gain * math.sqrt(6.0 / (shape[0] + shape[-1]))
        return uinit(shape, lim)

    p = {}
    # ConvLayer: Conv1d(k -> k, KSIZE), stored as (KSIZE, in, out).
    # TODO(synk): porting real PyTorch Conv1d weights (out,in,k) needs permute(2,1,0).
    clim = 1.0 / math.sqrt(K_FEAT * KSIZE)
    p["conv_w"] = uinit((KSIZE, K_FEAT, K_FEAT), clim)
    p["conv_b"] = uinit((1, K_FEAT), clim)

    # FeatureAttentionLayer (GATv2): lin: Linear(2n -> E_GAT), a: (E_GAT,), bias: (k,k)
    w_lin = xavier((2 * N_WIN, E_GAT))
    p["gat_w1"] = w_lin[:N_WIN, :]                             # acts on the "left" node
    p["gat_w2"] = w_lin[N_WIN:, :]                             # acts on the "right" node
    p["gat_lb"] = uinit((1, E_GAT), 1.0 / math.sqrt(2 * N_WIN))
    p["gat_a"] = xavier((1, E_GAT), gain=1.414)
    p["gat_bias"] = jnp.zeros((K_FEAT, K_FEAT), jnp.float32)

    # Positional encoding (deterministic sin/cos table)
    pos = jnp.arange(N_WIN, dtype=jnp.float32)[:, None]
    div = jnp.exp(jnp.arange(0, D_MODEL, 2, dtype=jnp.float32)
                  * (-math.log(10000.0) / D_MODEL))
    ang = pos * div
    pe = jnp.zeros((N_WIN, D_MODEL), jnp.float32)
    pe = pe.at[:, 0::2].set(jnp.sin(ang)).at[:, 1::2].set(jnp.cos(ang))
    p["pe"] = pe

    blim = 1.0 / math.sqrt(D_MODEL)
    layers = []
    for _ in range(N_LAYERS):
        lp = {
            "wq": xavier((D_MODEL, D_MODEL)), "bq": uinit((1, D_MODEL), blim),
            "wk": xavier((D_MODEL, D_MODEL)), "bk": uinit((1, D_MODEL), blim),
            "wv": xavier((D_MODEL, D_MODEL)), "bv": uinit((1, D_MODEL), blim),
            "wo": xavier((D_MODEL, D_MODEL)), "bo": uinit((1, D_MODEL), blim),
            "ff_w1": xavier((D_MODEL, D_FF)), "ff_b1": uinit((1, D_FF), blim),
            "ff_w2": xavier((D_FF, D_MODEL)),
            "ff_b2": uinit((1, D_MODEL), 1.0 / math.sqrt(D_FF)),
            "ln1_g": jnp.ones((1, D_MODEL), jnp.float32),
            "ln1_b": jnp.zeros((1, D_MODEL), jnp.float32),
            "ln2_g": jnp.ones((1, D_MODEL), jnp.float32),
            "ln2_b": jnp.zeros((1, D_MODEL), jnp.float32),
        }
        layers.append(lp)
    p["layers"] = layers

    p["lnf_g"] = jnp.ones((1, D_MODEL), jnp.float32)
    p["lnf_b"] = jnp.zeros((1, D_MODEL), jnp.float32)
    p["final_w"] = xavier((D_MODEL, K_FEAT))
    p["final_b"] = uinit((1, K_FEAT), blim)
    return p


# ------------------------------------ main --------------------------------------

if __name__ == "__main__":
    key = jax.random.PRNGKey(0)
    pkey, xkey = jax.random.split(key)
    params = init_params(pkey)

    x = jax.random.normal(xkey, (B, N_WIN, K_FEAT), jnp.float32)
    src_mask = jnp.ones((B, N_WIN, N_WIN), jnp.float32)        # no masking

    fwd = jax.jit(graph_transformer_forward)
    out = jax.block_until_ready(fwd(x, src_mask, params))

    assert out.shape == (B, N_WIN, K_FEAT), out.shape
    assert bool(jnp.all(jnp.isfinite(out)))
    print("KERNEL_OK")
</pallas_src>

<mosaic_0001>
module attributes {stable_mosaic.version = 11 : i64} {
  func.func @graph_transformer_kernel(%arg0: memref<2x24x57xf32, #tpu.memory_space<vmem>>, %arg1: memref<2x16x1x16xf32, #tpu.memory_space<vmem>>, %arg2: memref<89x8xf32, #tpu.memory_space<vmem>>, %arg3: memref<2x64x16xf32, #tpu.memory_space<vmem>>, %arg4: memref<2x32xf32, #tpu.memory_space<vmem>>, %arg5: memref<34x16xf32, #tpu.memory_space<vmem>>, %arg6: memref<2x2x17x16xf32, #tpu.memory_space<vmem>>, %arg7: memref<2x2x32x17xf32, #tpu.memory_space<vmem>>, %arg8: memref<2x17x64xf32, #tpu.memory_space<vmem>>, %arg9: memref<2x69x16xf32, #tpu.memory_space<vmem>>, %arg10: memref<32x8xf32, #tpu.memory_space<vmem>>) attributes {dimension_semantics = [], scalar_prefetch = 0 : i64, scratch_operands = 0 : i64, tpu.core_type = #tpu.core_type<tc>} {
    %c0 = arith.constant 0 : index
    %c0_0 = arith.constant 0 : index
    %c0_1 = arith.constant 0 : index
    %0 = vector.load %arg0[%c0, %c0_0, %c0_1] : memref<2x24x57xf32, #tpu.memory_space<vmem>>, vector<2x24x57xf32>
    %c0_2 = arith.constant 0 : index
    %c0_3 = arith.constant 0 : index
    %1 = vector.load %arg2[%c0_2, %c0_3] : memref<89x8xf32, #tpu.memory_space<vmem>>, vector<89x8xf32>
    %c0_4 = arith.constant 0 : index
    %c0_5 = arith.constant 0 : index
    %2 = vector.load %arg5[%c0_4, %c0_5] : memref<34x16xf32, #tpu.memory_space<vmem>>, vector<34x16xf32>
    %c0_6 = arith.constant 0 : index
    %c0_7 = arith.constant 0 : index
    %3 = vector.load %arg4[%c0_6, %c0_7] : memref<2x32xf32, #tpu.memory_space<vmem>>, vector<2x32xf32>
    %c0_8 = arith.constant 0 : index
    %c0_9 = arith.constant 0 : index
    %c0_10 = arith.constant 0 : index
    %c0_11 = arith.constant 0 : index
    %4 = vector.load %arg1[%c0_8, %c0_9, %c0_10, %c0_11] : memref<2x16x1x16xf32, #tpu.memory_space<vmem>>, vector<2x16x1x16xf32>
    %5 = vector.extract_strided_slice %0 {offsets = [0, 0, 0], sizes = [2, 16, 57], strides = [1, 1, 1]} : vector<2x24x57xf32> to vector<2x16x57xf32>
    %6 = vector.extract_strided_slice %0 {offsets = [0, 16, 0], sizes = [2, 8, 57], strides = [1, 1, 1]} : vector<2x24x57xf32> to vector<2x8x57xf32>
    %7 = vector.extract_strided_slice %1 {offsets = [0, 0], sizes = [57, 8], strides = [1, 1]} : vector<89x8xf32> to vector<57x8xf32>
    %8 = vector.extract_strided_slice %1 {offsets = [64, 0], sizes = [16, 8], strides = [1, 1]} : vector<89x8xf32> to vector<16x8xf32>
    %9 = vector.extract_strided_slice %1 {offsets = [80, 0], sizes = [8, 8], strides = [1, 1]} : vector<89x8xf32> to vector<8x8xf32>
    %10 = vector.extract_strided_slice %1 {offsets = [88, 0], sizes = [1, 8], strides = [1, 1]} : vector<89x8xf32> to vector<1x8xf32>
    %11 = vector.shape_cast %5 : vector<2x16x57xf32> to vector<32x57xf32>
    %cst = arith.constant dense<0.000000e+00> : vector<32x8xf32>
    %12 = tpu.matmul %11, %7, %cst {dimension_numbers = #tpu.dot_dimension_numbers<[1], [0], [0], [1], [0, 0, 1, 1], [], []>} : vector<32x57xf32>, vector<57x8xf32>, vector<32x8xf32> -> vector<32x8xf32>
    %cst_12 = arith.constant 0.000000e+00 : f32
    %13 = vector.broadcast %cst_12 : f32 to vector<32x8xf32>
    %14 = arith.maximumf %12, %13 : vector<32x8xf32>
    %15 = vector.shape_cast %14 : vector<32x8xf32> to vector<2x16x8xf32>
    "tpu.trace_start"() <{level = 10 : i32, message = "bkc,btc->bkt"}> : () -> ()
    %cst_13 = arith.constant dense<0.000000e+00> : vector<2x8x16xf32>
    %16 = tpu.matmul %6, %5, %cst_13 {dimension_numbers = #tpu.dot_dimension_numbers<[2], [2], [1], [1], [0, 0, 0, 1, 1, 1], [0], [0]>} : vector<2x8x57xf32>, vector<2x16x57xf32>, vector<2x8x16xf32> -> vector<2x8x16xf32>
    "tpu.trace_stop"() : () -> ()
    %cst_14 = arith.constant 0.000000e+00 : f32
    %17 = vector.broadcast %cst_14 : f32 to vector<2x8x16xf32>
    %18 = arith.maximumf %16, %17 : vector<2x8x16xf32>
    %c0_15 = arith.constant 0 : index
    %c0_16 = arith.constant 0 : index
    %c0_17 = arith.constant 0 : index
    %19 = vector.load %arg3[%c0_15, %c0_16, %c0_17] : memref<2x64x16xf32, #tpu.memory_space<vmem>>, vector<2x64x16xf32>
    "tpu.trace_start"() <{level = 10 : i32, message = "bkt,bet->bke"}> : () -> ()
    %cst_18 = arith.constant dense<0.000000e+00> : vector<2x8x64xf32>
    %20 = tpu.matmul %18, %19, %cst_18 {dimension_numbers = #tpu.dot_dimension_numbers<[2], [2], [1], [1], [0, 0, 0, 1, 1, 1], [0], [0]>} : vector<2x8x16xf32>, vector<2x64x16xf32>, vector<2x8x64xf32> -> vector<2x8x64xf32>
    "tpu.trace_stop"() : () -> ()
    %21 = vector.extract_strided_slice %20 {offsets = [0, 0, 0], sizes = [2, 8, 32], strides = [1, 1, 1]} : vector<2x8x64xf32> to vector<2x8x32xf32>
    %22 = vector.extract_strided_slice %20 {offsets = [0, 0, 32], sizes = [2, 8, 32], strides = [1, 1, 1]} : vector<2x8x64xf32> to vector<2x8x32xf32>
    %23 = vector.extract_strided_slice %3 {offsets = [0, 0], sizes = [1, 32], strides = [1, 1]} : vector<2x32xf32> to vector<1x32xf32>
    %24 = vector.extract_strided_slice %3 {offsets = [1, 0], sizes = [1, 32], strides = [1, 1]} : vector<2x32xf32> to vector<1x32xf32>
    %25 = vector.shape_cast %21 : vector<2x8x32xf32> to vector<2x8x1x32xf32>
    %26 = vector.shape_cast %22 : vector<2x8x32xf32> to vector<2x1x8x32xf32>
    %27 = vector.broadcast %25 : vector<2x8x1x32xf32> to vector<2x8x8x32xf32>
    %28 = vector.broadcast %26 : vector<2x1x8x32xf32> to vector<2x8x8x32xf32>
    %29 = arith.addf %27, %28 : vector<2x8x8x32xf32>
    %30 = vector.shape_cast %23 : vector<1x32xf32> to vector<1x1x1x32xf32>
    %31 = vector.broadcast %30 : vector<1x1x1x32xf32> to vector<2x8x8x32xf32>
    %32 = arith.addf %29, %31 : vector<2x8x8x32xf32>
    %cst_19 = arith.constant 0.000000e+00 : f32
    %33 = vector.broadcast %cst_19 : f32 to vector<2x8x8x32xf32>
    %34 = arith.cmpf oge, %32, %33 : vector<2x8x8x32xf32>
    %cst_20 = arith.constant 2.000000e-01 : f32
    %35 = vector.broadcast %cst_20 : f32 to vector<2x8x8x32xf32>
    %36 = arith.mulf %35, %32 : vector<2x8x8x32xf32>
    %37 = arith.select %34, %32, %36 : vector<2x8x8x32xi1>, vector<2x8x8x32xf32>
    %38 = vector.shape_cast %24 : vector<1x32xf32> to vector<1x1x1x32xf32>
    %39 = vector.broadcast %38 : vector<1x1x1x32xf32> to vector<2x8x8x32xf32>
    %40 = arith.mulf %37, %39 : vector<2x8x8x32xf32>
    %cst_21 = arith.constant dense<0.000000e+00> : vector<2x8x8xf32>
    %41 = vector.multi_reduction <add>, %40, %cst_21 [3] : vector<2x8x8x32xf32> to vector<2x8x8xf32>
    %42 = vector.shape_cast %9 : vector<8x8xf32> to vector<1x8x8xf32>
    %43 = vector.broadcast %42 : vector<1x8x8xf32> to vector<2x8x8xf32>
    %44 = arith.addf %41, %43 : vector<2x8x8xf32>
    %cst_22 = arith.constant dense<0xFF800000> : vector<2x8xf32>
    %45 = vector.multi_reduction <maximumf>, %44, %cst_22 [2] : vector<2x8x8xf32> to vector<2x8xf32>
    %46 = vector.shape_cast %45 : vector<2x8xf32> to vector<2x8x1xf32>
    %47 = vector.broadcast %46 : vector<2x8x1xf32> to vector<2x8x8xf32>
    %48 = arith.subf %44, %47 : vector<2x8x8xf32>
    %49 = math.exp %48 : vector<2x8x8xf32>
    %cst_23 = arith.constant dense<0.000000e+00> : vector<2x8xf32>
    %50 = vector.multi_reduction <add>, %49, %cst_23 [2] : vector<2x8x8xf32> to vector<2x8xf32>
    %51 = vector.shape_cast %50 : vector<2x8xf32> to vector<2x8x1xf32>
    %52 = vector.broadcast %51 : vector<2x8x1xf32> to vector<2x8x8xf32>
    %53 = arith.divf %49, %52 : vector<2x8x8xf32>
    "tpu.trace_start"() <{level = 10 : i32, message = "btj,bij->bti"}> : () -> ()
    %cst_24 = arith.constant dense<0.000000e+00> : vector<2x16x8xf32>
    %54 = tpu.matmul %15, %53, %cst_24 {dimension_numbers = #tpu.dot_dimension_numbers<[2], [2], [1], [1], [0, 0, 0, 1, 1, 1], [0], [0]>} : vector<2x16x8xf32>, vector<2x8x8xf32>, vector<2x16x8xf32> -> vector<2x16x8xf32>
    "tpu.trace_stop"() : () -> ()
    %55 = arith.negf %54 : vector<2x16x8xf32>
    %56 = math.exp %55 : vector<2x16x8xf32>
    %cst_25 = arith.constant 1.000000e+00 : f32
    %57 = vector.broadcast %cst_25 : f32 to vector<2x16x8xf32>
    %58 = arith.addf %57, %56 : vector<2x16x8xf32>
    %59 = arith.divf %57, %58 : vector<2x16x8xf32>
    %60 = tpu.concatenate %15, %59 in 2 : vector<2x16x8xf32>, vector<2x16x8xf32> -> vector<2x16x16xf32>
    %61 = vector.shape_cast %60 : vector<2x16x16xf32> to vector<32x16xf32>
    %62 = vector.extract_strided_slice %2 {offsets = [0, 0], sizes = [32, 16], strides = [1, 1]} : vector<34x16xf32> to vector<32x16xf32>
    %63 = arith.addf %61, %62 : vector<32x16xf32>
    %c0_26 = arith.constant 0 : index
    %c0_27 = arith.constant 0 : index
    %c0_28 = arith.constant 0 : index
    %c0_29 = arith.constant 0 : index
    %64 = vector.load %arg6[%c0_26, %c0_27, %c0_28, %c0_29] : memref<2x2x17x16xf32, #tpu.memory_space<vmem>>, vector<1x2x17x16xf32>
    %65 = vector.shape_cast %64 : vector<1x2x17x16xf32> to vector<2x17x16xf32>
    %c0_30 = arith.constant 0 : index
    %c0_31 = arith.constant 0 : index
    %c0_32 = arith.constant 0 : index
    %c0_33 = arith.constant 0 : index
    %66 = vector.load %arg7[%c0_30, %c0_31, %c0_32, %c0_33] : memref<2x2x32x17xf32, #tpu.memory_space<vmem>>, vector<1x2x32x17xf32>
    %67 = vector.shape_cast %66 : vector<1x2x32x17xf32> to vector<2x32x17xf32>
    %c0_34 = arith.constant 0 : index
    %c0_35 = arith.constant 0 : index
    %c0_36 = arith.constant 0 : index
    %68 = vector.load %arg8[%c0_34, %c0_35, %c0_36] : memref<2x17x64xf32, #tpu.memory_space<vmem>>, vector<1x17x64xf32>
    %69 = vector.shape_cast %68 : vector<1x17x64xf32> to vector<17x64xf32>
    %c0_37 = arith.constant 0 : index
    %c0_38 = arith.constant 0 : index
    %c0_39 = arith.constant 0 : index
    %70 = vector.load %arg9[%c0_37, %c0_38, %c0_39] : memref<2x69x16xf32, #tpu.memory_space<vmem>>, vector<1x69x16xf32>
    %71 = vector.shape_cast %70 : vector<1x69x16xf32> to vector<69x16xf32>
    %72 = vector.extract_strided_slice %71 {offsets = [65, 0], sizes = [1, 16], strides = [1, 1]} : vector<69x16xf32> to vector<1x16xf32>
    %73 = vector.extract_strided_slice %71 {offsets = [66, 0], sizes = [1, 16], strides = [1, 1]} : vector<69x16xf32> to vector<1x16xf32>
    %cst_40 = arith.constant dense<0.000000e+00> : vector<32xf32>
    %74 = vector.multi_reduction <add>, %63, %cst_40 [1] : vector<32x16xf32> to vector<32xf32>
    %75 = vector.shape_cast %74 : vector<32xf32> to vector<32x1xf32>
    %cst_41 = arith.constant 1.600000e+01 : f32
    %76 = vector.broadcast %cst_41 : f32 to vector<32x1xf32>
    %77 = arith.divf %75, %76 : vector<32x1xf32>
    %78 = vector.broadcast %77 : vector<32x1xf32> to vector<32x16xf32>
    %79 = arith.subf %63, %78 : vector<32x16xf32>
    %80 = arith.mulf %79, %79 : vector<32x16xf32>
    %cst_42 = arith.constant dense<0.000000e+00> : vector<32xf32>
    %81 = vector.multi_reduction <add>, %80, %cst_42 [1] : vector<32x16xf32> to vector<32xf32>
    %82 = vector.shape_cast %81 : vector<32xf32> to vector<32x1xf32>
    %cst_43 = arith.constant 0.0666666701 : f32
    %83 = vector.broadcast %cst_43 : f32 to vector<32x1xf32>
    %84 = arith.mulf %82, %83 : vector<32x1xf32>
    %85 = vector.broadcast %72 : vector<1x16xf32> to vector<32x16xf32>
    %86 = arith.mulf %85, %79 : vector<32x16xf32>
    %87 = math.sqrt %84 : vector<32x1xf32>
    %cst_44 = arith.constant 9.99999997E-7 : f32
    %88 = vector.broadcast %cst_44 : f32 to vector<32x1xf32>
    %89 = arith.addf %87, %88 : vector<32x1xf32>
    %90 = vector.broadcast %89 : vector<32x1xf32> to vector<32x16xf32>
    %91 = arith.divf %86, %90 : vector<32x16xf32>
    %92 = vector.broadcast %73 : vector<1x16xf32> to vector<32x16xf32>
    %93 = arith.addf %91, %92 : vector<32x16xf32>
    %94 = vector.shape_cast %93 : vector<32x16xf32> to vector<2x16x16xf32>
    %95 = vector.extract_strided_slice %65 {offsets = [0, 0, 0], sizes = [1, 16, 16], strides = [1, 1, 1]} : vector<2x17x16xf32> to vector<1x16x16xf32>
    %96 = vector.shape_cast %95 : vector<1x16x16xf32> to vector<16x16xf32>
    %cst_45 = arith.constant dense<0.000000e+00> : vector<32x16xf32>
    %97 = tpu.matmul %93, %96, %cst_45 {dimension_numbers = #tpu.dot_dimension_numbers<[1], [0], [0], [1], [0, 0, 1, 1], [], []>} : vector<32x16xf32>, vector<16x16xf32>, vector<32x16xf32> -> vector<32x16xf32>
    %98 = vector.extract_strided_slice %65 {offsets = [0, 16, 0], sizes = [1, 1, 16], strides = [1, 1, 1]} : vector<2x17x16xf32> to vector<1x1x16xf32>
    %99 = vector.shape_cast %98 : vector<1x1x16xf32> to vector<1x16xf32>
    %100 = vector.broadcast %99 : vector<1x16xf32> to vector<32x16xf32>
    %101 = arith.addf %97, %100 : vector<32x16xf32>
    %102 = vector.extract_strided_slice %101 {offsets = [0, 0], sizes = [32, 8], strides = [1, 1]} : vector<32x16xf32> to vector<32x8xf32>
    %103 = vector.shape_cast %102 : vector<32x8xf32> to vector<2x16x8xf32>
    %104 = vector.extract_strided_slice %101 {offsets = [0, 8], sizes = [32, 8], strides = [1, 1]} : vector<32x16xf32> to vector<32x8xf32>
    %105 = vector.shape_cast %104 : vector<32x8xf32> to vector<2x16x8xf32>
    %106 = vector.extract_strided_slice %67 {offsets = [0, 0, 0], sizes = [2, 32, 16], strides = [1, 1, 1]} : vector<2x32x17xf32> to vector<2x32x16xf32>
    "tpu.trace_start"() <{level = 10 : i32, message = "brd,bnd->brn"}> : () -> ()
    %cst_46 = arith.constant dense<0.000000e+00> : vector<2x32x16xf32>
    %107 = tpu.matmul %106, %94, %cst_46 {dimension_numbers = #tpu.dot_dimension_numbers<[2], [2], [1], [1], [0, 0, 0, 1, 1, 1], [0], [0]>} : vector<2x32x16xf32>, vector<2x16x16xf32>, vector<2x32x16xf32> -> vector<2x32x16xf32>
    "tpu.trace_stop"() : () -> ()
    %108 = vector.extract_strided_slice %67 {offsets = [0, 0, 16], sizes = [2, 32, 1], strides = [1, 1, 1]} : vector<2x32x17xf32> to vector<2x32x1xf32>
    %109 = vector.broadcast %108 : vector<2x32x1xf32> to vector<2x32x16xf32>
    %110 = arith.addf %107, %109 : vector<2x32x16xf32>
    %111 = vector.extract_strided_slice %110 {offsets = [0, 0, 0], sizes = [2, 8, 16], strides = [1, 1, 1]} : vector<2x32x16xf32> to vector<2x8x16xf32>
    %112 = vector.extract_strided_slice %110 {offsets = [0, 8, 0], sizes = [2, 8, 16], strides = [1, 1, 1]} : vector<2x32x16xf32> to vector<2x8x16xf32>
    %113 = vector.extract_strided_slice %110 {offsets = [0, 16, 0], sizes = [2, 8, 16], strides = [1, 1, 1]} : vector<2x32x16xf32> to vector<2x8x16xf32>
    %114 = vector.extract_strided_slice %110 {offsets = [0, 24, 0], sizes = [2, 8, 16], strides = [1, 1, 1]} : vector<2x32x16xf32> to vector<2x8x16xf32>
    %115 = vector.shape_cast %103 : vector<2x16x8xf32> to vector<2x16x8x1xf32>
    %116 = vector.shape_cast %111 : vector<2x8x16xf32> to vector<2x1x8x16xf32>
    %117 = vector.broadcast %115 : vector<2x16x8x1xf32> to vector<2x16x8x16xf32>
    %118 = vector.broadcast %116 : vector<2x1x8x16xf32> to vector<2x16x8x16xf32>
    %119 = arith.mulf %117, %118 : vector<2x16x8x16xf32>
    %120 = vector.shape_cast %105 : vector<2x16x8xf32> to vector<2x16x8x1xf32>
    %121 = vector.shape_cast %112 : vector<2x8x16xf32> to vector<2x1x8x16xf32>
    %122 = vector.broadcast %120 : vector<2x16x8x1xf32> to vector<2x16x8x16xf32>
    %123 = vector.broadcast %121 : vector<2x1x8x16xf32> to vector<2x16x8x16xf32>
    %124 = arith.mulf %122, %123 : vector<2x16x8x16xf32>
    %125 = arith.addf %119, %124 : vector<2x16x8x16xf32>
    %cst_47 = arith.constant 0.707106769 : f32
    %126 = vector.broadcast %cst_47 : f32 to vector<2x16x8x16xf32>
    %127 = arith.mulf %125, %126 : vector<2x16x8x16xf32>
    %128 = vector.broadcast %4 : vector<2x16x1x16xf32> to vector<2x16x8x16xf32>
    %129 = arith.addf %127, %128 : vector<2x16x8x16xf32>
    %cst_48 = arith.constant dense<0xFF800000> : vector<2x16x8xf32>
    %130 = vector.multi_reduction <maximumf>, %129, %cst_48 [3] : vector<2x16x8x16xf32> to vector<2x16x8xf32>
    %131 = vector.shape_cast %130 : vector<2x16x8xf32> to vector<2x16x8x1xf32>
    %132 = vector.broadcast %131 : vector<2x16x8x1xf32> to vector<2x16x8x16xf32>
    %133 = arith.subf %129, %132 : vector<2x16x8x16xf32>
    %134 = math.exp %133 : vector<2x16x8x16xf32>
    %cst_49 = arith.constant dense<0.000000e+00> : vector<2x16x8xf32>
    %135 = vector.multi_reduction <add>, %134, %cst_49 [3] : vector<2x16x8x16xf32> to vector<2x16x8xf32>
    %136 = vector.shape_cast %135 : vector<2x16x8xf32> to vector<2x16x8x1xf32>
    %137 = vector.broadcast %136 : vector<2x16x8x1xf32> to vector<2x16x8x16xf32>
    %138 = arith.divf %134, %137 : vector<2x16x8x16xf32>
    %139 = vector.shape_cast %113 : vector<2x8x16xf32> to vector<2x1x8x16xf32>
    %140 = vector.broadcast %139 : vector<2x1x8x16xf32> to vector<2x16x8x16xf32>
    %141 = arith.mulf %138, %140 : vector<2x16x8x16xf32>
    %cst_50 = arith.constant dense<0.000000e+00> : vector<2x16x8xf32>
    %142 = vector.multi_reduction <add>, %141, %cst_50 [3] : vector<2x16x8x16xf32> to vector<2x16x8xf32>
    %143 = vector.shape_cast %114 : vector<2x8x16xf32> to vector<2x1x8x16xf32>
    %144 = vector.broadcast %143 : vector<2x1x8x16xf32> to vector<2x16x8x16xf32>
    %145 = arith.mulf %138, %144 : vector<2x16x8x16xf32>
    %cst_51 = arith.constant dense<0.000000e+00> : vector<2x16x8xf32>
    %146 = vector.multi_reduction <add>, %145, %cst_51 [3] : vector<2x16x8x16xf32> to vector<2x16x8xf32>
    %147 = tpu.concatenate %142, %146 in 2 : vector<2x16x8xf32>, vector<2x16x8xf32> -> vector<2x16x16xf32>
    %148 = vector.shape_cast %147 : vector<2x16x16xf32> to vector<32x16xf32>
    %149 = vector.extract_strided_slice %65 {offsets = [1, 0, 0], sizes = [1, 16, 16], strides = [1, 1, 1]} : vector<2x17x16xf32> to vector<1x16x16xf32>
    %150 = vector.shape_cast %149 : vector<1x16x16xf32> to vector<16x16xf32>
    %cst_52 = arith.constant dense<0.000000e+00> : vector<32x16xf32>
    %151 = tpu.matmul %148, %150, %cst_52 {dimension_numbers = #tpu.dot_dimension_numbers<[1], [0], [0], [1], [0, 0, 1, 1], [], []>} : vector<32x16xf32>, vector<16x16xf32>, vector<32x16xf32> -> vector<32x16xf32>
    %152 = arith.addf %63, %151 : vector<32x16xf32>
    %153 = vector.extract_strided_slice %65 {offsets = [1, 16, 0], sizes = [1, 1, 16], strides = [1, 1, 1]} : vector<2x17x16xf32> to vector<1x1x16xf32>
    %154 = vector.shape_cast %153 : vector<1x1x16xf32> to vector<1x16xf32>
    %155 = vector.broadcast %154 : vector<1x16xf32> to vector<32x16xf32>
    %156 = arith.addf %152, %155 : vector<32x16xf32>
    %157 = vector.extract_strided_slice %71 {offsets = [67, 0], sizes = [1, 16], strides = [1, 1]} : vector<69x16xf32> to vector<1x16xf32>
    %158 = vector.extract_strided_slice %71 {offsets = [68, 0], sizes = [1, 16], strides = [1, 1]} : vector<69x16xf32> to vector<1x16xf32>
    %cst_53 = arith.constant dense<0.000000e+00> : vector<32xf32>
    %159 = vector.multi_reduction <add>, %156, %cst_53 [1] : vector<32x16xf32> to vector<32xf32>
    %160 = vector.shape_cast %159 : vector<32xf32> to vector<32x1xf32>
    %cst_54 = arith.constant 1.600000e+01 : f32
    %161 = vector.broadcast %cst_54 : f32 to vector<32x1xf32>
    %162 = arith.divf %160, %161 : vector<32x1xf32>
    %163 = vector.broadcast %162 : vector<32x1xf32> to vector<32x16xf32>
    %164 = arith.subf %156, %163 : vector<32x16xf32>
    %165 = arith.mulf %164, %164 : vector<32x16xf32>
    %cst_55 = arith.constant dense<0.000000e+00> : vector<32xf32>
    %166 = vector.multi_reduction <add>, %165, %cst_55 [1] : vector<32x16xf32> to vector<32xf32>
    %167 = vector.shape_cast %166 : vector<32xf32> to vector<32x1xf32>
    %cst_56 = arith.constant 0.0666666701 : f32
    %168 = vector.broadcast %cst_56 : f32 to vector<32x1xf32>
    %169 = arith.mulf %167, %168 : vector<32x1xf32>
    %170 = vector.broadcast %157 : vector<1x16xf32> to vector<32x16xf32>
    %171 = arith.mulf %170, %164 : vector<32x16xf32>
    %172 = math.sqrt %169 : vector<32x1xf32>
    %cst_57 = arith.constant 9.99999997E-7 : f32
    %173 = vector.broadcast %cst_57 : f32 to vector<32x1xf32>
    %174 = arith.addf %172, %173 : vector<32x1xf32>
    %175 = vector.broadcast %174 : vector<32x1xf32> to vector<32x16xf32>
    %176 = arith.divf %171, %175 : vector<32x16xf32>
    %177 = vector.broadcast %158 : vector<1x16xf32> to vector<32x16xf32>
    %178 = arith.addf %176, %177 : vector<32x16xf32>
    %179 = vector.extract_strided_slice %69 {offsets = [0, 0], sizes = [16, 64], strides = [1, 1]} : vector<17x64xf32> to vector<16x64xf32>
    %cst_58 = arith.constant dense<0.000000e+00> : vector<32x64xf32>
    %180 = tpu.matmul %178, %179, %cst_58 {dimension_numbers = #tpu.dot_dimension_numbers<[1], [0], [0], [1], [0, 0, 1, 1], [], []>} : vector<32x16xf32>, vector<16x64xf32>, vector<32x64xf32> -> vector<32x64xf32>
    %181 = vector.extract_strided_slice %69 {offsets = [16, 0], sizes = [1, 64], strides = [1, 1]} : vector<17x64xf32> to vector<1x64xf32>
    %182 = vector.broadcast %181 : vector<1x64xf32> to vector<32x64xf32>
    %183 = arith.addf %180, %182 : vector<32x64xf32>
    %cst_59 = arith.constant 0.000000e+00 : f32
    %184 = vector.broadcast %cst_59 : f32 to vector<32x64xf32>
    %185 = arith.maximumf %183, %184 : vector<32x64xf32>
    %186 = vector.extract_strided_slice %71 {offsets = [0, 0], sizes = [64, 16], strides = [1, 1]} : vector<69x16xf32> to vector<64x16xf32>
    %cst_60 = arith.constant dense<0.000000e+00> : vector<32x16xf32>
    %187 = tpu.matmul %185, %186, %cst_60 {dimension_numbers = #tpu.dot_dimension_numbers<[1], [0], [0], [1], [0, 0, 1, 1], [], []>} : vector<32x64xf32>, vector<64x16xf32>, vector<32x16xf32> -> vector<32x16xf32>
    %188 = arith.addf %156, %187 : vector<32x16xf32>
    %189 = vector.extract_strided_slice %71 {offsets = [64, 0], sizes = [1, 16], strides = [1, 1]} : vector<69x16xf32> to vector<1x16xf32>
    %190 = vector.broadcast %189 : vector<1x16xf32> to vector<32x16xf32>
    %191 = arith.addf %188, %190 : vector<32x16xf32>
    %c1 = arith.constant 1 : index
    %c0_61 = arith.constant 0 : index
    %c0_62 = arith.constant 0 : index
    %c0_63 = arith.constant 0 : index
    %192 = vector.load %arg6[%c1, %c0_61, %c0_62, %c0_63] : memref<2x2x17x16xf32, #tpu.memory_space<vmem>>, vector<1x2x17x16xf32>
    %193 = vector.shape_cast %192 : vector<1x2x17x16xf32> to vector<2x17x16xf32>
    %c1_64 = arith.constant 1 : index
    %c0_65 = arith.constant 0 : index
    %c0_66 = arith.constant 0 : index
    %c0_67 = arith.constant 0 : index
    %194 = vector.load %arg7[%c1_64, %c0_65, %c0_66, %c0_67] : memref<2x2x32x17xf32, #tpu.memory_space<vmem>>, vector<1x2x32x17xf32>
    %195 = vector.shape_cast %194 : vector<1x2x32x17xf32> to vector<2x32x17xf32>
    %c1_68 = arith.constant 1 : index
    %c0_69 = arith.constant 0 : index
    %c0_70 = arith.constant 0 : index
    %196 = vector.load %arg8[%c1_68, %c0_69, %c0_70] : memref<2x17x64xf32, #tpu.memory_space<vmem>>, vector<1x17x64xf32>
    %197 = vector.shape_cast %196 : vector<1x17x64xf32> to vector<17x64xf32>
    %c1_71 = arith.constant 1 : index
    %c0_72 = arith.constant 0 : index
    %c0_73 = arith.constant 0 : index
    %198 = vector.load %arg9[%c1_71, %c0_72, %c0_73] : memref<2x69x16xf32, #tpu.memory_space<vmem>>, vector<1x69x16xf32>
    %199 = vector.shape_cast %198 : vector<1x69x16xf32> to vector<69x16xf32>
    %200 = vector.extract_strided_slice %199 {offsets = [65, 0], sizes = [1, 16], strides = [1, 1]} : vector<69x16xf32> to vector<1x16xf32>
    %201 = vector.extract_strided_slice %199 {offsets = [66, 0], sizes = [1, 16], strides = [1, 1]} : vector<69x16xf32> to vector<1x16xf32>
    %cst_74 = arith.constant dense<0.000000e+00> : vector<32xf32>
    %202 = vector.multi_reduction <add>, %191, %cst_74 [1] : vector<32x16xf32> to vector<32xf32>
    %203 = vector.shape_cast %202 : vector<32xf32> to vector<32x1xf32>
    %cst_75 = arith.constant 1.600000e+01 : f32
    %204 = vector.broadcast %cst_75 : f32 to vector<32x1xf32>
    %205 = arith.divf %203, %204 : vector<32x1xf32>
    %206 = vector.broadcast %205 : vector<32x1xf32> to vector<32x16xf32>
    %207 = arith.subf %191, %206 : vector<32x16xf32>
    %208 = arith.mulf %207, %207 : vector<32x16xf32>
    %cst_76 = arith.constant dense<0.000000e+00> : vector<32xf32>
    %209 = vector.multi_reduction <add>, %208, %cst_76 [1] : vector<32x16xf32> to vector<32xf32>
    %210 = vector.shape_cast %209 : vector<32xf32> to vector<32x1xf32>
    %cst_77 = arith.constant 0.0666666701 : f32
    %211 = vector.broadcast %cst_77 : f32 to vector<32x1xf32>
    %212 = arith.mulf %210, %211 : vector<32x1xf32>
    %213 = vector.broadcast %200 : vector<1x16xf32> to vector<32x16xf32>
    %214 = arith.mulf %213, %207 : vector<32x16xf32>
    %215 = math.sqrt %212 : vector<32x1xf32>
    %cst_78 = arith.constant 9.99999997E-7 : f32
    %216 = vector.broadcast %cst_78 : f32 to vector<32x1xf32>
    %217 = arith.addf %215, %216 : vector<32x1xf32>
    %218 = vector.broadcast %217 : vector<32x1xf32> to vector<32x16xf32>
    %219 = arith.divf %214, %218 : vector<32x16xf32>
    %220 = vector.broadcast %201 : vector<1x16xf32> to vector<32x16xf32>
    %221 = arith.addf %219, %220 : vector<32x16xf32>
    %222 = vector.shape_cast %221 : vector<32x16xf32> to vector<2x16x16xf32>
    %223 = vector.extract_strided_slice %193 {offsets = [0, 0, 0], sizes = [1, 16, 16], strides = [1, 1, 1]} : vector<2x17x16xf32> to vector<1x16x16xf32>
    %224 = vector.shape_cast %223 : vector<1x16x16xf32> to vector<16x16xf32>
    %cst_79 = arith.constant dense<0.000000e+00> : vector<32x16xf32>
    %225 = tpu.matmul %221, %224, %cst_79 {dimension_numbers = #tpu.dot_dimension_numbers<[1], [0], [0], [1], [0, 0, 1, 1], [], []>} : vector<32x16xf32>, vector<16x16xf32>, vector<32x16xf32> -> vector<32x16xf32>
    %226 = vector.extract_strided_slice %193 {offsets = [0, 16, 0], sizes = [1, 1, 16], strides = [1, 1, 1]} : vector<2x17x16xf32> to vector<1x1x16xf32>
    %227 = vector.shape_cast %226 : vector<1x1x16xf32> to vector<1x16xf32>
    %228 = vector.broadcast %227 : vector<1x16xf32> to vector<32x16xf32>
    %229 = arith.addf %225, %228 : vector<32x16xf32>
    %230 = vector.extract_strided_slice %229 {offsets = [0, 0], sizes = [32, 8], strides = [1, 1]} : vector<32x16xf32> to vector<32x8xf32>
    %231 = vector.shape_cast %230 : vector<32x8xf32> to vector<2x16x8xf32>
    %232 = vector.extract_strided_slice %229 {offsets = [0, 8], sizes = [32, 8], strides = [1, 1]} : vector<32x16xf32> to vector<32x8xf32>
    %233 = vector.shape_cast %232 : vector<32x8xf32> to vector<2x16x8xf32>
    %234 = vector.extract_strided_slice %195 {offsets = [0, 0, 0], sizes = [2, 32, 16], strides = [1, 1, 1]} : vector<2x32x17xf32> to vector<2x32x16xf32>
    "tpu.trace_start"() <{level = 10 : i32, message = "brd,bnd->brn"}> : () -> ()
    %cst_80 = arith.constant dense<0.000000e+00> : vector<2x32x16xf32>
    %235 = tpu.matmul %234, %222, %cst_80 {dimension_numbers = #tpu.dot_dimension_numbers<[2], [2], [1], [1], [0, 0, 0, 1, 1, 1], [0], [0]>} : vector<2x32x16xf32>, vector<2x16x16xf32>, vector<2x32x16xf32> -> vector<2x32x16xf32>
    "tpu.trace_stop"() : () -> ()
    %236 = vector.extract_strided_slice %195 {offsets = [0, 0, 16], sizes = [2, 32, 1], strides = [1, 1, 1]} : vector<2x32x17xf32> to vector<2x32x1xf32>
    %237 = vector.broadcast %236 : vector<2x32x1xf32> to vector<2x32x16xf32>
    %238 = arith.addf %235, %237 : vector<2x32x16xf32>
    %239 = vector.extract_strided_slice %238 {offsets = [0, 0, 0], sizes = [2, 8, 16], strides = [1, 1, 1]} : vector<2x32x16xf32> to vector<2x8x16xf32>
    %240 = vector.extract_strided_slice %238 {offsets = [0, 8, 0], sizes = [2, 8, 16], strides = [1, 1, 1]} : vector<2x32x16xf32> to vector<2x8x16xf32>
    %241 = vector.extract_strided_slice %238 {offsets = [0, 16, 0], sizes = [2, 8, 16], strides = [1, 1, 1]} : vector<2x32x16xf32> to vector<2x8x16xf32>
    %242 = vector.extract_strided_slice %238 {offsets = [0, 24, 0], sizes = [2, 8, 16], strides = [1, 1, 1]} : vector<2x32x16xf32> to vector<2x8x16xf32>
    %243 = vector.shape_cast %231 : vector<2x16x8xf32> to vector<2x16x8x1xf32>
    %244 = vector.shape_cast %239 : vector<2x8x16xf32> to vector<2x1x8x16xf32>
    %245 = vector.broadcast %243 : vector<2x16x8x1xf32> to vector<2x16x8x16xf32>
    %246 = vector.broadcast %244 : vector<2x1x8x16xf32> to vector<2x16x8x16xf32>
    %247 = arith.mulf %245, %246 : vector<2x16x8x16xf32>
    %248 = vector.shape_cast %233 : vector<2x16x8xf32> to vector<2x16x8x1xf32>
    %249 = vector.shape_cast %240 : vector<2x8x16xf32> to vector<2x1x8x16xf32>
    %250 = vector.broadcast %248 : vector<2x16x8x1xf32> to vector<2x16x8x16xf32>
    %251 = vector.broadcast %249 : vector<2x1x8x16xf32> to vector<2x16x8x16xf32>
    %252 = arith.mulf %250, %251 : vector<2x16x8x16xf32>
    %253 = arith.addf %247, %252 : vector<2x16x8x16xf32>
    %cst_81 = arith.constant 0.707106769 : f32
    %254 = vector.broadcast %cst_81 : f32 to vector<2x16x8x16xf32>
    %255 = arith.mulf %253, %254 : vector<2x16x8x16xf32>
    %256 = vector.broadcast %4 : vector<2x16x1x16xf32> to vector<2x16x8x16xf32>
    %257 = arith.addf %255, %256 : vector<2x16x8x16xf32>
    %cst_82 = arith.constant dense<0xFF800000> : vector<2x16x8xf32>
    %258 = vector.multi_reduction <maximumf>, %257, %cst_82 [3] : vector<2x16x8x16xf32> to vector<2x16x8xf32>
    %259 = vector.shape_cast %258 : vector<2x16x8xf32> to vector<2x16x8x1xf32>
    %260 = vector.broadcast %259 : vector<2x16x8x1xf32> to vector<2x16x8x16xf32>
    %261 = arith.subf %257, %260 : vector<2x16x8x16xf32>
    %262 = math.exp %261 : vector<2x16x8x16xf32>
    %cst_83 = arith.constant dense<0.000000e+00> : vector<2x16x8xf32>
    %263 = vector.multi_reduction <add>, %262, %cst_83 [3] : vector<2x16x8x16xf32> to vector<2x16x8xf32>
    %264 = vector.shape_cast %263 : vector<2x16x8xf32> to vector<2x16x8x1xf32>
    %265 = vector.broadcast %264 : vector<2x16x8x1xf32> to vector<2x16x8x16xf32>
    %266 = arith.divf %262, %265 : vector<2x16x8x16xf32>
    %267 = vector.shape_cast %241 : vector<2x8x16xf32> to vector<2x1x8x16xf32>
    %268 = vector.broadcast %267 : vector<2x1x8x16xf32> to vector<2x16x8x16xf32>
    %269 = arith.mulf %266, %268 : vector<2x16x8x16xf32>
    %cst_84 = arith.constant dense<0.000000e+00> : vector<2x16x8xf32>
    %270 = vector.multi_reduction <add>, %269, %cst_84 [3] : vector<2x16x8x16xf32> to vector<2x16x8xf32>
    %271 = vector.shape_cast %242 : vector<2x8x16xf32> to vector<2x1x8x16xf32>
    %272 = vector.broadcast %271 : vector<2x1x8x16xf32> to vector<2x16x8x16xf32>
    %273 = arith.mulf %266, %272 : vector<2x16x8x16xf32>
    %cst_85 = arith.constant dense<0.000000e+00> : vector<2x16x8xf32>
    %274 = vector.multi_reduction <add>, %273, %cst_85 [3] : vector<2x16x8x16xf32> to vector<2x16x8xf32>
    %275 = tpu.concatenate %270, %274 in 2 : vector<2x16x8xf32>, vector<2x16x8xf32> -> vector<2x16x16xf32>
    %276 = vector.shape_cast %275 : vector<2x16x16xf32> to vector<32x16xf32>
    %277 = vector.extract_strided_slice %193 {offsets = [1, 0, 0], sizes = [1, 16, 16], strides = [1, 1, 1]} : vector<2x17x16xf32> to vector<1x16x16xf32>
    %278 = vector.shape_cast %277 : vector<1x16x16xf32> to vector<16x16xf32>
    %cst_86 = arith.constant dense<0.000000e+00> : vector<32x16xf32>
    %279 = tpu.matmul %276, %278, %cst_86 {dimension_numbers = #tpu.dot_dimension_numbers<[1], [0], [0], [1], [0, 0, 1, 1], [], []>} : vector<32x16xf32>, vector<16x16xf32>, vector<32x16xf32> -> vector<32x16xf32>
    %280 = arith.addf %191, %279 : vector<32x16xf32>
    %281 = vector.extract_strided_slice %193 {offsets = [1, 16, 0], sizes = [1, 1, 16], strides = [1, 1, 1]} : vector<2x17x16xf32> to vector<1x1x16xf32>
    %282 = vector.shape_cast %281 : vector<1x1x16xf32> to vector<1x16xf32>
    %283 = vector.broadcast %282 : vector<1x16xf32> to vector<32x16xf32>
    %284 = arith.addf %280, %283 : vector<32x16xf32>
    %285 = vector.extract_strided_slice %199 {offsets = [67, 0], sizes = [1, 16], strides = [1, 1]} : vector<69x16xf32> to vector<1x16xf32>
    %286 = vector.extract_strided_slice %199 {offsets = [68, 0], sizes = [1, 16], strides = [1, 1]} : vector<69x16xf32> to vector<1x16xf32>
    %cst_87 = arith.constant dense<0.000000e+00> : vector<32xf32>
    %287 = vector.multi_reduction <add>, %284, %cst_87 [1] : vector<32x16xf32> to vector<32xf32>
    %288 = vector.shape_cast %287 : vector<32xf32> to vector<32x1xf32>
    %cst_88 = arith.constant 1.600000e+01 : f32
    %289 = vector.broadcast %cst_88 : f32 to vector<32x1xf32>
    %290 = arith.divf %288, %289 : vector<32x1xf32>
    %291 = vector.broadcast %290 : vector<32x1xf32> to vector<32x16xf32>
    %292 = arith.subf %284, %291 : vector<32x16xf32>
    %293 = arith.mulf %292, %292 : vector<32x16xf32>
    %cst_89 = arith.constant dense<0.000000e+00> : vector<32xf32>
    %294 = vector.multi_reduction <add>, %293, %cst_89 [1] : vector<32x16xf32> to vector<32xf32>
    %295 = vector.shape_cast %294 : vector<32xf32> to vector<32x1xf32>
    %cst_90 = arith.constant 0.0666666701 : f32
    %296 = vector.broadcast %cst_90 : f32 to vector<32x1xf32>
    %297 = arith.mulf %295, %296 : vector<32x1xf32>
    %298 = vector.broadcast %285 : vector<1x16xf32> to vector<32x16xf32>
    %299 = arith.mulf %298, %292 : vector<32x16xf32>
    %300 = math.sqrt %297 : vector<32x1xf32>
    %cst_91 = arith.constant 9.99999997E-7 : f32
    %301 = vector.broadcast %cst_91 : f32 to vector<32x1xf32>
    %302 = arith.addf %300, %301 : vector<32x1xf32>
    %303 = vector.broadcast %302 : vector<32x1xf32> to vector<32x16xf32>
    %304 = arith.divf %299, %303 : vector<32x16xf32>
    %305 = vector.broadcast %286 : vector<1x16xf32> to vector<32x16xf32>
    %306 = arith.addf %304, %305 : vector<32x16xf32>
    %307 = vector.extract_strided_slice %197 {offsets = [0, 0], sizes = [16, 64], strides = [1, 1]} : vector<17x64xf32> to vector<16x64xf32>
    %cst_92 = arith.constant dense<0.000000e+00> : vector<32x64xf32>
    %308 = tpu.matmul %306, %307, %cst_92 {dimension_numbers = #tpu.dot_dimension_numbers<[1], [0], [0], [1], [0, 0, 1, 1], [], []>} : vector<32x16xf32>, vector<16x64xf32>, vector<32x64xf32> -> vector<32x64xf32>
    %309 = vector.extract_strided_slice %197 {offsets = [16, 0], sizes = [1, 64], strides = [1, 1]} : vector<17x64xf32> to vector<1x64xf32>
    %310 = vector.broadcast %309 : vector<1x64xf32> to vector<32x64xf32>
    %311 = arith.addf %308, %310 : vector<32x64xf32>
    %cst_93 = arith.constant 0.000000e+00 : f32
    %312 = vector.broadcast %cst_93 : f32 to vector<32x64xf32>
    %313 = arith.maximumf %311, %312 : vector<32x64xf32>
    %314 = vector.extract_strided_slice %199 {offsets = [0, 0], sizes = [64, 16], strides = [1, 1]} : vector<69x16xf32> to vector<64x16xf32>
    %cst_94 = arith.constant dense<0.000000e+00> : vector<32x16xf32>
    %315 = tpu.matmul %313, %314, %cst_94 {dimension_numbers = #tpu.dot_dimension_numbers<[1], [0], [0], [1], [0, 0, 1, 1], [], []>} : vector<32x64xf32>, vector<64x16xf32>, vector<32x16xf32> -> vector<32x16xf32>
    %316 = arith.addf %284, %315 : vector<32x16xf32>
    %317 = vector.extract_strided_slice %199 {offsets = [64, 0], sizes = [1, 16], strides = [1, 1]} : vector<69x16xf32> to vector<1x16xf32>
    %318 = vector.broadcast %317 : vector<1x16xf32> to vector<32x16xf32>
    %319 = arith.addf %316, %318 : vector<32x16xf32>
    %320 = vector.extract_strided_slice %2 {offsets = [32, 0], sizes = [1, 16], strides = [1, 1]} : vector<34x16xf32> to vector<1x16xf32>
    %321 = vector.extract_strided_slice %2 {offsets = [33, 0], sizes = [1, 16], strides = [1, 1]} : vector<34x16xf32> to vector<1x16xf32>
    %cst_95 = arith.constant dense<0.000000e+00> : vector<32xf32>
    %322 = vector.multi_reduction <add>, %319, %cst_95 [1] : vector<32x16xf32> to vector<32xf32>
    %323 = vector.shape_cast %322 : vector<32xf32> to vector<32x1xf32>
    %cst_96 = arith.constant 1.600000e+01 : f32
    %324 = vector.broadcast %cst_96 : f32 to vector<32x1xf32>
    %325 = arith.divf %323, %324 : vector<32x1xf32>
    %326 = vector.broadcast %325 : vector<32x1xf32> to vector<32x16xf32>
    %327 = arith.subf %319, %326 : vector<32x16xf32>
    %328 = arith.mulf %327, %327 : vector<32x16xf32>
    %cst_97 = arith.constant dense<0.000000e+00> : vector<32xf32>
    %329 = vector.multi_reduction <add>, %328, %cst_97 [1] : vector<32x16xf32> to vector<32xf32>
    %330 = vector.shape_cast %329 : vector<32xf32> to vector<32x1xf32>
    %cst_98 = arith.constant 0.0666666701 : f32
    %331 = vector.broadcast %cst_98 : f32 to vector<32x1xf32>
    %332 = arith.mulf %330, %331 : vector<32x1xf32>
    %333 = vector.broadcast %320 : vector<1x16xf32> to vector<32x16xf32>
    %334 = arith.mulf %333, %327 : vector<32x16xf32>
    %335 = math.sqrt %332 : vector<32x1xf32>
    %cst_99 = arith.constant 9.99999997E-7 : f32
    %336 = vector.broadcast %cst_99 : f32 to vector<32x1xf32>
    %337 = arith.addf %335, %336 : vector<32x1xf32>
    %338 = vector.broadcast %337 : vector<32x1xf32> to vector<32x16xf32>
    %339 = arith.divf %334, %338 : vector<32x16xf32>
    %340 = vector.broadcast %321 : vector<1x16xf32> to vector<32x16xf32>
    %341 = arith.addf %339, %340 : vector<32x16xf32>
    %cst_100 = arith.constant dense<0.000000e+00> : vector<32x8xf32>
    %342 = tpu.matmul %341, %8, %cst_100 {dimension_numbers = #tpu.dot_dimension_numbers<[1], [0], [0], [1], [0, 0, 1, 1], [], []>} : vector<32x16xf32>, vector<16x8xf32>, vector<32x8xf32> -> vector<32x8xf32>
    %343 = vector.broadcast %10 : vector<1x8xf32> to vector<32x8xf32>
    %344 = arith.addf %342, %343 : vector<32x8xf32>
    %c0_101 = arith.constant 0 : index
    %c0_102 = arith.constant 0 : index
    %345 = vector.load %arg10[%c0_101, %c0_102] : memref<32x8xf32, #tpu.memory_space<vmem>>, vector<32x8xf32>
    tpu.vector_store %arg10[%c0_101, %c0_102], %344 {strides = array<i32>} : memref<32x8xf32, #tpu.memory_space<vmem>>, vector<32x8xf32>,
    return
  }
}

</mosaic_0001>

<bundles_post_ra>
// kernel: graph_transformer_forward.1
= control target key start
LH: loop header
LB: loop body
LE: loop exit
PB: predicated region body
PF: predicated region fallthrough
CT: control target
= control target key end

     0   :  { %vm91_vm0 = vcmask 465920   ;;  %vm104_vm1 = vcmask 1040384   ;;  %vm12115_vm2 = vcmask 130048   ;;  %v503_v29 = vlaneseq  ;;  %s7343_s29 = smov 8   ;;  %s12104_s0 = inlined_call_operand.vmem [shape: f32[2,24,57], index: 0, kind: input, shape index: {}]   ;;  %s12105_s2 = inlined_call_operand.vmem [shape: f32[89,8], index: 2, kind: input, shape index: {}]   ;;  %s12106_s3 = inlined_call_operand.vmem [shape: f32[2,64,16], index: 3, kind: input, shape index: {}]   ;;  %s12107_s4 = inlined_call_operand.vmem [shape: f32[2,32], index: 4, kind: input, shape index: {}]   ;;  %s12108_s7 = inlined_call_operand.vmem [shape: f32[2,2,32,17], index: 7, kind: input, shape index: {}]   ;;  %s12109_s5 = inlined_call_operand.vmem [shape: f32[34,16], index: 5, kind: input, shape index: {}]   ;;  %s12110_s6 = inlined_call_operand.vmem [shape: f32[2,2,17,16], index: 6, kind: input, shape index: {}]   ;;  %s12111_s9 = inlined_call_operand.vmem [shape: f32[2,69,16], index: 9, kind: input, shape index: {}]   ;;  %s12112_s1 = inlined_call_operand.vmem [shape: f32[2,16,1,16], index: 1, kind: input, shape index: {}]   ;;  %s12113_s8 = inlined_call_operand.vmem [shape: f32[2,17,64], index: 8, kind: input, shape index: {}]   ;;  %s12114_s10 = inlined_call_operand.vmem [shape: f32[32,8], index: 10, kind: output, shape index: {}]  }
   0x1   :  { %v36_v0 = vld [vmem:[%s12104_s0 + $0x8] sm:$0xff]  ;;  %v39_v1 = vld [vmem:[%s12104_s0 + $0x20] sm:$0xff]  ;;  %v48_v3 = vld [vmem:[%s12105_s2 + $0x38] sm:$0xff]  ;;  %vm452_vm3 = vcmask 261120  }
   0x2   :  { %6630 = vmatpush.xpose.msk.msra.mxu1 %vm91_vm0, %v36_v0  ;;  %v35_v2 = vld [vmem:[%s12104_s0] sm:$0xff]  ;;  %6633 = vmatpush.xpose.msk.msra.mxu2 %vm91_vm0, %v39_v1  ;;  %v47_v4 = vld [vmem:[%s12105_s2 + $0x30] sm:$0xff]  ;;  %v38_v5 = vld [vmem:[%s12104_s0 + $0x18] sm:$0xff]  ;;  %v7516_v31 = vshrl.u32 %v503_v29, 7 }
   0x3   :  { %6625 = vmatpush.msk.msra.mxu0 %vm104_vm1, %v48_v3  ;;  %v46_v6 = vld [vmem:[%s12105_s2 + $0x28] sm:$0xff]  ;;  %v37_v7 = vld [vmem:[%s12104_s0 + $0x10] sm:$0xff]  ;;  %v45_v9 = vld [vmem:[%s12105_s2 + $0x20] sm:$0xff] }
   0x4   :  { %v40_v8 = vld [vmem:[%s12104_s0 + $0x28] sm:$0xff]  ;;  %v204_v10 = vld [vmem:[%s12106_s3 + $0x78] sm:$0xff]  ;;  %v203_v12 = vld [vmem:[%s12106_s3 + $0x70] sm:$0xff]  ;;  %12143 = vst [vmem:[#allocation2_spill] sm:$0xff] %v7516_v31  ;;  %6758 = vset.pattern.permute.xlu0 %v7516_v31  ;;  %6759 = vset.pattern.permute.xlu1 %v7516_v31 }
   0x5   :  { %117 = vmatpush.msra.mxu0 %v47_v4  ;;  %v44_v11 = vld [vmem:[%s12105_s2 + $0x18] sm:$0xff]  ;;  %v43_v13 = vld [vmem:[%s12105_s2 + $0x10] sm:$0xff]  ;;  %v42_v14 = vld [vmem:[%s12105_s2 + $0x8] sm:$0xff]  ;;  %6757 = vset.pattern.permute.xlu2 %v7516_v31 }
   0x6   :  { %6631 = vmatpush.xpose.msk.msra.mxu1 %vm91_vm0, %v35_v2  ;;  %6634 = vmatpush.xpose.msk.msra.mxu2 %vm91_vm0, %v38_v5  ;;  %v202_v15 = vld [vmem:[%s12106_s3 + $0x68] sm:$0xff]  ;;  %v41_v16 = vld [vmem:[%s12105_s2] sm:$0xff]  ;;  %v196_v17 = vld [vmem:[%s12106_s3 + $0x38] sm:$0xff] }
   0x7   :  { %118 = vmatpush.msra.mxu0 %v46_v6  ;;  %v195_v18 = vld [vmem:[%s12106_s3 + $0x30] sm:$0xff]  ;;  %v194_v19 = vld [vmem:[%s12106_s3 + $0x28] sm:$0xff]  ;;  %v193_v20 = vld [vmem:[%s12106_s3 + $0x20] sm:$0xff] }
   0x8   :  { %v192_v21 = vld [vmem:[%s12106_s3 + $0x18] sm:$0xff]  ;;  %v191_v22 = vld [vmem:[%s12106_s3 + $0x10] sm:$0xff]  ;;  %v190_v23 = vld [vmem:[%s12106_s3 + $0x8] sm:$0xff] }
   0x9   :  { %6632 = vmatmul.msk.f32.vlgmr.msra.gmra.mxu1 %vm91_vm0, %v37_v7  ;;  %6635 = vmatmul.msk.f32.vlgmr.msra.gmra.mxu2 %vm91_vm0, %v40_v8  ;;  %v189_v24 = vld [vmem:[%s12106_s3] sm:$0xff]  ;;  %v200_v26 = vld [vmem:[%s12106_s3 + $0x58] sm:$0xff]  ;;  %v199_v27 = vld [vmem:[%s12106_s3 + $0x50] sm:$0xff] }
   0xa   :  { %6645 = vmatpush.xpose.msk.msrb.mxu1 %vm12115_vm2, %v204_v10  ;;  %119 = vmatpush.msra.mxu0 %v45_v9  ;;  %v201_v25 = vld [vmem:[%s12106_s3 + $0x60] sm:$0xff]  ;;  %v198_v28 = vld [vmem:[%s12106_s3 + $0x48] sm:$0xff]  ;;  %v51_v32 = vld [vmem:[%s12105_s2 + $0x50] sm:$0xff] }
   0xb   :  { %v197_v30 = vld [vmem:[%s12106_s3 + $0x40] sm:$0xff]  ;;  %v509_v33 = vperm.slane %v51_v32, 1  ;;  %v537_v34 = vperm.slane %v51_v32, 5  ;;  %v516_v42 = vperm.slane %v51_v32, 2  ;;  %v502_v43 = vperm.slane %v51_v32, 0  ;;  %s7340_s3 = smov 96  }
   0xc   :  { %120 = vmatpush.msra.mxu0 %v44_v11  ;;  %v530_v45 = vperm.slane %v51_v32, 4  ;;  %v523_v46 = vperm.slane %v51_v32, 3  ;;  %v544_v47 = vperm.slane %v51_v32, 6  ;;  %v551_v49 = vperm.slane %v51_v32, 7  ;;  %v58_v56 = vld [vmem:[%s12107_s4] sm:$0x3] }
   0xd   :  { %514 = vperm.xlu0 %6758, %v509_v33   ;;  %521 = vperm.xlu1 %6759, %v516_v42   ;;  %v7554_v60 = vperm.slane %v58_v56, 0 }
   0xe   :  { %6646 = vmatpush.xpose.msk.msrb.mxu1 %vm12115_vm2, %v203_v12  ;;  %121 = vmatpush.msra.mxu0 %v43_v13 }
   0xf   :  { %507 = vperm.xlu2 %6757, %v502_v43  }
  0x10   :  { %122 = vmatpush.msra.mxu0 %v42_v14  ;;  %v7562_v14 = vperm.slane %v58_v56, 1 }
  0x12   :  { %6647 = vmatpush.xpose.msk.msrb.mxu1 %vm12115_vm2, %v202_v15  ;;  %123 = vmatpush.msra.mxu0 %v41_v16 }
  0x13   :  { %6626 = vmatmul.msk.f32.vlgmr.msra.gmra.mxu0 %vm91_vm0, %v35_v2 }
  0x14   :  { %6636 = vmatpush.xpose.msk.msrb.mxu0 %vm12115_vm2, %v196_v17 }
  0x15   :  { %542 = vperm.xlu0 %6758, %v537_v34   ;;  %535 = vperm.xlu1 %6759, %v530_v45  }
  0x16   :  { %6648 = vmatpush.xpose.msk.msrb.mxu1 %vm12115_vm2, %v201_v25 }
  0x17   :  { %528 = vperm.xlu2 %6757, %v523_v46  }
  0x18   :  { %6637 = vmatpush.xpose.msk.msrb.mxu0 %vm12115_vm2, %v195_v18 }
  0x1a   :  { %6649 = vmatpush.xpose.msk.msrb.mxu1 %vm12115_vm2, %v200_v26 }
  0x1b   :  { %6627 = vmatmul.msk.f32.gmra.mxu0 %vm91_vm0, %v36_v0 }
  0x1c   :  { %6638 = vmatpush.xpose.msk.msrb.mxu0 %vm12115_vm2, %v194_v19 }
  0x1e   :  { %6650 = vmatpush.xpose.msk.msrb.mxu1 %vm12115_vm2, %v199_v27 }
  0x1f   :  { %549 = vperm.xlu2 %6757, %v544_v47  }
  0x20   :  { %6639 = vmatpush.xpose.msk.msrb.mxu0 %vm12115_vm2, %v193_v20 }
  0x22   :  { %6651 = vmatpush.xpose.msk.msrb.mxu1 %vm12115_vm2, %v198_v28 }
  0x23   :  { %6628 = vmatmul.msk.f32.gmra.mxu0 %vm91_vm0, %v38_v5 }
  0x24   :  { %6640 = vmatpush.xpose.msk.msrb.mxu0 %vm12115_vm2, %v192_v21 }
  0x26   :  { %6652 = vmatpush.xpose.msk.msrb.mxu1 %vm12115_vm2, %v197_v30 }
  0x28   :  { %6641 = vmatpush.xpose.msk.msrb.mxu0 %vm12115_vm2, %v191_v22 }
  0x2b   :  { %6629 = vmatmul.msk.f32.gmra.mxu0 %vm91_vm0, %v39_v1 }
  0x2c   :  { %6642 = vmatpush.xpose.msk.msrb.mxu0 %vm12115_vm2, %v190_v23 }
  0x30   :  { %6643 = vmatpush.xpose.msk.msrb.mxu0 %vm12115_vm2, %v189_v24 }
  0x7f   :  { %v7541_v51 = vpop.permute.xlu0 %514 }
  0x86   :  { %v161_v35 = vpop.f32.mrf.mxu1 }
  0x87   :  { %v187_v36 = vmax.f32 %v161_v35, 0.0  ;;  %v7543_v52 = vpop.permute.xlu0 %542 }
  0x89   :  { %6644 = vmatmul.msk.f32.vlgmr.msrb.gmra.mxu0 %vm12115_vm2, %v187_v36 }
  0x8c   :  { %v184_v37 = vpop.f32.mrf.mxu2 }
  0x8d   :  { %v188_v38 = vmax.f32 %v184_v37, 0.0 }
  0x8f   :  { %6653 = vmatmul.msk.f32.vlgmr.msrb.gmra.mxu1 %vm12115_vm2, %v188_v38 }
  0x90   :  { %v7527_v39 = vpop.f32.mrf.mxu0 }
  0x98   :  { %v7529_v40 = vpop.f32.mrf.mxu0 }
  0xa0   :  { %v7531_v41 = vpop.f32.mrf.mxu0 }
  0xa8   :  { %v7533_v44 = vpop.f32.mrf.mxu0 }
 0x106   :  { %v7535_v48 = vpop.f32.mrf.mxu0 }
 0x107   :  { %348 = vrot.lane.b32.xlu0 %v7535_v48, %s7340_s3  ;;  %v305_v53 = vrot.slane %v7535_v48, 4  ;;  %v303_v54 = vrot.slane %v7535_v48, 2  ;;  %v306_v55 = vrot.slane %v7535_v48, 5  ;;  %v302_v57 = vrot.slane %v7535_v48, 1 }
 0x108   :  { %v316_v58 = vperm.slane %v7535_v48, 0  ;;  %v308_v59 = vrot.slane %v7535_v48, 7  ;;  %v304_v2 = vrot.slane %v7535_v48, 3  ;;  %v307_v9 = vrot.slane %v7535_v48, 6 }
 0x109   :  { %v320_v61 = vperm.slane %v305_v53, 0  ;;  %v318_v62 = vperm.slane %v303_v54, 0  ;;  %v321_v63 = vperm.slane %v306_v55, 0  ;;  %v317_v1 = vperm.slane %v302_v57, 0 }
 0x10a   :  { %v323_v8 = vperm.slane %v308_v59, 0  ;;  %v319_v16 = vperm.slane %v304_v2, 0  ;;  %v322_v46 = vperm.slane %v307_v9, 0 }
 0x10c   :  { %v7538_v50 = vpop.f32.mrf.mxu1 }
 0x10d   :  { %v309_v35 = vrot.slane %v7538_v50, 1  ;;  %v311_v42 = vrot.slane %v7538_v50, 3  ;;  %v314_v47 = vrot.slane %v7538_v50, 6  ;;  %v324_v9 = vperm.slane %v7538_v50, 0 }
 0x10f   :  { %556 = vperm.xlu0 %6758, %v551_v49   ;;  %v325_v54 = vperm.slane %v309_v35, 0  ;;  %v327_v56 = vperm.slane %v311_v42, 0 }
 0x117   :  { %350 = vrot.lane.b32.xlu0 %v7538_v50, %s7340_s3 }
 0x179   :  { %v349_v0 = vpop.permute.xlu0 %348 }
 0x17a   :  { %v354_v3 = vadd.f32 %v349_v0, %v316_v58  ;;  %v358_v4 = vadd.f32 %v349_v0, %v320_v61  ;;  %v356_v5 = vadd.f32 %v349_v0, %v318_v62  ;;  %v359_v6 = vadd.f32 %v349_v0, %v321_v63 }
 0x17b   :  { %v355_v7 = vadd.f32 %v349_v0, %v317_v1  ;;  %v361_v20 = vadd.f32 %v349_v0, %v323_v8  ;;  %v357_v21 = vadd.f32 %v349_v0, %v319_v16  ;;  %v360_v49 = vadd.f32 %v349_v0, %v322_v46 }
 0x17c   :  { %v371_v10 = vadd.f32 %v7554_v60, %v354_v3  ;;  %v375_v11 = vadd.f32 %v7554_v60, %v358_v4  ;;  %v373_v12 = vadd.f32 %v7554_v60, %v356_v5  ;;  %v376_v13 = vadd.f32 %v7554_v60, %v359_v6 }
 0x17d   :  { %v372_v15 = vadd.f32 %v7554_v60, %v355_v7  ;;  %v374_v38 = vadd.f32 %v7554_v60, %v357_v21  ;;  %v378_v45 = vadd.f32 %v7554_v60, %v361_v20  ;;  %v330_v62 = vperm.slane %v314_v47, 0 }
 0x17e   :  { %vm387_vm4 = vcmp.ge.f32.partialorder %v371_v10, 0.0  ;;  %v403_v17 = vmul.f32 0.2, %v371_v10  ;;  %vm391_vm5 = vcmp.ge.f32.partialorder %v375_v11, 0.0  ;;  %v407_v18 = vmul.f32 0.2, %v375_v11 }
 0x17f   :  { %vm389_vm6 = vcmp.ge.f32.partialorder %v373_v12, 0.0  ;;  %v405_v19 = vmul.f32 0.2, %v373_v12  ;;  %v408_v24 = vmul.f32 0.2, %v376_v13  ;;  %vm388_vm7 = vcmp.ge.f32.partialorder %v372_v15, 0.0 }
 0x180   :  { %v419_v22 = vsel %vm387_vm4, %v371_v10, %v403_v17  ;;  %v423_v23 = vsel %vm391_vm5, %v375_v11, %v407_v18  ;;  %v404_v25 = vmul.f32 0.2, %v372_v15  ;;  %vm392_vm8 = vcmp.ge.f32.partialorder %v376_v13, 0.0 }
 0x181   :  { %v7565_v26 = vpop.permute.xlu0 %556  ;;  %v436_v27 = vmul.f32 %v7562_v14, %v419_v22  ;;  %v440_v28 = vmul.f32 %v7562_v14, %v423_v23  ;;  %v421_v30 = vsel %vm389_vm6, %v373_v12, %v405_v19  ;;  %v424_v43 = vsel %vm392_vm8, %v376_v13, %v408_v24 }
 0x182   :  { %v438_v32 = vmul.f32 %v7562_v14, %v421_v30  ;;  %v420_v37 = vsel %vm388_vm7, %v372_v15, %v404_v25  ;;  %v441_v53 = vmul.f32 %v7562_v14, %v424_v43  ;;  %v406_v55 = vmul.f32 0.2, %v374_v38 }
 0x183   :  { %v453_v33 = vsel %vm452_vm3, %v436_v27, 0.0  ;;  %v465_v34 = vsel %vm452_vm3, %v440_v28, 0.0  ;;  %v437_v48 = vmul.f32 %v7562_v14, %v420_v37  ;;  %v410_v58 = vmul.f32 0.2, %v378_v45 }
 0x184   :  { %454 = vadd.xlane.f32.xlu1 %v453_v33  ;;  %466 = vadd.xlane.f32.xlu0 %v465_v34  ;;  %v459_v36 = vsel %vm452_vm3, %v438_v32, 0.0  ;;  %vm390_vm9 = vcmp.ge.f32.partialorder %v374_v38, 0.0  ;;  %vm394_vm10 = vcmp.ge.f32.partialorder %v378_v45, 0.0  ;;  %v377_v1 = vadd.f32 %v7554_v60, %v360_v49 }
 0x185   :  { %460 = vadd.xlane.f32.xlu2 %v459_v36  ;;  %v456_v63 = vsel %vm452_vm3, %v437_v48, 0.0  ;;  %v315_v0 = vrot.slane %v7538_v50, 7  ;;  %v468_v2 = vsel %vm452_vm3, %v441_v53, 0.0  ;;  %v422_v4 = vsel %vm390_vm9, %v374_v38, %v406_v55 }
 0x186   :  { %v426_v6 = vsel %vm394_vm10, %v378_v45, %v410_v58  ;;  %v439_v10 = vmul.f32 %v7562_v14, %v422_v4  ;;  %vm393_vm12 = vcmp.ge.f32.partialorder %v377_v1, 0.0  ;;  %v409_v11 = vmul.f32 0.2, %v377_v1 }
 0x187   :  { %v331_v12 = vperm.slane %v315_v0, 0  ;;  %v443_v15 = vmul.f32 %v7562_v14, %v426_v6  ;;  %v310_v21 = vrot.slane %v7538_v50, 2  ;;  %v312_v47 = vrot.slane %v7538_v50, 4 }
 0x188   :  { %v462_v23 = vsel %vm452_vm3, %v439_v10, 0.0  ;;  %v425_v24 = vsel %vm393_vm12, %v377_v1, %v409_v11  ;;  %vm666_vm6 = vcmask 1042434   ;;  %vm668_vm7 = vcmask 1043459  }
 0x189   :  { %v7580_v57 = vpop.permute.xlu0 %350  ;;  %v474_v25 = vsel %vm452_vm3, %v443_v15, 0.0  ;;  %v326_v33 = vperm.slane %v310_v21, 0  ;;  %v442_v35 = vmul.f32 %v7562_v14, %v425_v24  ;;  %v328_v58 = vperm.slane %v312_v47, 0 }
 0x18a   :  { %v363_v59 = vadd.f32 %v7580_v57, %v325_v54  ;;  %v365_v61 = vadd.f32 %v7580_v57, %v327_v56  ;;  %v368_v5 = vadd.f32 %v7580_v57, %v330_v62  ;;  %v362_v16 = vadd.f32 %v7580_v57, %v324_v9 }
 0x18b   :  { %v369_v20 = vadd.f32 %v7580_v57, %v331_v12  ;;  %v364_v43 = vadd.f32 %v7580_v57, %v326_v33  ;;  %v471_v49 = vsel %vm452_vm3, %v442_v35, 0.0  ;;  %v366_v62 = vadd.f32 %v7580_v57, %v328_v58 }
 0x18c   :  { %457 = vadd.xlane.f32.xlu1 %v456_v63  ;;  %v380_v3 = vadd.f32 %v7554_v60, %v363_v59  ;;  %v382_v7 = vadd.f32 %v7554_v60, %v365_v61  ;;  %v385_v17 = vadd.f32 %v7554_v60, %v368_v5  ;;  %v379_v27 = vadd.f32 %v7554_v60, %v362_v16  ;;  %v522_v16 = vpop.permute.xlu1 %521 }
 0x18d   :  { %469 = vadd.xlane.f32.xlu2 %v468_v2  ;;  %v386_v32 = vadd.f32 %v7554_v60, %v369_v20  ;;  %v381_v55 = vadd.f32 %v7554_v60, %v364_v43  ;;  %v313_v63 = vrot.slane %v7538_v50, 5  ;;  %v383_v2 = vadd.f32 %v7554_v60, %v366_v62 }
 0x18e   :  { %vm396_vm11 = vcmp.ge.f32.partialorder %v380_v3, 0.0  ;;  %v412_v8 = vmul.f32 0.2, %v380_v3  ;;  %v414_v19 = vmul.f32 0.2, %v382_v7  ;;  %vm398_vm13 = vcmp.ge.f32.partialorder %v382_v7, 0.0 }
 0x18f   :  { %vm401_vm14 = vcmp.ge.f32.partialorder %v385_v17, 0.0  ;;  %v417_v28 = vmul.f32 0.2, %v385_v17  ;;  %vm402_vm15 = vcmp.ge.f32.partialorder %v386_v32, 0.0  ;;  %v418_v37 = vmul.f32 0.2, %v386_v32 }
 0x190   :  { %v428_v13 = vsel %vm396_vm11, %v380_v3, %v412_v8  ;;  %v430_v30 = vsel %vm398_vm13, %v382_v7, %v414_v19  ;;  %v411_v42 = vmul.f32 0.2, %v379_v27  ;;  %vm395_vm0 = vcmp.ge.f32.partialorder %v379_v27, 0.0 }
 0x191   :  { %v445_v18 = vmul.f32 %v7562_v14, %v428_v13  ;;  %v433_v34 = vsel %vm401_vm14, %v385_v17, %v417_v28  ;;  %v447_v38 = vmul.f32 %v7562_v14, %v430_v30  ;;  %v434_v46 = vsel %vm402_vm15, %v386_v32, %v418_v37 }
 0x192   :  { %v450_v36 = vmul.f32 %v7562_v14, %v433_v34  ;;  %v451_v48 = vmul.f32 %v7562_v14, %v434_v46  ;;  %v427_v54 = vsel %vm395_vm0, %v379_v27, %v411_v42  ;;  %v413_v61 = vmul.f32 0.2, %v381_v55 }
 0x193   :  { %v480_v22 = vsel %vm452_vm3, %v445_v18, 0.0  ;;  %v486_v53 = vsel %vm452_vm3, %v447_v38, 0.0  ;;  %v444_v59 = vmul.f32 %v7562_v14, %v427_v54  ;;  %vm397_vm1 = vcmp.ge.f32.partialorder %v381_v55, 0.0 }
 0x194   :  { %481 = vadd.xlane.f32.xlu0 %v480_v22  ;;  %463 = vadd.xlane.f32.xlu1 %v462_v23  ;;  %v495_v45 = vsel %vm452_vm3, %v450_v36, 0.0  ;;  %v498_v56 = vsel %vm452_vm3, %v451_v48, 0.0  ;;  %v429_v0 = vsel %vm397_vm1, %v381_v55, %v413_v61  ;;  %v329_v3 = vperm.slane %v313_v63, 0  ;;  %v536_v18 = vpop.permute.xlu1 %535 }
 0x195   :  { %475 = vadd.xlane.f32.xlu2 %v474_v25  ;;  %v477_v1 = vsel %vm452_vm3, %v444_v59, 0.0  ;;  %v446_v4 = vmul.f32 %v7562_v14, %v429_v0  ;;  %v415_v5 = vmul.f32 0.2, %v383_v2  ;;  %vm399_vm4 = vcmp.ge.f32.partialorder %v383_v2, 0.0 }
 0x196   :  { %v367_v6 = vadd.f32 %v7580_v57, %v329_v3  ;;  %v7341_v57 = vmov 0   ;;  %vm670_vm8 = vcmask 1044484   ;;  %vm12119_vm9 = vcmask 1045509  }
 0x197   :  { %v483_v7 = vsel %vm452_vm3, %v446_v4, 0.0  ;;  %v431_v8 = vsel %vm399_vm4, %v383_v2, %v415_v5  ;;  %6762 = vset.pattern.permute.xlu2 %v7341_v57  ;;  %6760 = vset.pattern.permute.xlu0 %v7341_v57  ;;  %vm12118_vm10 = vcmask 1046534   ;;  %vm12117_vm11 = vcmask 1047559  }
 0x198   :  { %v384_v9 = vadd.f32 %v7554_v60, %v367_v6  ;;  %v448_v50 = vmul.f32 %v7562_v14, %v431_v8  ;;  %6761 = vset.pattern.permute.xlu1 %v7341_v57  ;;  %v508_v60 = vpop.permute.xlu2 %507  ;;  %vm12116_vm12 = vcmask 64512  }
 0x19a   :  { %v416_v10 = vmul.f32 0.2, %v384_v9  ;;  %vm400_vm5 = vcmp.ge.f32.partialorder %v384_v9, 0.0  ;;  %v489_v11 = vsel %vm452_vm3, %v448_v50, 0.0 }
 0x19c   :  { %472 = vadd.xlane.f32.xlu1 %v471_v49  ;;  %v432_v12 = vsel %vm400_vm5, %v384_v9, %v416_v10 }
 0x19d   :  { %487 = vadd.xlane.f32.xlu2 %v486_v53  ;;  %v449_v13 = vmul.f32 %v7562_v14, %v432_v12 }
 0x19f   :  { %v492_v15 = vsel %vm452_vm3, %v449_v13, 0.0  ;;  %vm664_vm3 = vcmask 1041409  }
 0x1a0   :  { %v529_v17 = vpop.permute.xlu2 %528 }
 0x1a4   :  { %478 = vadd.xlane.f32.xlu1 %v477_v1  ;;  %v7683_v1 = vand.u32 127, %v503_v29 }
 0x1a6   :  { %12144 = vst [vmem:[#allocation3_spill] sm:$0xff] %v7683_v1 }
 0x1a8   :  { %v550_v19 = vpop.permute.xlu2 %549 }
 0x1ac   :  { %484 = vadd.xlane.f32.xlu1 %v483_v7 }
 0x1b4   :  { %490 = vadd.xlane.f32.xlu1 %v489_v11 }
 0x1bc   :  { %493 = vadd.xlane.f32.xlu1 %v492_v15 }
 0x1c4   :  { %496 = vadd.xlane.f32.xlu1 %v495_v45 }
 0x1cc   :  { %499 = vadd.xlane.f32.xlu1 %v498_v56 }
 0x1f7   :  { %v455_v20 = vpop.xlane.xlu1 %454  ;;  %v467_v14 = vpop.xlane.xlu0 %466 }
 0x1f8   :  { %v7628_v21 = vadd.f32 %v508_v60, %v455_v20  ;;  %v461_v22 = vpop.xlane.xlu2 %460  ;;  %v7637_v28 = vadd.f32 %v536_v18, %v467_v14 }
 0x1f9   :  { %v7630_v23 = vadd.f32 %v522_v16, %v461_v22 }
 0x1fa   :  { %599 = vperm.xlu0 %6760, %v7628_v21  }
 0x1fb   :  { %605 = vperm.xlu2 %6762, %v7630_v23  }
 0x1ff   :  { %v458_v24 = vpop.xlane.xlu1 %457 }
 0x200   :  { %v470_v25 = vpop.xlane.xlu2 %469  ;;  %v7635_v27 = vadd.f32 %v7541_v51, %v458_v24 }
 0x201   :  { %v7649_v36 = vadd.f32 %v7543_v52, %v470_v25 }
 0x202   :  { %602 = vperm.xlu1 %6761, %v7635_v27  }
 0x203   :  { %611 = vperm.xlu2 %6762, %v7637_v28  }
 0x207   :  { %v464_v30 = vpop.xlane.xlu1 %463  ;;  %v482_v38 = vpop.xlane.xlu0 %481 }
 0x208   :  { %v476_v32 = vpop.xlane.xlu2 %475  ;;  %v7641_v33 = vadd.f32 %v529_v17, %v464_v30  ;;  %v7656_v43 = vadd.f32 %v7541_v51, %v482_v38 }
 0x209   :  { %v7644_v34 = vadd.f32 %v7565_v26, %v476_v32 }
 0x20a   :  { %608 = vperm.xlu1 %6761, %v7641_v33  }
 0x20b   :  { %620 = vperm.xlu2 %6762, %v7644_v34  }
 0x20f   :  { %v473_v35 = vpop.xlane.xlu1 %472 }
 0x210   :  { %v7651_v37 = vadd.f32 %v550_v19, %v473_v35  ;;  %v488_v46 = vpop.xlane.xlu2 %487 }
 0x211   :  { %v7662_v48 = vadd.f32 %v529_v17, %v488_v46 }
 0x212   :  { %614 = vperm.xlu1 %6761, %v7649_v36   ;;  %617 = vperm.xlu0 %6760, %v7651_v37  }
 0x217   :  { %v479_v42 = vpop.xlane.xlu1 %478 }
 0x218   :  { %v7658_v45 = vadd.f32 %v508_v60, %v479_v42 }
 0x21a   :  { %626 = vperm.xlu0 %6760, %v7656_v43   ;;  %623 = vperm.xlu1 %6761, %v7658_v45  }
 0x21f   :  { %v485_v47 = vpop.xlane.xlu1 %484 }
 0x220   :  { %v7664_v49 = vadd.f32 %v522_v16, %v485_v47 }
 0x222   :  { %632 = vperm.xlu1 %6761, %v7662_v48   ;;  %629 = vperm.xlu2 %6762, %v7664_v49  }
 0x227   :  { %v491_v53 = vpop.xlane.xlu1 %490 }
 0x228   :  { %v7668_v54 = vadd.f32 %v536_v18, %v491_v53 }
 0x22a   :  { %635 = vperm.xlu0 %6760, %v7668_v54  }
 0x22f   :  { %v494_v51 = vpop.xlane.xlu1 %493 }
 0x230   :  { %v7672_v55 = vadd.f32 %v7543_v52, %v494_v51 }
 0x232   :  { %638 = vperm.xlu2 %6762, %v7672_v55  }
 0x237   :  { %v497_v56 = vpop.xlane.xlu1 %496 }
 0x238   :  { %v7675_v58 = vadd.f32 %v550_v19, %v497_v56 }
 0x23a   :  { %641 = vperm.xlu1 %6761, %v7675_v58  }
 0x23f   :  { %v500_v59 = vpop.xlane.xlu1 %499 }
 0x240   :  { %v7679_v61 = vadd.f32 %v7565_v26, %v500_v59 }
 0x242   :  { %644 = vperm.xlu0 %6760, %v7679_v61  }
 0x255   :  { %v606_v62 = vpop.permute.xlu2 %605 }
 0x256   :  { %v650_v6 = vperm.slane %v606_v62, %v7683_v1 }
 0x25d   :  { %v612_v52 = vpop.permute.xlu2 %611 }
 0x25e   :  { %v652_v9 = vperm.slane %v612_v52, %v7683_v1 }
 0x265   :  { %v621_v29 = vpop.permute.xlu2 %620 }
 0x266   :  { %v655_v15 = vperm.slane %v621_v29, %v7683_v1 }
 0x26c   :  { %v600_v0 = vpop.permute.xlu0 %599 }
 0x26d   :  { %v648_v4 = vperm.slane %v600_v0, %v7683_v1 }
 0x274   :  { %v603_v63 = vpop.permute.xlu1 %602 }
 0x275   :  { %v649_v2 = vperm.slane %v603_v63, %v7683_v1 }
 0x277   :  { %v665_v5 = vsel %vm664_vm3, %v649_v2, %v648_v4 }
 0x278   :  { %v667_v7 = vsel %vm666_vm6, %v650_v6, %v665_v5 }
 0x27c   :  { %v609_v3 = vpop.permute.xlu1 %608  ;;  %v630_v22 = vpop.permute.xlu2 %629 }
 0x27d   :  { %v651_v26 = vperm.slane %v609_v3, %v7683_v1  ;;  %v658_v35 = vperm.slane %v630_v22, %v7683_v1 }
 0x27f   :  { %v669_v8 = vsel %vm668_vm7, %v651_v26, %v667_v7 }
 0x280   :  { %v671_v13 = vsel %vm670_vm8, %v652_v9, %v669_v8 }
 0x284   :  { %v618_v50 = vpop.permute.xlu0 %617  ;;  %v615_v10 = vpop.permute.xlu1 %614 }
 0x285   :  { %v654_v11 = vperm.slane %v618_v50, %v7683_v1  ;;  %v653_v12 = vperm.slane %v615_v10, %v7683_v1 }
 0x287   :  { %v673_v57 = vsel %vm12119_vm9, %v653_v12, %v671_v13 }
 0x288   :  { %v675_v60 = vsel %vm12118_vm10, %v654_v11, %v673_v57 }
 0x289   :  { %v677_v16 = vsel %vm12117_vm11, %v655_v15, %v675_v60 }
 0x28a   :  { %v688_v17 = vsel %vm12116_vm12, %v677_v16, -inf }
 0x28b   :  { %689 = vmax.xlane.f32.xlu2 %v688_v17 }
 0x28c   :  { %v624_v18 = vpop.permute.xlu1 %623  ;;  %v627_v19 = vpop.permute.xlu0 %626 }
 0x28d   :  { %v657_v14 = vperm.slane %v627_v19, %v7683_v1  ;;  %v656_v24 = vperm.slane %v624_v18, %v7683_v1  ;;  %v639_v46 = vpop.permute.xlu2 %638 }
 0x28e   :  { %v661_v59 = vperm.slane %v639_v46, %v7683_v1 }
 0x28f   :  { %v678_v30 = vsel %vm664_vm3, %v657_v14, %v656_v24 }
 0x290   :  { %v679_v47 = vsel %vm666_vm6, %v658_v35, %v678_v30 }
 0x294   :  { %v633_v20 = vpop.permute.xlu1 %632 }
 0x295   :  { %v659_v32 = vperm.slane %v633_v20, %v7683_v1 }
 0x297   :  { %v680_v53 = vsel %vm668_vm7, %v659_v32, %v679_v47 }
 0x29c   :  { %v636_v25 = vpop.permute.xlu0 %635 }
 0x29d   :  { %v660_v38 = vperm.slane %v636_v25, %v7683_v1 }
 0x29f   :  { %v681_v51 = vsel %vm670_vm8, %v660_v38, %v680_v53 }
 0x2a0   :  { %v682_v52 = vsel %vm12119_vm9, %v661_v59, %v681_v51 }
 0x2ac   :  { %v642_v42 = vpop.permute.xlu1 %641 }
 0x2ad   :  { %v662_v56 = vperm.slane %v642_v42, %v7683_v1 }
 0x2af   :  { %v683_v0 = vsel %vm12118_vm10, %v662_v56, %v682_v52 }
 0x2b4   :  { %v645_v62 = vpop.permute.xlu0 %644 }
 0x2b5   :  { %v663_v63 = vperm.slane %v645_v62, %v7683_v1 }
 0x2b7   :  { %v684_v2 = vsel %vm12117_vm11, %v663_v63, %v683_v0 }
 0x2b8   :  { %v691_v3 = vsel %vm12116_vm12, %v684_v2, -inf }
 0x2b9   :  { %692 = vmax.xlane.f32.xlu1 %v691_v3 }
 0x2fe   :  { %v690_v4 = vpop.xlane.xlu2 %689 }
 0x2ff   :  { %v701_v5 = vperm.slane %v690_v4, 5  ;;  %v696_v26 = vperm.slane %v690_v4, 0  ;;  %v702_v6 = vperm.slane %v690_v4, 6  ;;  %v697_v9 = vperm.slane %v690_v4, 1 }
 0x300   :  { %v698_v15 = vperm.slane %v690_v4, 2  ;;  %v700_v19 = vperm.slane %v690_v4, 4 }
 0x301   :  { %v733_v7 = vsub.f32 %v7649_v36, %v701_v5  ;;  %v728_v29 = vsub.f32 %v7628_v21, %v696_v26  ;;  %v734_v8 = vsub.f32 %v7651_v37, %v702_v6  ;;  %v729_v12 = vsub.f32 %v7635_v27, %v697_v9 }
 0x302   :  { %v730_v36 = vsub.f32 %v7630_v23, %v698_v15  ;;  %v699_v27 = vperm.slane %v690_v4, 3  ;;  %v732_v22 = vsub.f32 %v7637_v28, %v700_v19  ;;  %v703_v23 = vperm.slane %v690_v4, 7 }
 0x303   :  { %v754_v50 = vmul.f32 1.442695, %v733_v7  ;;  %v744_v10 = vmul.f32 1.442695, %v728_v29  ;;  %v756_v11 = vmul.f32 1.442695, %v734_v8 }
 0x304   :  { %v746_v13 = vmul.f32 1.442695, %v729_v12  ;;  %v748_v37 = vmul.f32 1.442695, %v730_v36  ;;  %v731_v17 = vsub.f32 %v7641_v33, %v699_v27  ;;  %v752_v14 = vmul.f32 1.442695, %v732_v22 }
 0x305   :  { %6888 = vpow2.f32 %v754_v50  ;;  %v735_v25 = vsub.f32 %v7644_v34, %v703_v23 }
 0x306   :  { %6890 = vpow2.f32 %v744_v10  ;;  %v750_v18 = vmul.f32 1.442695, %v731_v17 }
 0x307   :  { %6892 = vpow2.f32 %v756_v11  ;;  %v758_v30 = vmul.f32 1.442695, %v735_v25 }
 0x308   :  { %6894 = vpow2.f32 %v746_v13 }
 0x309   :  { %6896 = vpow2.f32 %v748_v37 }
 0x30a   :  { %6898 = vpow2.f32 %v750_v18 }
 0x30b   :  { %v7721_v57 = vpop.eup %6888  ;;  %6900 = vpow2.f32 %v752_v14 }
 0x30c   :  { %v7723_v60 = vpop.eup %6890  ;;  %808 = vperm.xlu2 %6762, %v7721_v57   ;;  %6902 = vpow2.f32 %v758_v30 }
 0x30d   :  { %v7726_v21 = vpop.eup %6892  ;;  %793 = vperm.xlu0 %6760, %v7723_v60  }
 0x30e   :  { %811 = vperm.xlu1 %6761, %v7726_v21   ;;  %v7731_v16 = vpop.eup %6894 }
 0x30f   :  { %v7735_v20 = vpop.eup %6896 }
 0x310   :  { %v7739_v24 = vpop.eup %6898 }
 0x311   :  { %v7743_v33 = vpop.eup %6900 }
 0x312   :  { %v7750_v52 = vpop.eup %6902 }
 0x315   :  { %796 = vperm.xlu0 %6760, %v7731_v16  }
 0x31d   :  { %799 = vperm.xlu0 %6760, %v7735_v20  }
 0x325   :  { %802 = vperm.xlu0 %6760, %v7739_v24  }
 0x32c   :  { %v693_v32 = vpop.xlane.xlu1 %692 }
 0x32d   :  { %805 = vperm.xlu0 %6760, %v7743_v33   ;;  %v707_v35 = vperm.slane %v693_v32, 3  ;;  %v706_v38 = vperm.slane %v693_v32, 2  ;;  %v704_v42 = vperm.slane %v693_v32, 0  ;;  %v710_v53 = vperm.slane %v693_v32, 6 }
 0x32e   :  { %v709_v51 = vperm.slane %v693_v32, 5  ;;  %v705_v62 = vperm.slane %v693_v32, 1  ;;  %v711_v7 = vperm.slane %v693_v32, 7 }
 0x32f   :  { %v739_v28 = vsub.f32 %v7662_v48, %v707_v35  ;;  %v738_v46 = vsub.f32 %v7664_v49, %v706_v38  ;;  %v736_v47 = vsub.f32 %v7658_v45, %v704_v42  ;;  %v742_v63 = vsub.f32 %v7675_v58, %v710_v53 }
 0x330   :  { %v741_v0 = vsub.f32 %v7672_v55, %v709_v51  ;;  %v737_v48 = vsub.f32 %v7656_v43, %v705_v62  ;;  %v708_v58 = vperm.slane %v693_v32, 4  ;;  %v743_v8 = vsub.f32 %v7679_v61, %v711_v7 }
 0x331   :  { %v766_v56 = vmul.f32 1.442695, %v739_v28  ;;  %v764_v34 = vmul.f32 1.442695, %v738_v46  ;;  %v760_v59 = vmul.f32 1.442695, %v736_v47 }
 0x332   :  { %v772_v45 = vmul.f32 1.442695, %v742_v63  ;;  %v770_v49 = vmul.f32 1.442695, %v741_v0  ;;  %v762_v4 = vmul.f32 1.442695, %v737_v48  ;;  %v740_v43 = vsub.f32 %v7668_v54, %v708_v58 }
 0x333   :  { %6904 = vpow2.f32 %v766_v56  ;;  %v774_v9 = vmul.f32 1.442695, %v743_v8 }
 0x334   :  { %6906 = vpow2.f32 %v764_v34  ;;  %v768_v6 = vmul.f32 1.442695, %v740_v43 }
 0x335   :  { %814 = vperm.xlu0 %6760, %v7750_v52   ;;  %6908 = vpow2.f32 %v760_v59 }
 0x336   :  { %6910 = vpow2.f32 %v772_v45 }
 0x337   :  { %6912 = vpow2.f32 %v770_v49 }
 0x338   :  { %6914 = vpow2.f32 %v762_v4 }
 0x339   :  { %v7755_v2 = vpop.eup %6904  ;;  %6916 = vpow2.f32 %v768_v6 }
 0x33a   :  { %v7757_v3 = vpop.eup %6906  ;;  %826 = vperm.xlu1 %6761, %v7755_v2   ;;  %6918 = vpow2.f32 %v774_v9 }
 0x33b   :  { %823 = vperm.xlu2 %6762, %v7757_v3   ;;  %v7761_v5 = vpop.eup %6908 }
 0x33c   :  { %v7765_v55 = vpop.eup %6910 }
 0x33d   :  { %817 = vperm.xlu0 %6760, %v7761_v5   ;;  %v7767_v26 = vpop.eup %6912 }
 0x33e   :  { %v7771_v29 = vpop.eup %6914 }
 0x33f   :  { %v7775_v50 = vpop.eup %6916 }
 0x340   :  { %v7778_v54 = vpop.eup %6918 }
 0x342   :  { %835 = vperm.xlu1 %6761, %v7765_v55  }
 0x343   :  { %832 = vperm.xlu2 %6762, %v7767_v26  }
 0x345   :  { %820 = vperm.xlu0 %6760, %v7771_v29  }
 0x34d   :  { %829 = vperm.xlu0 %6760, %v7775_v50  }
 0x355   :  { %838 = vperm.xlu0 %6760, %v7778_v54  }
 0x366   :  { %v809_v19 = vpop.permute.xlu2 %808 }
 0x367   :  { %v845_v25 = vperm.slane %v809_v19, %v7683_v1 }
 0x37f   :  { %v794_v10 = vpop.permute.xlu0 %793 }
 0x380   :  { %v840_v61 = vperm.slane %v794_v10, %v7683_v1  ;;  %v812_v30 = vpop.permute.xlu1 %811 }
 0x381   :  { %v846_v35 = vperm.slane %v812_v30, %v7683_v1 }
 0x387   :  { %v797_v11 = vpop.permute.xlu0 %796 }
 0x388   :  { %v841_v15 = vperm.slane %v797_v11, %v7683_v1 }
 0x38a   :  { %v856_v17 = vsel %vm664_vm3, %v841_v15, %v840_v61 }
 0x38f   :  { %v800_v12 = vpop.permute.xlu0 %799 }
 0x390   :  { %v842_v36 = vperm.slane %v800_v12, %v7683_v1 }
 0x392   :  { %v857_v22 = vsel %vm666_vm6, %v842_v36, %v856_v17 }
 0x395   :  { %v824_v51 = vpop.permute.xlu2 %823 }
 0x396   :  { %v850_v0 = vperm.slane %v824_v51, %v7683_v1 }
 0x397   :  { %v803_v13 = vpop.permute.xlu0 %802 }
 0x398   :  { %v843_v37 = vperm.slane %v803_v13, %v7683_v1 }
 0x39a   :  { %v858_v14 = vsel %vm668_vm7, %v843_v37, %v857_v22 }
 0x39d   :  { %v833_v58 = vpop.permute.xlu2 %832 }
 0x39e   :  { %v853_v7 = vperm.slane %v833_v58, %v7683_v1 }
 0x39f   :  { %v806_v27 = vpop.permute.xlu0 %805 }
 0x3a0   :  { %v844_v18 = vperm.slane %v806_v27, %v7683_v1 }
 0x3a2   :  { %v859_v23 = vsel %vm670_vm8, %v844_v18, %v858_v14 }
 0x3a3   :  { %v860_v32 = vsel %vm12119_vm9, %v845_v25, %v859_v23 }
 0x3a4   :  { %v861_v28 = vsel %vm12118_vm10, %v846_v35, %v860_v32 }
 0x3a7   :  { %v815_v38 = vpop.permute.xlu0 %814 }
 0x3a8   :  { %v847_v42 = vperm.slane %v815_v38, %v7683_v1 }
 0x3aa   :  { %v862_v46 = vsel %vm12117_vm11, %v847_v42, %v861_v28 }
 0x3ab   :  { %v872_v47 = vsel %vm12116_vm12, %v862_v46, 0.0 }
 0x3ac   :  { %873 = vadd.xlane.f32.xlu2 %v872_v47  ;;  %v827_v59 = vpop.permute.xlu1 %826 }
 0x3ad   :  { %v851_v49 = vperm.slane %v827_v59, %v7683_v1 }
 0x3af   :  { %v818_v53 = vpop.permute.xlu0 %817 }
 0x3b0   :  { %v848_v62 = vperm.slane %v818_v53, %v7683_v1 }
 0x3b4   :  { %v836_v8 = vpop.permute.xlu1 %835 }
 0x3b5   :  { %v854_v10 = vperm.slane %v836_v8, %v7683_v1 }
 0x3b7   :  { %v821_v56 = vpop.permute.xlu0 %820 }
 0x3b8   :  { %v849_v34 = vperm.slane %v821_v56, %v7683_v1 }
 0x3ba   :  { %v863_v63 = vsel %vm664_vm3, %v849_v34, %v848_v62 }
 0x3bb   :  { %v864_v48 = vsel %vm666_vm6, %v850_v0, %v863_v63 }
 0x3bc   :  { %v865_v43 = vsel %vm668_vm7, %v851_v49, %v864_v48 }
 0x3bf   :  { %v830_v45 = vpop.permute.xlu0 %829 }
 0x3c0   :  { %v852_v4 = vperm.slane %v830_v45, %v7683_v1 }
 0x3c2   :  { %v866_v6 = vsel %vm670_vm8, %v852_v4, %v865_v43 }
 0x3c3   :  { %v867_v9 = vsel %vm12119_vm9, %v853_v7, %v866_v6 }
 0x3c4   :  { %v868_v13 = vsel %vm12118_vm10, %v854_v10, %v867_v9 }
 0x3c7   :  { %v839_v11 = vpop.permute.xlu0 %838 }
 0x3c8   :  { %v855_v12 = vperm.slane %v839_v11, %v7683_v1 }
 0x3ca   :  { %v869_v15 = vsel %vm12117_vm11, %v855_v12, %v868_v13 }
 0x3cb   :  { %v875_v36 = vsel %vm12116_vm12, %v869_v15, 0.0 }
 0x3cc   :  { %876 = vadd.xlane.f32.xlu1 %v875_v36 }
 0x41f   :  { %v7813_v61 = vpop.xlane.xlu2 %873 }
 0x420   :  { %v885_v37 = vperm.slane %v7813_v61, 5  ;;  %v880_v27 = vperm.slane %v7813_v61, 0  ;;  %v887_v17 = vperm.slane %v7813_v61, 7  ;;  %v7819_v18 = vperm.slane %v7813_v61, 1 }
 0x421   :  { %v7822_v19 = vperm.slane %v7813_v61, 2  ;;  %v7825_v22 = vperm.slane %v7813_v61, 3  ;;  %v7830_v32 = vperm.slane %v7813_v61, 4  ;;  %v7877_v56 = vperm.slane %v7813_v61, 6 }
 0x422   :  { %6920 = vrcp.f32 %v885_v37  ;;  %v996_v14 = vand.u32 2147483647, %v885_v37  ;;  %v998_v23 = vand.u32 2147483648, %v885_v37  ;;  %v921_v25 = vand.u32 2147483647, %v880_v27 }
 0x423   :  { %6922 = vrcp.f32 %v880_v27  ;;  %vm992_vm13 = vweird.f32 %v885_v37  ;;  %vm917_vm14 = vweird.f32 %v880_v27  ;;  %v923_v53 = vand.u32 2147483648, %v880_v27 }
 0x424   :  { %6924 = vrcp.f32 %v887_v17  ;;  %vm7833_vm15 = vcmp.eq.f32.partialorder %v996_v14, 8.507059e+37  ;;  %v999_v46 = vor.u32 1.1754944e-38, %v998_v23  ;;  %vm7837_vm0 = vcmp.eq.f32.partialorder %v921_v25, 8.507059e+37 }
 0x425   :  { %6926 = vrcp.f32 %v7819_v18  ;;  %vm1022_vm1 = vweird.f32 %v887_v17  ;;  %v1026_v63 = vand.u32 2147483647, %v887_v17  ;;  %v1028_v0 = vand.u32 2147483648, %v887_v17 }
 0x426   :  { %6928 = vrcp.f32 %v7822_v19  ;;  %v924_v43 = vor.u32 1.1754944e-38, %v923_v53  ;;  %v938_v15 = vand.u32 2147483648, %v7819_v18  ;;  %v968_v61 = vand.u32 2147483648, %v7825_v22 }
 0x427   :  { %6930 = vrcp.f32 %v7825_v22  ;;  %vm7850_vm11 = vcmp.eq.f32.partialorder %v1026_v63, 8.507059e+37  ;;  %v1029_v13 = vor.u32 1.1754944e-38, %v1028_v0 }
 0x428   :  { %v6921_v30 = vpop.eup %6920  ;;  %6932 = vrcp.f32 %v7830_v32 }
 0x429   :  { %v6923_v35 = vpop.eup %6922  ;;  %v988_v38 = vmul.f32 %v6921_v30, %v885_v37  ;;  %vm993_vm4 = vweird.f32 %v6921_v30  ;;  %6934 = vrcp.f32 %v7877_v56 }
 0x42a   :  { %v6925_v42 = vpop.eup %6924  ;;  %v913_v47 = vmul.f32 %v6923_v35, %v880_v27  ;;  %vm918_vm5 = vweird.f32 %v6923_v35  ;;  %vm994_vm12 = vmor %vm992_vm13, %vm993_vm4 }
 0x42b   :  { %v989_v51 = vsub.f32 1.0, %v988_v38  ;;  %v1018_v34 = vmul.f32 %v6925_v42, %v887_v17  ;;  %v6927_v59 = vpop.eup %6926  ;;  %vm1023_vm2 = vweird.f32 %v6925_v42  ;;  %vm919_vm10 = vmor %vm917_vm14, %vm918_vm5  ;;  %vm947_vm14 = vweird.f32 %v7822_v19 }
 0x42c   :  { %v914_v62 = vsub.f32 1.0, %v913_v47  ;;  %v7842_v48 = vpop.eup %6928  ;;  %v928_v4 = vmul.f32 %v6927_v59, %v7819_v18  ;;  %vm1024_vm13 = vmor %vm1022_vm1, %vm1023_vm2  ;;  %vm933_vm4 = vweird.f32 %v6927_v59  ;;  %vm962_vm5 = vweird.f32 %v7825_v22 }
 0x42d   :  { %v990_v45 = vmul.f32 %v6921_v30, %v989_v51  ;;  %v1019_v49 = vsub.f32 1.0, %v1018_v34  ;;  %v943_v6 = vmul.f32 %v7842_v48, %v7822_v19  ;;  %v7847_v7 = vpop.eup %6930 }
 0x42e   :  { %v915_v58 = vmul.f32 %v6923_v35, %v914_v62  ;;  %v929_v10 = vsub.f32 1.0, %v928_v4  ;;  %v958_v25 = vmul.f32 %v7847_v7, %v7825_v22  ;;  %v7858_v38 = vpop.eup %6932 }
 0x42f   :  { %v991_v8 = vadd.f32 %v6921_v30, %v990_v45  ;;  %v1020_v9 = vmul.f32 %v6925_v42, %v1019_v49  ;;  %v944_v53 = vsub.f32 1.0, %v943_v6  ;;  %v951_v49 = vand.u32 2147483647, %v7822_v19 }
 0x430   :  { %v916_v11 = vadd.f32 %v6923_v35, %v915_v58  ;;  %v930_v23 = vmul.f32 %v6927_v59, %v929_v10  ;;  %v959_v28 = vsub.f32 1.0, %v958_v25  ;;  %v983_v25 = vand.u32 2147483648, %v7830_v32 }
 0x431   :  { %v995_v36 = vsel %vm994_vm12, %v6921_v30, %v991_v8  ;;  %v1021_v14 = vadd.f32 %v6925_v42, %v1020_v9  ;;  %vm932_vm12 = vweird.f32 %v7819_v18  ;;  %vm952_vm1 = vcmp.eq.f32.partialorder %v951_v49, 8.507059e+37 }
 0x432   :  { %v1000_v37 = vsel %vm7833_vm15, %v999_v46, %v995_v36  ;;  %v920_v47 = vsel %vm919_vm10, %v6923_v35, %v916_v11  ;;  %v931_v34 = vadd.f32 %v6927_v59, %v930_v23  ;;  %v936_v35 = vand.u32 2147483647, %v7819_v18  ;;  %vm934_vm2 = vmor %vm932_vm12, %vm933_vm4 }
 0x433   :  { %v1001_v30 = vmul.f32 %v7721_v57, %v1000_v37  ;;  %v925_v27 = vsel %vm7837_vm0, %v924_v43, %v920_v47  ;;  %v1025_v51 = vsel %vm1024_vm13, %v6925_v42, %v1021_v14  ;;  %v973_v57 = vmul.f32 %v7858_v38, %v7830_v32 }
 0x434   :  { %v926_v62 = vmul.f32 %v7723_v60, %v925_v27  ;;  %v1030_v63 = vsel %vm7850_vm11, %v1029_v13, %v1025_v51  ;;  %v935_v42 = vsel %vm934_vm2, %v6927_v59, %v931_v34  ;;  %v945_v46 = vmul.f32 %v7842_v48, %v944_v53 }
 0x435   :  { %1176 = vperm.xlu2 %6762, %v1001_v30   ;;  %v1031_v17 = vmul.f32 %v7750_v52, %v1030_v63  ;;  %v939_v60 = vor.u32 1.1754944e-38, %v938_v15  ;;  %vm937_vm10 = vcmp.eq.f32.partialorder %v936_v35, 8.507059e+37  ;;  %v960_v18 = vmul.f32 %v7847_v7, %v959_v28  ;;  %v7915_v15 = vpop.eup %6934 }
 0x436   :  { %1161 = vperm.xlu0 %6760, %v926_v62   ;;  %v974_v45 = vsub.f32 1.0, %v973_v57  ;;  %v946_v52 = vadd.f32 %v7842_v48, %v945_v46  ;;  %vm948_vm11 = vweird.f32 %v7842_v48  ;;  %v953_v59 = vand.u32 2147483648, %v7822_v19 }
 0x437   :  { %1182 = vperm.xlu1 %6761, %v1031_v17   ;;  %v940_v0 = vsel %vm937_vm10, %v939_v60, %v935_v42  ;;  %vm7888_vm15 = vmor %vm947_vm14, %vm948_vm11  ;;  %v961_v43 = vadd.f32 %v7847_v7, %v960_v18  ;;  %vm963_vm0 = vweird.f32 %v7847_v7  ;;  %v966_v9 = vand.u32 2147483647, %v7825_v22 }
 0x438   :  { %v941_v4 = vmul.f32 %v7731_v16, %v940_v0  ;;  %v975_v6 = vmul.f32 %v7858_v38, %v974_v45  ;;  %v950_v8 = vsel %vm7888_vm15, %v7842_v48, %v946_v52  ;;  %v954_v19 = vor.u32 1.1754944e-38, %v953_v59  ;;  %vm7902_vm13 = vmor %vm962_vm5, %vm963_vm0 }
 0x439   :  { %v969_v11 = vor.u32 1.1754944e-38, %v968_v61  ;;  %v965_v22 = vsel %vm7902_vm13, %v7847_v7, %v961_v43  ;;  %vm978_vm4 = vweird.f32 %v7858_v38  ;;  %v981_v23 = vand.u32 2147483647, %v7830_v32 }
 0x43a   :  { %v955_v36 = vsel %vm952_vm1, %v954_v19, %v950_v8  ;;  %v976_v14 = vadd.f32 %v7858_v38, %v975_v6  ;;  %vm967_vm12 = vcmp.eq.f32.partialorder %v966_v9, 8.507059e+37  ;;  %vm977_vm2 = vweird.f32 %v7830_v32 }
 0x43b   :  { %v956_v47 = vmul.f32 %v7735_v20, %v955_v36  ;;  %v970_v53 = vsel %vm967_vm12, %v969_v11, %v965_v22  ;;  %vm979_vm10 = vmor %vm977_vm2, %vm978_vm4  ;;  %v1003_v30 = vmul.f32 %v7915_v15, %v7877_v56  ;;  %vm982_vm11 = vcmp.eq.f32.partialorder %v981_v23, 8.507059e+37 }
 0x43c   :  { %v980_v27 = vsel %vm979_vm10, %v7858_v38, %v976_v14  ;;  %v984_v51 = vor.u32 1.1754944e-38, %v983_v25  ;;  %v1011_v32 = vand.u32 2147483647, %v7877_v56  ;;  %v971_v34 = vmul.f32 %v7739_v24, %v970_v53 }
 0x43d   :  { %v1004_v38 = vsub.f32 1.0, %v1003_v30  ;;  %v1013_v28 = vand.u32 2147483648, %v7877_v56  ;;  %vm1008_vm14 = vweird.f32 %v7915_v15  ;;  %vm1007_vm1 = vweird.f32 %v7877_v56 }
 0x43e   :  { %1164 = vperm.xlu0 %6760, %v941_v4   ;;  %v985_v35 = vsel %vm982_vm11, %v984_v51, %v980_v27 }
 0x43f   :  { %v7898_v16 = vpop.xlane.xlu1 %876  ;;  %v1005_v43 = vmul.f32 %v7915_v15, %v1004_v38 }
 0x440   :  { %v7907_v12 = vperm.slane %v7898_v16, 4  ;;  %v7910_v13 = vperm.slane %v7898_v16, 2  ;;  %v7913_v48 = vperm.slane %v7898_v16, 7  ;;  %v7926_v37 = vperm.slane %v7898_v16, 5 }
 0x441   :  { %v7931_v7 = vperm.slane %v7898_v16, 0  ;;  %v7949_v24 = vperm.slane %v7898_v16, 1  ;;  %v7952_v46 = vperm.slane %v7898_v16, 3 }
 0x442   :  { %6936 = vrcp.f32 %v7907_v12  ;;  %v1101_v20 = vand.u32 2147483647, %v7907_v12  ;;  %v1103_v62 = vand.u32 2147483648, %v7907_v12  ;;  %v1071_v17 = vand.u32 2147483647, %v7910_v13 }
 0x443   :  { %6938 = vrcp.f32 %v7910_v13  ;;  %vm1097_vm15 = vweird.f32 %v7907_v12  ;;  %vm1067_vm0 = vweird.f32 %v7910_v13  ;;  %v1073_v18 = vand.u32 2147483648, %v7910_v13 }
 0x444   :  { %6940 = vrcp.f32 %v7913_v48  ;;  %vm7961_vm5 = vcmp.eq.f32.partialorder %v1101_v20, 8.507059e+37  ;;  %v1104_v49 = vor.u32 1.1754944e-38, %v1103_v62  ;;  %vm7969_vm4 = vcmp.eq.f32.partialorder %v1071_v17, 8.507059e+37 }
 0x445   :  { %6942 = vrcp.f32 %v7926_v37  ;;  %v1074_v11 = vor.u32 1.1754944e-38, %v1073_v18  ;;  %vm1142_vm2 = vweird.f32 %v7913_v48  ;;  %v1146_v53 = vand.u32 2147483647, %v7913_v48 }
 0x446   :  { %1167 = vperm.xlu0 %6760, %v956_v47   ;;  %6944 = vrcp.f32 %v7931_v7  ;;  %v1006_v47 = vadd.f32 %v7915_v15, %v1005_v43  ;;  %v1148_v30 = vand.u32 2147483648, %v7913_v48  ;;  %v8046_v43 = vperm.slane %v7898_v16, 6 }
 0x447   :  { %6946 = vrcp.f32 %v7949_v24 }
 0x448   :  { %v6937_v63 = vpop.eup %6936  ;;  %6948 = vrcp.f32 %v7952_v46  ;;  %v1133_v38 = vand.u32 2147483648, %v8046_v43 }
 0x449   :  { %v6939_v57 = vpop.eup %6938  ;;  %v1093_v42 = vmul.f32 %v6937_v63, %v7907_v12  ;;  %vm1098_vm13 = vweird.f32 %v6937_v63  ;;  %6950 = vrcp.f32 %v8046_v43 }
 0x44a   :  { %v7954_v60 = vpop.eup %6940  ;;  %v1063_v0 = vmul.f32 %v6939_v57, %v7910_v13  ;;  %vm1068_vm12 = vweird.f32 %v6939_v57  ;;  %vm1099_vm10 = vmor %vm1097_vm15, %vm1098_vm13  ;;  %vm1112_vm13 = vweird.f32 %v7926_v37 }
 0x44b   :  { %v1094_v45 = vsub.f32 1.0, %v1093_v42  ;;  %v1138_v59 = vmul.f32 %v7954_v60, %v7913_v48  ;;  %v7967_v4 = vpop.eup %6942  ;;  %vm1069_vm11 = vmor %vm1067_vm0, %vm1068_vm12  ;;  %vm1143_vm9 = vweird.f32 %v7954_v60  ;;  %v1118_v42 = vand.u32 2147483648, %v7926_v37 }
 0x44c   :  { %v1064_v61 = vsub.f32 1.0, %v1063_v0  ;;  %v7974_v6 = vpop.eup %6944  ;;  %v1108_v9 = vmul.f32 %v7967_v4, %v7926_v37  ;;  %vm1113_vm15 = vweird.f32 %v7967_v4  ;;  %vm8006_vm0 = vmor %vm1007_vm1, %vm1008_vm14  ;;  %v986_v0 = vmul.f32 %v7743_v33, %v985_v35 }
 0x44d   :  { %v1095_v8 = vmul.f32 %v6937_v63, %v1094_v45  ;;  %v1139_v19 = vsub.f32 1.0, %v1138_v59  ;;  %v1033_v36 = vmul.f32 %v7974_v6, %v7931_v7  ;;  %v7997_v17 = vpop.eup %6946  ;;  %v1116_v45 = vand.u32 2147483647, %v7926_v37  ;;  %vm8030_vm14 = vmor %vm1112_vm13, %vm1113_vm15 }
 0x44e   :  { %1170 = vperm.xlu0 %6760, %v971_v34   ;;  %v1065_v10 = vmul.f32 %v6939_v57, %v1064_v61  ;;  %v1109_v23 = vsub.f32 1.0, %v1108_v9  ;;  %v1010_v52 = vsel %vm8006_vm0, %v7915_v15, %v1006_v47  ;;  %v1149_v48 = vor.u32 1.1754944e-38, %v1148_v30 }
 0x44f   :  { %v1096_v22 = vadd.f32 %v6937_v63, %v1095_v8  ;;  %v1140_v14 = vmul.f32 %v7954_v60, %v1139_v19  ;;  %v1034_v62 = vsub.f32 1.0, %v1033_v36  ;;  %v1048_v35 = vmul.f32 %v7997_v17, %v7949_v24  ;;  %v6949_v19 = vpop.eup %6948 }
 0x450   :  { %v1066_v25 = vadd.f32 %v6939_v57, %v1065_v10  ;;  %v1110_v34 = vmul.f32 %v7967_v4, %v1109_v23  ;;  %vm1012_vm1 = vcmp.eq.f32.partialorder %v1011_v32, 8.507059e+37  ;;  %vm1038_vm12 = vweird.f32 %v7974_v6 }
 0x451   :  { %v1100_v27 = vsel %vm1099_vm10, %v6937_v63, %v1096_v22  ;;  %v1141_v51 = vadd.f32 %v7954_v60, %v1140_v14  ;;  %v1035_v15 = vmul.f32 %v7974_v6, %v1034_v62  ;;  %v1049_v8 = vsub.f32 1.0, %v1048_v35  ;;  %v6951_v22 = vpop.eup %6950 }
 0x452   :  { %v1105_v12 = vsel %vm7961_vm5, %v1104_v49, %v1100_v27  ;;  %v1070_v20 = vsel %vm1069_vm11, %v6939_v57, %v1066_v25  ;;  %v1111_v57 = vadd.f32 %v7967_v4, %v1110_v34  ;;  %vm8016_vm5 = vmor %vm1142_vm2, %vm1143_vm9  ;;  %vm1147_vm9 = vcmp.eq.f32.partialorder %v1146_v53, 8.507059e+37 }
 0x453   :  { %v1106_v63 = vmul.f32 %v7775_v50, %v1105_v12  ;;  %v1075_v13 = vsel %vm7969_vm4, %v1074_v11, %v1070_v20  ;;  %v1145_v33 = vsel %vm8016_vm5, %v7954_v60, %v1141_v51  ;;  %v1014_v60 = vor.u32 1.1754944e-38, %v1013_v28 }
 0x454   :  { %v1076_v18 = vmul.f32 %v7757_v3, %v1075_v13  ;;  %v1115_v37 = vsel %vm8030_vm14, %v7967_v4, %v1111_v57  ;;  %v1119_v49 = vor.u32 1.1754944e-38, %v1118_v42  ;;  %v1150_v59 = vsel %vm1147_vm9, %v1149_v48, %v1145_v33 }
 0x455   :  { %1251 = vperm.xlu1 %6761, %v1106_v63   ;;  %vm1117_vm4 = vcmp.eq.f32.partialorder %v1116_v45, 8.507059e+37  ;;  %v1015_v61 = vsel %vm1012_vm1, %v1014_v60, %v1010_v52  ;;  %v1036_v4 = vadd.f32 %v7974_v6, %v1035_v15  ;;  %v1151_v28 = vmul.f32 %v7778_v54, %v1150_v59 }
 0x456   :  { %1173 = vperm.xlu0 %6760, %v986_v0   ;;  %1245 = vperm.xlu2 %6762, %v1076_v18   ;;  %v1120_v58 = vsel %vm1117_vm4, %v1119_v49, %v1115_v37  ;;  %v1043_v9 = vand.u32 2147483648, %v7931_v7  ;;  %v1016_v56 = vmul.f32 %v7726_v21, %v1015_v61  ;;  %vm1037_vm2 = vweird.f32 %v7931_v7 }
 0x457   :  { %v1121_v32 = vmul.f32 %v7767_v26, %v1120_v58  ;;  %v1041_v10 = vand.u32 2147483647, %v7931_v7  ;;  %vm1039_vm10 = vmor %vm1037_vm2, %vm1038_vm12  ;;  %v1050_v54 = vmul.f32 %v7997_v17, %v1049_v8  ;;  %v1078_v11 = vmul.f32 %v6949_v19, %v7952_v46 }
 0x458   :  { %v1040_v16 = vsel %vm1039_vm10, %v7974_v6, %v1036_v4  ;;  %v1044_v36 = vor.u32 1.1754944e-38, %v1043_v9  ;;  %vm1053_vm15 = vweird.f32 %v7997_v17  ;;  %v1058_v14 = vand.u32 2147483648, %v7949_v24 }
 0x459   :  { %vm1042_vm11 = vcmp.eq.f32.partialorder %v1041_v10, 8.507059e+37  ;;  %v1051_v26 = vadd.f32 %v7997_v17, %v1050_v54  ;;  %v1079_v7 = vsub.f32 1.0, %v1078_v11  ;;  %vm1052_vm0 = vweird.f32 %v7949_v24  ;;  %v8105_v11 = vld [vmem:[%s12108_s7] sm:$0xff] }
 0x45a   :  { %v1045_v21 = vsel %vm1042_vm11, %v1044_v36, %v1040_v16  ;;  %v1056_v6 = vand.u32 2147483647, %v7949_v24  ;;  %vm1054_vm5 = vmor %vm1052_vm0, %vm1053_vm15  ;;  %v1123_v53 = vmul.f32 %v6951_v22, %v8046_v43  ;;  %v1059_v30 = vor.u32 1.1754944e-38, %v1058_v14  ;;  %v8115_v14 = vld [vmem:[%s12108_s7 + $0x20] sm:$0xff] }
 0x45b   :  { %v1046_v23 = vmul.f32 %v7761_v5, %v1045_v21  ;;  %v1055_v25 = vsel %vm1054_vm5, %v7997_v17, %v1051_v26  ;;  %v1080_v47 = vmul.f32 %v6949_v19, %v1079_v7  ;;  %vm1083_vm14 = vweird.f32 %v6949_v19 }
 0x45c   :  { %vm1057_vm13 = vcmp.eq.f32.partialorder %v1056_v6, 8.507059e+37  ;;  %v1124_v34 = vsub.f32 1.0, %v1123_v53  ;;  %v1088_v5 = vand.u32 2147483648, %v7952_v46  ;;  %vm1082_vm9 = vweird.f32 %v7952_v46 }
 0x45d   :  { %1260 = vperm.xlu1 %6761, %v1151_v28   ;;  %v1060_v27 = vsel %vm1057_vm13, %v1059_v30, %v1055_v25  ;;  %v1081_v51 = vadd.f32 %v6949_v19, %v1080_v47  ;;  %v1086_v24 = vand.u32 2147483647, %v7952_v46  ;;  %vm1084_vm1 = vmor %vm1082_vm9, %vm1083_vm14  ;;  %vm1128_vm12 = vweird.f32 %v6951_v22 }
 0x45e   :  { %1179 = vperm.xlu0 %6760, %v1016_v56   ;;  %1254 = vperm.xlu2 %6762, %v1121_v32   ;;  %v1061_v12 = vmul.f32 %v7771_v29, %v1060_v27  ;;  %v1125_v62 = vmul.f32 %v6951_v22, %v1124_v34  ;;  %v1089_v17 = vor.u32 1.1754944e-38, %v1088_v5  ;;  %vm1127_vm2 = vweird.f32 %v8046_v43 }
 0x45f   :  { %v1085_v20 = vsel %vm1084_vm1, %v6949_v19, %v1081_v51  ;;  %vm1087_vm4 = vcmp.eq.f32.partialorder %v1086_v24, 8.507059e+37  ;;  %v1131_v29 = vand.u32 2147483647, %v8046_v43  ;;  %vm1129_vm10 = vmor %vm1127_vm2, %vm1128_vm12  ;;  %v1134_v42 = vor.u32 1.1754944e-38, %v1133_v38 }
 0x460   :  { %v1090_v63 = vsel %vm1087_vm4, %v1089_v17, %v1085_v20  ;;  %v1126_v13 = vadd.f32 %v6951_v22, %v1125_v62  ;;  %vm12165_vm15 = vcmask 1045509   ;;  %vm12166_vm0 = vcmask 1046534  }
 0x461   :  { %v1091_v57 = vmul.f32 %v7755_v2, %v1090_v63  ;;  %vm1132_vm11 = vcmp.eq.f32.partialorder %v1131_v29, 8.507059e+37  ;;  %vm12167_vm5 = vcmask 1047559   ;;  %vm12168_vm13 = vcmask 64512   ;;  %vm12171_vm1 = vmmov %vm12165_vm15 }
 0x462   :  { %v1130_v46 = vsel %vm1129_vm10, %v6951_v22, %v1126_v13  ;;  %v137_v32 = vmax.f32 %v7527_v39, 0.0  ;;  %vm12169_vm14 = vmmov %vm12168_vm13  ;;  %v138_v16 = vmax.f32 %v7529_v40, 0.0  ;;  %v7342_v36 = vmov 16  }
 0x463   :  { %v1135_v0 = vsel %vm1132_vm11, %v1134_v42, %v1130_v46  ;;  %vm12170_vm9 = vmmov %vm12168_vm13  ;;  %v140_v29 = vmax.f32 %v7533_v44, 0.0  ;;  %v8149_v46 = vld [vmem:[%s12108_s7 + $0x30] sm:$0xff]  ;;  %v8154_v42 = vld [vmem:[%s12108_s7 + $0x8] sm:$0xff] }
 0x464   :  { %v1136_v18 = vmul.f32 %v7765_v55, %v1135_v0  ;;  %vm12172_vm4 = vmmov %vm12166_vm0  ;;  %v8161_v0 = vld [vmem:[%s12108_s7 + $0x28] sm:$0xff] }
 0x465   :  { %6765 = vset.pattern.permute.xlu1 %v7516_v31  ;;  %vm12173_vm12 = vmmov %vm12167_vm5 }
 0x466   :  { %1239 = vperm.xlu0 %6760, %v1046_v23   ;;  %6763 = vset.pattern.permute.xlu2 %v7342_v36  ;;  %vm12174_vm2 = vmmov %vm12170_vm9 }
 0x467   :  { %1647 = vperm.xlu2 %6763, %v8105_v11   ;;  %vm12175_vm10 = vmmov %vm12174_vm2 }
 0x468   :  { %vm12176_vm11 = vmmov %vm12174_vm2 }
 0x46e   :  { %1242 = vperm.xlu0 %6760, %v1061_v12   ;;  %v8128_v12 = vld [vmem:[%s12108_s7 + $0x18] sm:$0xff] }
 0x46f   :  { %1667 = vperm.xlu2 %6763, %v8115_v14  }
 0x476   :  { %1248 = vperm.xlu0 %6760, %v1091_v57   ;;  %v139_v57 = vmax.f32 %v7531_v41, 0.0 }
 0x477   :  { %1662 = vperm.xlu2 %6763, %v8128_v12  }
 0x47e   :  { %1257 = vperm.xlu0 %6760, %v1136_v18   ;;  %v8168_v18 = vld [vmem:[%s12108_s7 + $0x10] sm:$0xff] }
 0x47f   :  { %1677 = vperm.xlu2 %6763, %v8149_v46  }
 0x486   :  { %6764 = vset.pattern.permute.xlu0 %v7342_v36 }
 0x487   :  { %1652 = vperm.xlu0 %6764, %v8154_v42   ;;  %6766 = vset.pattern.permute.xlu2 %v7516_v31 }
 0x48f   :  { %v1177_v49 = vpop.permute.xlu2 %1176  ;;  %1672 = vperm.xlu0 %6764, %v8161_v0  }
 0x490   :  { %v1189_v43 = vperm.slane %v1177_v49, %v7683_v1 }
 0x497   :  { %1657 = vperm.xlu0 %6764, %v8168_v18  }
 0x4a8   :  { %v1162_v50 = vpop.permute.xlu0 %1161 }
 0x4a9   :  { %v1184_v37 = vperm.slane %v1162_v50, %v7683_v1  ;;  %v1183_v61 = vpop.permute.xlu1 %1182 }
 0x4aa   :  { %v1191_v19 = vperm.slane %v1183_v61, %v7683_v1 }
 0x4b0   :  { %v1165_v45 = vpop.permute.xlu0 %1164  ;;  %v1246_v21 = vpop.permute.xlu2 %1245 }
 0x4b1   :  { %v1185_v3 = vperm.slane %v1165_v45, %v7683_v1  ;;  %v1264_v25 = vperm.slane %v1246_v21, %v7683_v1 }
 0x4b3   :  { %v1192_v60 = vsel %vm664_vm3, %v1185_v3, %v1184_v37 }
 0x4b8   :  { %v1168_v52 = vpop.permute.xlu0 %1167  ;;  %v1255_v27 = vpop.permute.xlu2 %1254 }
 0x4b9   :  { %v1186_v48 = vperm.slane %v1168_v52, %v7683_v1  ;;  %v1267_v24 = vperm.slane %v1255_v27, %v7683_v1  ;;  %v8174_v52 = vld [vmem:[%s12108_s7 + $0x38] sm:$0xff] }
 0x4ba   :  { %1682 = vperm.xlu0 %6764, %v8174_v52  }
 0x4bb   :  { %v1193_v55 = vsel %vm666_vm6, %v1186_v48, %v1192_v60 }
 0x4c0   :  { %v1171_v33 = vpop.permute.xlu0 %1170 }
 0x4c1   :  { %v1187_v15 = vperm.slane %v1171_v33, %v7683_v1 }
 0x4c2   :  { %6770 = vset.pattern.permute.xlu0 %v7516_v31 }
 0x4c3   :  { %v1194_v59 = vsel %vm668_vm7, %v1187_v15, %v1193_v55 }
 0x4c7   :  { %v1252_v7 = vpop.permute.xlu1 %1251 }
 0x4c8   :  { %v1174_v2 = vpop.permute.xlu0 %1173  ;;  %v1266_v51 = vperm.slane %v1252_v7, %v7683_v1 }
 0x4c9   :  { %v1188_v35 = vperm.slane %v1174_v2, %v7683_v1 }
 0x4cb   :  { %v1195_v58 = vsel %vm670_vm8, %v1188_v35, %v1194_v59 }
 0x4cc   :  { %v1196_v28 = vsel %vm12165_vm15, %v1189_v43, %v1195_v58 }
 0x4cf   :  { %v1261_v34 = vpop.permute.xlu1 %1260 }
 0x4d0   :  { %v1180_v4 = vpop.permute.xlu0 %1179  ;;  %v1269_v17 = vperm.slane %v1261_v34, %v7683_v1 }
 0x4d1   :  { %v1190_v8 = vperm.slane %v1180_v4, %v7683_v1 }
 0x4d3   :  { %v1197_v9 = vsel %vm12166_vm0, %v1190_v8, %v1196_v28 }
 0x4d4   :  { %v1198_v56 = vsel %vm12167_vm5, %v1191_v19, %v1197_v9 }
 0x4d5   :  { %6654 = vmatpush.xpose.msk.msrb.mxu2 %vm12168_vm13, %v1198_v56 }
 0x4d8   :  { %v1240_v10 = vpop.permute.xlu0 %1239  ;;  %6655 = vmatmul.msk.f32.vlgmr.msrb.gmra.mxu2 %vm12169_vm14, %v137_v32 }
 0x4d9   :  { %v1262_v22 = vperm.slane %v1240_v10, %v7683_v1 }
 0x4e0   :  { %v1243_v54 = vpop.permute.xlu0 %1242  ;;  %6656 = vmatmul.msk.f32.gmra.mxu2 %vm12170_vm9, %v138_v16 }
 0x4e1   :  { %v1263_v26 = vperm.slane %v1243_v54, %v7683_v1 }
 0x4e3   :  { %v1270_v23 = vsel %vm664_vm3, %v1263_v26, %v1262_v22 }
 0x4e4   :  { %v1271_v53 = vsel %vm666_vm6, %v1264_v25, %v1270_v23 }
 0x4e8   :  { %v1249_v6 = vpop.permute.xlu0 %1248 }
 0x4e9   :  { %v1265_v47 = vperm.slane %v1249_v6, %v7683_v1 }
 0x4eb   :  { %v1272_v30 = vsel %vm668_vm7, %v1265_v47, %v1271_v53 }
 0x4ec   :  { %v1273_v5 = vsel %vm670_vm8, %v1266_v51, %v1272_v30 }
 0x4ed   :  { %v1274_v63 = vsel %vm12171_vm1, %v1267_v24, %v1273_v5 }
 0x4f0   :  { %v1258_v20 = vpop.permute.xlu0 %1257 }
 0x4f1   :  { %v1268_v62 = vperm.slane %v1258_v20, %v7683_v1 }
 0x4f3   :  { %v1275_v13 = vsel %vm12172_vm4, %v1268_v62, %v1274_v63 }
 0x4f4   :  { %v1276_v38 = vsel %vm12173_vm12, %v1269_v17, %v1275_v13 }
 0x4f5   :  { %6657 = vmatpush.xpose.msk.msra.mxu2 %vm12174_vm2, %v1276_v38 }
 0x4f8   :  { %6658 = vmatmul.msk.f32.vlgmr.msra.gmra.mxu2 %vm12175_vm10, %v139_v57 }
 0x500   :  { %6659 = vmatmul.msk.f32.gmra.mxu2 %vm12176_vm11, %v140_v29 }
 0x55b   :  { %v1224_v50 = vpop.f32.mrf.mxu2 }
 0x55c   :  { %v6660_v45 = vmul.f32 -1.442695, %v1224_v50 }
 0x55e   :  { %6952 = vpow2.f32 %v6660_v45 }
 0x563   :  { %v1227_v33 = vpop.f32.mrf.mxu2 }
 0x564   :  { %v6953_v3 = vpop.eup %6952  ;;  %v6661_v2 = vmul.f32 -1.442695, %v1227_v33 }
 0x565   :  { %v1320_v48 = vadd.f32 1.0, %v6953_v3 }
 0x566   :  { %6954 = vpow2.f32 %v6661_v2 }
 0x567   :  { %6956 = vrcp.f32 %v1320_v48  ;;  %v1335_v55 = vand.u32 2147483648, %v1320_v48  ;;  %v1333_v61 = vand.u32 2147483647, %v1320_v48  ;;  %vm1329_vm0 = vweird.f32 %v1320_v48 }
 0x569   :  { %v1336_v4 = vor.u32 1.1754944e-38, %v1335_v55  ;;  %vm1334_vm13 = vcmp.eq.f32.partialorder %v1333_v61, 8.507059e+37  ;;  %v8182_v55 = vpop.permute.xlu2 %1647 }
 0x56c   :  { %v6955_v37 = vpop.eup %6954 }
 0x56d   :  { %v6957_v15 = vpop.eup %6956  ;;  %v1321_v35 = vadd.f32 1.0, %v6955_v37 }
 0x56e   :  { %v1325_v60 = vmul.f32 %v6957_v15, %v1320_v48  ;;  %vm1330_vm15 = vweird.f32 %v6957_v15 }
 0x56f   :  { %6958 = vrcp.f32 %v1321_v35  ;;  %vm1331_vm5 = vmor %vm1329_vm0, %vm1330_vm15  ;;  %v1350_v56 = vand.u32 2147483648, %v1321_v35  ;;  %v1348_v54 = vand.u32 2147483647, %v1321_v35  ;;  %vm1344_vm9 = vweird.f32 %v1321_v35 }
 0x570   :  { %v1326_v49 = vsub.f32 1.0, %v1325_v60 }
 0x571   :  { %v1351_v22 = vor.u32 1.1754944e-38, %v1350_v56  ;;  %vm1349_vm4 = vcmp.eq.f32.partialorder %v1348_v54, 8.507059e+37 }
 0x572   :  { %v1327_v59 = vmul.f32 %v6957_v15, %v1326_v49 }
 0x574   :  { %v1328_v58 = vadd.f32 %v6957_v15, %v1327_v59  ;;  %v8184_v59 = vpop.permute.xlu2 %1667 }
 0x575   :  { %v6959_v43 = vpop.eup %6958 }
 0x576   :  { %v1332_v8 = vsel %vm1331_vm5, %v6957_v15, %v1328_v58  ;;  %v1340_v19 = vmul.f32 %v6959_v43, %v1321_v35  ;;  %vm1345_vm14 = vweird.f32 %v6959_v43 }
 0x577   :  { %v1337_v28 = vsel %vm1334_vm13, %v1336_v4, %v1332_v8  ;;  %vm1346_vm1 = vmor %vm1344_vm9, %vm1345_vm14  ;;  %v53_v4 = vld [vmem:[%s12109_s5] sm:$0xff]  ;;  %vm12177_vm14 = vcmask 64512   ;;  %vm12179_vm9 = vcmask 130048  }
 0x578   :  { %1388 = vrot.lane.b32.xlu2 %v1337_v28, %s7343_s29  ;;  %v1341_v9 = vsub.f32 1.0, %v1340_v19 }
 0x57a   :  { %v1342_v10 = vmul.f32 %v6959_v43, %v1341_v9 }
 0x57b   :  { %v1302_v21 = vpop.f32.mrf.mxu2 }
 0x57c   :  { %v6662_v26 = vmul.f32 -1.442695, %v1302_v21  ;;  %v1343_v7 = vadd.f32 %v6959_v43, %v1342_v10  ;;  %v8186_v61 = vpop.permute.xlu2 %1662  ;;  %v54_v21 = vld [vmem:[%s12109_s5 + $0x8] sm:$0xff] }
 0x57e   :  { %6960 = vpow2.f32 %v6662_v26  ;;  %v1347_v23 = vsel %vm1346_vm1, %v6959_v43, %v1343_v7  ;;  %v8190_v43 = vpop.permute.xlu0 %1652  ;;  %vm12180_vm1 = vmmov %vm12177_vm14 }
 0x57f   :  { %v1352_v6 = vsel %vm1349_vm4, %v1351_v22, %v1347_v23  ;;  %vm12182_vm4 = vmmov %vm12179_vm9  ;;  %v56_v22 = vld [vmem:[%s12109_s5 + $0x18] sm:$0xff] }
 0x580   :  { %1390 = vrot.lane.b32.xlu0 %v1352_v6, %s7343_s29 }
 0x583   :  { %v1305_v25 = vpop.f32.mrf.mxu2 }
 0x584   :  { %v6961_v47 = vpop.eup %6960  ;;  %v6663_v53 = vmul.f32 -1.442695, %v1305_v25  ;;  %v8188_v58 = vpop.permute.xlu2 %1677 }
 0x585   :  { %v1322_v30 = vadd.f32 1.0, %v6961_v47 }
 0x586   :  { %6962 = vpow2.f32 %v6663_v53  ;;  %v8200_v9 = vpop.permute.xlu0 %1672 }
 0x587   :  { %6964 = vrcp.f32 %v1322_v30  ;;  %v1365_v20 = vand.u32 2147483648, %v1322_v30  ;;  %v1363_v17 = vand.u32 2147483647, %v1322_v30  ;;  %vm1359_vm2 = vweird.f32 %v1322_v30 }
 0x589   :  { %v1366_v38 = vor.u32 1.1754944e-38, %v1365_v20  ;;  %vm1364_vm11 = vcmp.eq.f32.partialorder %v1363_v17, 8.507059e+37 }
 0x58c   :  { %v6963_v27 = vpop.eup %6962 }
 0x58d   :  { %v6965_v51 = vpop.eup %6964  ;;  %v1323_v34 = vadd.f32 1.0, %v6963_v27 }
 0x58e   :  { %v1355_v5 = vmul.f32 %v6965_v51, %v1322_v30  ;;  %vm1360_vm12 = vweird.f32 %v6965_v51  ;;  %v8204_v10 = vpop.permute.xlu0 %1657 }
 0x58f   :  { %6966 = vrcp.f32 %v1323_v34  ;;  %vm1361_vm10 = vmor %vm1359_vm2, %vm1360_vm12  ;;  %v1380_v2 = vand.u32 2147483648, %v1323_v34  ;;  %v1378_v37 = vand.u32 2147483647, %v1323_v34  ;;  %vm1374_vm0 = vweird.f32 %v1323_v34 }
 0x590   :  { %v1356_v24 = vsub.f32 1.0, %v1355_v5  ;;  %vm12183_vm12 = vmmov %vm12180_vm1 }
 0x591   :  { %v1381_v35 = vor.u32 1.1754944e-38, %v1380_v2  ;;  %vm1379_vm13 = vcmp.eq.f32.partialorder %v1378_v37, 8.507059e+37  ;;  %vm12185_vm2 = vmmov %vm12182_vm4 }
 0x592   :  { %v1357_v62 = vmul.f32 %v6965_v51, %v1356_v24 }
 0x594   :  { %v1358_v63 = vadd.f32 %v6965_v51, %v1357_v62 }
 0x595   :  { %v6967_v13 = vpop.eup %6966 }
 0x596   :  { %v1362_v50 = vsel %vm1361_vm10, %v6965_v51, %v1358_v63  ;;  %v1370_v45 = vmul.f32 %v6967_v13, %v1323_v34  ;;  %vm1375_vm15 = vweird.f32 %v6967_v13  ;;  %v8206_v54 = vpop.permute.xlu0 %1682  ;;  %vm12186_vm10 = vmmov %vm12180_vm1 }
 0x597   :  { %v1367_v33 = vsel %vm1364_vm11, %v1366_v38, %v1362_v50  ;;  %vm1376_vm5 = vmor %vm1374_vm0, %vm1375_vm15 }
 0x598   :  { %1392 = vrot.lane.b32.xlu1 %v1367_v33, %s7343_s29  ;;  %v1371_v3 = vsub.f32 1.0, %v1370_v45  ;;  %vm12188_vm11 = vmmov %vm12185_vm2 }
 0x599   :  { %vm12190_vm0 = vmmov %vm12185_vm2 }
 0x59a   :  { %v1372_v48 = vmul.f32 %v6967_v13, %v1371_v3 }
 0x59c   :  { %v1373_v15 = vadd.f32 %v6967_v13, %v1372_v48 }
 0x59e   :  { %v1377_v60 = vsel %vm1376_vm5, %v6967_v13, %v1373_v15  ;;  %vm12191_vm5 = vmmov %vm12190_vm0 }
 0x59f   :  { %v1382_v49 = vsel %vm1379_vm13, %v1381_v35, %v1377_v60  ;;  %vm12192_vm13 = vmmov %vm12190_vm0 }
 0x5a0   :  { %1394 = vrot.lane.b32.xlu2 %v1382_v49, %s7343_s29 }
 0x5d2   :  { %v1389_v8 = vpop.permute.xlu2 %1388 }
 0x5d3   :  { %v1400_v19 = vsel %vm12177_vm14, %v137_v32, %v1389_v8  ;;  %vm12193_vm14 = vmmov %vm12190_vm0 }
 0x5d4   :  { %v8198_v28 = vadd.f32 %v1400_v19, %v53_v4 }
 0x5d6   :  { %12178 = vst [vmem:[#allocation4_spill] sm:$0xff] %v8198_v28  ;;  %v1434_v56 = vsel %vm12179_vm9, %v8198_v28, 0.0 }
 0x5d7   :  { %1435 = vadd.xlane.f32.xlu0 %v1434_v56 }
 0x5f2   :  { %v1391_v26 = vpop.permute.xlu0 %1390 }
 0x5f3   :  { %v1401_v39 = vsel %vm12180_vm1, %v138_v16, %v1391_v26  ;;  %v55_v16 = vld [vmem:[%s12109_s5 + $0x10] sm:$0xff] }
 0x5f4   :  { %v8214_v32 = vadd.f32 %v1401_v39, %v54_v21 }
 0x5f6   :  { %12181 = vst [vmem:[#allocation5_spill] sm:$0xff] %v8214_v32  ;;  %v1437_v7 = vsel %vm12182_vm4, %v8214_v32, 0.0 }
 0x5f7   :  { %1438 = vadd.xlane.f32.xlu1 %v1437_v7 }
 0x5fa   :  { %v1395_v23 = vpop.permute.xlu2 %1394 }
 0x5fb   :  { %v1403_v6 = vsel %vm12183_vm12, %v140_v29, %v1395_v23  ;;  %v7344_v29 = vmov 16.0  }
 0x5fc   :  { %v8224_v25 = vadd.f32 %v1403_v6, %v56_v22  ;;  %6968 = vrcp.f32 %v7344_v29 }
 0x5fe   :  { %12184 = vst [vmem:[#allocation6_spill] sm:$0xff] %v8224_v25  ;;  %v1443_v40 = vsel %vm12185_vm2, %v8224_v25, 0.0 }
 0x5ff   :  { %1444 = vadd.xlane.f32.xlu0 %v1443_v40 }
 0x602   :  { %v6969_v27 = vpop.eup %6968 }
 0x603   :  { %v1447_v51 = vmul.f32 16.0, %v6969_v27  ;;  %vm1451_vm15 = vweird.f32 %v6969_v27 }
 0x605   :  { %v1448_v34 = vsub.f32 1.0, %v1447_v51 }
 0x607   :  { %v1449_v5 = vmul.f32 %v6969_v27, %v1448_v34  ;;  %v1409_v34 = vld [vmem:[%s12110_s6 + $0x8] sm:$0xff] }
 0x608   :  { %1630 = vmatpush.msra.mxu3 %v1409_v34 }
 0x609   :  { %v1450_v24 = vadd.f32 %v6969_v27, %v1449_v5  ;;  %v1408_v5 = vld [vmem:[%s12110_s6] sm:$0xff] }
 0x60a   :  { %v1393_v47 = vpop.permute.xlu1 %1392  ;;  %1631 = vmatpush.msra.mxu3 %v1408_v5 }
 0x60b   :  { %v1402_v53 = vsel %vm12186_vm10, %v139_v57, %v1393_v47  ;;  %v8238_v20 = vsel %vm1451_vm15, %v6969_v27, %v1450_v24  ;;  %v1433_v24 = vld [vmem:[%s12111_s9 + $0x40] sm:$0x1f] }
 0x60c   :  { %v8234_v30 = vadd.f32 %v1402_v53, %v55_v16  ;;  %12189 = vst [vmem:[#allocation8_spill] sm:$0xff] %v8238_v20 }
 0x60e   :  { %12187 = vst [vmem:[#allocation7_spill] sm:$0xff] %v8234_v30  ;;  %v1440_v44 = vsel %vm12188_vm11, %v8234_v30, 0.0  ;;  %vm12194_vm11 = vmmov %vm12190_vm0 }
 0x60f   :  { %1441 = vadd.xlane.f32.xlu2 %v1440_v44 }
 0x64a   :  { %v1436_v62 = vpop.xlane.xlu0 %1435 }
 0x64b   :  { %v1453_v41 = vmul.f32 %v8238_v20, %v1436_v62 }
 0x64d   :  { %v8242_v57 = vsub.f32 %v8198_v28, %v1453_v41 }
 0x64f   :  { %v1461_v17 = vmul.f32 %v8242_v57, %v8242_v57 }
 0x651   :  { %v1465_v63 = vsel %vm12190_vm0, %v1461_v17, 0.0 }
 0x652   :  { %1466 = vadd.xlane.f32.xlu1 %v1465_v63 }
 0x66a   :  { %v1439_v13 = vpop.xlane.xlu1 %1438 }
 0x66b   :  { %v1454_v38 = vmul.f32 %v8238_v20, %v1439_v13  ;;  %v8277_v13 = vperm.slane %v1433_v24, 1 }
 0x66d   :  { %v8249_v50 = vsub.f32 %v8214_v32, %v1454_v38 }
 0x66f   :  { %v1462_v45 = vmul.f32 %v8249_v50, %v8249_v50 }
 0x671   :  { %v1468_v33 = vsel %vm12191_vm5, %v1462_v45, 0.0 }
 0x672   :  { %1469 = vadd.xlane.f32.xlu2 %v1468_v33  ;;  %v1445_v3 = vpop.xlane.xlu0 %1444 }
 0x673   :  { %v1456_v2 = vmul.f32 %v8238_v20, %v1445_v3 }
 0x675   :  { %v8256_v48 = vsub.f32 %v8224_v25, %v1456_v2 }
 0x677   :  { %v1464_v37 = vmul.f32 %v8256_v48, %v8256_v48 }
 0x679   :  { %v1474_v15 = vsel %vm12192_vm13, %v1464_v37, 0.0 }
 0x67a   :  { %1475 = vadd.xlane.f32.xlu1 %v1474_v15  ;;  %v1482_v15 = vmul.f32 %v8277_v13, %v8242_v57 }
 0x682   :  { %v1442_v35 = vpop.xlane.xlu2 %1441 }
 0x683   :  { %v1455_v60 = vmul.f32 %v8238_v20, %v1442_v35 }
 0x685   :  { %v8263_v49 = vsub.f32 %v8234_v30, %v1455_v60 }
 0x687   :  { %v1463_v4 = vmul.f32 %v8263_v49, %v8263_v49 }
 0x689   :  { %v1471_v8 = vsel %vm12193_vm14, %v1463_v4, 0.0  ;;  %v8281_v4 = vperm.slane %v1433_v24, 2 }
 0x68a   :  { %1472 = vadd.xlane.f32.xlu0 %v1471_v8 }
 0x6c5   :  { %v1467_v19 = vpop.xlane.xlu1 %1466 }
 0x6c6   :  { %v1477_v56 = vmul.f32 0.06666667, %v1467_v19 }
 0x6c8   :  { %6970 = vrsqrt.f32 %v1477_v56  ;;  %vm1493_vm9 = vcmp.eq.f32.partialorder %v1477_v56, inf  ;;  %v1496_v40 = vand.u32 2147483648, %v1477_v56  ;;  %vm1495_vm1 = vcmp.eq.f32.partialorder %v1477_v56, 0.0 }
 0x6ce   :  { %v6971_v21 = vpop.eup %6970 }
 0x6cf   :  { %v1487_v26 = vmul.f32 %v6971_v21, %v1477_v56 }
 0x6d1   :  { %v1488_v39 = vmul.f32 %v6971_v21, %v1487_v26 }
 0x6d3   :  { %v1489_v7 = vmul.f32 0.5, %v1488_v39 }
 0x6d5   :  { %v1490_v22 = vsub.f32 1.5, %v1489_v7 }
 0x6d7   :  { %v1491_v23 = vmul.f32 %v6971_v21, %v1490_v22 }
 0x6d9   :  { %v1492_v6 = vmul.f32 %v1491_v23, %v1477_v56 }
 0x6db   :  { %v1494_v16 = vsel %vm1493_vm9, %v1477_v56, %v1492_v6 }
 0x6dc   :  { %v1497_v47 = vsel %vm1495_vm1, %v1496_v40, %v1494_v16 }
 0x6dd   :  { %v1534_v53 = vadd.f32 1e-06, %v1497_v47 }
 0x6df   :  { %6972 = vrcp.f32 %v1534_v53  ;;  %v1549_v41 = vand.u32 2147483648, %v1534_v53  ;;  %v1547_v63 = vand.u32 2147483647, %v1534_v53  ;;  %vm1543_vm12 = vweird.f32 %v1534_v53 }
 0x6e1   :  { %v1550_v33 = vor.u32 1.1754944e-38, %v1549_v41  ;;  %vm1548_vm10 = vcmp.eq.f32.partialorder %v1547_v63, 8.507059e+37 }
 0x6e5   :  { %v6973_v44 = vpop.eup %6972  ;;  %v1470_v29 = vpop.xlane.xlu2 %1469 }
 0x6e6   :  { %v1478_v27 = vmul.f32 0.06666667, %v1470_v29  ;;  %v1539_v51 = vmul.f32 %v6973_v44, %v1534_v53  ;;  %vm1544_vm4 = vweird.f32 %v6973_v44 }
 0x6e7   :  { %vm1545_vm2 = vmor %vm1543_vm12, %vm1544_vm4 }
 0x6e8   :  { %6974 = vrsqrt.f32 %v1478_v27  ;;  %v1540_v62 = vsub.f32 1.0, %v1539_v51  ;;  %vm1505_vm15 = vcmp.eq.f32.partialorder %v1478_v27, inf  ;;  %v1508_v6 = vand.u32 2147483648, %v1478_v27 }
 0x6e9   :  { %vm1507_vm0 = vcmp.eq.f32.partialorder %v1478_v27, 0.0 }
 0x6ea   :  { %v1541_v17 = vmul.f32 %v6973_v44, %v1540_v62 }
 0x6ec   :  { %v1542_v38 = vadd.f32 %v6973_v44, %v1541_v17 }
 0x6ed   :  { %v1476_v45 = vpop.xlane.xlu1 %1475 }
 0x6ee   :  { %v6975_v3 = vpop.eup %6974  ;;  %v1480_v2 = vmul.f32 0.06666667, %v1476_v45  ;;  %v1546_v37 = vsel %vm1545_vm2, %v6973_v44, %v1542_v38 }
 0x6ef   :  { %v1499_v35 = vmul.f32 %v6975_v3, %v1478_v27  ;;  %v1551_v60 = vsel %vm1548_vm10, %v1550_v33, %v1546_v37 }
 0x6f0   :  { %6976 = vrsqrt.f32 %v1480_v2  ;;  %v1552_v19 = vmul.f32 %v1551_v60, %v1482_v15  ;;  %vm1529_vm5 = vcmp.eq.f32.partialorder %v1480_v2, inf  ;;  %v1532_v24 = vand.u32 2147483648, %v1480_v2 }
 0x6f1   :  { %v1500_v8 = vmul.f32 %v6975_v3, %v1499_v35  ;;  %vm1531_vm13 = vcmp.eq.f32.partialorder %v1480_v2, 0.0 }
 0x6f2   :  { %v8284_v21 = vadd.f32 %v8281_v4, %v1552_v19 }
 0x6f3   :  { %v1501_v56 = vmul.f32 0.5, %v1500_v8 }
 0x6f4   :  { %6664 = vmatmul.msk.f32.vlgmr.msra.gmra.mxu3 %vm12194_vm11, %v8284_v21 }
 0x6f5   :  { %v1502_v26 = vsub.f32 1.5, %v1501_v56 }
 0x6f6   :  { %v6977_v39 = vpop.eup %6976 }
 0x6f7   :  { %v1503_v7 = vmul.f32 %v6975_v3, %v1502_v26  ;;  %v1523_v22 = vmul.f32 %v6977_v39, %v1480_v2  ;;  %v1483_v26 = vmul.f32 %v8277_v13, %v8249_v50 }
 0x6f9   :  { %v1504_v23 = vmul.f32 %v1503_v7, %v1478_v27  ;;  %v1524_v57 = vmul.f32 %v6977_v39, %v1523_v22 }
 0x6fb   :  { %v1525_v40 = vmul.f32 0.5, %v1524_v57  ;;  %v1506_v16 = vsel %vm1505_vm15, %v1478_v27, %v1504_v23  ;;  %vm12195_vm15 = vmmov %vm12194_vm11 }
 0x6fc   :  { %v1509_v47 = vsel %vm1507_vm0, %v1508_v6, %v1506_v16 }
 0x6fd   :  { %v1526_v53 = vsub.f32 1.5, %v1525_v40  ;;  %v1473_v44 = vpop.xlane.xlu0 %1472  ;;  %v1535_v29 = vadd.f32 1e-06, %v1509_v47 }
 0x6fe   :  { %v1479_v51 = vmul.f32 0.06666667, %v1473_v44 }
 0x6ff   :  { %v1527_v34 = vmul.f32 %v6977_v39, %v1526_v53  ;;  %6978 = vrcp.f32 %v1535_v29  ;;  %v1564_v37 = vand.u32 2147483648, %v1535_v29  ;;  %v1562_v35 = vand.u32 2147483647, %v1535_v29 }
 0x700   :  { %6980 = vrsqrt.f32 %v1479_v51  ;;  %vm1558_vm9 = vweird.f32 %v1535_v29  ;;  %vm1517_vm12 = vcmp.eq.f32.partialorder %v1479_v51, inf  ;;  %v1520_v16 = vand.u32 2147483648, %v1479_v51 }
 0x701   :  { %v1528_v5 = vmul.f32 %v1527_v34, %v1480_v2  ;;  %vm1563_vm4 = vcmp.eq.f32.partialorder %v1562_v35, 8.507059e+37  ;;  %vm1519_vm10 = vcmp.eq.f32.partialorder %v1479_v51, 0.0  ;;  %v1484_v35 = vmul.f32 %v8277_v13, %v8263_v49 }
 0x703   :  { %v1530_v62 = vsel %vm1529_vm5, %v1480_v2, %v1528_v5  ;;  %v1565_v2 = vor.u32 1.1754944e-38, %v1564_v37  ;;  %vm12196_vm5 = vmmov %vm12194_vm11 }
 0x704   :  { %v1533_v41 = vsel %vm1531_vm13, %v1532_v24, %v1530_v62 }
 0x705   :  { %v6979_v17 = vpop.eup %6978  ;;  %v1537_v63 = vadd.f32 1e-06, %v1533_v41  ;;  %v1485_v41 = vmul.f32 %v8277_v13, %v8256_v48 }
 0x706   :  { %v6981_v38 = vpop.eup %6980  ;;  %v1554_v45 = vmul.f32 %v6979_v17, %v1535_v29  ;;  %vm1559_vm14 = vweird.f32 %v6979_v17 }
 0x707   :  { %6982 = vrcp.f32 %v1537_v63  ;;  %v1511_v27 = vmul.f32 %v6981_v38, %v1479_v51  ;;  %vm1560_vm1 = vmor %vm1558_vm9, %vm1559_vm14  ;;  %v1594_v47 = vand.u32 2147483648, %v1537_v63  ;;  %v1592_v29 = vand.u32 2147483647, %v1537_v63 }
 0x708   :  { %v1555_v33 = vsub.f32 1.0, %v1554_v45  ;;  %vm1588_vm0 = vweird.f32 %v1537_v63  ;;  %vm12197_vm9 = vmmov %vm12196_vm5 }
 0x709   :  { %v1512_v3 = vmul.f32 %v6981_v38, %v1511_v27  ;;  %v1595_v24 = vor.u32 1.1754944e-38, %v1594_v47  ;;  %vm1593_vm14 = vcmp.eq.f32.partialorder %v1592_v29, 8.507059e+37 }
 0x70a   :  { %v1556_v15 = vmul.f32 %v6979_v17, %v1555_v33 }
 0x70b   :  { %v1513_v60 = vmul.f32 0.5, %v1512_v3 }
 0x70c   :  { %v1557_v8 = vadd.f32 %v6979_v17, %v1556_v15 }
 0x70d   :  { %v6983_v19 = vpop.eup %6982  ;;  %v1514_v56 = vsub.f32 1.5, %v1513_v60 }
 0x70e   :  { %v1561_v39 = vsel %vm1560_vm1, %v6979_v17, %v1557_v8  ;;  %v1584_v7 = vmul.f32 %v6983_v19, %v1537_v63  ;;  %vm1589_vm2 = vweird.f32 %v6983_v19  ;;  %vm12198_vm1 = vmmov %vm12196_vm5 }
 0x70f   :  { %v1515_v22 = vmul.f32 %v6981_v38, %v1514_v56  ;;  %v1566_v23 = vsel %vm1563_vm4, %v1565_v2, %v1561_v39  ;;  %vm1590_vm13 = vmor %vm1588_vm0, %vm1589_vm2 }
 0x710   :  { %v1567_v57 = vmul.f32 %v1566_v23, %v1483_v26  ;;  %v1585_v6 = vsub.f32 1.0, %v1584_v7  ;;  %vm12199_vm4 = vmmov %vm12198_vm1 }
 0x711   :  { %v1516_v40 = vmul.f32 %v1515_v22, %v1479_v51 }
 0x712   :  { %v1600_v53 = vadd.f32 %v8281_v4, %v1567_v57  ;;  %v1586_v44 = vmul.f32 %v6983_v19, %v1585_v6 }
 0x713   :  { %v1518_v34 = vsel %vm1517_vm12, %v1479_v51, %v1516_v40  ;;  %vm12200_vm12 = vmmov %vm12198_vm1 }
 0x714   :  { %6665 = vmatmul.msk.f32.gmra.mxu3 %vm12194_vm11, %v1600_v53  ;;  %6668 = vmatpush.xpose.msk.msra.mxu0 %vm12195_vm15, %v1600_v53  ;;  %v1587_v50 = vadd.f32 %v6983_v19, %v1586_v44  ;;  %v1521_v5 = vsel %vm1519_vm10, %v1520_v16, %v1518_v34  ;;  %vm12201_vm10 = vmmov %vm12198_vm1 }
 0x715   :  { %6750 = vmatpush.xpose.msk.msrb.mxu3 %vm12196_vm5, %v1600_v53  ;;  %v1536_v62 = vadd.f32 1e-06, %v1521_v5  ;;  %vm12202_vm5 = vmmov %vm12198_vm1 }
 0x716   :  { %v1591_v17 = vsel %vm1590_vm13, %v6983_v19, %v1587_v50  ;;  %vm12203_vm13 = vmmov %vm12198_vm1 }
 0x717   :  { %v1596_v38 = vsel %vm1593_vm14, %v1595_v24, %v1591_v17  ;;  %6984 = vrcp.f32 %v1536_v62  ;;  %v1579_v33 = vand.u32 2147483648, %v1536_v62  ;;  %v1577_v37 = vand.u32 2147483647, %v1536_v62  ;;  %vm12204_vm14 = vmmov %vm12198_vm1 }
 0x718   :  { %6669 = vmatpush.xpose.msk.msra.mxu0 %vm12197_vm9, %v8284_v21  ;;  %v1597_v51 = vmul.f32 %v1596_v38, %v1485_v41  ;;  %vm1573_vm11 = vweird.f32 %v1536_v62  ;;  %vm12205_vm9 = vmmov %vm12198_vm1 }
 0x719   :  { %6751 = vmatpush.xpose.msk.msrb.mxu3 %vm12198_vm1, %v8284_v21  ;;  %v1580_v21 = vor.u32 1.1754944e-38, %v1579_v33  ;;  %vm1578_vm0 = vcmp.eq.f32.partialorder %v1577_v37, 8.507059e+37 }
 0x71a   :  { %v1602_v63 = vadd.f32 %v8281_v4, %v1597_v51 }
 0x71b   :  { %6670 = vmatmul.msk.f32.vlgmr.msra.gmra.mxu0 %vm12199_vm4, %v8105_v11  ;;  %vm12206_vm4 = vmmov %vm12198_vm1 }
 0x71c   :  { %6674 = vmatpush.xpose.msk.msra.mxu1 %vm12200_vm12, %v1602_v63  ;;  %vm12207_vm12 = vmmov %vm12198_vm1 }
 0x71d   :  { %v6985_v45 = vpop.eup %6984 }
 0x71e   :  { %v1569_v48 = vmul.f32 %v6985_v45, %v1536_v62  ;;  %vm1574_vm2 = vweird.f32 %v6985_v45 }
 0x71f   :  { %vm1575_vm15 = vmor %vm1573_vm11, %vm1574_vm2 }
 0x720   :  { %v1570_v27 = vsub.f32 1.0, %v1569_v48  ;;  %vm12208_vm2 = vmmov %vm12198_vm1 }
 0x721   :  { %vm12211_vm11 = vmmov %vm12198_vm1 }
 0x722   :  { %v1571_v3 = vmul.f32 %v6985_v45, %v1570_v27 }
 0x723   :  { %6671 = vmatmul.msk.f32.gmra.mxu0 %vm12201_vm10, %v8154_v42  ;;  %vm12209_vm10 = vmmov %vm12198_vm1  ;;  %v8327_v42 = vld [vmem:[%s12110_s6 + $0x10] ss:$0 sm:$0xff] }
 0x724   :  { %v1572_v15 = vadd.f32 %v6985_v45, %v1571_v3 }
 0x726   :  { %v1576_v11 = vsel %vm1575_vm15, %v6985_v45, %v1572_v15  ;;  %vm12212_vm15 = vmmov %vm12198_vm1 }
 0x727   :  { %v1581_v60 = vsel %vm1578_vm0, %v1580_v21, %v1576_v11  ;;  %vm12213_vm0 = vmmov %vm12198_vm1 }
 0x728   :  { %v1582_v8 = vmul.f32 %v1581_v60, %v1484_v35 }
 0x72a   :  { %v1601_v19 = vadd.f32 %v8281_v4, %v1582_v8 }
 0x72b   :  { %6672 = vmatmul.msk.f32.gmra.mxu0 %vm12202_vm5, %v8168_v18  ;;  %vm12214_vm5 = vmmov %vm12213_vm0 }
 0x72c   :  { %6666 = vmatmul.msk.f32.gmra.mxu3 %vm12203_vm13, %v1601_v19  ;;  %6675 = vmatpush.xpose.msk.msra.mxu1 %vm12204_vm14, %v1601_v19  ;;  %vm12215_vm13 = vmmov %vm12213_vm0 }
 0x72d   :  { %vm12216_vm14 = vmmov %vm12213_vm0 }
 0x72f   :  { %6676 = vmatmul.msk.f32.vlgmr.msra.gmra.mxu1 %vm12205_vm9, %v8115_v14  ;;  %vm12217_vm9 = vmmov %vm12213_vm0 }
 0x734   :  { %6667 = vmatmul.msk.f32.gmra.mxu3 %vm12198_vm1, %v1602_v63  ;;  %vm12218_vm1 = vmmov %vm12213_vm0 }
 0x737   :  { %6677 = vmatmul.msk.f32.gmra.mxu1 %vm12206_vm4, %v8161_v0  ;;  %vm12219_vm4 = vmmov %vm12213_vm0 }
 0x73c   :  { %6673 = vmatmul.msk.f32.vlgmr.msrb.gmra.mxu3 %vm12207_vm12, %v8128_v12  ;;  %v8331_v12 = vadd.s32 8, %v7516_v31  ;;  %vm12220_vm12 = vmmov %vm12213_vm0 }
 0x73e   :  { %12210 = vst [vmem:[#allocation9_spill] sm:$0xff] %v8331_v12 }
 0x73f   :  { %6678 = vmatmul.msk.f32.gmra.mxu1 %vm12208_vm2, %v8149_v46  ;;  %vm12221_vm2 = vmmov %vm12213_vm0 }
 0x747   :  { %6679 = vmatmul.msk.f32.gmra.mxu1 %vm12209_vm10, %v8174_v52  ;;  %vm12222_vm10 = vmmov %vm12213_vm0 }
 0x777   :  { %v1633_v14 = vpop.f32.mrf.mxu3 }
 0x778   :  { %v1634_v18 = vadd.f32 %v8327_v42, %v1633_v14 }
 0x77a   :  { %v1766_v49 = vperm.slane %v1634_v18, 1  ;;  %v1759_v13 = vperm.slane %v1634_v18, 0  ;;  %v1780_v0 = vperm.slane %v1634_v18, 3  ;;  %v1794_v46 = vperm.slane %v1634_v18, 5 }
 0x77b   :  { %v1773_v52 = vperm.slane %v1634_v18, 2  ;;  %v1787_v26 = vperm.slane %v1634_v18, 4  ;;  %v1801_v7 = vperm.slane %v1634_v18, 6  ;;  %v1808_v23 = vperm.slane %v1634_v18, 7 }
 0x77c   :  { %1771 = vperm.xlu2 %6766, %v1766_v49   ;;  %1764 = vperm.xlu1 %6765, %v1759_v13  }
 0x77d   :  { %1785 = vperm.xlu0 %6770, %v1780_v0  }
 0x784   :  { %6768 = vset.pattern.permute.xlu2 %v8331_v12  ;;  %6767 = vset.pattern.permute.xlu1 %v8331_v12 }
 0x785   :  { %6773 = vset.pattern.permute.xlu0 %v8331_v12 }
 0x78c   :  { %2025 = vperm.xlu2 %6768, %v1766_v49   ;;  %2019 = vperm.xlu1 %6767, %v1759_v13  }
 0x78d   :  { %2049 = vperm.xlu0 %6773, %v1794_v46  }
 0x794   :  { %2031 = vperm.xlu2 %6768, %v1773_v52   ;;  %6769 = vset.pattern.permute.xlu1 %v7516_v31 }
 0x795   :  { %6776 = vset.pattern.permute.xlu0 %v7516_v31 }
 0x797   :  { %v1636_v4 = vpop.f32.mrf.mxu3 }
 0x798   :  { %v8339_v56 = vadd.f32 %v8327_v42, %v1636_v4  ;;  %v1710_v35 = vpop.f32.mrf.mxu0 }
 0x79a   :  { %v1815_v2 = vperm.slane %v8339_v56, 0  ;;  %v1829_v39 = vperm.slane %v8339_v56, 2  ;;  %v1850_v22 = vperm.slane %v8339_v56, 5  ;;  %v1822_v16 = vperm.slane %v8339_v56, 1 }
 0x79b   :  { %v1836_v44 = vperm.slane %v8339_v56, 3  ;;  %v1843_v29 = vperm.slane %v8339_v56, 4  ;;  %v1857_v24 = vperm.slane %v8339_v56, 6  ;;  %v1864_v38 = vperm.slane %v8339_v56, 7 }
 0x79c   :  { %6772 = vset.pattern.permute.xlu2 %v7516_v31  ;;  %1778 = vperm.xlu1 %6769, %v1773_v52  }
 0x79d   :  { %1820 = vperm.xlu0 %6776, %v1815_v2  }
 0x7a0   :  { %v1713_v19 = vpop.f32.mrf.mxu0 }
 0x7a1   :  { %v8418_v14 = vadd.f32 %v1713_v19, %v8190_v43  ;;  %v6850_v43 = vld [vmem:[%s12112_s1 + $0x2] ss:$0 sm:$0xff] }
 0x7a4   :  { %1792 = vperm.xlu2 %6772, %v1787_v26   ;;  %6771 = vset.pattern.permute.xlu1 %v8331_v12 }
 0x7a5   :  { %6779 = vset.pattern.permute.xlu0 %v8331_v12 }
 0x7ac   :  { %1799 = vperm.xlu2 %6772, %v1794_v46   ;;  %2037 = vperm.xlu1 %6771, %v1780_v0  }
 0x7ad   :  { %2079 = vperm.xlu0 %6779, %v1829_v39  }
 0x7af   :  { %v1639_v57 = vpop.f32.mrf.mxu3 }
 0x7b0   :  { %v8352_v6 = vadd.f32 %v8327_v42, %v1639_v57  ;;  %v6851_v57 = vld [vmem:[%s12112_s1 + $0x6] ss:$0 sm:$0xff] }
 0x7b2   :  { %v1871_v40 = vperm.slane %v8352_v6, 0  ;;  %v1892_v47 = vperm.slane %v8352_v6, 3  ;;  %v1906_v53 = vperm.slane %v8352_v6, 5  ;;  %v1920_v34 = vperm.slane %v8352_v6, 7 }
 0x7b3   :  { %v1878_v27 = vperm.slane %v8352_v6, 1  ;;  %v1885_v15 = vperm.slane %v8352_v6, 2  ;;  %v1899_v46 = vperm.slane %v8352_v6, 4 }
 0x7b4   :  { %6775 = vset.pattern.permute.xlu2 %v8331_v12  ;;  %2043 = vperm.xlu1 %6771, %v1787_v26  }
 0x7b5   :  { %6782 = vset.pattern.permute.xlu0 %v7516_v31 }
 0x7b7   :  { %v1642_v50 = vpop.f32.mrf.mxu3 }
 0x7b8   :  { %v8374_v5 = vadd.f32 %v8327_v42, %v1642_v50  ;;  %v8414_v42 = vadd.f32 %v1710_v35, %v8182_v55 }
 0x7ba   :  { %v1941_v62 = vperm.slane %v8374_v5, 2  ;;  %v1955_v51 = vperm.slane %v8374_v5, 4  ;;  %v1976_v33 = vperm.slane %v8374_v5, 7  ;;  %v1934_v19 = vperm.slane %v8374_v5, 1 }
 0x7bc   :  { %2055 = vperm.xlu2 %6775, %v1801_v7   ;;  %6774 = vset.pattern.permute.xlu1 %v7516_v31 }
 0x7bd   :  { %1855 = vperm.xlu0 %6782, %v1850_v22  }
 0x7c4   :  { %2061 = vperm.xlu2 %6775, %v1808_v23   ;;  %1806 = vperm.xlu1 %6774, %v1801_v7  }
 0x7c5   :  { %6788 = vset.pattern.permute.xlu0 %v8331_v12 }
 0x7cc   :  { %1813 = vperm.xlu1 %6774, %v1808_v23   ;;  %2067 = vperm.xlu2 %6775, %v1815_v2  }
 0x7cd   :  { %2115 = vperm.xlu0 %6788, %v1871_v40  }
 0x7d4   :  { %1827 = vperm.xlu1 %6774, %v1822_v16   ;;  %6778 = vset.pattern.permute.xlu2 %v7516_v31 }
 0x7d5   :  { %2133 = vperm.xlu0 %6788, %v1892_v47  }
 0x7d6   :  { %v8385_v17 = vpop.permute.xlu2 %1771 }
 0x7dc   :  { %6777 = vset.pattern.permute.xlu1 %v8331_v12  ;;  %1834 = vperm.xlu2 %6778, %v1829_v39  }
 0x7dd   :  { %6792 = vset.pattern.permute.xlu0 %v7516_v31 }
 0x7e4   :  { %2073 = vperm.xlu1 %6777, %v1822_v16   ;;  %6781 = vset.pattern.permute.xlu2 %v8331_v12  ;;  %v1913_v16 = vperm.slane %v8352_v6, 6 }
 0x7e5   :  { %1911 = vperm.xlu0 %6792, %v1906_v53  }
 0x7e6   :  { %v8393_v45 = vpop.permute.xlu2 %2025 }
 0x7ec   :  { %6780 = vset.pattern.permute.xlu1 %v7516_v31  ;;  %2085 = vperm.xlu2 %6781, %v1836_v44  }
 0x7ed   :  { %6795 = vset.pattern.permute.xlu0 %v8331_v12 }
 0x7ee   :  { %v8383_v41 = vpop.permute.xlu1 %1764  ;;  %v2032_v3 = vpop.permute.xlu2 %2031 }
 0x7ef   :  { %v2209_v13 = vmul.f32 %v2032_v3, %v8418_v14 }
 0x7f4   :  { %1841 = vperm.xlu1 %6780, %v1836_v44   ;;  %2091 = vperm.xlu2 %6781, %v1843_v29  }
 0x7f5   :  { %2157 = vperm.xlu0 %6795, %v1920_v34  }
 0x7fc   :  { %1848 = vperm.xlu1 %6780, %v1843_v29   ;;  %6784 = vset.pattern.permute.xlu2 %v7516_v31 }
 0x7fd   :  { %6799 = vset.pattern.permute.xlu0 %v7516_v31 }
 0x7fe   :  { %v8391_v63 = vpop.permute.xlu1 %2019  ;;  %v8405_v21 = vpop.permute.xlu2 %1792 }
 0x804   :  { %6783 = vset.pattern.permute.xlu1 %v8331_v12  ;;  %1862 = vperm.xlu2 %6784, %v1857_v24  }
 0x805   :  { %1946 = vperm.xlu0 %6799, %v1941_v62  }
 0x806   :  { %v8411_v60 = vpop.permute.xlu2 %1799 }
 0x80c   :  { %2097 = vperm.xlu1 %6783, %v1850_v22   ;;  %6786 = vset.pattern.permute.xlu2 %v8331_v12 }
 0x80d   :  { %6801 = vset.pattern.permute.xlu0 %v8331_v12 }
 0x80e   :  { %v1779_v48 = vpop.permute.xlu1 %1778 }
 0x80f   :  { %v1985_v18 = vmul.f32 %v1779_v48, %v8414_v42  ;;  %v6852_v48 = vld [vmem:[%s12112_s1 + $0x9] ss:$0 sm:$0xff] }
 0x811   :  { %v2241_v0 = vadd.f32 %v2209_v13, %v1985_v18 }
 0x813   :  { %v2273_v55 = vmul.f32 0.70710677, %v2241_v0 }
 0x814   :  { %2103 = vperm.xlu1 %6783, %v1857_v24   ;;  %2109 = vperm.xlu2 %6786, %v1864_v38  }
 0x815   :  { %2187 = vperm.xlu0 %6801, %v1955_v51   ;;  %v8432_v39 = vadd.f32 %v6850_v43, %v2273_v55  ;;  %v6853_v55 = vld [vmem:[%s12112_s1 + $0xc] ss:$0 sm:$0xff]  ;;  %v1927_v43 = vperm.slane %v8374_v5, 0 }
 0x816   :  { %v2056_v49 = vpop.permute.xlu2 %2055 }
 0x817   :  { %v2213_v56 = vmul.f32 %v2056_v49, %v8418_v14  ;;  %v2437_v23 = vsel %vm12211_vm11, %v8432_v39, -inf  ;;  %vm12223_vm11 = vmmov %vm12213_vm0 }
 0x81c   :  { %6785 = vset.pattern.permute.xlu1 %v7516_v31  ;;  %6787 = vset.pattern.permute.xlu2 %v7516_v31 }
 0x81d   :  { %6804 = vset.pattern.permute.xlu0 %v7516_v31 }
 0x81e   :  { %v8402_v37 = vpop.permute.xlu1 %2037  ;;  %v8430_v2 = vpop.permute.xlu2 %2061 }
 0x824   :  { %1869 = vperm.xlu1 %6785, %v1864_v38   ;;  %1883 = vperm.xlu2 %6787, %v1878_v27  }
 0x825   :  { %1981 = vperm.xlu0 %6804, %v1976_v33  }
 0x826   :  { %v8408_v11 = vpop.permute.xlu1 %2043 }
 0x82c   :  { %1876 = vperm.xlu1 %6785, %v1871_v40   ;;  %1890 = vperm.xlu2 %6787, %v1885_v15   ;;  %v8441_v40 = vpop.permute.xlu2 %2067 }
 0x82d   :  { %6806 = vset.pattern.permute.xlu0 %v7342_v36 }
 0x834   :  { %6789 = vset.pattern.permute.xlu1 %v8331_v12  ;;  %1897 = vperm.xlu2 %6787, %v1892_v47  }
 0x836   :  { %v1807_v8 = vpop.permute.xlu1 %1806 }
 0x837   :  { %v1989_v4 = vmul.f32 %v1807_v8, %v8414_v42 }
 0x839   :  { %v2245_v26 = vadd.f32 %v2213_v56, %v1989_v4  ;;  %v1948_v56 = vperm.slane %v8374_v5, 3 }
 0x83b   :  { %v2277_v7 = vmul.f32 0.70710677, %v2245_v26 }
 0x83c   :  { %2121 = vperm.xlu1 %6789, %v1878_v27   ;;  %6791 = vset.pattern.permute.xlu2 %v8331_v12  ;;  %v8453_v27 = vpop.permute.xlu2 %1834 }
 0x83d   :  { %v8444_v47 = vadd.f32 %v6851_v57, %v2277_v7 }
 0x83e   :  { %v8423_v52 = vpop.permute.xlu1 %1813 }
 0x83f   :  { %v2449_v29 = vsel %vm12212_vm15, %v8444_v47, -inf  ;;  %vm12224_vm15 = vmmov %vm12213_vm0 }
 0x844   :  { %2127 = vperm.xlu1 %6789, %v1885_v15   ;;  %2139 = vperm.xlu2 %6791, %v1899_v46  }
 0x846   :  { %v1828_v22 = vpop.permute.xlu1 %1827  ;;  %v8462_v8 = vpop.permute.xlu2 %2085 }
 0x847   :  { %v1992_v50 = vmul.f32 %v1828_v22, %v8414_v42 }
 0x84c   :  { %6790 = vset.pattern.permute.xlu1 %v7516_v31  ;;  %6794 = vset.pattern.permute.xlu2 %v7516_v31 }
 0x84e   :  { %v2092_v49 = vpop.permute.xlu2 %2091 }
 0x84f   :  { %2438 = vmax.xlane.f32.xlu0 %v2437_v23  ;;  %v2219_v13 = vmul.f32 %v2092_v49, %v8418_v14  ;;  %v1747_v49 = vpop.f32.mrf.mxu1 }
 0x854   :  { %1904 = vperm.xlu1 %6790, %v1899_v46   ;;  %1918 = vperm.xlu2 %6794, %v1913_v16  }
 0x856   :  { %v2074_v44 = vpop.permute.xlu1 %2073 }
 0x857   :  { %v2216_v24 = vmul.f32 %v2074_v44, %v8418_v14  ;;  %2450 = vmax.xlane.f32.xlu0 %v2449_v29 }
 0x859   :  { %v2248_v38 = vadd.f32 %v2216_v24, %v1992_v50  ;;  %v6854_v50 = vld [vmem:[%s12112_s1 + $0xf] ss:$0 sm:$0xff]  ;;  %v1786_v24 = vpop.permute.xlu0 %1785 }
 0x85b   :  { %v2280_v3 = vmul.f32 0.70710677, %v2248_v38 }
 0x85c   :  { %6793 = vset.pattern.permute.xlu1 %v8331_v12  ;;  %1925 = vperm.xlu2 %6794, %v1920_v34  }
 0x85d   :  { %v8458_v15 = vadd.f32 %v6852_v48, %v2280_v3 }
 0x85e   :  { %v8486_v7 = vpop.permute.xlu2 %1862 }
 0x85f   :  { %v2458_v35 = vsel %vm12213_vm0, %v8458_v15, -inf }
 0x860   :  { %2459 = vmax.xlane.f32.xlu0 %v2458_v35  ;;  %v1969_v35 = vperm.slane %v8374_v5, 6 }
 0x861   :  { %v8505_v3 = vpop.permute.xlu0 %2049 }
 0x864   :  { %2145 = vperm.xlu1 %6793, %v1906_v53   ;;  %1939 = vperm.xlu2 %6794, %v1934_v19  }
 0x866   :  { %v8467_v18 = vpop.permute.xlu1 %1841 }
 0x86c   :  { %2151 = vperm.xlu1 %6793, %v1913_v16   ;;  %6798 = vset.pattern.permute.xlu2 %v8331_v12 }
 0x86e   :  { %v1849_v34 = vpop.permute.xlu1 %1848  ;;  %v2110_v23 = vpop.permute.xlu2 %2109 }
 0x86f   :  { %v1995_v0 = vmul.f32 %v1849_v34, %v8414_v42  ;;  %v2222_v16 = vmul.f32 %v2110_v23, %v8418_v14  ;;  %v8511_v34 = vpop.permute.xlu0 %1820 }
 0x871   :  { %v2251_v46 = vadd.f32 %v2219_v13, %v1995_v0 }
 0x873   :  { %v2283_v4 = vmul.f32 0.70710677, %v2251_v46  ;;  %v1750_v46 = vpop.f32.mrf.mxu1 }
 0x874   :  { %6796 = vset.pattern.permute.xlu1 %v7516_v31  ;;  %2169 = vperm.xlu2 %6798, %v1934_v19  }
 0x875   :  { %v8476_v6 = vadd.f32 %v6853_v55, %v2283_v4 }
 0x877   :  { %v2467_v53 = vsel %vm12214_vm5, %v8476_v6, -inf  ;;  %v8518_v55 = vpop.permute.xlu0 %2079  ;;  %vm12225_vm5 = vmmov %vm12213_vm0 }
 0x878   :  { %2468 = vmax.xlane.f32.xlu0 %v2467_v53  ;;  %v8521_v53 = vadd.f32 %v1747_v49, %v8184_v59  ;;  %v2207_v59 = vmul.f32 %v8391_v63, %v8418_v14  ;;  %v6856_v63 = vld [vmem:[%s12112_s1] ss:$0 sm:$0xff] }
 0x87c   :  { %1932 = vperm.xlu1 %6796, %v1927_v43   ;;  %6800 = vset.pattern.permute.xlu2 %v7516_v31 }
 0x87e   :  { %v8483_v26 = vpop.permute.xlu1 %2097  ;;  %v8513_v13 = vpop.permute.xlu2 %1883 }
 0x884   :  { %6797 = vset.pattern.permute.xlu1 %v8331_v12  ;;  %1953 = vperm.xlu2 %6800, %v1948_v56  }
 0x886   :  { %v8490_v22 = vpop.permute.xlu1 %2103  ;;  %v1891_v4 = vpop.permute.xlu2 %1890 }
 0x887   :  { %v2001_v23 = vmul.f32 %v1891_v4, %v8521_v53 }
 0x88c   :  { %2163 = vperm.xlu1 %6797, %v1927_v43   ;;  %1960 = vperm.xlu2 %6800, %v1955_v51   ;;  %v1962_v51 = vperm.slane %v8374_v5, 5  ;;  %v8524_v43 = vadd.f32 %v1750_v46, %v8200_v9  ;;  %v2210_v46 = vmul.f32 %v8402_v37, %v8418_v14  ;;  %v1987_v37 = vmul.f32 %v8405_v21, %v8414_v42 }
 0x88d   :  { %v2214_v21 = vmul.f32 %v8430_v2, %v8418_v14 }
 0x894   :  { %2175 = vperm.xlu1 %6797, %v1941_v62   ;;  %6803 = vset.pattern.permute.xlu2 %v8331_v12 }
 0x896   :  { %v1870_v57 = vpop.permute.xlu1 %1869 }
 0x897   :  { %v1998_v44 = vmul.f32 %v1870_v57, %v8414_v42 }
 0x899   :  { %v2254_v29 = vadd.f32 %v2222_v16, %v1998_v44  ;;  %v6855_v44 = vld [vmem:[%s12112_s1 + $0x12] ss:$0 sm:$0xff] }
 0x89b   :  { %v2286_v38 = vmul.f32 0.70710677, %v2254_v29  ;;  %v8531_v29 = vpop.permute.xlu0 %1855 }
 0x89c   :  { %2181 = vperm.xlu1 %6797, %v1948_v56   ;;  %2193 = vperm.xlu2 %6803, %v1962_v51  }
 0x89d   :  { %v8501_v48 = vadd.f32 %v6854_v50, %v2286_v38 }
 0x89e   :  { %v8509_v19 = vpop.permute.xlu1 %1876 }
 0x89f   :  { %v2476_v62 = vsel %vm12215_vm13, %v8501_v48, -inf  ;;  %vm12226_vm13 = vmmov %vm12213_vm0 }
 0x8a0   :  { %2477 = vmax.xlane.f32.xlu0 %v2476_v62 }
 0x8a4   :  { %6802 = vset.pattern.permute.xlu1 %v7516_v31  ;;  %2199 = vperm.xlu2 %6803, %v1969_v35  }
 0x8ac   :  { %1967 = vperm.xlu1 %6802, %v1962_v51   ;;  %6808 = vset.pattern.permute.xlu2 %v7342_v36  ;;  %v1983_v51 = vmul.f32 %v8383_v41, %v8414_v42  ;;  %v1986_v41 = vmul.f32 %v1786_v24, %v8414_v42 }
 0x8ae   :  { %v8516_v0 = vpop.permute.xlu1 %2121  ;;  %v2239_v62 = vadd.f32 %v2207_v59, %v1983_v51  ;;  %v2242_v4 = vadd.f32 %v2210_v46, %v1986_v41 }
 0x8b0   :  { %v2271_v49 = vmul.f32 0.70710677, %v2239_v62 }
 0x8b4   :  { %1974 = vperm.xlu1 %6802, %v1969_v35   ;;  %v8542_v35 = vpop.permute.xlu0 %2115 }
 0x8b6   :  { %v2128_v56 = vpop.permute.xlu1 %2127 }
 0x8b7   :  { %v2225_v57 = vmul.f32 %v2128_v56, %v8524_v43  ;;  %v8552_v56 = vadd.f32 %v6856_v63, %v2271_v49 }
 0x8b9   :  { %v2257_v16 = vadd.f32 %v2225_v57, %v2001_v23  ;;  %v8554_v23 = vpop.permute.xlu2 %1897  ;;  %v2274_v57 = vmul.f32 0.70710677, %v2242_v4  ;;  %v2431_v5 = vsel %vm12217_vm9, %v8552_v56, -inf  ;;  %vm12228_vm9 = vmmov %vm12213_vm0 }
 0x8bb   :  { %v2289_v50 = vmul.f32 0.70710677, %v2257_v16  ;;  %v2211_v16 = vmul.f32 %v8408_v11, %v8418_v14 }
 0x8bc   :  { %6805 = vset.pattern.permute.xlu1 %v8331_v12 }
 0x8bd   :  { %v8536_v9 = vadd.f32 %v6855_v44, %v2289_v50  ;;  %v8558_v44 = vpop.permute.xlu0 %2133  ;;  %v2243_v50 = vadd.f32 %v2211_v16, %v1987_v37  ;;  %v6859_v16 = vld [vmem:[%s12112_s1 + $0x15] ss:$0 sm:$0xff]  ;;  %v1993_v37 = vmul.f32 %v8453_v27, %v8414_v42  ;;  %v1984_v27 = vmul.f32 %v8385_v17, %v8414_v42 }
 0x8bf   :  { %v2485_v38 = vsel %vm12216_vm14, %v8536_v9, -inf  ;;  %v2275_v51 = vmul.f32 0.70710677, %v2243_v50  ;;  %vm12227_vm14 = vmmov %vm12213_vm0 }
 0x8c0   :  { %2486 = vmax.xlane.f32.xlu0 %v2485_v38  ;;  %v1990_v38 = vmul.f32 %v8423_v52, %v8414_v42 }
 0x8c1   :  { %v8572_v11 = vpop.permute.xlu2 %2139 }
 0x8c2   :  { %v2246_v4 = vadd.f32 %v2214_v21, %v1990_v38  ;;  %v2208_v38 = vmul.f32 %v8393_v45, %v8418_v14  ;;  %v2220_v45 = vmul.f32 %v8483_v26, %v8418_v14  ;;  %v1996_v26 = vmul.f32 %v8531_v29, %v8414_v42  ;;  %v6863_v29 = vld [vmem:[%s12112_s1 + $0xd] ss:$0 sm:$0xff] }
 0x8c4   :  { %2205 = vperm.xlu1 %6805, %v1976_v33   ;;  %v6857_v33 = vld [vmem:[%s12112_s1 + $0x3] ss:$0 sm:$0xff]  ;;  %v2278_v2 = vmul.f32 0.70710677, %v2246_v4 }
 0x8c5   :  { %v8570_v59 = vadd.f32 %v6857_v33, %v2274_v57  ;;  %v1912_v62 = vpop.permute.xlu0 %1911 }
 0x8c6   :  { %v8568_v24 = vpop.permute.xlu1 %1904  ;;  %v2004_v63 = vmul.f32 %v1912_v62, %v8521_v53 }
 0x8c7   :  { %v2440_v49 = vsel %vm12218_vm1, %v8570_v59, -inf  ;;  %vm12229_vm1 = vmmov %vm12213_vm0 }
 0x8cc   :  { %6807 = vset.pattern.permute.xlu1 %v7342_v36  ;;  %v6858_v36 = vld [vmem:[%s12112_s1 + $0x4] ss:$0 sm:$0xff] }
 0x8cd   :  { %2432 = vmax.xlane.f32.xlu2 %v2431_v5  ;;  %v8585_v57 = vadd.f32 %v6858_v36, %v2275_v51  ;;  %v8590_v5 = vpop.permute.xlu2 %1918  ;;  %v6860_v51 = vld [vmem:[%s12112_s1 + $0x7] ss:$0 sm:$0xff] }
 0x8cf   :  { %v2443_v50 = vsel %vm12219_vm4, %v8585_v57, -inf  ;;  %vm12230_vm4 = vmmov %vm12213_vm0 }
 0x8d5   :  { %2441 = vmax.xlane.f32.xlu2 %v2440_v49  ;;  %v2217_v49 = vmul.f32 %v8518_v55, %v8418_v14  ;;  %v6861_v55 = vld [vmem:[%s12112_s1 + $0xa] ss:$0 sm:$0xff] }
 0x8d6   :  { %v2146_v46 = vpop.permute.xlu1 %2145 }
 0x8d7   :  { %v2228_v41 = vmul.f32 %v2146_v46, %v8524_v43  ;;  %v2249_v21 = vadd.f32 %v2217_v49, %v1993_v37  ;;  %v8609_v46 = vadd.f32 %v6860_v51, %v2278_v2  ;;  %v2212_v37 = vmul.f32 %v8505_v3, %v8418_v14 }
 0x8d8   :  { %v2252_v2 = vadd.f32 %v2220_v45, %v1996_v26  ;;  %v1999_v49 = vmul.f32 %v8509_v19, %v8521_v53  ;;  %v2215_v3 = vmul.f32 %v8441_v40, %v8418_v14  ;;  %v2223_v19 = vmul.f32 %v8542_v35, %v8524_v43  ;;  %v6865_v35 = vld [vmem:[%s12112_s1 + $0x10] ss:$0 sm:$0xff] }
 0x8d9   :  { %v2260_v52 = vadd.f32 %v2228_v41, %v2004_v63  ;;  %v2240_v63 = vadd.f32 %v2208_v38, %v1984_v27  ;;  %v2281_v41 = vmul.f32 0.70710677, %v2249_v21  ;;  %v2452_v4 = vsel %vm12221_vm2, %v8609_v46, -inf  ;;  %vm12232_vm2 = vmmov %vm12213_vm0 }
 0x8da   :  { %v1991_v45 = vmul.f32 %v8511_v34, %v8414_v42  ;;  %v1994_v34 = vmul.f32 %v8467_v18, %v8414_v42 }
 0x8db   :  { %v2292_v33 = vmul.f32 0.70710677, %v2260_v52  ;;  %v2272_v17 = vmul.f32 0.70710677, %v2240_v63  ;;  %v1988_v52 = vmul.f32 %v8411_v60, %v8414_v42  ;;  %v2284_v60 = vmul.f32 0.70710677, %v2252_v2 }
 0x8dc   :  { %v6864_v63 = vld [vmem:[%s12112_s1 + $0x5] ss:$0 sm:$0xff]  ;;  %v2247_v40 = vadd.f32 %v2215_v3, %v1991_v45 }
 0x8dd   :  { %2444 = vmax.xlane.f32.xlu2 %v2443_v50  ;;  %v8601_v62 = vadd.f32 %v6859_v16, %v2292_v33  ;;  %v8620_v16 = vpop.permute.xlu2 %1925  ;;  %v6862_v33 = vld [vmem:[%s12112_s1 + $0x1] ss:$0 sm:$0xff]  ;;  %v8629_v50 = vadd.f32 %v6861_v55, %v2281_v41  ;;  %v2244_v51 = vadd.f32 %v2212_v37, %v1988_v52  ;;  %v2255_v55 = vadd.f32 %v2223_v19, %v1999_v49 }
 0x8de   :  { %v8631_v38 = vadd.f32 %v6862_v33, %v2272_v17  ;;  %v2152_v41 = vpop.permute.xlu1 %2151  ;;  %v8651_v17 = vadd.f32 %v6863_v29, %v2284_v60  ;;  %v2002_v33 = vmul.f32 %v8554_v23, %v8521_v53  ;;  %v2279_v2 = vmul.f32 0.70710677, %v2247_v40  ;;  %v6866_v23 = vld [vmem:[%s12112_s1 + $0x8] ss:$0 sm:$0xff] }
 0x8df   :  { %v2494_v36 = vsel %vm12220_vm12, %v8601_v62, -inf  ;;  %v2461_v27 = vsel %vm12222_vm10, %v8629_v50, -inf  ;;  %v2287_v26 = vmul.f32 0.70710677, %v2255_v55  ;;  %v2226_v60 = vmul.f32 %v8558_v44, %v8524_v43  ;;  %v6867_v55 = vld [vmem:[%s12112_s1 + $0x13] ss:$0 sm:$0xff]  ;;  %vm12231_vm12 = vmmov %vm12213_vm0 }
 0x8e0   :  { %2495 = vmax.xlane.f32.xlu0 %v2494_v36  ;;  %v2276_v36 = vmul.f32 0.70710677, %v2244_v51  ;;  %v2434_v21 = vsel %vm12223_vm11, %v8631_v38, -inf  ;;  %v2470_v37 = vsel %vm12224_vm15, %v8651_v17, -inf  ;;  %v2229_v45 = vmul.f32 %v2152_v41, %v8524_v43  ;;  %vm12233_vm10 = vmmov %vm12213_vm0 }
 0x8e1   :  { %v8673_v3 = vadd.f32 %v6865_v35, %v2287_v26  ;;  %v2221_v40 = vmul.f32 %v8490_v22, %v8418_v14  ;;  %v6868_v26 = vld [vmem:[%s12112_s1 + $0xb] ss:$0 sm:$0xff]  ;;  %v2005_v41 = vmul.f32 %v8590_v5, %v8521_v53  ;;  %v1997_v35 = vmul.f32 %v8486_v7, %v8414_v42  ;;  %v6869_v5 = vld [vmem:[%s12112_s1 + $0x18] ss:$0 sm:$0xff]  ;;  %vm12234_vm11 = vmmov %vm12213_vm0 }
 0x8e2   :  { %v8653_v52 = vadd.f32 %v6864_v63, %v2276_v36  ;;  %v2258_v36 = vadd.f32 %v2226_v60, %v2002_v33  ;;  %v8677_v63 = vpop.permute.xlu0 %2157  ;;  %vm12235_vm15 = vmmov %vm12213_vm0 }
 0x8e3   :  { %v2479_v44 = vsel %vm12225_vm5, %v8673_v3, -inf  ;;  %v2261_v22 = vadd.f32 %v2229_v45, %v2005_v41  ;;  %vm12236_vm5 = vmmov %vm12213_vm0 }
 0x8e4   :  { %v2446_v51 = vsel %vm12213_vm0, %v8653_v52, -inf  ;;  %v2290_v19 = vmul.f32 0.70710677, %v2258_v36 }
 0x8e5   :  { %2453 = vmax.xlane.f32.xlu2 %v2452_v4  ;;  %v1940_v4 = vpop.permute.xlu2 %1939  ;;  %v2293_v7 = vmul.f32 0.70710677, %v2261_v22 }
 0x8ea   :  { %v8705_v36 = vpop.permute.xlu0 %1946 }
 0x8ed   :  { %2462 = vmax.xlane.f32.xlu2 %v2461_v27  ;;  %v2218_v27 = vmul.f32 %v8462_v8, %v8418_v14  ;;  %v2170_v29 = vpop.permute.xlu2 %2169 }
 0x8ee   :  { %2435 = vmax.xlane.f32.xlu1 %v2434_v21  ;;  %v1933_v49 = vpop.permute.xlu1 %1932  ;;  %v8675_v21 = vadd.f32 %v6866_v23, %v2279_v2  ;;  %v2253_v23 = vadd.f32 %v2221_v40, %v1997_v35  ;;  %v2232_v42 = vmul.f32 %v2170_v29, %v8524_v43  ;;  %v6871_v29 = vld [vmem:[%s12112_s1 + $0xe] ss:$0 sm:$0xff]  ;;  %v2008_v40 = vmul.f32 %v1940_v4, %v8521_v53 }
 0x8ef   :  { %v2250_v18 = vadd.f32 %v2218_v27, %v1994_v34  ;;  %v2007_v34 = vmul.f32 %v1933_v49, %v8521_v53 }
 0x8f0   :  { %v2455_v33 = vsel %vm12226_vm13, %v8675_v21, -inf  ;;  %v2285_v45 = vmul.f32 0.70710677, %v2253_v23  ;;  %v2264_v41 = vadd.f32 %v2232_v42, %v2008_v40  ;;  %vm12237_vm13 = vmmov %vm12213_vm0 }
 0x8f1   :  { %v2282_v8 = vmul.f32 0.70710677, %v2250_v18 }
 0x8f2   :  { %v2188_v22 = vpop.permute.xlu0 %2187  ;;  %v2296_v23 = vmul.f32 0.70710677, %v2264_v41  ;;  %v6874_v41 = vld [vmem:[%s12112_s1 + $0x1b] ss:$0 sm:$0xff] }
 0x8f3   :  { %v8700_v27 = vadd.f32 %v6868_v26, %v2282_v8  ;;  %v2000_v26 = vmul.f32 %v8513_v13, %v8521_v53  ;;  %v6872_v13 = vld [vmem:[%s12112_s1 + $0x19] ss:$0 sm:$0xff] }
 0x8f5   :  { %2471 = vmax.xlane.f32.xlu2 %v2470_v37  ;;  %v1954_v2 = vpop.permute.xlu2 %1953 }
 0x8f6   :  { %2447 = vmax.xlane.f32.xlu1 %v2446_v51  ;;  %v8698_v51 = vadd.f32 %v6867_v55, %v2290_v19  ;;  %v6870_v19 = vld [vmem:[%s12112_s1 + $0x16] ss:$0 sm:$0xff]  ;;  %v2464_v55 = vsel %vm12228_vm9, %v8700_v27, -inf  ;;  %vm12239_vm9 = vmmov %vm12213_vm0 }
 0x8f8   :  { %v2488_v49 = vsel %vm12227_vm14, %v8698_v51, -inf  ;;  %vm12238_vm14 = vmmov %vm12213_vm0 }
 0x8fd   :  { %2480 = vmax.xlane.f32.xlu2 %v2479_v44  ;;  %v2224_v44 = vmul.f32 %v8516_v0, %v8524_v43 }
 0x8fe   :  { %v2164_v37 = vpop.permute.xlu1 %2163  ;;  %2456 = vmax.xlane.f32.xlu1 %v2455_v33 }
 0x8ff   :  { %v2231_v14 = vmul.f32 %v2164_v37, %v8524_v43  ;;  %v8727_v37 = vadd.f32 %v6870_v19, %v2293_v7  ;;  %v2256_v35 = vadd.f32 %v2224_v44, %v2000_v26  ;;  %v6873_v7 = vld [vmem:[%s12112_s1 + $0x11] ss:$0 sm:$0xff]  ;;  %v2010_v44 = vmul.f32 %v1954_v2, %v8521_v53  ;;  %v6875_v2 = vld [vmem:[%s12112_s1 + $0x1c] ss:$0 sm:$0xff] }
 0x901   :  { %v2263_v60 = vadd.f32 %v2231_v14, %v2007_v34  ;;  %v1961_v34 = vpop.permute.xlu2 %1960  ;;  %v8729_v14 = vadd.f32 %v6871_v29, %v2285_v45  ;;  %v2227_v45 = vmul.f32 %v8572_v11, %v8524_v43  ;;  %v8749_v29 = vadd.f32 %v6872_v13, %v2296_v23  ;;  %v6876_v13 = vld [vmem:[%s12112_s1 + $0x14] ss:$0 sm:$0xff] }
 0x902   :  { %v2011_v4 = vmul.f32 %v1961_v34, %v8521_v53 }
 0x903   :  { %v2295_v18 = vmul.f32 0.70710677, %v2263_v60  ;;  %v2497_v60 = vsel %vm12230_vm4, %v8727_v37, -inf  ;;  %v2473_v42 = vsel %vm12231_vm12, %v8729_v14, -inf  ;;  %v2506_v11 = vsel %vm12232_vm2, %v8749_v29, -inf  ;;  %vm12241_vm4 = vmmov %vm12213_vm0 }
 0x904   :  { %vm12242_vm12 = vmmov %vm12213_vm0 }
 0x905   :  { %2489 = vmax.xlane.f32.xlu2 %v2488_v49  ;;  %v8717_v8 = vadd.f32 %v6869_v5, %v2295_v18  ;;  %v2288_v5 = vmul.f32 0.70710677, %v2256_v35  ;;  %v2003_v18 = vmul.f32 %v8568_v24, %v8521_v53  ;;  %v2235_v49 = vmul.f32 %v2188_v22, %v8524_v43  ;;  %vm12243_vm2 = vmmov %vm12213_vm0 }
 0x906   :  { %v2176_v33 = vpop.permute.xlu1 %2175  ;;  %2465 = vmax.xlane.f32.xlu1 %v2464_v55  ;;  %v2006_v22 = vmul.f32 %v8620_v16, %v8521_v53 }
 0x907   :  { %v2503_v0 = vsel %vm12229_vm1, %v8717_v8, -inf  ;;  %v2267_v24 = vadd.f32 %v2235_v49, %v2011_v4  ;;  %v2259_v40 = vadd.f32 %v2227_v45, %v2003_v18  ;;  %vm12240_vm1 = vmmov %vm12213_vm0 }
 0x908   :  { %2504 = vmax.xlane.f32.xlu0 %v2503_v0  ;;  %v8751_v0 = vadd.f32 %v6873_v7, %v2288_v5  ;;  %v2230_v5 = vmul.f32 %v8677_v63, %v8524_v43 }
 0x909   :  { %v2299_v34 = vmul.f32 0.70710677, %v2267_v24  ;;  %v2291_v23 = vmul.f32 0.70710677, %v2259_v40  ;;  %v2194_v49 = vpop.permute.xlu2 %2193  ;;  %v2009_v40 = vmul.f32 %v8705_v36, %v8521_v53 }
 0x90a   :  { %v2482_v4 = vsel %vm12233_vm10, %v8751_v0, -inf  ;;  %vm12244_vm10 = vmmov %vm12213_vm0 }
 0x90b   :  { %v8774_v16 = vadd.f32 %v6875_v2, %v2299_v34  ;;  %v8776_v7 = vadd.f32 %v6876_v13, %v2291_v23  ;;  %v6878_v2 = vld [vmem:[%s12112_s1 + $0x1a] ss:$0 sm:$0xff]  ;;  %v2236_v23 = vmul.f32 %v2194_v49, %v8524_v43  ;;  %v6880_v49 = vld [vmem:[%s12112_s1 + $0x1d] ss:$0 sm:$0xff] }
 0x90d   :  { %2498 = vmax.xlane.f32.xlu2 %v2497_v60  ;;  %v2491_v63 = vsel %vm12213_vm0, %v8776_v7, -inf }
 0x90e   :  { %v2182_v19 = vpop.permute.xlu1 %2181  ;;  %2474 = vmax.xlane.f32.xlu1 %v2473_v42  ;;  %v2262_v42 = vadd.f32 %v2230_v5, %v2006_v22 }
 0x90f   :  { %v2234_v55 = vmul.f32 %v2182_v19, %v8524_v43  ;;  %v2515_v19 = vsel %vm12235_vm15, %v8774_v16, -inf  ;;  %vm12246_vm15 = vmmov %vm12213_vm0 }
 0x910   :  { %v2294_v45 = vmul.f32 0.70710677, %v2262_v42  ;;  %v6879_v42 = vld [vmem:[%s12112_s1 + $0x1e] ss:$0 sm:$0xff] }
 0x911   :  { %v2266_v26 = vadd.f32 %v2234_v55, %v2010_v44  ;;  %v2233_v44 = vmul.f32 %v2176_v33, %v8524_v43  ;;  %v6877_v55 = vld [vmem:[%s12112_s1 + $0x17] ss:$0 sm:$0xff] }
 0x913   :  { %v2298_v35 = vmul.f32 0.70710677, %v2266_v26  ;;  %v2265_v26 = vadd.f32 %v2233_v44, %v2009_v40 }
 0x915   :  { %2507 = vmax.xlane.f32.xlu2 %v2506_v11  ;;  %v8765_v60 = vadd.f32 %v6874_v41, %v2298_v35  ;;  %v8788_v41 = vadd.f32 %v6877_v55, %v2294_v45  ;;  %v2200_v35 = vpop.permute.xlu2 %2199  ;;  %v2297_v34 = vmul.f32 0.70710677, %v2265_v26 }
 0x916   :  { %2483 = vmax.xlane.f32.xlu1 %v2482_v4  ;;  %v2237_v36 = vmul.f32 %v2200_v35, %v8524_v43 }
 0x917   :  { %v2512_v18 = vsel %vm12234_vm11, %v8765_v60, -inf  ;;  %v2500_v11 = vsel %vm12236_vm5, %v8788_v41, -inf  ;;  %vm12245_vm11 = vmmov %vm12213_vm0 }
 0x918   :  { %2513 = vmax.xlane.f32.xlu0 %v2512_v18  ;;  %v8799_v18 = vadd.f32 %v6878_v2, %v2297_v34  ;;  %vm12247_vm5 = vmmov %vm12213_vm0 }
 0x91d   :  { %2516 = vmax.xlane.f32.xlu2 %v2515_v19  ;;  %v1982_v19 = vpop.permute.xlu0 %1981 }
 0x91e   :  { %v1968_v24 = vpop.permute.xlu1 %1967  ;;  %2492 = vmax.xlane.f32.xlu1 %v2491_v63  ;;  %v2509_v63 = vsel %vm12237_vm13, %v8799_v18, -inf  ;;  %vm12248_vm13 = vmmov %vm12213_vm0 }
 0x91f   :  { %v2012_v33 = vmul.f32 %v1968_v24, %v8521_v53 }
 0x921   :  { %v2268_v13 = vadd.f32 %v2236_v23, %v2012_v33  ;;  %v6881_v23 = vld [vmem:[%s12112_s1 + $0x1f] ss:$0 sm:$0xff] }
 0x923   :  { %v2300_v44 = vmul.f32 0.70710677, %v2268_v13 }
 0x925   :  { %v8813_v40 = vadd.f32 %v6880_v49, %v2300_v44  ;;  %v2439_v26 = vpop.xlane.xlu0 %2438 }
 0x926   :  { %v1975_v22 = vpop.permute.xlu1 %1974  ;;  %2501 = vmax.xlane.f32.xlu1 %v2500_v11  ;;  %v2529_v34 = vsub.f32 %v8432_v39, %v2439_v26  ;;  %v2014_v11 = vmul.f32 %v1982_v19, %v8521_v53 }
 0x927   :  { %v2013_v4 = vmul.f32 %v1975_v22, %v8521_v53  ;;  %v2518_v35 = vsel %vm12239_vm9, %v8813_v40, -inf  ;;  %vm12250_vm9 = vmmov %vm12213_vm0 }
 0x929   :  { %v2269_v5 = vadd.f32 %v2237_v36, %v2013_v4  ;;  %v2563_v36 = vmul.f32 1.442695, %v2529_v34 }
 0x92b   :  { %v2301_v45 = vmul.f32 0.70710677, %v2269_v5  ;;  %6986 = vpow2.f32 %v2563_v36 }
 0x92d   :  { %v8806_v55 = vadd.f32 %v6879_v42, %v2301_v45  ;;  %v2451_v45 = vpop.xlane.xlu0 %2450 }
 0x92e   :  { %2510 = vmax.xlane.f32.xlu1 %v2509_v63 }
 0x92f   :  { %v2521_v24 = vsel %vm12238_vm14, %v8806_v55, -inf  ;;  %vm12249_vm14 = vmmov %vm12213_vm0 }
 0x930   :  { %2522 = vmax.xlane.f32.xlu0 %v2521_v24  ;;  %v2533_v24 = vsub.f32 %v8444_v47, %v2451_v45 }
 0x931   :  { %v8828_v19 = vpop.eup %6986 }
 0x935   :  { %v2460_v34 = vpop.xlane.xlu0 %2459 }
 0x936   :  { %v2206_v33 = vpop.permute.xlu1 %2205  ;;  %2519 = vmax.xlane.f32.xlu1 %v2518_v35  ;;  %v2571_v35 = vmul.f32 1.442695, %v2533_v24 }
 0x937   :  { %v2238_v2 = vmul.f32 %v2206_v33, %v8524_v43  ;;  %v2629_v43 = vsel %vm12241_vm4, %v8828_v19, 0.0  ;;  %vm12252_vm4 = vmmov %vm12213_vm0 }
 0x939   :  { %v2270_v22 = vadd.f32 %v2238_v2, %v2014_v11  ;;  %v2536_v2 = vsub.f32 %v8458_v15, %v2460_v34 }
 0x93b   :  { %v2302_v4 = vmul.f32 0.70710677, %v2270_v22  ;;  %v2577_v22 = vmul.f32 1.442695, %v2536_v2 }
 0x93d   :  { %v8823_v13 = vadd.f32 %v6881_v23, %v2302_v4  ;;  %v2469_v47 = vpop.xlane.xlu0 %2468 }
 0x93e   :  { %v2539_v4 = vsub.f32 %v8476_v6, %v2469_v47 }
 0x93f   :  { %v2524_v5 = vsel %vm12240_vm1, %v8823_v13, -inf  ;;  %vm12251_vm1 = vmmov %vm12213_vm0 }
 0x940   :  { %2525 = vmax.xlane.f32.xlu2 %v2524_v5  ;;  %v2433_v39 = vpop.xlane.xlu2 %2432 }
 0x941   :  { %v2527_v42 = vsub.f32 %v8552_v56, %v2433_v39  ;;  %v2583_v39 = vmul.f32 1.442695, %v2539_v4 }
 0x943   :  { %v2559_v53 = vmul.f32 1.442695, %v2527_v42 }
 0x945   :  { %6988 = vpow2.f32 %v2559_v53  ;;  %v2478_v42 = vpop.xlane.xlu0 %2477 }
 0x948   :  { %2630 = vadd.xlane.f32.xlu2 %v2629_v43  ;;  %v2442_v44 = vpop.xlane.xlu2 %2441 }
 0x949   :  { %v2530_v63 = vsub.f32 %v8570_v59, %v2442_v44  ;;  %v2542_v44 = vsub.f32 %v8501_v48, %v2478_v42 }
 0x94b   :  { %v8833_v49 = vpop.eup %6988  ;;  %v2565_v26 = vmul.f32 1.442695, %v2530_v63 }
 0x94c   :  { %v2623_v56 = vsel %vm12242_vm12, %v8833_v49, 0.0  ;;  %vm12253_vm12 = vmmov %vm12213_vm0 }
 0x94d   :  { %6990 = vpow2.f32 %v2565_v26  ;;  %2624 = vadd.xlane.f32.xlu1 %v2623_v56  ;;  %v2589_v26 = vmul.f32 1.442695, %v2542_v44  ;;  %v2487_v56 = vpop.xlane.xlu0 %2486 }
 0x94e   :  { %6992 = vpow2.f32 %v2571_v35  ;;  %v2545_v48 = vsub.f32 %v8536_v9, %v2487_v56 }
 0x94f   :  { %6994 = vpow2.f32 %v2577_v22 }
 0x950   :  { %v2445_v33 = vpop.xlane.xlu2 %2444  ;;  %6996 = vpow2.f32 %v2583_v39 }
 0x951   :  { %v2531_v63 = vsub.f32 %v8585_v57, %v2445_v33 }
 0x953   :  { %v8838_v11 = vpop.eup %6990  ;;  %v2567_v35 = vmul.f32 1.442695, %v2531_v63 }
 0x954   :  { %v2632_v59 = vsel %vm12243_vm2, %v8838_v11, 0.0  ;;  %v8843_v36 = vpop.eup %6992  ;;  %vm12254_vm2 = vmmov %vm12213_vm0 }
 0x955   :  { %2633 = vadd.xlane.f32.xlu1 %v2632_v59  ;;  %v2641_v5 = vsel %vm12244_vm10, %v8843_v36, 0.0  ;;  %v8848_v15 = vpop.eup %6994  ;;  %vm12255_vm10 = vmmov %vm12213_vm0 }
 0x956   :  { %v2650_v6 = vsel %vm12245_vm11, %v8848_v15, 0.0  ;;  %v8855_v2 = vpop.eup %6996  ;;  %vm12256_vm11 = vmmov %vm12213_vm0 }
 0x957   :  { %v2659_v47 = vsel %vm12246_vm15, %v8855_v2, 0.0  ;;  %vm12257_vm15 = vmmov %vm12213_vm0 }
 0x958   :  { %v2454_v23 = vpop.xlane.xlu2 %2453 }
 0x959   :  { %v2534_v57 = vsub.f32 %v8609_v46, %v2454_v23 }
 0x95d   :  { %2642 = vadd.xlane.f32.xlu1 %v2641_v5  ;;  %v2595_v5 = vmul.f32 1.442695, %v2545_v48 }
 0x960   :  { %v2463_v53 = vpop.xlane.xlu2 %2462 }
 0x961   :  { %v2436_v43 = vpop.xlane.xlu1 %2435 }
 0x962   :  { %v2528_v45 = vsub.f32 %v8631_v38, %v2436_v43 }
 0x964   :  { %v2561_v24 = vmul.f32 1.442695, %v2528_v45  ;;  %v2537_v45 = vsub.f32 %v8629_v50, %v2463_v53 }
 0x965   :  { %2651 = vadd.xlane.f32.xlu1 %v2650_v6 }
 0x966   :  { %6998 = vpow2.f32 %v2561_v24 }
 0x967   :  { %7000 = vpow2.f32 %v2589_v26 }
 0x968   :  { %v2472_v34 = vpop.xlane.xlu2 %2471  ;;  %7002 = vpow2.f32 %v2567_v35 }
 0x969   :  { %v2448_v59 = vpop.xlane.xlu1 %2447 }
 0x96a   :  { %v2532_v38 = vsub.f32 %v8653_v52, %v2448_v59  ;;  %v2573_v52 = vmul.f32 1.442695, %v2534_v57  ;;  %v2540_v57 = vsub.f32 %v8651_v17, %v2472_v34 }
 0x96c   :  { %v8859_v22 = vpop.eup %6998  ;;  %v2569_v33 = vmul.f32 1.442695, %v2532_v38 }
 0x96d   :  { %2660 = vadd.xlane.f32.xlu1 %v2659_v47  ;;  %v2626_v4 = vsel %vm12213_vm0, %v8859_v22, 0.0  ;;  %v8866_v42 = vpop.eup %7000 }
 0x96e   :  { %7004 = vpow2.f32 %v2569_v33  ;;  %2627 = vadd.xlane.f32.xlu0 %v2626_v4  ;;  %v8868_v43 = vpop.eup %7002  ;;  %v2668_v63 = vsel %vm12247_vm5, %v8866_v42, 0.0  ;;  %vm12258_vm5 = vmmov %vm12213_vm0 }
 0x96f   :  { %7006 = vpow2.f32 %v2595_v5  ;;  %v2635_v6 = vsel %vm12249_vm14, %v8868_v43, 0.0  ;;  %vm12260_vm14 = vmmov %vm12213_vm0 }
 0x970   :  { %v2481_v39 = vpop.xlane.xlu2 %2480  ;;  %7008 = vpow2.f32 %v2573_v52 }
 0x971   :  { %v2457_v9 = vpop.xlane.xlu1 %2456 }
 0x972   :  { %v2535_v46 = vsub.f32 %v8675_v21, %v2457_v9  ;;  %v2579_v21 = vmul.f32 1.442695, %v2537_v45  ;;  %v2543_v45 = vsub.f32 %v8673_v3, %v2481_v39  ;;  %v2496_v39 = vpop.xlane.xlu0 %2495 }
 0x974   :  { %v8871_v23 = vpop.eup %7004  ;;  %v2575_v44 = vmul.f32 1.442695, %v2535_v46 }
 0x975   :  { %2669 = vadd.xlane.f32.xlu1 %v2668_v63  ;;  %v2638_v24 = vsel %vm12248_vm13, %v8871_v23, 0.0  ;;  %v8880_v56 = vpop.eup %7006  ;;  %vm12259_vm13 = vmmov %vm12213_vm0 }
 0x976   :  { %7010 = vpow2.f32 %v2575_v44  ;;  %2639 = vadd.xlane.f32.xlu2 %v2638_v24  ;;  %2636 = vadd.xlane.f32.xlu0 %v2635_v6  ;;  %v8883_v35 = vpop.eup %7008  ;;  %v2677_v47 = vsel %vm12250_vm9, %v8880_v56, 0.0  ;;  %vm12261_vm9 = vmmov %vm12213_vm0 }
 0x977   :  { %7012 = vpow2.f32 %v2579_v21  ;;  %v2644_v4 = vsel %vm12252_vm4, %v8883_v35, 0.0  ;;  %vm12263_vm4 = vmmov %vm12213_vm0 }
 0x978   :  { %v2490_v26 = vpop.xlane.xlu2 %2489 }
 0x979   :  { %v2546_v50 = vsub.f32 %v8698_v51, %v2490_v26  ;;  %v2466_v53 = vpop.xlane.xlu1 %2465 }
 0x97a   :  { %v2538_v59 = vsub.f32 %v8700_v27, %v2466_v53  ;;  %v2585_v27 = vmul.f32 1.442695, %v2540_v57 }
 0x97b   :  { %v2597_v38 = vmul.f32 1.442695, %v2546_v50 }
 0x97c   :  { %v8886_v48 = vpop.eup %7010  ;;  %v2581_v33 = vmul.f32 1.442695, %v2538_v59 }
 0x97d   :  { %7014 = vpow2.f32 %v2597_v38  ;;  %2678 = vadd.xlane.f32.xlu1 %v2677_v47  ;;  %v2647_v51 = vsel %vm12251_vm1, %v8886_v48, 0.0  ;;  %v8895_v9 = vpop.eup %7012  ;;  %vm12262_vm1 = vmmov %vm12213_vm0 }
 0x97e   :  { %7016 = vpow2.f32 %v2581_v33  ;;  %2648 = vadd.xlane.f32.xlu2 %v2647_v51  ;;  %2645 = vadd.xlane.f32.xlu0 %v2644_v4  ;;  %v2653_v6 = vsel %vm12255_vm10, %v8895_v9, 0.0  ;;  %vm12267_vm10 = vmmov %vm12213_vm0 }
 0x97f   :  { %7018 = vpow2.f32 %v2585_v27 }
 0x980   :  { %v2499_v5 = vpop.xlane.xlu2 %2498 }
 0x981   :  { %v2475_v52 = vpop.xlane.xlu1 %2474  ;;  %v2549_v59 = vsub.f32 %v8727_v37, %v2499_v5  ;;  %v2505_v37 = vpop.xlane.xlu0 %2504 }
 0x982   :  { %v2541_v17 = vsub.f32 %v8729_v14, %v2475_v52  ;;  %v2591_v14 = vmul.f32 1.442695, %v2543_v45 }
 0x983   :  { %v8898_v34 = vpop.eup %7014  ;;  %v2603_v51 = vmul.f32 1.442695, %v2549_v59 }
 0x984   :  { %v8900_v46 = vpop.eup %7016  ;;  %v2587_v44 = vmul.f32 1.442695, %v2541_v17  ;;  %v2680_v63 = vsel %vm12253_vm12, %v8898_v34, 0.0  ;;  %vm12265_vm12 = vmmov %vm12213_vm0 }
 0x985   :  { %2681 = vadd.xlane.f32.xlu1 %v2680_v63  ;;  %v2656_v24 = vsel %vm12254_vm2, %v8900_v46, 0.0  ;;  %v8909_v26 = vpop.eup %7018  ;;  %vm12266_vm2 = vmmov %vm12213_vm0 }
 0x986   :  { %7020 = vpow2.f32 %v2587_v44  ;;  %2657 = vadd.xlane.f32.xlu2 %v2656_v24  ;;  %2654 = vadd.xlane.f32.xlu0 %v2653_v6  ;;  %v2662_v47 = vsel %vm12257_vm15, %v8909_v26, 0.0 }
 0x987   :  { %7022 = vpow2.f32 %v2591_v14 }
 0x988   :  { %v2508_v50 = vpop.xlane.xlu2 %2507 }
 0x989   :  { %v2484_v21 = vpop.xlane.xlu1 %2483  ;;  %v2552_v57 = vsub.f32 %v8749_v29, %v2508_v50  ;;  %v2548_v29 = vsub.f32 %v8601_v62, %v2496_v39 }
 0x98a   :  { %v2544_v3 = vsub.f32 %v8751_v0, %v2484_v21 }
 0x98b   :  { %v2609_v0 = vmul.f32 1.442695, %v2552_v57  ;;  %v2601_v63 = vmul.f32 1.442695, %v2548_v29  ;;  %v2514_v14 = vpop.xlane.xlu0 %2513 }
 0x98c   :  { %v8912_v53 = vpop.eup %7020  ;;  %v2593_v38 = vmul.f32 1.442695, %v2544_v3 }
 0x98d   :  { %v2665_v33 = vsel %vm12256_vm11, %v8912_v53, 0.0  ;;  %v8920_v27 = vpop.eup %7022  ;;  %vm12268_vm11 = vmmov %vm12213_vm0 }
 0x98e   :  { %7024 = vpow2.f32 %v2593_v38  ;;  %2666 = vadd.xlane.f32.xlu2 %v2665_v33  ;;  %2663 = vadd.xlane.f32.xlu0 %v2662_v47  ;;  %v2671_v44 = vsel %vm12258_vm5, %v8920_v27, 0.0  ;;  %v2551_v33 = vsub.f32 %v8717_v8, %v2505_v37 }
 0x98f   :  { %7026 = vpow2.f32 %v2603_v51 }
 0x990   :  { %7028 = vpow2.f32 %v2609_v0  ;;  %v2607_v0 = vmul.f32 1.442695, %v2551_v33  ;;  %v2517_v29 = vpop.xlane.xlu2 %2516 }
 0x991   :  { %v2493_v4 = vpop.xlane.xlu1 %2492 }
 0x992   :  { %v2547_v52 = vsub.f32 %v8776_v7, %v2493_v4 }
 0x994   :  { %v8923_v5 = vpop.eup %7024  ;;  %v2599_v17 = vmul.f32 1.442695, %v2547_v52 }
 0x995   :  { %v2674_v45 = vsel %vm12213_vm0, %v8923_v5, 0.0  ;;  %v8930_v7 = vpop.eup %7026 }
 0x996   :  { %7030 = vpow2.f32 %v2599_v17  ;;  %2675 = vadd.xlane.f32.xlu2 %v2674_v45  ;;  %2672 = vadd.xlane.f32.xlu0 %v2671_v44  ;;  %v8932_v6 = vpop.eup %7028  ;;  %v2689_v3 = vsel %vm12260_vm14, %v8930_v7, 0.0  ;;  %vm12269_vm14 = vmmov %vm12262_vm1 }
 0x997   :  { %7032 = vpow2.f32 %v2601_v63  ;;  %v2698_v39 = vsel %vm12261_vm9, %v8932_v6, 0.0  ;;  %v2554_v63 = vsub.f32 %v8765_v60, %v2514_v14  ;;  %vm12270_vm9 = vmmov %vm12262_vm1 }
 0x999   :  { %v2502_v24 = vpop.xlane.xlu1 %2501 }
 0x99a   :  { %v2550_v21 = vsub.f32 %v8788_v41, %v2502_v24 }
 0x99c   :  { %v8934_v62 = vpop.eup %7030  ;;  %v2605_v59 = vmul.f32 1.442695, %v2550_v21  ;;  %v2613_v21 = vmul.f32 1.442695, %v2554_v63 }
 0x99d   :  { %v2683_v50 = vsel %vm12259_vm13, %v8934_v62, 0.0  ;;  %v8943_v38 = vpop.eup %7032 }
 0x99e   :  { %2684 = vadd.xlane.f32.xlu1 %v2683_v50  ;;  %2690 = vadd.xlane.f32.xlu2 %v2689_v3  ;;  %7034 = vpow2.f32 %v2605_v59  ;;  %v2686_v47 = vsel %vm12262_vm1, %v8943_v38, 0.0  ;;  %v2555_v59 = vsub.f32 %v8774_v16, %v2517_v29 }
 0x99f   :  { %2699 = vadd.xlane.f32.xlu0 %v2698_v39 }
 0x9a0   :  { %v2615_v60 = vmul.f32 1.442695, %v2555_v59 }
 0x9a1   :  { %v2511_v4 = vpop.xlane.xlu1 %2510 }
 0x9a2   :  { %v2553_v17 = vsub.f32 %v8799_v18, %v2511_v4 }
 0x9a3   :  { %v2523_v57 = vpop.xlane.xlu0 %2522 }
 0x9a4   :  { %v2557_v41 = vsub.f32 %v8806_v55, %v2523_v57  ;;  %v8949_v52 = vpop.eup %7034  ;;  %v2611_v45 = vmul.f32 1.442695, %v2553_v17 }
 0x9a5   :  { %v2692_v8 = vsel %vm12263_vm4, %v8949_v52, 0.0 }
 0x9a6   :  { %v2619_v51 = vmul.f32 1.442695, %v2557_v41  ;;  %2687 = vadd.xlane.f32.xlu1 %v2686_v47 }
 0x9a8   :  { %7036 = vpow2.f32 %v2619_v51 }
 0x9a9   :  { %7038 = vpow2.f32 %v2607_v0  ;;  %v2520_v50 = vpop.xlane.xlu1 %2519 }
 0x9aa   :  { %7040 = vpow2.f32 %v2611_v45  ;;  %v2556_v51 = vsub.f32 %v8813_v40, %v2520_v50 }
 0x9ab   :  { %7042 = vpow2.f32 %v2613_v21  ;;  %v1716_v21 = vpop.f32.mrf.mxu0 }
 0x9ae   :  { %v8954_v37 = vpop.eup %7036  ;;  %2693 = vadd.xlane.f32.xlu1 %v2692_v8 }
 0x9af   :  { %12264 = vst [vmem:[#allocation10_spill] sm:$0xff] %v8954_v37  ;;  %v2713_v55 = vsel %vm12265_vm12, %v8954_v37, 0.0  ;;  %v8958_v44 = vpop.eup %7038  ;;  %vm12271_vm12 = vmmov %vm12266_vm2 }
 0x9b0   :  { %2714 = vadd.xlane.f32.xlu2 %v2713_v55  ;;  %v2695_v18 = vsel %vm12266_vm2, %v8958_v44, 0.0  ;;  %v8963_v3 = vpop.eup %7040  ;;  %v2617_v55 = vmul.f32 1.442695, %v2556_v51 }
 0x9b1   :  { %v2701_v57 = vsel %vm12267_vm10, %v8963_v3, 0.0  ;;  %v8968_v33 = vpop.eup %7042 }
 0x9b2   :  { %v2704_v4 = vsel %vm12268_vm11, %v8968_v33, 0.0  ;;  %vm12273_vm11 = vmmov %vm12270_vm9 }
 0x9b3   :  { %v2526_v24 = vpop.xlane.xlu2 %2525 }
 0x9b6   :  { %2696 = vadd.xlane.f32.xlu1 %v2695_v18 }
 0x9bb   :  { %v2631_v39 = vpop.xlane.xlu2 %2630 }
 0x9bc   :  { %7044 = vrcp.f32 %v2631_v39  ;;  %v2760_v16 = vand.u32 2147483648, %v2631_v39  ;;  %v2758_v8 = vand.u32 2147483647, %v2631_v39  ;;  %vm2754_vm0 = vweird.f32 %v2631_v39 }
 0x9be   :  { %2702 = vadd.xlane.f32.xlu1 %v2701_v57  ;;  %v2761_v59 = vor.u32 1.1754944e-38, %v2760_v16  ;;  %vm2759_vm13 = vcmp.eq.f32.partialorder %v2758_v8, 8.507059e+37  ;;  %v2558_v57 = vsub.f32 %v8823_v13, %v2526_v24 }
 0x9c0   :  { %v2625_v14 = vpop.xlane.xlu1 %2624  ;;  %v2621_v16 = vmul.f32 1.442695, %v2558_v57 }
 0x9c1   :  { %7046 = vrcp.f32 %v2625_v14  ;;  %vm2724_vm4 = vweird.f32 %v2625_v14  ;;  %v2728_v8 = vand.u32 2147483647, %v2625_v14 }
 0x9c2   :  { %v7045_v41 = vpop.eup %7044  ;;  %7048 = vpow2.f32 %v2615_v60 }
 0x9c3   :  { %v2750_v47 = vmul.f32 %v7045_v41, %v2631_v39  ;;  %vm2755_vm15 = vweird.f32 %v7045_v41  ;;  %7050 = vpow2.f32 %v2617_v55  ;;  %vm2729_vm10 = vcmp.eq.f32.partialorder %v2728_v8, 8.507059e+37 }
 0x9c4   :  { %vm2756_vm5 = vmor %vm2754_vm0, %vm2755_vm15  ;;  %7052 = vpow2.f32 %v2621_v16 }
 0x9c5   :  { %v2751_v0 = vsub.f32 1.0, %v2750_v47  ;;  %v8977_v47 = vadd.f32 %v1716_v21, %v8204_v10  ;;  %vm12274_vm15 = vmmov %vm12270_vm9 }
 0x9c6   :  { %2705 = vadd.xlane.f32.xlu1 %v2704_v4 }
 0x9c7   :  { %v7047_v29 = vpop.eup %7046  ;;  %v2752_v17 = vmul.f32 %v7045_v41, %v2751_v0 }
 0x9c8   :  { %v2720_v45 = vmul.f32 %v7047_v29, %v2625_v14  ;;  %v8973_v18 = vpop.eup %7048  ;;  %v8979_v0 = vpop.xlane.xlu1 %2633  ;;  %vm2725_vm1 = vweird.f32 %v7047_v29 }
 0x9c9   :  { %v2753_v63 = vadd.f32 %v7045_v41, %v2752_v17  ;;  %v2707_v39 = vsel %vm12269_vm14, %v8973_v18, 0.0  ;;  %v8989_v24 = vpop.eup %7050  ;;  %v2730_v17 = vand.u32 2147483648, %v2625_v14  ;;  %vm2726_vm2 = vmor %vm2724_vm4, %vm2725_vm1  ;;  %7054 = vrcp.f32 %v8979_v0 }
 0x9ca   :  { %v2721_v40 = vsub.f32 1.0, %v2720_v45  ;;  %v8996_v21 = vpop.eup %7052 }
 0x9cb   :  { %v2757_v50 = vsel %vm2756_vm5, %v7045_v41, %v2753_v63  ;;  %v2731_v63 = vor.u32 1.1754944e-38, %v2730_v17  ;;  %12272 = vst [vmem:[#allocation11_spill] sm:$0xff] %v8996_v21 }
 0x9cc   :  { %v2762_v60 = vsel %vm2759_vm13, %v2761_v59, %v2757_v50  ;;  %v2722_v4 = vmul.f32 %v7047_v29, %v2721_v40  ;;  %v2716_v50 = vsel %vm12273_vm11, %v8996_v21, 0.0  ;;  %vm2769_vm13 = vweird.f32 %v8979_v0 }
 0x9cd   :  { %v8984_v51 = vmul.f32 %v8828_v19, %v2762_v60  ;;  %v2710_v19 = vsel %vm12271_vm12, %v8989_v24, 0.0 }
 0x9ce   :  { %2708 = vadd.xlane.f32.xlu1 %v2707_v39  ;;  %v2723_v10 = vadd.f32 %v7047_v29, %v2722_v4 }
 0x9cf   :  { %v3201_v41 = vmul.f32 %v8984_v51, %v8977_v47  ;;  %v8999_v40 = vpop.eup %7054 }
 0x9d0   :  { %v8994_v55 = vpop.xlane.xlu1 %2642  ;;  %v2727_v45 = vsel %vm2726_vm2, %v7047_v29, %v2723_v10  ;;  %v2765_v57 = vmul.f32 %v8999_v40, %v8979_v0  ;;  %v1719_v10 = vpop.f32.mrf.mxu3  ;;  %vm2770_vm0 = vweird.f32 %v8999_v40 }
 0x9d1   :  { %v3237_v13 = vsel %vm12270_vm9, %v3201_v41, 0.0  ;;  %v2732_v59 = vsel %vm2729_vm10, %v2731_v63, %v2727_v45  ;;  %7056 = vrcp.f32 %v8994_v55  ;;  %vm9042_vm1 = vmor %vm2769_vm13, %vm2770_vm0  ;;  %vm2814_vm2 = vweird.f32 %v8994_v55 }
 0x9d2   :  { %3238 = vadd.xlane.f32.xlu0 %v3237_v13  ;;  %v2733_v14 = vmul.f32 %v8833_v49, %v2732_v59  ;;  %v2766_v41 = vsub.f32 1.0, %v2765_v57  ;;  %v2775_v57 = vand.u32 2147483648, %v8979_v0 }
 0x9d4   :  { %v3199_v4 = vmul.f32 %v2733_v14, %v8977_v47  ;;  %v2767_v17 = vmul.f32 %v8999_v40, %v2766_v41 }
 0x9d6   :  { %2711 = vadd.xlane.f32.xlu1 %v2710_v19  ;;  %v3231_v49 = vsel %vm12274_vm15, %v3199_v4, 0.0 }
 0x9d7   :  { %v9006_v60 = vpop.eup %7056 }
 0x9d8   :  { %v9008_v29 = vpop.xlane.xlu1 %2651  ;;  %v2810_v16 = vmul.f32 %v9006_v60, %v8994_v55  ;;  %vm2815_vm12 = vweird.f32 %v9006_v60 }
 0x9d9   :  { %vm9080_vm0 = vmor %vm2814_vm2, %vm2815_vm12 }
 0x9da   :  { %v2811_v19 = vsub.f32 1.0, %v2810_v16  ;;  %v2768_v16 = vadd.f32 %v8999_v40, %v2767_v17  ;;  %v2818_v17 = vand.u32 2147483647, %v8994_v55 }
 0x9dc   :  { %v2812_v41 = vmul.f32 %v9006_v60, %v2811_v19  ;;  %v2820_v19 = vand.u32 2147483648, %v8994_v55  ;;  %vm9070_vm11 = vcmp.eq.f32.partialorder %v2818_v17, 8.507059e+37 }
 0x9de   :  { %2717 = vadd.xlane.f32.xlu1 %v2716_v50  ;;  %v2773_v50 = vand.u32 2147483647, %v8979_v0  ;;  %v2813_v21 = vadd.f32 %v9006_v60, %v2812_v41 }
 0x9e0   :  { %v9024_v31 = vpop.xlane.xlu1 %2660  ;;  %vm9036_vm14 = vcmp.eq.f32.partialorder %v2773_v50, 8.507059e+37 }
 0x9e1   :  { %v2628_v39 = vpop.xlane.xlu0 %2627 }
 0x9e2   :  { %7058 = vrcp.f32 %v2628_v39  ;;  %v2745_v20 = vand.u32 2147483648, %v2628_v39  ;;  %vm2739_vm9 = vweird.f32 %v2628_v39 }
 0x9e3   :  { %7060 = vrcp.f32 %v9008_v29 }
 0x9e6   :  { %3232 = vadd.xlane.f32.xlu1 %v3231_v49  ;;  %v9028_v49 = vadd.f32 %v1719_v10, %v8186_v61  ;;  %v2776_v61 = vor.u32 1.1754944e-38, %v2775_v57 }
 0x9e8   :  { %v7059_v13 = vpop.eup %7058  ;;  %v3327_v0 = vmul.f32 %v2733_v14, %v9028_v49  ;;  %v9053_v50 = vmul.f32 %v8984_v51, %v9028_v49  ;;  %v2746_v14 = vor.u32 1.1754944e-38, %v2745_v20 }
 0x9e9   :  { %v2735_v8 = vmul.f32 %v7059_v13, %v2628_v39  ;;  %v9016_v45 = vpop.xlane.xlu0 %2636  ;;  %v9018_v63 = vpop.xlane.xlu2 %2639  ;;  %vm2740_vm5 = vweird.f32 %v7059_v13 }
 0x9ea   :  { %v9020_v59 = vpop.eup %7060  ;;  %7062 = vrcp.f32 %v9018_v63  ;;  %vm9046_vm4 = vmor %vm2739_vm9, %vm2740_vm5  ;;  %vm2859_vm5 = vweird.f32 %v9008_v29  ;;  %v2805_v30 = vand.u32 2147483648, %v9018_v63 }
 0x9eb   :  { %v2736_v4 = vsub.f32 1.0, %v2735_v8  ;;  %v2855_v12 = vmul.f32 %v9020_v59, %v9008_v29  ;;  %v2743_v8 = vand.u32 2147483647, %v2628_v39 }
 0x9ed   :  { %v2737_v25 = vmul.f32 %v7059_v13, %v2736_v4  ;;  %v2856_v57 = vsub.f32 1.0, %v2855_v12  ;;  %vm2744_vm10 = vcmp.eq.f32.partialorder %v2743_v8, 8.507059e+37  ;;  %v9088_v8 = vpop.xlane.xlu1 %2669 }
 0x9ef   :  { %v2738_v10 = vadd.f32 %v7059_v13, %v2737_v25  ;;  %v2772_v25 = vsel %vm9042_vm1, %v8999_v40, %v2768_v16  ;;  %v2821_v40 = vor.u32 1.1754944e-38, %v2820_v19  ;;  %v2857_v41 = vmul.f32 %v9020_v59, %v2856_v57 }
 0x9f0   :  { %v7063_v39 = vpop.eup %7062  ;;  %vm2860_vm1 = vweird.f32 %v9020_v59 }
 0x9f1   :  { %v9059_v28 = vpop.xlane.xlu0 %2645  ;;  %v9061_v1 = vpop.xlane.xlu2 %2648  ;;  %v2742_v37 = vsel %vm9046_vm4, %v7059_v13, %v2738_v10  ;;  %v2795_v51 = vmul.f32 %v7063_v39, %v9018_v63  ;;  %v9076_v13 = vsel %vm12274_vm15, %v3327_v0, 0.0  ;;  %v2863_v10 = vand.u32 2147483647, %v9008_v29 }
 0x9f2   :  { %7064 = vrcp.f32 %v9059_v28  ;;  %v2747_v32 = vsel %vm2744_vm10, %v2746_v14, %v2742_v37  ;;  %v2777_v37 = vsel %vm9036_vm14, %v2776_v61, %v2772_v25  ;;  %vm2800_vm13 = vweird.f32 %v7063_v39  ;;  %vm12285_vm14 = vmmov %vm12274_vm15 }
 0x9f3   :  { %7066 = vrcp.f32 %v9061_v1  ;;  %v2796_v16 = vsub.f32 1.0, %v2795_v51  ;;  %v2748_v20 = vmul.f32 %v8859_v22, %v2747_v32  ;;  %v2817_v22 = vsel %vm9080_vm0, %v9006_v60, %v2813_v21  ;;  %vm12286_vm9 = vmmov %vm12285_vm14 }
 0x9f4   :  { %v2803_v61 = vand.u32 2147483647, %v9018_v63  ;;  %v9099_v0 = vmul.f32 %v8838_v11, %v2777_v37  ;;  %v2865_v25 = vand.u32 2147483648, %v9008_v29  ;;  %7068 = vrcp.f32 %v9016_v45  ;;  %vm9141_vm15 = vmor %vm2859_vm5, %vm2860_vm1 }
 0x9f5   :  { %v2797_v17 = vmul.f32 %v7063_v39, %v2796_v16  ;;  %v3328_v19 = vmul.f32 %v2748_v20, %v9028_v49  ;;  %v3200_v4 = vmul.f32 %v2748_v20, %v8977_v47  ;;  %vm2799_vm4 = vweird.f32 %v9018_v63 }
 0x9f6   :  { %v2822_v20 = vsel %vm9070_vm11, %v2821_v40, %v2817_v22  ;;  %vm2801_vm12 = vmor %vm2799_vm4, %vm2800_vm13  ;;  %v2806_v63 = vor.u32 1.1754944e-38, %v2805_v30  ;;  %v2858_v37 = vadd.f32 %v9020_v59, %v2857_v41  ;;  %vm2804_vm2 = vcmp.eq.f32.partialorder %v2803_v61, 8.507059e+37 }
 0x9f7   :  { %v3362_v21 = vsel %vm12285_vm14, %v3328_v19, 0.0  ;;  %v3234_v60 = vsel %vm12286_vm9, %v3200_v4, 0.0  ;;  %v2798_v14 = vadd.f32 %v7063_v39, %v2797_v17  ;;  %v2835_v40 = vand.u32 2147483648, %v9059_v28  ;;  %vm12293_vm14 = vmmov %vm12286_vm9 }
 0x9f8   :  { %v9102_v57 = vpop.eup %7064  ;;  %3363 = vadd.xlane.f32.xlu2 %v3362_v21  ;;  %3235 = vadd.xlane.f32.xlu1 %v3234_v60  ;;  %vm9127_vm10 = vcmp.eq.f32.partialorder %v2863_v10, 8.507059e+37  ;;  %v9135_v41 = vmul.f32 %v8843_v36, %v2822_v20  ;;  %vm2829_vm0 = vweird.f32 %v9059_v28  ;;  %v2833_v61 = vand.u32 2147483647, %v9059_v28  ;;  %v9153_v60 = vpop.xlane.xlu1 %2678 }
 0x9f9   :  { %v9107_v51 = vpop.eup %7066  ;;  %v2825_v11 = vmul.f32 %v9102_v57, %v9059_v28  ;;  %v9113_v32 = vpop.xlane.xlu0 %2654  ;;  %v2802_v19 = vsel %vm2801_vm12, %v7063_v39, %v2798_v14  ;;  %vm2830_vm11 = vweird.f32 %v9102_v57  ;;  %vm2844_vm1 = vweird.f32 %v9061_v1 }
 0x9fa   :  { %v9115_v16 = vpop.xlane.xlu2 %2657  ;;  %v2840_v55 = vmul.f32 %v9107_v51, %v9061_v1  ;;  %7070 = vrcp.f32 %v9113_v32  ;;  %v2807_v12 = vsel %vm2804_vm2, %v2806_v63, %v2802_v19  ;;  %v9151_v36 = vpop.eup %7068  ;;  %vm9161_vm5 = vmor %vm2829_vm0, %vm2830_vm11  ;;  %vm2845_vm13 = vweird.f32 %v9107_v51 }
 0x9fb   :  { %v2826_v17 = vsub.f32 1.0, %v2825_v11  ;;  %7072 = vrcp.f32 %v9115_v16  ;;  %v2808_v30 = vmul.f32 %v8871_v23, %v2807_v12  ;;  %v2862_v23 = vsel %vm9141_vm15, %v9020_v59, %v2858_v37  ;;  %vm2846_vm12 = vmor %vm2844_vm1, %vm2845_vm13 }
 0x9fc   :  { %7074 = vrcp.f32 %v9024_v31  ;;  %v2841_v4 = vsub.f32 1.0, %v2840_v55  ;;  %v2848_v55 = vand.u32 2147483647, %v9061_v1  ;;  %v2850_v37 = vand.u32 2147483648, %v9061_v1  ;;  %vm12294_vm11 = vmmov %vm12286_vm9 }
 0x9fd   :  { %v2827_v21 = vmul.f32 %v9102_v57, %v2826_v17  ;;  %v3332_v14 = vmul.f32 %v2808_v30, %v9028_v49  ;;  %v3204_v11 = vmul.f32 %v2808_v30, %v8977_v47  ;;  %v2836_v17 = vor.u32 1.1754944e-38, %v2835_v40  ;;  %vm12296_vm0 = vmmov %vm12286_vm9 }
 0x9fe   :  { %v2842_v10 = vmul.f32 %v9107_v51, %v2841_v4  ;;  %vm2834_vm4 = vcmp.eq.f32.partialorder %v2833_v61, 8.507059e+37  ;;  %v3333_v1 = vmul.f32 %v9135_v41, %v9028_v49  ;;  %v2851_v61 = vor.u32 1.1754944e-38, %v2850_v37 }
 0x9ff   :  { %v2828_v20 = vadd.f32 %v9102_v57, %v2827_v21  ;;  %v3374_v12 = vsel %vm12293_vm14, %v3332_v14, 0.0  ;;  %v3246_v21 = vsel %vm12286_vm9, %v3204_v11, 0.0  ;;  %vm2849_vm2 = vcmp.eq.f32.partialorder %v2848_v55, 8.507059e+37  ;;  %vm12297_vm14 = vmmov %vm12296_vm0 }
 0xa00   :  { %v9159_v63 = vpop.eup %7070  ;;  %v2843_v59 = vadd.f32 %v9107_v51, %v2842_v10  ;;  %3360 = vadd.xlane.f32.xlu1 %v9076_v13  ;;  %v2780_v10 = vmul.f32 %v9151_v36, %v9016_v45  ;;  %3375 = vadd.xlane.f32.xlu0 %v3374_v12  ;;  %v3365_v12 = vsel %vm12294_vm11, %v9053_v50, 0.0  ;;  %v3377_v55 = vsel %vm12296_vm0, %v3333_v1, 0.0 }
 0xa01   :  { %v9168_v19 = vpop.eup %7072  ;;  %v2870_v4 = vmul.f32 %v9159_v63, %v9113_v32  ;;  %v9175_v30 = vpop.xlane.xlu0 %2663  ;;  %v2832_v40 = vsel %vm9161_vm5, %v9102_v57, %v2828_v20  ;;  %3247 = vadd.xlane.f32.xlu2 %v3246_v21  ;;  %v2866_v57 = vor.u32 1.1754944e-38, %v2865_v25  ;;  %vm2875_vm15 = vweird.f32 %v9159_v63 }
 0xa02   :  { %v9180_v39 = vpop.eup %7074  ;;  %7076 = vrcp.f32 %v9175_v30  ;;  %v2885_v14 = vmul.f32 %v9168_v19, %v9115_v16  ;;  %v2837_v11 = vsel %vm2834_vm4, %v2836_v17, %v2832_v40  ;;  %v2847_v28 = vsel %vm2846_vm12, %v9107_v51, %v2843_v59  ;;  %v9201_v25 = vpop.xlane.xlu2 %2666 }
 0xa03   :  { %v2871_v13 = vsub.f32 1.0, %v2870_v4  ;;  %v9193_v20 = vmul.f32 %v8883_v35, %v2837_v11  ;;  %v2867_v17 = vsel %vm9127_vm10, %v2866_v57, %v2862_v23  ;;  %v2781_v29 = vsub.f32 1.0, %v2780_v10  ;;  %vm12295_vm10 = vmmov %vm12286_vm9  ;;  %v9217_v10 = vpop.xlane.xlu1 %2681 }
 0xa04   :  { %v2852_v21 = vsel %vm2849_vm2, %v2851_v61, %v2847_v28  ;;  %v2886_v40 = vsub.f32 1.0, %v2885_v14  ;;  %v3202_v51 = vmul.f32 %v9099_v0, %v8977_v47  ;;  %v2868_v50 = vmul.f32 %v8848_v15, %v2867_v17  ;;  %vm12298_vm2 = vmmov %vm12296_vm0 }
 0xa05   :  { %v2872_v4 = vmul.f32 %v9159_v63, %v2871_v13  ;;  %v3206_v35 = vmul.f32 %v9193_v20, %v8977_v47  ;;  %v2880_v37 = vand.u32 2147483648, %v9113_v32  ;;  %vm2874_vm5 = vweird.f32 %v9113_v32 }
 0xa06   :  { %7078 = vrcp.f32 %v9201_v25  ;;  %v9222_v13 = vmul.f32 %v8886_v48, %v2852_v21  ;;  %v2878_v14 = vand.u32 2147483647, %v9113_v32  ;;  %v2900_v11 = vmul.f32 %v9180_v39, %v9024_v31  ;;  %vm2876_vm13 = vmor %vm2874_vm5, %vm2875_vm15 }
 0xa07   :  { %v2873_v59 = vadd.f32 %v9159_v63, %v2872_v4  ;;  %v3252_v23 = vsel %vm12295_vm10, %v3206_v35, 0.0  ;;  %v2782_v57 = vmul.f32 %v9151_v36, %v2781_v29  ;;  %v2887_v15 = vmul.f32 %v9168_v19, %v2886_v40  ;;  %vm12299_vm15 = vmmov %vm12296_vm0 }
 0xa08   :  { %v9211_v22 = vpop.eup %7076  ;;  %3366 = vadd.xlane.f32.xlu1 %v3365_v12  ;;  %3253 = vadd.xlane.f32.xlu0 %v3252_v23  ;;  %v3208_v28 = vmul.f32 %v2868_v50, %v8977_v47  ;;  %v3330_v32 = vmul.f32 %v9099_v0, %v9028_v49  ;;  %v2881_v61 = vor.u32 1.1754944e-38, %v2880_v37  ;;  %7080 = vrcp.f32 %v9088_v8 }
 0xa09   :  { %3378 = vadd.xlane.f32.xlu2 %v3377_v55  ;;  %v2915_v1 = vmul.f32 %v9211_v22, %v9175_v30  ;;  %v2877_v48 = vsel %vm2876_vm13, %v9159_v63, %v2873_v59  ;;  %v3240_v4 = vsel %vm12297_vm14, %v3202_v51, 0.0  ;;  %v3207_v17 = vmul.f32 %v9222_v13, %v8977_v47  ;;  %v9245_v40 = vpop.xlane.xlu0 %2672  ;;  %vm12304_vm13 = vmmov %vm12298_vm2 }
 0xa0a   :  { %vm2879_vm9 = vcmp.eq.f32.partialorder %v2878_v14, 8.507059e+37  ;;  %v2901_v29 = vsub.f32 1.0, %v2900_v11  ;;  %v2783_v35 = vadd.f32 %v9151_v36, %v2782_v57  ;;  %vm2785_vm1 = vweird.f32 %v9151_v36 }
 0xa0b   :  { %v2882_v12 = vsel %vm2879_vm9, %v2881_v61, %v2877_v48  ;;  %v2916_v21 = vsub.f32 1.0, %v2915_v1  ;;  %v2790_v0 = vand.u32 2147483648, %v9016_v45  ;;  %v2888_v59 = vadd.f32 %v9168_v19, %v2887_v15 }
 0xa0c   :  { %v9243_v63 = vpop.eup %7078  ;;  %vm2890_vm4 = vweird.f32 %v9168_v19  ;;  %vm2784_vm12 = vweird.f32 %v9016_v45  ;;  %v3258_v51 = vsel %vm12298_vm2, %v3208_v28, 0.0  ;;  %v2788_v23 = vand.u32 2147483647, %v9016_v45 }
 0xa0d   :  { %v2895_v55 = vand.u32 2147483648, %v9115_v16  ;;  %vm2889_vm11 = vweird.f32 %v9115_v16  ;;  %v3255_v37 = vsel %vm12299_vm15, %v3207_v17, 0.0  ;;  %v9259_v11 = vmul.f32 %v8895_v9, %v2882_v12  ;;  %vm9263_vm10 = vmor %vm2784_vm12, %vm2785_vm1 }
 0xa0e   :  { %v2893_v45 = vand.u32 2147483647, %v9115_v16  ;;  %v2930_v15 = vmul.f32 %v9243_v63, %v9201_v25  ;;  %7082 = vrcp.f32 %v9245_v40  ;;  %v2787_v9 = vsel %vm9263_vm10, %v9151_v36, %v2783_v35  ;;  %vm9276_vm0 = vmor %vm2889_vm11, %vm2890_vm4  ;;  %v9280_v48 = vpop.eup %7080 }
 0xa0f   :  { %v2902_v16 = vmul.f32 %v9180_v39, %v2901_v29  ;;  %v2917_v28 = vmul.f32 %v9211_v22, %v2916_v21  ;;  %v2791_v61 = vor.u32 1.1754944e-38, %v2790_v0  ;;  %v3336_v17 = vmul.f32 %v2868_v50, %v9028_v49  ;;  %v9293_v0 = vpop.xlane.xlu2 %2675  ;;  %vm12305_vm12 = vmmov %vm12298_vm2 }
 0xa10   :  { %3241 = vadd.xlane.f32.xlu1 %v3240_v4  ;;  %3259 = vadd.xlane.f32.xlu0 %v3258_v51  ;;  %v2892_v4 = vsel %vm9276_vm0, %v9168_v19, %v2888_v59  ;;  %vm2789_vm5 = vcmp.eq.f32.partialorder %v2788_v23, 8.507059e+37  ;;  %v2896_v36 = vor.u32 1.1754944e-38, %v2895_v55  ;;  %v3368_v12 = vsel %vm12304_vm13, %v3330_v32, 0.0  ;;  %vm12306_vm11 = vmmov %vm12305_vm12 }
 0xa11   :  { %v9256_v14 = vpop.xlane.xlu1 %2684  ;;  %3256 = vadd.xlane.f32.xlu2 %v3255_v37  ;;  %v3209_v35 = vmul.f32 %v9259_v11, %v8977_v47  ;;  %v2792_v51 = vsel %vm2789_vm5, %v2791_v61, %v2787_v9  ;;  %vm2894_vm14 = vcmp.eq.f32.partialorder %v2893_v45, 8.507059e+37  ;;  %vm2904_vm9 = vweird.f32 %v9024_v31 }
 0xa12   :  { %v2931_v29 = vsub.f32 1.0, %v2930_v15  ;;  %v2897_v21 = vsel %vm2894_vm14, %v2896_v36, %v2892_v4  ;;  %vm2905_vm1 = vweird.f32 %v9180_v39  ;;  %v2918_v19 = vadd.f32 %v9211_v22, %v2917_v28 }
 0xa13   :  { %vm2920_vm4 = vweird.f32 %v9211_v22  ;;  %v2903_v50 = vadd.f32 %v9180_v39, %v2902_v16  ;;  %v2908_v32 = vand.u32 2147483647, %v9024_v31  ;;  %v3386_v23 = vsel %vm12305_vm12, %v3336_v17, 0.0  ;;  %vm9315_vm15 = vmor %vm2904_vm9, %vm2905_vm1 }
 0xa14   :  { %v9299_v59 = vpop.eup %7082  ;;  %v2793_v55 = vmul.f32 %v8868_v43, %v2792_v51  ;;  %v2925_v37 = vand.u32 2147483648, %v9175_v30  ;;  %v2910_v57 = vand.u32 2147483648, %v9024_v31  ;;  %vm2919_vm2 = vweird.f32 %v9175_v30  ;;  %vm12309_vm9 = vmmov %vm12306_vm11 }
 0xa15   :  { %v3261_v45 = vsel %vm12306_vm11, %v3209_v35, 0.0  ;;  %v2898_v9 = vmul.f32 %v8900_v46, %v2897_v21  ;;  %v2923_v1 = vand.u32 2147483647, %v9175_v30  ;;  %v2932_v16 = vmul.f32 %v9243_v63, %v2931_v29  ;;  %vm2921_vm10 = vmor %vm2919_vm2, %vm2920_vm4 }
 0xa16   :  { %7084 = vrcp.f32 %v9293_v0  ;;  %v2945_v46 = vmul.f32 %v9280_v48, %v9088_v8  ;;  %v2960_v30 = vmul.f32 %v9299_v59, %v9245_v40  ;;  %v2922_v31 = vsel %vm2921_vm10, %v9211_v22, %v2918_v19  ;;  %vm12310_vm1 = vmmov %vm12309_vm9 }
 0xa17   :  { %v2907_v28 = vsel %vm9315_vm15, %v9180_v39, %v2903_v50  ;;  %v3203_v61 = vmul.f32 %v2793_v55, %v8977_v47  ;;  %v2926_v4 = vor.u32 1.1754944e-38, %v2925_v37  ;;  %v2911_v17 = vor.u32 1.1754944e-38, %v2910_v57  ;;  %vm12311_vm4 = vmmov %vm12310_vm1 }
 0xa18   :  { %3369 = vadd.xlane.f32.xlu1 %v3368_v12  ;;  %3262 = vadd.xlane.f32.xlu0 %v3261_v45  ;;  %v3338_v36 = vmul.f32 %v2898_v9, %v9028_v49  ;;  %v3210_v12 = vmul.f32 %v2898_v9, %v8977_v47  ;;  %vm2924_vm0 = vcmp.eq.f32.partialorder %v2923_v1, 8.507059e+37  ;;  %vm2909_vm5 = vcmp.eq.f32.partialorder %v2908_v32, 8.507059e+37 }
 0xa19   :  { %v9307_v15 = vpop.xlane.xlu1 %2687  ;;  %3387 = vadd.xlane.f32.xlu2 %v3386_v23  ;;  %v2927_v35 = vsel %vm2924_vm0, %v2926_v4, %v2922_v31  ;;  %v2912_v51 = vsel %vm2909_vm5, %v2911_v17, %v2907_v28  ;;  %v2933_v29 = vadd.f32 %v9243_v63, %v2932_v16  ;;  %vm2935_vm13 = vweird.f32 %v9243_v63  ;;  %vm12312_vm5 = vmmov %vm12310_vm1 }
 0xa1a   :  { %v2946_v22 = vsub.f32 1.0, %v2945_v46  ;;  %v2961_v21 = vsub.f32 1.0, %v2960_v30  ;;  %v2940_v39 = vand.u32 2147483648, %v9201_v25  ;;  %7086 = vrcp.f32 %v9153_v60 }
 0xa1b   :  { %vm2934_vm14 = vweird.f32 %v9201_v25  ;;  %v3243_v50 = vsel %vm12309_vm9, %v3203_v61, 0.0  ;;  %v2938_v32 = vand.u32 2147483647, %v9201_v25  ;;  %v3392_v23 = vsel %vm12310_vm1, %v3338_v36, 0.0 }
 0xa1c   :  { %v9337_v19 = vpop.eup %7084  ;;  %v3264_v37 = vsel %vm12311_vm4, %v3210_v12, 0.0  ;;  %v9348_v45 = vmul.f32 %v8909_v26, %v2927_v35  ;;  %v9351_v9 = vmul.f32 %v8855_v2, %v2912_v51  ;;  %vm2936_vm12 = vmor %vm2934_vm14, %vm2935_vm13  ;;  %7088 = vrcp.f32 %v9217_v10 }
 0xa1d   :  { %v2937_v25 = vsel %vm2936_vm12, %v9243_v63, %v2933_v29  ;;  %v2947_v1 = vmul.f32 %v9280_v48, %v2946_v22  ;;  %v2962_v43 = vmul.f32 %v9299_v59, %v2961_v21  ;;  %v2975_v26 = vmul.f32 %v9337_v19, %v9293_v0  ;;  %vm12313_vm13 = vmmov %vm12310_vm1 }
 0xa1e   :  { %v2941_v16 = vor.u32 1.1754944e-38, %v2940_v39  ;;  %v3331_v2 = vmul.f32 %v2793_v55, %v9028_v49  ;;  %vm2939_vm2 = vcmp.eq.f32.partialorder %v2938_v32, 8.507059e+37  ;;  %v3212_v46 = vmul.f32 %v9348_v45, %v8977_v47  ;;  %vm12314_vm14 = vmmov %vm12310_vm1 }
 0xa1f   :  { %v3339_v30 = vmul.f32 %v9351_v9, %v9028_v49  ;;  %vm2949_vm11 = vweird.f32 %v9088_v8  ;;  %vm2964_vm15 = vweird.f32 %v9245_v40  ;;  %vm2965_vm10 = vweird.f32 %v9299_v59 }
 0xa20   :  { %3244 = vadd.xlane.f32.xlu1 %v3243_v50  ;;  %3393 = vadd.xlane.f32.xlu0 %v3392_v23  ;;  %v2942_v31 = vsel %vm2939_vm2, %v2941_v16, %v2937_v25  ;;  %v9366_v28 = vpop.eup %7086  ;;  %v2976_v63 = vsub.f32 1.0, %v2975_v26  ;;  %v2963_v61 = vadd.f32 %v9299_v59, %v2962_v43  ;;  %v2948_v55 = vadd.f32 %v9280_v48, %v2947_v1  ;;  %vm9386_vm9 = vmor %vm2964_vm15, %vm2965_vm10  ;;  %v1753_v26 = vpop.f32.mrf.mxu1 }
 0xa21   :  { %v9345_v57 = vpop.xlane.xlu1 %2693  ;;  %3265 = vadd.xlane.f32.xlu2 %v3264_v37  ;;  %vm2950_vm0 = vweird.f32 %v9280_v48  ;;  %v3371_v17 = vsel %vm12312_vm5, %v3331_v2, 0.0  ;;  %v2943_v36 = vmul.f32 %v8912_v53, %v2942_v31  ;;  %v2970_v12 = vand.u32 2147483648, %v9245_v40  ;;  %v9415_v16 = vpop.xlane.xlu2 %2690  ;;  %vm12319_vm2 = vmmov %vm12312_vm5 }
 0xa22   :  { %v9374_v4 = vpop.eup %7088  ;;  %v2955_v35 = vand.u32 2147483648, %v9088_v8  ;;  %v3270_v51 = vsel %vm12313_vm13, %v3212_v46, 0.0  ;;  %v3395_v29 = vsel %vm12314_vm14, %v3339_v30, 0.0  ;;  %v2968_v39 = vand.u32 2147483647, %v9245_v40  ;;  %vm9401_vm1 = vmor %vm2949_vm11, %vm2950_vm0 }
 0xa23   :  { %v2953_v53 = vand.u32 2147483647, %v9088_v8  ;;  %v2990_v50 = vmul.f32 %v9366_v28, %v9153_v60  ;;  %7090 = vrcp.f32 %v9256_v14  ;;  %v3205_v32 = vmul.f32 %v9135_v41, %v8977_v47  ;;  %vm12320_vm10 = vmmov %vm12319_vm2 }
 0xa24   :  { %v3005_v40 = vmul.f32 %v9374_v4, %v9217_v10  ;;  %v2977_v37 = vmul.f32 %v9337_v19, %v2976_v63  ;;  %v2967_v25 = vsel %vm9386_vm9, %v9299_v59, %v2963_v61  ;;  %v2952_v41 = vsel %vm9401_vm1, %v9280_v48, %v2948_v55  ;;  %vm12321_vm0 = vmmov %vm12319_vm2 }
 0xa25   :  { %v3341_v1 = vmul.f32 %v2943_v36, %v9028_v49  ;;  %v2971_v8 = vor.u32 1.1754944e-38, %v2970_v12  ;;  %v2956_v43 = vor.u32 1.1754944e-38, %v2955_v35  ;;  %v3213_v2 = vmul.f32 %v2943_v36, %v8977_v47 }
 0xa26   :  { %vm2969_vm4 = vcmp.eq.f32.partialorder %v2968_v39, 8.507059e+37  ;;  %vm2954_vm12 = vcmp.eq.f32.partialorder %v2953_v53, 8.507059e+37  ;;  %v2991_v46 = vsub.f32 1.0, %v2990_v50  ;;  %v3006_v63 = vsub.f32 1.0, %v3005_v40 }
 0xa27   :  { %v2972_v30 = vsel %vm2969_vm4, %v2971_v8, %v2967_v25  ;;  %v2957_v31 = vsel %vm2954_vm12, %v2956_v43, %v2952_v41  ;;  %v3249_v59 = vsel %vm12319_vm2, %v3205_v32, 0.0  ;;  %v2978_v61 = vadd.f32 %v9337_v19, %v2977_v37  ;;  %vm12322_vm12 = vmmov %vm12321_vm0 }
 0xa28   :  { %3372 = vadd.xlane.f32.xlu1 %v3371_v17  ;;  %3271 = vadd.xlane.f32.xlu0 %v3270_v51  ;;  %vm2980_vm11 = vweird.f32 %v9337_v19  ;;  %vm2979_vm15 = vweird.f32 %v9293_v0  ;;  %7092 = vrcp.f32 %v9415_v16  ;;  %v3401_v55 = vsel %vm12320_vm10, %v3341_v1, 0.0  ;;  %vm12323_vm2 = vmmov %vm12321_vm0 }
 0xa29   :  { %v9382_v22 = vpop.xlane.xlu1 %2696  ;;  %3396 = vadd.xlane.f32.xlu2 %v3395_v29  ;;  %v9421_v48 = vpop.eup %7090  ;;  %v2985_v17 = vand.u32 2147483648, %v9293_v0  ;;  %v3273_v36 = vsel %vm12321_vm0, %v3213_v2, 0.0  ;;  %v2973_v12 = vmul.f32 %v8920_v27, %v2972_v30  ;;  %v9430_v35 = vmul.f32 %v8866_v42, %v2957_v31  ;;  %vm2981_vm5 = vmor %vm2979_vm15, %vm2980_vm11 }
 0xa2a   :  { %v2983_v51 = vand.u32 2147483647, %v9293_v0  ;;  %v2992_v29 = vmul.f32 %v9366_v28, %v2991_v46  ;;  %7094 = vrcp.f32 %v9307_v15  ;;  %v9440_v39 = vadd.f32 %v1753_v26, %v8188_v58  ;;  %vm12324_vm11 = vmmov %vm12321_vm0 }
 0xa2b   :  { %v3007_v27 = vmul.f32 %v9374_v4, %v3006_v63  ;;  %v3020_v42 = vmul.f32 %v9421_v48, %v9256_v14  ;;  %v2982_v0 = vsel %vm2981_vm5, %v9337_v19, %v2978_v61  ;;  %v3334_v53 = vmul.f32 %v9193_v20, %v9028_v49  ;;  %v1756_v19 = vpop.f32.mrf.mxu1 }
 0xa2c   :  { %v2986_v50 = vor.u32 1.1754944e-38, %v2985_v17  ;;  %v3215_v32 = vmul.f32 %v2973_v12, %v9440_v39  ;;  %v3342_v23 = vmul.f32 %v9430_v35, %v9028_v49  ;;  %vm2984_vm13 = vcmp.eq.f32.partialorder %v2983_v51, 8.507059e+37 }
 0xa2d   :  { %vm2994_vm14 = vweird.f32 %v9153_v60  ;;  %v2993_v37 = vadd.f32 %v9366_v28, %v2992_v29  ;;  %vm2995_vm9 = vweird.f32 %v9366_v28  ;;  %v3021_v25 = vsub.f32 1.0, %v3020_v42  ;;  %v9506_v29 = vpop.xlane.xlu0 %2699 }
 0xa2e   :  { %v9451_v40 = vpop.eup %7092  ;;  %v2987_v58 = vsel %vm2984_vm13, %v2986_v50, %v2982_v0  ;;  %v3000_v20 = vand.u32 2147483648, %v9153_v60  ;;  %v3008_v41 = vadd.f32 %v9374_v4, %v3007_v27  ;;  %vm3010_vm1 = vweird.f32 %v9374_v4  ;;  %vm9474_vm15 = vmor %vm2994_vm14, %vm2995_vm9 }
 0xa2f   :  { %vm3009_vm4 = vweird.f32 %v9217_v10  ;;  %v3380_v8 = vsel %vm12322_vm12, %v3334_v53, 0.0  ;;  %v2998_v43 = vand.u32 2147483647, %v9153_v60  ;;  %v3015_v26 = vand.u32 2147483648, %v9217_v10  ;;  %vm12329_vm9 = vmmov %vm12323_vm2 }
 0xa30   :  { %3250 = vadd.xlane.f32.xlu1 %v3249_v59  ;;  %3402 = vadd.xlane.f32.xlu0 %v3401_v55  ;;  %v9459_v1 = vpop.eup %7094  ;;  %v3279_v2 = vsel %vm12323_vm2, %v3215_v32, 0.0  ;;  %v3404_v46 = vsel %vm12324_vm11, %v3342_v23, 0.0  ;;  %v9468_v30 = vmul.f32 %v8923_v5, %v2987_v58  ;;  %v3013_v63 = vand.u32 2147483647, %v9217_v10  ;;  %vm9492_vm10 = vmor %vm3009_vm4, %vm3010_vm1 }
 0xa31   :  { %3274 = vadd.xlane.f32.xlu2 %v3273_v36  ;;  %v9435_v21 = vpop.xlane.xlu1 %2702  ;;  %v9480_v59 = vadd.f32 %v1756_v19, %v8206_v54  ;;  %v3050_v61 = vmul.f32 %v9451_v40, %v9415_v16  ;;  %7096 = vrcp.f32 %v9345_v57  ;;  %v2997_v5 = vsel %vm9474_vm15, %v9366_v28, %v2993_v37  ;;  %vm12330_vm1 = vmmov %vm12323_vm2 }
 0xa32   :  { %v3022_v54 = vmul.f32 %v9421_v48, %v3021_v25  ;;  %v3035_v55 = vmul.f32 %v9459_v1, %v9307_v15  ;;  %v3001_v17 = vor.u32 1.1754944e-38, %v3000_v20  ;;  %v3012_v36 = vsel %vm9492_vm10, %v9374_v4, %v3008_v41  ;;  %vm12331_vm4 = vmmov %vm12330_vm1 }
 0xa33   :  { %v3335_v28 = vmul.f32 %v9222_v13, %v9028_v49  ;;  %vm2999_vm0 = vcmp.eq.f32.partialorder %v2998_v43, 8.507059e+37  ;;  %v3016_v10 = vor.u32 1.1754944e-38, %v3015_v26  ;;  %v3343_v27 = vmul.f32 %v2973_v12, %v9480_v59  ;;  %vm12332_vm10 = vmmov %vm12330_vm1 }
 0xa34   :  { %v3344_v42 = vmul.f32 %v9468_v30, %v9480_v59  ;;  %v3002_v0 = vsel %vm2999_vm0, %v3001_v17, %v2997_v5  ;;  %vm3014_vm5 = vcmp.eq.f32.partialorder %v3013_v63, 8.507059e+37  ;;  %vm3024_vm13 = vweird.f32 %v9256_v14 }
 0xa35   :  { %v3017_v53 = vsel %vm3014_vm5, %v3016_v10, %v3012_v36  ;;  %v3051_v4 = vsub.f32 1.0, %v3050_v61  ;;  %v3036_v50 = vsub.f32 1.0, %v3035_v55  ;;  %v3023_v32 = vadd.f32 %v9421_v48, %v3022_v54 }
 0xa36   :  { %vm3025_vm14 = vweird.f32 %v9421_v48  ;;  %7098 = vrcp.f32 %v9506_v29  ;;  %v3383_v12 = vsel %vm12329_vm9, %v3335_v28, 0.0  ;;  %v9519_v23 = vmul.f32 %v8880_v56, %v3002_v0 }
 0xa37   :  { %v9514_v13 = vpop.eup %7096  ;;  %v3030_v58 = vand.u32 2147483648, %v9256_v14  ;;  %v3407_v37 = vsel %vm12330_vm1, %v3343_v27, 0.0  ;;  %v3410_v19 = vsel %vm12331_vm4, %v3344_v42, 0.0  ;;  %v9525_v25 = vmul.f32 %v8898_v34, %v3017_v53  ;;  %vm3026_vm12 = vmor %vm3024_vm13, %vm3025_vm14 }
 0xa38   :  { %3381 = vadd.xlane.f32.xlu1 %v3380_v8  ;;  %3280 = vadd.xlane.f32.xlu0 %v3279_v2  ;;  %v3028_v20 = vand.u32 2147483647, %v9256_v14  ;;  %7100 = vrcp.f32 %v9382_v22  ;;  %v3337_v56 = vmul.f32 %v9259_v11, %v9028_v49  ;;  %v3052_v41 = vmul.f32 %v9451_v40, %v3051_v4  ;;  %vm12333_vm13 = vmmov %vm12330_vm1 }
 0xa39   :  { %3405 = vadd.xlane.f32.xlu2 %v3404_v46  ;;  %v9502_v51 = vpop.xlane.xlu1 %2705  ;;  %v3037_v8 = vmul.f32 %v9459_v1, %v3036_v50  ;;  %v3065_v34 = vmul.f32 %v9514_v13, %v9345_v57  ;;  %v3027_v43 = vsel %vm3026_vm12, %v9421_v48, %v3023_v32  ;;  %v3345_v26 = vmul.f32 %v9519_v23, %v9480_v59  ;;  %vm12334_vm14 = vmmov %vm12330_vm1 }
 0xa3a   :  { %v3031_v2 = vor.u32 1.1754944e-38, %v3030_v58  ;;  %vm3054_vm2 = vweird.f32 %v9415_v16  ;;  %v3218_v11 = vmul.f32 %v9525_v25, %v9440_v39  ;;  %vm3029_vm11 = vcmp.eq.f32.partialorder %v3028_v20, 8.507059e+37 }
 0xa3b   :  { %vm3039_vm15 = vweird.f32 %v9307_v15  ;;  %v3389_v31 = vsel %vm12332_vm10, %v3337_v56, 0.0  ;;  %vm3055_vm0 = vweird.f32 %v9451_v40  ;;  %v3066_v48 = vsub.f32 1.0, %v3065_v34 }
 0xa3c   :  { %v9545_v14 = vpop.eup %7098  ;;  %v3032_v63 = vsel %vm3029_vm11, %v3031_v2, %v3027_v43  ;;  %v3038_v61 = vadd.f32 %v9459_v1, %v3037_v8  ;;  %vm3040_vm5 = vweird.f32 %v9459_v1  ;;  %v3053_v5 = vadd.f32 %v9451_v40, %v3052_v41  ;;  %vm9569_vm9 = vmor %vm3054_vm2, %vm3055_vm0 }
 0xa3d   :  { %v3413_v54 = vsel %vm12333_vm13, %v3345_v26, 0.0  ;;  %v3045_v55 = vand.u32 2147483648, %v9307_v15  ;;  %v3058_v17 = vand.u32 2147483647, %v9415_v16  ;;  %v3060_v36 = vand.u32 2147483648, %v9415_v16  ;;  %vm3041_vm1 = vmor %vm3039_vm15, %vm3040_vm5 }
 0xa3e   :  { %v9555_v60 = vpop.eup %7100  ;;  %7102 = vrcp.f32 %v9435_v21  ;;  %v3288_v28 = vsel %vm12334_vm14, %v3218_v11, 0.0  ;;  %v3033_v10 = vmul.f32 %v8934_v62, %v3032_v63  ;;  %v3043_v27 = vand.u32 2147483647, %v9307_v15  ;;  %vm12337_vm15 = vmmov %vm12332_vm10 }
 0xa3f   :  { %v3095_v0 = vmul.f32 %v9545_v14, %v9506_v29  ;;  %v3067_v62 = vmul.f32 %v9514_v13, %v3066_v48  ;;  %v3080_v53 = vmul.f32 %v9555_v60, %v9382_v22  ;;  %v3042_v16 = vsel %vm3041_vm1, %v9459_v1, %v3038_v61  ;;  %vm12338_vm0 = vmmov %vm12332_vm10 }
 0xa40   :  { %3384 = vadd.xlane.f32.xlu1 %v3383_v12  ;;  %3411 = vadd.xlane.f32.xlu0 %v3410_v19  ;;  %v3057_v4 = vsel %vm9569_vm9, %v9451_v40, %v3053_v5  ;;  %v3211_v50 = vmul.f32 %v9351_v9, %v8977_v47  ;;  %v3046_v32 = vor.u32 1.1754944e-38, %v3045_v55  ;;  %v3061_v12 = vor.u32 1.1754944e-38, %v3060_v36 }
 0xa41   :  { %3408 = vadd.xlane.f32.xlu2 %v3407_v37  ;;  %v9548_v46 = vpop.xlane.xlu1 %2708  ;;  %v3219_v58 = vmul.f32 %v3033_v10, %v9440_v39  ;;  %v3347_v15 = vmul.f32 %v3033_v10, %v9480_v59  ;;  %vm3044_vm4 = vcmp.eq.f32.partialorder %v3043_v27, 8.507059e+37  ;;  %vm3059_vm12 = vcmp.eq.f32.partialorder %v3058_v17, 8.507059e+37 }
 0xa42   :  { %v3096_v37 = vsub.f32 1.0, %v3095_v0  ;;  %v3047_v19 = vsel %vm3044_vm4, %v3046_v32, %v3042_v16  ;;  %v3062_v20 = vsel %vm3059_vm12, %v3061_v12, %v3057_v4  ;;  %vm3069_vm2 = vweird.f32 %v9345_v57  ;;  %vm12339_vm12 = vmmov %vm12338_vm0 }
 0xa43   :  { %v3081_v1 = vsub.f32 1.0, %v3080_v53  ;;  %v3068_v40 = vadd.f32 %v9514_v13, %v3067_v62  ;;  %vm3070_vm11 = vweird.f32 %v9514_v13  ;;  %7104 = vrcp.f32 %v9502_v51 }
 0xa44   :  { %v9590_v56 = vpop.eup %7102  ;;  %v3267_v41 = vsel %vm12337_vm15, %v3211_v50, 0.0  ;;  %v3073_v8 = vand.u32 2147483647, %v9345_v57  ;;  %v3075_v34 = vand.u32 2147483648, %v9345_v57  ;;  %v3291_v43 = vsel %vm12332_vm10, %v3219_v58, 0.0  ;;  %vm3071_vm5 = vmor %vm3069_vm2, %vm3070_vm11 }
 0xa45   :  { %v3419_v26 = vsel %vm12338_vm0, %v3347_v15, 0.0  ;;  %v9604_v2 = vmul.f32 %v8943_v38, %v3047_v19  ;;  %v9607_v11 = vmul.f32 %v8930_v7, %v3062_v20  ;;  %7106 = vrcp.f32 %v9548_v46  ;;  %vm12340_vm2 = vmmov %vm12338_vm0  ;;  %v9667_v19 = vpop.xlane.xlu2 %2714 }
 0xa46   :  { %v3097_v63 = vmul.f32 %v9545_v14, %v3096_v37  ;;  %v3082_v38 = vmul.f32 %v9555_v60, %v3081_v1  ;;  %v3072_v48 = vsel %vm3071_vm5, %v9514_v13, %v3068_v40  ;;  %v3340_v7 = vmul.f32 %v9348_v45, %v9028_v49  ;;  %vm12341_vm11 = vmmov %vm12338_vm0 }
 0xa47   :  { %v3076_v61 = vor.u32 1.1754944e-38, %v3075_v34  ;;  %v3348_v5 = vmul.f32 %v9604_v2, %v9480_v59  ;;  %vm3074_vm13 = vcmp.eq.f32.partialorder %v3073_v8, 8.507059e+37  ;;  %vm3099_vm14 = vweird.f32 %v9506_v29 }
 0xa48   :  { %3390 = vadd.xlane.f32.xlu1 %v3389_v31  ;;  %3289 = vadd.xlane.f32.xlu0 %v3288_v28  ;;  %v3110_v31 = vmul.f32 %v9590_v56, %v9435_v21  ;;  %vm3100_vm9 = vweird.f32 %v9545_v14  ;;  %vm3084_vm1 = vweird.f32 %v9382_v22  ;;  %v3098_v49 = vadd.f32 %v9545_v14, %v3097_v63 }
 0xa49   :  { %3414 = vadd.xlane.f32.xlu2 %v3413_v54  ;;  %v9596_v9 = vpop.xlane.xlu1 %2711  ;;  %v3221_v54 = vmul.f32 %v9607_v11, %v9440_v39  ;;  %v9625_v55 = vpop.eup %7104  ;;  %v3077_v17 = vsel %vm3074_vm13, %v3076_v61, %v3072_v48  ;;  %v3083_v45 = vadd.f32 %v9555_v60, %v3082_v38  ;;  %vm3085_vm4 = vweird.f32 %v9555_v60  ;;  %vm9644_vm15 = vmor %vm3099_vm14, %vm3100_vm9 }
 0xa4a   :  { %v3111_v57 = vsub.f32 1.0, %v3110_v31  ;;  %v3398_v36 = vsel %vm12339_vm12, %v3340_v7, 0.0  ;;  %v3103_v28 = vand.u32 2147483647, %v9506_v29  ;;  %v3105_v10 = vand.u32 2147483648, %v9506_v29  ;;  %vm3086_vm10 = vmor %vm3084_vm1, %vm3085_vm4 }
 0xa4b   :  { %v9633_v13 = vpop.eup %7106  ;;  %v3090_v27 = vand.u32 2147483648, %v9382_v22  ;;  %v3422_v42 = vsel %vm12340_vm2, %v3348_v5, 0.0  ;;  %v3297_v0 = vsel %vm12341_vm11, %v3221_v54, 0.0  ;;  %v3078_v62 = vmul.f32 %v8949_v52, %v3077_v17  ;;  %vm12344_vm9 = vmmov %vm12340_vm2 }
 0xa4c   :  { %v3088_v16 = vand.u32 2147483647, %v9382_v22  ;;  %v3112_v4 = vmul.f32 %v9590_v56, %v3111_v57  ;;  %7108 = vrcp.f32 %v9596_v9  ;;  %v3125_v52 = vmul.f32 %v9625_v55, %v9502_v51  ;;  %vm12345_vm1 = vmmov %vm12340_vm2 }
 0xa4d   :  { %v3140_v29 = vmul.f32 %v9633_v13, %v9548_v46  ;;  %v3102_v32 = vsel %vm9644_vm15, %v9545_v14, %v3098_v49  ;;  %v3087_v12 = vsel %vm3086_vm10, %v9555_v60, %v3083_v45  ;;  %v3214_v58 = vmul.f32 %v9430_v35, %v8977_v47  ;;  %vm12346_vm4 = vmmov %vm12345_vm1 }
 0xa4e   :  { %v3106_v15 = vor.u32 1.1754944e-38, %v3105_v10  ;;  %v3091_v37 = vor.u32 1.1754944e-38, %v3090_v27  ;;  %v3222_v22 = vmul.f32 %v3078_v62, %v9440_v39  ;;  %v3350_v20 = vmul.f32 %v3078_v62, %v9480_v59  ;;  %vm12347_vm15 = vmmov %vm12345_vm1 }
 0xa4f   :  { %vm3104_vm0 = vcmp.eq.f32.partialorder %v3103_v28, 8.507059e+37  ;;  %vm3089_vm5 = vcmp.eq.f32.partialorder %v3088_v16, 8.507059e+37  ;;  %vm3115_vm13 = vweird.f32 %v9590_v56  ;;  %v3126_v14 = vsub.f32 1.0, %v3125_v52 }
 0xa50   :  { %3268 = vadd.xlane.f32.xlu1 %v3267_v41  ;;  %3420 = vadd.xlane.f32.xlu0 %v3419_v26  ;;  %v3107_v1 = vsel %vm3104_vm0, %v3106_v15, %v3102_v32  ;;  %v3092_v40 = vsel %vm3089_vm5, %v3091_v37, %v3087_v12  ;;  %v3113_v41 = vadd.f32 %v9590_v56, %v3112_v4  ;;  %v3141_v60 = vsub.f32 1.0, %v3140_v29 }
 0xa51   :  { %3292 = vadd.xlane.f32.xlu2 %v3291_v43  ;;  %v9651_v50 = vpop.xlane.xlu1 %2717  ;;  %v3120_v47 = vand.u32 2147483648, %v9435_v21  ;;  %7110 = vrcp.f32 %v9667_v19  ;;  %vm3114_vm14 = vweird.f32 %v9435_v21  ;;  %v3276_v8 = vsel %vm12344_vm9, %v3214_v58, 0.0 }
 0xa52   :  { %v9674_v35 = vpop.eup %7108  ;;  %v3118_v34 = vand.u32 2147483647, %v9435_v21  ;;  %v3300_v43 = vsel %vm12345_vm1, %v3222_v22, 0.0  ;;  %v3428_v26 = vsel %vm12346_vm4, %v3350_v20, 0.0  ;;  %v9683_v31 = vmul.f32 %v8932_v6, %v3107_v1  ;;  %vm3116_vm12 = vmor %vm3114_vm14, %vm3115_vm13 }
 0xa53   :  { %v9686_v63 = vmul.f32 %v8958_v44, %v3092_v40  ;;  %7112 = vrcp.f32 %v9651_v50  ;;  %v3216_v38 = vmul.f32 %v9468_v30, %v9440_v39  ;;  %v3117_v21 = vsel %vm3116_vm12, %v9590_v56, %v3113_v41  ;;  %vm12348_vm13 = vmmov %vm12345_vm1 }
 0xa54   :  { %v3127_v48 = vmul.f32 %v9625_v55, %v3126_v14  ;;  %v3142_v7 = vmul.f32 %v9633_v13, %v3141_v60  ;;  %v3155_v6 = vmul.f32 %v9674_v35, %v9596_v9  ;;  %v3121_v61 = vor.u32 1.1754944e-38, %v3120_v47  ;;  %vm12349_vm14 = vmmov %vm12345_vm1 }
 0xa55   :  { %vm3119_vm2 = vcmp.eq.f32.partialorder %v3118_v34, 8.507059e+37  ;;  %v3224_v5 = vmul.f32 %v9683_v31, %v9440_v39  ;;  %v3351_v54 = vmul.f32 %v9686_v63, %v9480_v59  ;;  %vm3129_vm11 = vweird.f32 %v9502_v51 }
 0xa56   :  { %v3122_v30 = vsel %vm3119_vm2, %v3121_v61, %v3117_v21  ;;  %v3282_v56 = vsel %vm12347_vm15, %v3216_v38, 0.0  ;;  %vm3130_vm10 = vweird.f32 %v9625_v55  ;;  %v3156_v17 = vsub.f32 1.0, %v3155_v6  ;;  %vm12352_vm15 = vmmov %vm12348_vm13  ;;  %v9776_v61 = vpop.xlane.xlu0 %3238 }
 0xa57   :  { %v9702_v57 = vpop.eup %7110  ;;  %v3128_v49 = vadd.f32 %v9625_v55, %v3127_v48  ;;  %v3143_v45 = vadd.f32 %v9633_v13, %v3142_v7  ;;  %vm3145_vm0 = vweird.f32 %v9633_v13  ;;  %vm3144_vm5 = vweird.f32 %v9548_v46  ;;  %vm9720_vm9 = vmor %vm3129_vm11, %vm3130_vm10 }
 0xa58   :  { %3399 = vadd.xlane.f32.xlu1 %v3398_v36  ;;  %3298 = vadd.xlane.f32.xlu0 %v3297_v0  ;;  %v3123_v28 = vmul.f32 %v8963_v3, %v3122_v30  ;;  %v3135_v10 = vand.u32 2147483648, %v9502_v51  ;;  %v3150_v27 = vand.u32 2147483648, %v9548_v46  ;;  %v3431_v0 = vsel %vm12349_vm14, %v3351_v54, 0.0  ;;  %vm3146_vm1 = vmor %vm3144_vm5, %vm3145_vm0 }
 0xa59   :  { %3423 = vadd.xlane.f32.xlu2 %v3422_v42  ;;  %v9696_v44 = vpop.xlane.xlu1 %3232  ;;  %v9710_v36 = vpop.eup %7112  ;;  %v3306_v42 = vsel %vm12348_vm13, %v3224_v5, 0.0  ;;  %v3133_v53 = vand.u32 2147483647, %v9502_v51  ;;  %v3148_v16 = vand.u32 2147483647, %v9548_v46  ;;  %v3170_v3 = vmul.f32 %v9702_v57, %v9667_v19  ;;  %vm12353_vm10 = vmmov %vm12348_vm13 }
 0xa5a   :  { %v3157_v4 = vmul.f32 %v9674_v35, %v3156_v17  ;;  %v3185_v52 = vmul.f32 %v9710_v36, %v9651_v50  ;;  %v3132_v29 = vsel %vm9720_vm9, %v9625_v55, %v3128_v49  ;;  %v3147_v51 = vsel %vm3146_vm1, %v9633_v13, %v3143_v45  ;;  %vm12354_vm0 = vmmov %vm12353_vm10 }
 0xa5b   :  { %v3225_v32 = vmul.f32 %v3123_v28, %v9440_v39  ;;  %v3217_v12 = vmul.f32 %v9519_v23, %v9440_v39  ;;  %v3136_v58 = vor.u32 1.1754944e-38, %v3135_v10  ;;  %v3151_v15 = vor.u32 1.1754944e-38, %v3150_v27  ;;  %vm12355_vm1 = vmmov %vm12354_vm0 }
 0xa5c   :  { %v3353_v37 = vmul.f32 %v3123_v28, %v9480_v59  ;;  %vm3134_vm4 = vcmp.eq.f32.partialorder %v3133_v53, 8.507059e+37  ;;  %vm3149_vm12 = vcmp.eq.f32.partialorder %v3148_v16, 8.507059e+37  ;;  %v3171_v1 = vsub.f32 1.0, %v3170_v3 }
 0xa5d   :  { %v3137_v22 = vsel %vm3134_vm4, %v3136_v58, %v3132_v29  ;;  %v3152_v20 = vsel %vm3149_vm12, %v3151_v15, %v3147_v51  ;;  %v3186_v40 = vsub.f32 1.0, %v3185_v52  ;;  %v3158_v55 = vadd.f32 %v9674_v35, %v3157_v4  ;;  %v12363_v52 = vld [vmem:[#allocation11_spill] sm:$0xff]  ;;  %v12364_v51 = vld [vmem:[#allocation10_spill] sm:$0xff] }
 0xa5e   :  { %vm3160_vm2 = vweird.f32 %v9674_v35  ;;  %vm3159_vm11 = vweird.f32 %v9596_v9  ;;  %v3309_v13 = vsel %vm12352_vm15, %v3225_v32, 0.0  ;;  %v3285_v23 = vsel %vm12353_vm10, %v3217_v12, 0.0 }
 0xa5f   :  { %v3165_v41 = vand.u32 2147483648, %v9596_v9  ;;  %v3437_v14 = vsel %vm12354_vm0, %v3353_v37, 0.0  ;;  %v9751_v60 = vmul.f32 %v8968_v33, %v3137_v22  ;;  %v9754_v47 = vmul.f32 %v8973_v18, %v3152_v20  ;;  %vm3161_vm5 = vmor %vm3159_vm11, %vm3160_vm2  ;;  %v1412_v22 = vld [vmem:[%s12110_s6 + $0x20] sm:$0xff] }
 0xa60   :  { %3277 = vadd.xlane.f32.xlu1 %v3276_v8  ;;  %3429 = vadd.xlane.f32.xlu0 %v3428_v26  ;;  %v3163_v8 = vand.u32 2147483647, %v9596_v9  ;;  %v3172_v34 = vmul.f32 %v9702_v57, %v3171_v1  ;;  %v3346_v26 = vmul.f32 %v9525_v25, %v9480_v59  ;;  %v3162_v38 = vsel %vm3161_vm5, %v9674_v35, %v3158_v55  ;;  %vm12356_vm2 = vmmov %vm12354_vm0 }
 0xa61   :  { %3301 = vadd.xlane.f32.xlu2 %v3300_v43  ;;  %v3187_v43 = vmul.f32 %v9710_v36, %v3186_v40  ;;  %v3166_v33 = vor.u32 1.1754944e-38, %v3165_v41  ;;  %v3354_v18 = vmul.f32 %v9751_v60, %v9480_v59  ;;  %v3227_v9 = vmul.f32 %v9754_v47, %v9440_v39  ;;  %vm12357_vm11 = vmmov %vm12354_vm0  ;;  %3678 = vmatpush.msrb.mxu2 %v1412_v22  ;;  %v1411_v41 = vld [vmem:[%s12110_s6 + $0x18] sm:$0xff] }
 0xa62   :  { %vm3164_vm13 = vcmp.eq.f32.partialorder %v3163_v8, 8.507059e+37  ;;  %vm3174_vm14 = vweird.f32 %v9667_v19  ;;  %vm3175_vm9 = vweird.f32 %v9702_v57  ;;  %v3416_v25 = vsel %vm12355_vm1, %v3346_v26, 0.0 }
 0xa63   :  { %v3167_v7 = vsel %vm3164_vm13, %v3166_v33, %v3162_v38  ;;  %v3188_v35 = vadd.f32 %v9710_v36, %v3187_v43  ;;  %vm3190_vm4 = vweird.f32 %v9710_v36  ;;  %v3173_v6 = vadd.f32 %v9702_v57, %v3172_v34  ;;  %vm9790_vm15 = vmor %vm3174_vm14, %vm3175_vm9  ;;  %3679 = vmatpush.msrb.mxu2 %v1411_v41 }
 0xa64   :  { %vm3189_vm12 = vweird.f32 %v9651_v50  ;;  %v3195_v5 = vand.u32 2147483648, %v9651_v50  ;;  %v3178_v54 = vand.u32 2147483647, %v9667_v19  ;;  %v3180_v30 = vand.u32 2147483648, %v9667_v19  ;;  %vm12360_vm13 = vmmov %vm12355_vm1 }
 0xa65   :  { %v3315_v17 = vsel %vm12357_vm11, %v3227_v9, 0.0  ;;  %v3168_v49 = vmul.f32 %v8989_v24, %v3167_v7  ;;  %v3193_v45 = vand.u32 2147483647, %v9651_v50  ;;  %vm3191_vm10 = vmor %vm3189_vm12, %vm3190_vm4  ;;  %v3177_v24 = vsel %vm9790_vm15, %v9702_v57, %v3173_v6  ;;  %v12369_v7 = vld [vmem:[#allocation3_spill] sm:$0xff] }
 0xa66   :  { %v3192_v10 = vsel %vm3191_vm10, %v9710_v36, %v3188_v35  ;;  %v3220_v19 = vmul.f32 %v9604_v2, %v9440_v39  ;;  %v3196_v27 = vor.u32 1.1754944e-38, %v3195_v5  ;;  %vm3179_vm5 = vcmp.eq.f32.partialorder %v3178_v54, 8.507059e+37  ;;  %vm12361_vm14 = vmmov %vm12355_vm1 }
 0xa67   :  { %v3356_v62 = vmul.f32 %v3168_v49, %v9480_v59  ;;  %vm3194_vm0 = vcmp.eq.f32.partialorder %v3193_v45, 8.507059e+37  ;;  %vm12362_vm9 = vmmov %vm12355_vm1  ;;  %v3349_v58 = vmul.f32 %v9607_v11, %v9480_v59  ;;  %v3352_v26 = vmul.f32 %v9683_v31, %v9480_v59 }
 0xa68   :  { %3283 = vadd.xlane.f32.xlu1 %v3282_v56  ;;  %3432 = vadd.xlane.f32.xlu0 %v3431_v0  ;;  %v3440_v56 = vsel %vm12356_vm2, %v3354_v18, 0.0  ;;  %v3228_v0 = vmul.f32 %v3168_v49, %v9440_v39  ;;  %v3197_v53 = vsel %vm3194_vm0, %v3196_v27, %v3192_v10  ;;  %v3294_v57 = vsel %vm12360_vm13, %v3220_v19, 0.0  ;;  %vm12365_vm4 = vmmov %vm12355_vm1 }
 0xa69   :  { %3307 = vadd.xlane.f32.xlu2 %v3306_v42  ;;  %v3181_v42 = vor.u32 1.1754944e-38, %v3180_v30  ;;  %v3446_v2 = vsel %vm12362_vm9, %v3356_v62, 0.0  ;;  %v9814_v29 = vmul.f32 %v12363_v52, %v3197_v53  ;;  %v3425_v20 = vsel %vm12355_vm1, %v3349_v58, 0.0  ;;  %vm12366_vm12 = vmmov %vm12355_vm1 }
 0xa6a   :  { %v3318_v4 = vsel %vm12361_vm14, %v3228_v0, 0.0  ;;  %vm12367_vm2 = vmmov %vm12355_vm1  ;;  %v3226_v33 = vmul.f32 %v9751_v60, %v9440_v39  ;;  %v9855_v35 = vadd.s32 4294967288, %v12369_v7  ;;  %v3487_v31 = vperm.slane %v9696_v44, %v12369_v7 }
 0xa6b   :  { %v9737_v46 = vpop.xlane.xlu1 %3235  ;;  %v9764_v48 = vpop.xlane.xlu2 %3363  ;;  %v3182_v16 = vsel %vm3179_vm5, %v3181_v42, %v3177_v24  ;;  %v3230_v15 = vmul.f32 %v9814_v29, %v9440_v39  ;;  %vm12368_vm11 = vmmov %vm12355_vm1  ;;  %v3355_v45 = vmul.f32 %v9754_v47, %v9480_v59  ;;  %vm12373_vm0 = vcmask 1045509  }
 0xa6c   :  { %v9817_v32 = vmul.f32 %v12364_v51, %v3182_v16  ;;  %v3434_v38 = vsel %vm12368_vm11, %v3352_v26, 0.0  ;;  %12370 = vst [vmem:[#allocation11_spill] sm:$0xff] %v9855_v35  ;;  %vm12371_vm15 = vmmov %vm12355_vm1  ;;  %vm12375_vm13 = vcmask 1046534   ;;  %vm12377_vm9 = vcmask 1047559  }
 0xa6d   :  { %v3324_v40 = vsel %vm12365_vm4, %v3230_v15, 0.0  ;;  %v3312_v6 = vsel %vm12371_vm15, %v3226_v33, 0.0  ;;  %vm12372_vm10 = vmmov %vm12355_vm1 }
 0xa6e   :  { %v3357_v37 = vmul.f32 %v9817_v32, %v9480_v59  ;;  %v3443_v47 = vsel %vm12372_vm10, %v3355_v45, 0.0  ;;  %vm12374_vm5 = vmmov %vm12373_vm0  ;;  %v3229_v51 = vmul.f32 %v9817_v32, %v9440_v39  ;;  %v3358_v32 = vmul.f32 %v9814_v29, %v9480_v59 }
 0xa6f   :  { %vm12376_vm14 = vmmov %vm12375_vm13 }
 0xa70   :  { %3286 = vadd.xlane.f32.xlu1 %v3285_v23  ;;  %3438 = vadd.xlane.f32.xlu0 %v3437_v14  ;;  %v3449_v11 = vsel %vm12366_vm12, %v3357_v37, 0.0  ;;  %v3223_v23 = vmul.f32 %v9686_v63, %v9440_v39  ;;  %vm12378_vm1 = vmmov %vm12377_vm9  ;;  %vm12380_vm12 = vcmask 64512  }
 0xa71   :  { %3310 = vadd.xlane.f32.xlu2 %v3309_v13  ;;  %vm12379_vm4 = vmmov %vm12367_vm2 }
 0xa72   :  { %v3303_v14 = vsel %vm12367_vm2, %v3223_v23, 0.0  ;;  %v3321_v37 = vsel %vm12379_vm4, %v3229_v51, 0.0  ;;  %vm12381_vm11 = vmmov %vm12367_vm2 }
 0xa73   :  { %v9762_v21 = vpop.xlane.xlu1 %3360  ;;  %v9808_v3 = vpop.xlane.xlu0 %3375  ;;  %vm12382_vm15 = vmmov %vm12373_vm0 }
 0xa74   :  { %v9806_v36 = vpop.xlane.xlu2 %3247  ;;  %v3584_v5 = vperm.slane %v9762_v21, %v9855_v35  ;;  %v3589_v62 = vperm.slane %v9808_v3, %v9855_v35  ;;  %vm12383_vm10 = vmmov %vm12373_vm0 }
 0xa75   :  { %v3492_v53 = vperm.slane %v9806_v36, %v12369_v7  ;;  %vm12390_vm4 = vmmov %vm12383_vm10 }
 0xa78   :  { %3417 = vadd.xlane.f32.xlu1 %v3416_v25  ;;  %3316 = vadd.xlane.f32.xlu0 %v3315_v17  ;;  %v3488_v25 = vperm.slane %v9737_v46, %v12369_v7  ;;  %v3585_v46 = vperm.slane %v9764_v48, %v9855_v35  ;;  %v3489_v17 = vperm.slane %v9776_v61, %v12369_v7 }
 0xa79   :  { %3441 = vadd.xlane.f32.xlu2 %v3440_v56 }
 0xa7a   :  { %v3519_v54 = vsel %vm664_vm3, %v3488_v25, %v3487_v31  ;;  %v3616_v28 = vsel %vm664_vm3, %v3585_v46, %v3584_v5 }
 0xa7b   :  { %v9800_v50 = vpop.xlane.xlu1 %3366  ;;  %v3254_v55 = vpop.xlane.xlu0 %3253  ;;  %v3520_v48 = vsel %vm666_vm6, %v3489_v17, %v3519_v54 }
 0xa7c   :  { %v9829_v1 = vpop.xlane.xlu2 %3378  ;;  %v3586_v60 = vperm.slane %v9800_v50, %v9855_v35 }
 0xa7e   :  { %v3617_v10 = vsel %vm666_vm6, %v3586_v60, %v3616_v28 }
 0xa80   :  { %3295 = vadd.xlane.f32.xlu1 %v3294_v57  ;;  %3447 = vadd.xlane.f32.xlu0 %v3446_v2 }
 0xa81   :  { %3319 = vadd.xlane.f32.xlu2 %v3318_v4  ;;  %v3590_v4 = vperm.slane %v9829_v1, %v9855_v35 }
 0xa83   :  { %v3242_v12 = vpop.xlane.xlu1 %3241  ;;  %v9841_v34 = vpop.xlane.xlu0 %3259 }
 0xa84   :  { %v9839_v8 = vpop.xlane.xlu2 %3256  ;;  %v3490_v30 = vperm.slane %v3242_v12, %v12369_v7  ;;  %v3494_v12 = vperm.slane %v3254_v55, %v12369_v7 }
 0xa85   :  { %v3495_v59 = vperm.slane %v9839_v8, %v12369_v7 }
 0xa86   :  { %v3521_v24 = vsel %vm668_vm7, %v3490_v30, %v3520_v48 }
 0xa88   :  { %3426 = vadd.xlane.f32.xlu1 %v3425_v20  ;;  %3325 = vadd.xlane.f32.xlu0 %v3324_v40  ;;  %v3452_v40 = vsel %vm12381_vm11, %v3358_v32, 0.0 }
 0xa89   :  { %3450 = vadd.xlane.f32.xlu2 %v3449_v11 }
 0xa8b   :  { %v3370_v13 = vpop.xlane.xlu1 %3369  ;;  %v9850_v9 = vpop.xlane.xlu0 %3262 }
 0xa8c   :  { %v9848_v18 = vpop.xlane.xlu2 %3387  ;;  %v3587_v56 = vperm.slane %v3370_v13, %v9855_v35  ;;  %v3497_v33 = vperm.slane %v9850_v9, %v12369_v7 }
 0xa8e   :  { %v3618_v50 = vsel %vm668_vm7, %v3587_v56, %v3617_v10 }
 0xa90   :  { %3304 = vadd.xlane.f32.xlu1 %v3303_v14 }
 0xa93   :  { %v3245_v43 = vpop.xlane.xlu1 %3244  ;;  %v3394_v27 = vpop.xlane.xlu0 %3393 }
 0xa94   :  { %v3491_v44 = vperm.slane %v3245_v43, %v12369_v7  ;;  %v3266_v19 = vpop.xlane.xlu2 %3265 }
 0xa95   :  { %v3498_v31 = vperm.slane %v3266_v19, %v12369_v7 }
 0xa96   :  { %v3522_v61 = vsel %vm670_vm8, %v3491_v44, %v3521_v24 }
 0xa97   :  { %v3523_v57 = vsel %vm12374_vm5, %v3492_v53, %v3522_v61 }
 0xa98   :  { %3435 = vadd.xlane.f32.xlu1 %v3434_v38  ;;  %v3593_v38 = vperm.slane %v9848_v18, %v9855_v35 }
 0xa9b   :  { %v3373_v63 = vpop.xlane.xlu1 %3372  ;;  %v3272_v1 = vpop.xlane.xlu0 %3271 }
 0xa9c   :  { %v3588_v21 = vperm.slane %v3373_v63, %v9855_v35  ;;  %v3397_v20 = vpop.xlane.xlu2 %3396  ;;  %v3496_v63 = vperm.slane %v9841_v34, %v12369_v7 }
 0xa9d   :  { %v3596_v46 = vperm.slane %v3397_v20, %v9855_v35 }
 0xa9e   :  { %v3619_v42 = vsel %vm670_vm8, %v3588_v21, %v3618_v50  ;;  %v3526_v60 = vsel %vm664_vm3, %v3496_v63, %v3495_v59  ;;  %v3500_v21 = vperm.slane %v3272_v1, %v12369_v7 }
 0xa9f   :  { %v3620_v16 = vsel %vm12373_vm0, %v3589_v62, %v3619_v42  ;;  %v3527_v54 = vsel %vm666_vm6, %v3497_v33, %v3526_v60  ;;  %vm12384_vm0 = vmmov %vm12375_vm13 }
 0xaa0   :  { %3313 = vadd.xlane.f32.xlu1 %v3312_v6  ;;  %v3621_v36 = vsel %vm12376_vm14, %v3590_v4, %v3620_v16  ;;  %v3595_v6 = vperm.slane %v3394_v27, %v9855_v35  ;;  %v3528_v9 = vsel %vm668_vm7, %v3498_v31, %v3527_v54  ;;  %vm12385_vm5 = vmmov %vm12384_vm0 }
 0xaa1   :  { %vm12387_vm14 = vmmov %vm12378_vm1 }
 0xaa2   :  { %vm12393_vm11 = vmmov %vm12384_vm0 }
 0xaa3   :  { %v3251_v49 = vpop.xlane.xlu1 %3250  ;;  %v3403_v55 = vpop.xlane.xlu0 %3402 }
 0xaa4   :  { %v3493_v0 = vperm.slane %v3251_v49, %v12369_v7  ;;  %v3275_v11 = vpop.xlane.xlu2 %3274  ;;  %v3598_v45 = vperm.slane %v3403_v55, %v9855_v35 }
 0xaa5   :  { %v3501_v10 = vperm.slane %v3275_v11, %v12369_v7 }
 0xaa6   :  { %v3524_v2 = vsel %vm12375_vm13, %v3493_v0, %v3523_v57  ;;  %vm12386_vm13 = vmmov %vm12378_vm1 }
 0xaa7   :  { %v3525_v15 = vsel %vm12378_vm1, %v3494_v12, %v3524_v2  ;;  %vm12389_vm1 = vmmov %vm12367_vm2 }
 0xaa8   :  { %3444 = vadd.xlane.f32.xlu1 %v3443_v47 }
 0xaab   :  { %v3382_v52 = vpop.xlane.xlu1 %3381  ;;  %v3281_v43 = vpop.xlane.xlu0 %3280 }
 0xaac   :  { %v3591_v3 = vperm.slane %v3382_v52, %v9855_v35  ;;  %v3406_v41 = vpop.xlane.xlu2 %3405 }
 0xaad   :  { %v3599_v50 = vperm.slane %v3406_v41, %v9855_v35 }
 0xaae   :  { %v3622_v58 = vsel %vm12377_vm9, %v3591_v3, %v3621_v36  ;;  %vm12388_vm9 = vmmov %vm12380_vm12  ;;  %v3503_v36 = vperm.slane %v3281_v43, %v12369_v7 }
 0xaaf   :  { %v3648_v22 = vsel %vm12380_vm12, %v3525_v15, %v3622_v58  ;;  %vm12391_vm12 = vmmov %vm12384_vm0 }
 0xab0   :  { %3322 = vadd.xlane.f32.xlu1 %v3321_v37  ;;  %6680 = vmatmul.msk.f32.vlgmr.msrb.gmra.mxu2 %vm12367_vm2, %v3648_v22  ;;  %vm12392_vm2 = vmmov %vm12390_vm4 }
 0xab3   :  { %v3385_v39 = vpop.xlane.xlu1 %3384  ;;  %v3412_v56 = vpop.xlane.xlu0 %3411 }
 0xab4   :  { %v3592_v14 = vperm.slane %v3385_v39, %v9855_v35  ;;  %v3409_v30 = vpop.xlane.xlu2 %3408  ;;  %v3601_v58 = vperm.slane %v3412_v56, %v9855_v35 }
 0xab5   :  { %v3600_v15 = vperm.slane %v3409_v30, %v9855_v35 }
 0xab6   :  { %v3623_v29 = vsel %vm664_vm3, %v3593_v38, %v3592_v14 }
 0xab8   :  { %3453 = vadd.xlane.f32.xlu1 %v3452_v40  ;;  %v3630_v40 = vsel %vm664_vm3, %v3601_v58, %v3600_v15 }
 0xabb   :  { %v3391_v13 = vpop.xlane.xlu1 %3390  ;;  %v3290_v62 = vpop.xlane.xlu0 %3289 }
 0xabc   :  { %v3594_v26 = vperm.slane %v3391_v13, %v9855_v35  ;;  %v3415_v47 = vpop.xlane.xlu2 %3414  ;;  %v3506_v1 = vperm.slane %v3290_v62, %v12369_v7 }
 0xabd   :  { %v3602_v22 = vperm.slane %v3415_v47, %v9855_v35 }
 0xabe   :  { %v3624_v25 = vsel %vm666_vm6, %v3594_v26, %v3623_v29 }
 0xabf   :  { %v3625_v34 = vsel %vm668_vm7, %v3595_v6, %v3624_v25  ;;  %v3631_v13 = vsel %vm666_vm6, %v3602_v22, %v3630_v40 }
 0xac0   :  { %v3626_v44 = vsel %vm670_vm8, %v3596_v46, %v3625_v34 }
 0xac3   :  { %v3269_v23 = vpop.xlane.xlu1 %3268  ;;  %v3421_v57 = vpop.xlane.xlu0 %3420 }
 0xac4   :  { %v3499_v5 = vperm.slane %v3269_v23, %v12369_v7  ;;  %v3293_v16 = vpop.xlane.xlu2 %3292  ;;  %v3604_v26 = vperm.slane %v3421_v57, %v9855_v35 }
 0xac5   :  { %v3507_v23 = vperm.slane %v3293_v16, %v12369_v7 }
 0xac6   :  { %v3529_v17 = vsel %vm670_vm8, %v3499_v5, %v3528_v9 }
 0xac7   :  { %v3530_v28 = vsel %vm12383_vm10, %v3500_v21, %v3529_v17  ;;  %vm12395_vm10 = vmmov %vm12386_vm13 }
 0xac8   :  { %v3531_v61 = vsel %vm12385_vm5, %v3501_v10, %v3530_v28  ;;  %vm12397_vm5 = vmmov %vm12389_vm1 }
 0xacb   :  { %v3400_v18 = vpop.xlane.xlu1 %3399  ;;  %v3299_v51 = vpop.xlane.xlu0 %3298 }
 0xacc   :  { %v3597_v8 = vperm.slane %v3400_v18, %v9855_v35  ;;  %v3424_v52 = vpop.xlane.xlu2 %3423  ;;  %v3509_v59 = vperm.slane %v3299_v51, %v12369_v7 }
 0xacd   :  { %v3605_v33 = vperm.slane %v3424_v52, %v9855_v35 }
 0xace   :  { %v3627_v49 = vsel %vm12382_vm15, %v3597_v8, %v3626_v44  ;;  %vm12394_vm15 = vmmov %vm12386_vm13 }
 0xacf   :  { %v3628_v24 = vsel %vm12384_vm0, %v3598_v45, %v3627_v49  ;;  %vm12396_vm0 = vmmov %vm12388_vm9 }
 0xad0   :  { %v3629_v42 = vsel %vm12387_vm14, %v3599_v50, %v3628_v24  ;;  %vm12399_vm14 = vmmov %vm12392_vm2 }
 0xad3   :  { %v3278_v48 = vpop.xlane.xlu1 %3277  ;;  %v3430_v14 = vpop.xlane.xlu0 %3429 }
 0xad4   :  { %v3502_v19 = vperm.slane %v3278_v48, %v12369_v7  ;;  %v3302_v41 = vpop.xlane.xlu2 %3301  ;;  %v3607_v5 = vperm.slane %v3430_v14, %v9855_v35 }
 0xad5   :  { %v3510_v18 = vperm.slane %v3302_v41, %v12369_v7 }
 0xad6   :  { %v3532_v27 = vsel %vm12386_vm13, %v3502_v19, %v3531_v61  ;;  %vm12398_vm13 = vmmov %vm12392_vm2 }
 0xad7   :  { %v3649_v0 = vsel %vm12388_vm9, %v3532_v27, %v3629_v42  ;;  %vm12400_vm9 = vmmov %vm12393_vm11 }
 0xad8   :  { %6681 = vmatmul.msk.f32.gmra.mxu2 %vm12389_vm1, %v3649_v0  ;;  %vm12401_vm1 = vmmov %vm12400_vm9 }
 0xadb   :  { %v3284_v53 = vpop.xlane.xlu1 %3283  ;;  %v3433_v30 = vpop.xlane.xlu0 %3432 }
 0xadc   :  { %v3504_v12 = vperm.slane %v3284_v53, %v12369_v7  ;;  %v3308_v46 = vpop.xlane.xlu2 %3307  ;;  %v3608_v50 = vperm.slane %v3433_v30, %v9855_v35 }
 0xadd   :  { %v3512_v19 = vperm.slane %v3308_v46, %v12369_v7 }
 0xade   :  { %v3533_v37 = vsel %vm664_vm3, %v3504_v12, %v3503_v36 }
 0xae3   :  { %v3287_v4 = vpop.xlane.xlu1 %3286  ;;  %v3439_v44 = vpop.xlane.xlu0 %3438 }
 0xae4   :  { %v3505_v3 = vperm.slane %v3287_v4, %v12369_v7  ;;  %v3311_v17 = vpop.xlane.xlu2 %3310  ;;  %v3610_v62 = vperm.slane %v3439_v44, %v9855_v35 }
 0xae5   :  { %v3513_v53 = vperm.slane %v3311_v17, %v12369_v7 }
 0xae6   :  { %v3534_v20 = vsel %vm666_vm6, %v3505_v3, %v3533_v37 }
 0xae7   :  { %v3535_v11 = vsel %vm668_vm7, %v3506_v1, %v3534_v20 }
 0xae8   :  { %v3536_v38 = vsel %vm670_vm8, %v3507_v23, %v3535_v11 }
 0xaeb   :  { %v3418_v2 = vpop.xlane.xlu1 %3417  ;;  %v3317_v28 = vpop.xlane.xlu0 %3316 }
 0xaec   :  { %v3603_v39 = vperm.slane %v3418_v2, %v9855_v35  ;;  %v3442_v45 = vpop.xlane.xlu2 %3441  ;;  %v3515_v12 = vperm.slane %v3317_v28, %v12369_v7  ;;  %v12414_v28 = vld [vmem:[#allocation6_spill] sm:$0xff] }
 0xaed   :  { %v3611_v52 = vperm.slane %v3442_v45, %v9855_v35 }
 0xaee   :  { %v3632_v43 = vsel %vm668_vm7, %v3603_v39, %v3631_v13 }
 0xaef   :  { %v3633_v29 = vsel %vm670_vm8, %v3604_v26, %v3632_v43 }
 0xaf0   :  { %v3634_v60 = vsel %vm12392_vm2, %v3605_v33, %v3633_v29  ;;  %vm12404_vm2 = vmmov %vm12396_vm0 }
 0xaf3   :  { %v3296_v32 = vpop.xlane.xlu1 %3295  ;;  %v3448_v27 = vpop.xlane.xlu0 %3447 }
 0xaf4   :  { %v3508_v55 = vperm.slane %v3296_v32, %v12369_v7  ;;  %v3320_v61 = vpop.xlane.xlu2 %3319  ;;  %v3613_v37 = vperm.slane %v3448_v27, %v9855_v35 }
 0xaf5   :  { %v3516_v22 = vperm.slane %v3320_v61, %v12369_v7 }
 0xaf6   :  { %v3537_v63 = vsel %vm12390_vm4, %v3508_v55, %v3536_v38  ;;  %vm12402_vm4 = vmmov %vm12395_vm10  ;;  %v6882_v38 = vld [vmem:[%s12110_s6 + $0x28] ss:$0 sm:$0xff] }
 0xaf7   :  { %v3538_v31 = vsel %vm12391_vm12, %v3509_v59, %v3537_v63  ;;  %vm12403_vm12 = vmmov %vm12402_vm4  ;;  %v12406_v59 = vld [vmem:[#allocation4_spill] sm:$0xff] }
 0xaf8   :  { %v3539_v8 = vsel %vm12394_vm15, %v3510_v18, %v3538_v31  ;;  %vm12407_vm15 = vmmov %vm12397_vm5  ;;  %v12408_v31 = vld [vmem:[#allocation5_spill] sm:$0xff] }
 0xafb   :  { %v3427_v25 = vpop.xlane.xlu1 %3426  ;;  %v3326_v1 = vpop.xlane.xlu0 %3325 }
 0xafc   :  { %v3606_v6 = vperm.slane %v3427_v25, %v9855_v35  ;;  %v3451_v20 = vpop.xlane.xlu2 %3450  ;;  %v3518_v13 = vperm.slane %v3326_v1, %v12369_v7 }
 0xafd   :  { %v3614_v40 = vperm.slane %v3451_v20, %v9855_v35 }
 0xafe   :  { %v3635_v34 = vsel %vm12393_vm11, %v3606_v6, %v3634_v60  ;;  %vm12405_vm11 = vmmov %vm12397_vm5 }
 0xaff   :  { %v3636_v54 = vsel %vm12395_vm10, %v3607_v5, %v3635_v34  ;;  %vm12409_vm10 = vmmov %vm12397_vm5 }
 0xb00   :  { %v3650_v9 = vsel %vm12396_vm0, %v3539_v8, %v3636_v54  ;;  %v12410_v8 = vld [vmem:[#allocation7_spill] sm:$0xff]  ;;  %vm12411_vm0 = vmmov %vm12397_vm5 }
 0xb01   :  { %6682 = vmatmul.msk.f32.gmra.mxu2 %vm12397_vm5, %v3650_v9  ;;  %vm12413_vm5 = vmmov %vm12411_vm0 }
 0xb03   :  { %v3305_v56 = vpop.xlane.xlu1 %3304 }
 0xb04   :  { %v3511_v48 = vperm.slane %v3305_v56, %v12369_v7  ;;  %v12412_v56 = vld [vmem:[#allocation8_spill] sm:$0xff] }
 0xb06   :  { %v3540_v42 = vsel %vm664_vm3, %v3512_v19, %v3511_v48 }
 0xb07   :  { %v3541_v57 = vsel %vm666_vm6, %v3513_v53, %v3540_v42 }
 0xb0b   :  { %v3436_v21 = vpop.xlane.xlu1 %3435 }
 0xb0c   :  { %v3609_v24 = vperm.slane %v3436_v21, %v9855_v35 }
 0xb0e   :  { %v3637_v0 = vsel %vm664_vm3, %v3609_v24, %v3608_v50 }
 0xb0f   :  { %v3638_v16 = vsel %vm666_vm6, %v3610_v62, %v3637_v0 }
 0xb10   :  { %v3639_v3 = vsel %vm668_vm7, %v3611_v52, %v3638_v16 }
 0xb13   :  { %v3314_v49 = vpop.xlane.xlu1 %3313 }
 0xb14   :  { %v3514_v47 = vperm.slane %v3314_v49, %v12369_v7 }
 0xb16   :  { %v3542_v51 = vsel %vm668_vm7, %v3514_v47, %v3541_v57 }
 0xb17   :  { %v3543_v36 = vsel %vm670_vm8, %v3515_v12, %v3542_v51 }
 0xb18   :  { %v3544_v39 = vsel %vm12398_vm13, %v3516_v22, %v3543_v36  ;;  %vm12415_vm13 = vmmov %vm12411_vm0 }
 0xb1b   :  { %v3445_v10 = vpop.xlane.xlu1 %3444 }
 0xb1c   :  { %v3612_v4 = vperm.slane %v3445_v10, %v9855_v35 }
 0xb1e   :  { %v3640_v58 = vsel %vm670_vm8, %v3612_v4, %v3639_v3 }
 0xb1f   :  { %v3641_v32 = vsel %vm12399_vm14, %v3613_v37, %v3640_v58  ;;  %vm12416_vm14 = vmmov %vm12411_vm0 }
 0xb20   :  { %v3642_v41 = vsel %vm12401_vm1, %v3614_v40, %v3641_v32  ;;  %vm12418_vm1 = vmmov %vm12411_vm0 }
 0xb23   :  { %v3323_v2 = vpop.xlane.xlu1 %3322 }
 0xb24   :  { %v3517_v15 = vperm.slane %v3323_v2, %v12369_v7 }
 0xb26   :  { %v3545_v55 = vsel %vm12400_vm9, %v3517_v15, %v3544_v39  ;;  %vm12417_vm9 = vmmov %vm12411_vm0 }
 0xb27   :  { %v3546_v14 = vsel %vm12402_vm4, %v3518_v13, %v3545_v55  ;;  %v1423_v55 = vld [vmem:[%s12113_s8 + $0x8] sm:$0xff]  ;;  %v1422_v13 = vld [vmem:[%s12113_s8] sm:$0xff] }
 0xb28   :  { %3891 = vmatpush.msra.mxu3 %v1423_v55 }
 0xb2a   :  { %3892 = vmatpush.msra.mxu3 %v1422_v13  ;;  %v1431_v13 = vld [vmem:[%s12111_s9 + $0x30] sm:$0xff] }
 0xb2b   :  { %v3454_v11 = vpop.xlane.xlu1 %3453 }
 0xb2c   :  { %v3615_v23 = vperm.slane %v3454_v11, %v9855_v35 }
 0xb2e   :  { %v3643_v43 = vsel %vm12403_vm12, %v3615_v23, %v3642_v41 }
 0xb2f   :  { %v3651_v26 = vsel %vm12404_vm2, %v3546_v14, %v3643_v43  ;;  %v10062_v43 = vld [vmem:[%s12111_s9 + $0x40] sm:$0x1f] }
 0xb30   :  { %6683 = vmatmul.msk.f32.gmra.mxu2 %vm12405_vm11, %v3651_v26  ;;  %v10065_v26 = vperm.slane %v10062_v43, 3 }
 0xb33   :  { %v3681_v63 = vpop.f32.mrf.mxu2 }
 0xb34   :  { %v3693_v29 = vadd.f32 %v3681_v63, %v12406_v59 }
 0xb36   :  { %v10010_v33 = vadd.f32 %v6882_v38, %v3693_v29 }
 0xb38   :  { %v3702_v25 = vsel %vm12407_vm15, %v10010_v33, 0.0 }
 0xb39   :  { %3703 = vadd.xlane.f32.xlu2 %v3702_v25 }
 0xb5b   :  { %v3684_v6 = vpop.f32.mrf.mxu2 }
 0xb5c   :  { %v3694_v5 = vadd.f32 %v3684_v6, %v12408_v31 }
 0xb5e   :  { %v10015_v18 = vadd.f32 %v6882_v38, %v3694_v5 }
 0xb60   :  { %v3705_v60 = vsel %vm12409_vm10, %v10015_v18, 0.0 }
 0xb61   :  { %3706 = vadd.xlane.f32.xlu0 %v3705_v60 }
 0xb84   :  { %v3687_v34 = vpop.f32.mrf.mxu2 }
 0xb85   :  { %v3695_v54 = vadd.f32 %v3687_v34, %v12410_v8  ;;  %v10069_v34 = vperm.slane %v10062_v43, 4 }
 0xb87   :  { %v10020_v46 = vadd.f32 %v6882_v38, %v3695_v54 }
 0xb89   :  { %v3708_v9 = vsel %vm12411_vm0, %v10020_v46, 0.0 }
 0xb8a   :  { %3709 = vadd.xlane.f32.xlu1 %v3708_v9 }
 0xbac   :  { %v3704_v30 = vpop.xlane.xlu2 %3703 }
 0xbad   :  { %v3714_v17 = vmul.f32 %v3704_v30, %v12412_v56 }
 0xbaf   :  { %v3718_v44 = vsub.f32 %v10010_v33, %v3714_v17 }
 0xbb1   :  { %v3722_v21 = vmul.f32 %v3718_v44, %v3718_v44  ;;  %v3743_v25 = vmul.f32 %v10065_v26, %v3718_v44 }
 0xbb3   :  { %v3690_v49 = vpop.f32.mrf.mxu2  ;;  %v3726_v45 = vsel %vm12413_vm5, %v3722_v21, 0.0 }
 0xbb4   :  { %v3696_v10 = vadd.f32 %v3690_v49, %v12414_v28  ;;  %3727 = vadd.xlane.f32.xlu0 %v3726_v45 }
 0xbb6   :  { %v10028_v48 = vadd.f32 %v6882_v38, %v3696_v10 }
 0xbb8   :  { %v3711_v24 = vsel %vm12415_vm13, %v10028_v48, 0.0 }
 0xbb9   :  { %3712 = vadd.xlane.f32.xlu2 %v3711_v24 }
 0xbd4   :  { %v3707_v50 = vpop.xlane.xlu0 %3706 }
 0xbd5   :  { %v3715_v19 = vmul.f32 %v3707_v50, %v12412_v56 }
 0xbd7   :  { %v10034_v61 = vsub.f32 %v10015_v18, %v3715_v19 }
 0xbd9   :  { %v3723_v27 = vmul.f32 %v10034_v61, %v10034_v61 }
 0xbdb   :  { %v3729_v42 = vsel %vm12416_vm14, %v3723_v27, 0.0 }
 0xbdc   :  { %3730 = vadd.xlane.f32.xlu1 %v3729_v42 }
 0xbfd   :  { %v3710_v0 = vpop.xlane.xlu1 %3709 }
 0xbfe   :  { %v3716_v47 = vmul.f32 %v3710_v0, %v12412_v56 }
 0xc00   :  { %v10041_v62 = vsub.f32 %v10020_v46, %v3716_v47 }
 0xc02   :  { %v3724_v53 = vmul.f32 %v10041_v62, %v10041_v62 }
 0xc04   :  { %v3732_v16 = vsel %vm12417_vm9, %v3724_v53, 0.0 }
 0xc05   :  { %3733 = vadd.xlane.f32.xlu2 %v3732_v16 }
 0xc27   :  { %v3728_v57 = vpop.xlane.xlu0 %3727 }
 0xc28   :  { %v3738_v4 = vmul.f32 0.06666667, %v3728_v57 }
 0xc2a   :  { %7114 = vrsqrt.f32 %v3738_v4  ;;  %vm3754_vm4 = vcmp.eq.f32.partialorder %v3738_v4, inf  ;;  %v3757_v39 = vand.u32 2147483648, %v3738_v4  ;;  %vm3756_vm12 = vcmp.eq.f32.partialorder %v3738_v4, 0.0 }
 0xc2c   :  { %v3713_v2 = vpop.xlane.xlu2 %3712 }
 0xc2d   :  { %v3717_v52 = vmul.f32 %v3713_v2, %v12412_v56 }
 0xc2f   :  { %v10048_v51 = vsub.f32 %v10028_v48, %v3717_v52 }
 0xc30   :  { %v7115_v12 = vpop.eup %7114 }
 0xc31   :  { %v3748_v3 = vmul.f32 %v7115_v12, %v3738_v4  ;;  %v3725_v36 = vmul.f32 %v10048_v51, %v10048_v51 }
 0xc33   :  { %v3749_v58 = vmul.f32 %v7115_v12, %v3748_v3  ;;  %v3735_v15 = vsel %vm12418_vm1, %v3725_v36, 0.0 }
 0xc34   :  { %3736 = vadd.xlane.f32.xlu0 %v3735_v15 }
 0xc35   :  { %v3750_v37 = vmul.f32 0.5, %v3749_v58 }
 0xc37   :  { %v3751_v22 = vsub.f32 1.5, %v3750_v37 }
 0xc39   :  { %v3752_v20 = vmul.f32 %v7115_v12, %v3751_v22  ;;  %v3744_v12 = vmul.f32 %v10065_v26, %v10034_v61  ;;  %v1432_v61 = vld [vmem:[%s12111_s9 + $0x38] sm:$0xff] }
 0xc3a   :  { %3931 = vmatpush.msrb.mxu0 %v1432_v61 }
 0xc3b   :  { %v3753_v1 = vmul.f32 %v3752_v20, %v3738_v4 }
 0xc3c   :  { %3932 = vmatpush.msrb.mxu0 %v1431_v13 }
 0xc3d   :  { %v3755_v32 = vsel %vm3754_vm4, %v3738_v4, %v3753_v1 }
 0xc3e   :  { %v3758_v40 = vsel %vm3756_vm12, %v3757_v39, %v3755_v32  ;;  %vm12419_vm12 = vmmov %vm12411_vm0 }
 0xc3f   :  { %v3795_v11 = vadd.f32 1e-06, %v3758_v40 }
 0xc41   :  { %7116 = vrcp.f32 %v3795_v11  ;;  %v3810_v38 = vand.u32 2147483648, %v3795_v11  ;;  %v3808_v59 = vand.u32 2147483647, %v3795_v11  ;;  %vm3804_vm11 = vweird.f32 %v3795_v11 }
 0xc43   :  { %v3811_v31 = vor.u32 1.1754944e-38, %v3810_v38  ;;  %vm3809_vm10 = vcmp.eq.f32.partialorder %v3808_v59, 8.507059e+37  ;;  %v1429_v38 = vld [vmem:[%s12111_s9 + $0x20] sm:$0xff] }
 0xc47   :  { %v7117_v23 = vpop.eup %7116 }
 0xc48   :  { %v3800_v41 = vmul.f32 %v7117_v23, %v3795_v11  ;;  %vm3805_vm2 = vweird.f32 %v7117_v23 }
 0xc49   :  { %vm3806_vm15 = vmor %vm3804_vm11, %vm3805_vm2 }
 0xc4a   :  { %v3801_v14 = vsub.f32 1.0, %v3800_v41 }
 0xc4c   :  { %v3802_v63 = vmul.f32 %v7117_v23, %v3801_v14  ;;  %v1430_v14 = vld [vmem:[%s12111_s9 + $0x28] sm:$0xff] }
 0xc4d   :  { %3933 = vmatpush.msrb.mxu0 %v1430_v14  ;;  %v12422_v14 = vld [vmem:[#allocation9_spill] sm:$0xff] }
 0xc4e   :  { %v3803_v29 = vadd.f32 %v7117_v23, %v3802_v63 }
 0xc4f   :  { %v3731_v6 = vpop.xlane.xlu1 %3730  ;;  %3934 = vmatpush.msrb.mxu0 %v1429_v38 }
 0xc50   :  { %v3739_v5 = vmul.f32 0.06666667, %v3731_v6  ;;  %v3807_v60 = vsel %vm3806_vm15, %v7117_v23, %v3803_v29 }
 0xc51   :  { %v3812_v8 = vsel %vm3809_vm10, %v3811_v31, %v3807_v60 }
 0xc52   :  { %7118 = vrsqrt.f32 %v3739_v5  ;;  %v3813_v54 = vmul.f32 %v3812_v8, %v3743_v25  ;;  %vm3766_vm5 = vcmp.eq.f32.partialorder %v3739_v5, inf  ;;  %v3769_v10 = vand.u32 2147483648, %v3739_v5 }
 0xc53   :  { %vm3768_vm13 = vcmp.eq.f32.partialorder %v3739_v5, 0.0 }
 0xc54   :  { %v3860_v9 = vadd.f32 %v10069_v34, %v3813_v54 }
 0xc56   :  { %6684 = vmatmul.msk.f32.vlgmr.msra.gmra.mxu3 %vm12411_vm0, %v3860_v9  ;;  %v3745_v9 = vmul.f32 %v10065_v26, %v10041_v62 }
 0xc58   :  { %v7119_v30 = vpop.eup %7118 }
 0xc59   :  { %v3760_v17 = vmul.f32 %v7119_v30, %v3739_v5 }
 0xc5b   :  { %v3761_v21 = vmul.f32 %v7119_v30, %v3760_v17 }
 0xc5d   :  { %v3762_v44 = vmul.f32 0.5, %v3761_v21 }
 0xc5f   :  { %v3763_v49 = vsub.f32 1.5, %v3762_v44 }
 0xc61   :  { %v3764_v45 = vmul.f32 %v7119_v30, %v3763_v49 }
 0xc63   :  { %v3765_v28 = vmul.f32 %v3764_v45, %v3739_v5 }
 0xc65   :  { %v3767_v24 = vsel %vm3766_vm5, %v3739_v5, %v3765_v28 }
 0xc66   :  { %v3770_v50 = vsel %vm3768_vm13, %v3769_v10, %v3767_v24  ;;  %vm12420_vm13 = vmmov %vm12419_vm12  ;;  %v1428_v24 = vld [vmem:[%s12111_s9 + $0x18] sm:$0xff] }
 0xc67   :  { %v3796_v19 = vadd.f32 1e-06, %v3770_v50  ;;  %3935 = vmatpush.msrb.mxu0 %v1428_v24 }
 0xc69   :  { %7120 = vrcp.f32 %v3796_v19  ;;  %v3825_v16 = vand.u32 2147483648, %v3796_v19  ;;  %v3823_v4 = vand.u32 2147483647, %v3796_v19  ;;  %vm3819_vm9 = vweird.f32 %v3796_v19 }
 0xc6b   :  { %v3826_v52 = vor.u32 1.1754944e-38, %v3825_v16  ;;  %vm3824_vm4 = vcmp.eq.f32.partialorder %v3823_v4, 8.507059e+37  ;;  %v1425_v16 = vld [vmem:[%s12111_s9] sm:$0xff] }
 0xc6f   :  { %v7121_v27 = vpop.eup %7120 }
 0xc70   :  { %v3815_v42 = vmul.f32 %v7121_v27, %v3796_v19  ;;  %vm3820_vm14 = vweird.f32 %v7121_v27 }
 0xc71   :  { %vm3821_vm1 = vmor %vm3819_vm9, %vm3820_vm14 }
 0xc72   :  { %v3816_v53 = vsub.f32 1.0, %v3815_v42  ;;  %v1427_v42 = vld [vmem:[%s12111_s9 + $0x10] sm:$0xff] }
 0xc73   :  { %3936 = vmatpush.msrb.mxu0 %v1427_v42 }
 0xc74   :  { %v3817_v57 = vmul.f32 %v7121_v27, %v3816_v53 }
 0xc76   :  { %v3818_v2 = vadd.f32 %v7121_v27, %v3817_v57 }
 0xc78   :  { %v3734_v0 = vpop.xlane.xlu2 %3733  ;;  %v3822_v3 = vsel %vm3821_vm1, %v7121_v27, %v3818_v2 }
 0xc79   :  { %v3740_v47 = vmul.f32 0.06666667, %v3734_v0  ;;  %v3827_v36 = vsel %vm3824_vm4, %v3826_v52, %v3822_v3  ;;  %v1426_v0 = vld [vmem:[%s12111_s9 + $0x8] sm:$0xff] }
 0xc7a   :  { %v3828_v15 = vmul.f32 %v3827_v36, %v3744_v12  ;;  %3937 = vmatpush.msrb.mxu0 %v1426_v0 }
 0xc7b   :  { %7122 = vrsqrt.f32 %v3740_v47  ;;  %vm3778_vm2 = vcmp.eq.f32.partialorder %v3740_v47, inf  ;;  %v3781_v11 = vand.u32 2147483648, %v3740_v47  ;;  %vm3780_vm11 = vcmp.eq.f32.partialorder %v3740_v47, 0.0 }
 0xc7c   :  { %v3861_v22 = vadd.f32 %v10069_v34, %v3828_v15  ;;  %3938 = vmatpush.msrb.mxu0 %v1425_v16 }
 0xc7e   :  { %6685 = vmatmul.msk.f32.gmra.mxu3 %vm12419_vm12, %v3861_v22 }
 0xc81   :  { %v7123_v58 = vpop.eup %7122 }
 0xc82   :  { %v3772_v37 = vmul.f32 %v7123_v58, %v3740_v47 }
 0xc84   :  { %v3773_v20 = vmul.f32 %v7123_v58, %v3772_v37  ;;  %v3746_v37 = vmul.f32 %v10065_v26, %v10048_v51  ;;  %v10116_v51 = vld [vmem:[%s12108_s7 + $0x48] sm:$0xff] }
 0xc85   :  { %4202 = vperm.xlu1 %6807, %v10116_v51   ;;  %v10122_v26 = vld [vmem:[%s12108_s7 + $0x68] sm:$0xff] }
 0xc86   :  { %v3774_v1 = vmul.f32 0.5, %v3773_v20 }
 0xc88   :  { %v3775_v39 = vsub.f32 1.5, %v3774_v1 }
 0xc8a   :  { %v3776_v32 = vmul.f32 %v7123_v58, %v3775_v39 }
 0xc8c   :  { %v3777_v40 = vmul.f32 %v3776_v32, %v3740_v47  ;;  %v6883_v32 = vld [vmem:[%s12113_s8 + $0x10] ss:$0 sm:$0xff] }
 0xc8d   :  { %4222 = vperm.xlu1 %6807, %v10122_v26  }
 0xc8e   :  { %v3779_v55 = vsel %vm3778_vm2, %v3740_v47, %v3777_v40 }
 0xc8f   :  { %v3782_v23 = vsel %vm3780_vm11, %v3781_v11, %v3779_v55  ;;  %vm12421_vm11 = vmmov %vm12420_vm13 }
 0xc90   :  { %v3797_v41 = vadd.f32 1e-06, %v3782_v23  ;;  %v10129_v23 = vld [vmem:[%s12108_s7 + $0x58] sm:$0xff] }
 0xc92   :  { %7124 = vrcp.f32 %v3797_v41  ;;  %v3840_v31 = vand.u32 2147483648, %v3797_v41  ;;  %v3838_v60 = vand.u32 2147483647, %v3797_v41  ;;  %vm3834_vm10 = vweird.f32 %v3797_v41 }
 0xc94   :  { %v3841_v54 = vor.u32 1.1754944e-38, %v3840_v31  ;;  %vm3839_vm5 = vcmp.eq.f32.partialorder %v3838_v60, 8.507059e+37  ;;  %v12423_v31 = vld [vmem:[#allocation2_spill] sm:$0xff] }
 0xc95   :  { %4212 = vperm.xlu1 %6807, %v10129_v23  }
 0xc98   :  { %v7125_v63 = vpop.eup %7124 }
 0xc99   :  { %v3830_v59 = vmul.f32 %v7125_v63, %v3797_v41  ;;  %vm3835_vm15 = vweird.f32 %v7125_v63  ;;  %v10135_v41 = vld [vmem:[%s12108_s7 + $0x60] sm:$0xff] }
 0xc9a   :  { %vm3836_vm0 = vmor %vm3834_vm10, %vm3835_vm15  ;;  %vm3910_vm15 = vcmask 523264   ;;  %4217 = vperm.xlu2 %6808, %v10135_v41  }
 0xc9b   :  { %v3831_v6 = vsub.f32 1.0, %v3830_v59  ;;  %vm12425_vm10 = vmmov %vm12421_vm11 }
 0xc9d   :  { %v3832_v5 = vmul.f32 %v7125_v63, %v3831_v6  ;;  %6811 = vset.pattern.permute.xlu1 %v12422_v14  ;;  %v10155_v6 = vld [vmem:[%s12108_s7 + $0x50] sm:$0xff] }
 0xc9f   :  { %v3833_v8 = vadd.f32 %v7125_v63, %v3832_v5 }
 0xca1   :  { %v3837_v30 = vsel %vm3836_vm0, %v7125_v63, %v3833_v8  ;;  %v3956_v8 = vperm.slane %v10062_v43, 0  ;;  %vm12427_vm0 = vmmov %vm12425_vm10 }
 0xca2   :  { %v3842_v17 = vsel %vm3839_vm5, %v3841_v54, %v3837_v30  ;;  %vm12429_vm5 = vmmov %vm12427_vm0 }
 0xca3   :  { %v3843_v44 = vmul.f32 %v3842_v17, %v3745_v9 }
 0xca5   :  { %v3862_v45 = vadd.f32 %v10069_v34, %v3843_v44  ;;  %v10169_v44 = vld [vmem:[%s12108_s7 + $0x78] sm:$0xff] }
 0xca7   :  { %v3737_v29 = vpop.xlane.xlu0 %3736  ;;  %6686 = vmatmul.msk.f32.gmra.mxu3 %vm12420_vm13, %v3862_v45  ;;  %vm12430_vm13 = vmmov %vm12427_vm0 }
 0xca8   :  { %v3741_v25 = vmul.f32 0.06666667, %v3737_v29  ;;  %v10143_v29 = vld [vmem:[%s12108_s7 + $0x70] sm:$0xff] }
 0xca9   :  { %4227 = vperm.xlu2 %6808, %v10143_v29  }
 0xcaa   :  { %7126 = vrsqrt.f32 %v3741_v25  ;;  %vm3790_vm14 = vcmp.eq.f32.partialorder %v3741_v25, inf  ;;  %v3793_v27 = vand.u32 2147483648, %v3741_v25  ;;  %vm3792_vm9 = vcmp.eq.f32.partialorder %v3741_v25, 0.0 }
 0xcb0   :  { %v7127_v21 = vpop.eup %7126 }
 0xcb1   :  { %v3784_v49 = vmul.f32 %v7127_v21, %v3741_v25  ;;  %6809 = vset.pattern.permute.xlu2 %v12423_v31 }
 0xcb3   :  { %v3785_v28 = vmul.f32 %v7127_v21, %v3784_v49 }
 0xcb5   :  { %v3786_v10 = vmul.f32 0.5, %v3785_v28 }
 0xcb7   :  { %v3787_v50 = vsub.f32 1.5, %v3786_v10 }
 0xcb9   :  { %v3788_v19 = vmul.f32 %v7127_v21, %v3787_v50 }
 0xcbb   :  { %v3789_v62 = vmul.f32 %v3788_v19, %v3741_v25 }
 0xcbd   :  { %v3791_v47 = vsel %vm3790_vm14, %v3741_v25, %v3789_v62  ;;  %v10149_v25 = vld [vmem:[%s12108_s7 + $0x40] sm:$0xff]  ;;  %vm12432_vm14 = vmmov %vm12427_vm0 }
 0xcbe   :  { %v3794_v53 = vsel %vm3792_vm9, %v3793_v27, %v3791_v47  ;;  %4197 = vperm.xlu0 %6806, %v10149_v25   ;;  %vm12433_vm9 = vmmov %vm12427_vm0 }
 0xcbf   :  { %v3798_v57 = vadd.f32 1e-06, %v3794_v53 }
 0xcc1   :  { %7128 = vrcp.f32 %v3798_v57  ;;  %v3855_v12 = vand.u32 2147483648, %v3798_v57  ;;  %v3853_v36 = vand.u32 2147483647, %v3798_v57  ;;  %vm3849_vm4 = vweird.f32 %v3798_v57 }
 0xcc3   :  { %v3856_v15 = vor.u32 1.1754944e-38, %v3855_v12  ;;  %vm3854_vm2 = vcmp.eq.f32.partialorder %v3853_v36, 8.507059e+37 }
 0xcc6   :  { %4207 = vperm.xlu0 %6806, %v10155_v6  }
 0xcc7   :  { %v7129_v4 = vpop.eup %7128 }
 0xcc8   :  { %v3845_v2 = vmul.f32 %v7129_v4, %v3798_v57  ;;  %vm3850_vm1 = vweird.f32 %v7129_v4 }
 0xcc9   :  { %vm3851_vm12 = vmor %vm3849_vm4, %vm3850_vm1 }
 0xcca   :  { %v3846_v52 = vsub.f32 1.0, %v3845_v2  ;;  %vm12434_vm1 = vmmov %vm12427_vm0 }
 0xccb   :  { %vm12435_vm4 = vmmov %vm12427_vm0 }
 0xccc   :  { %v3847_v3 = vmul.f32 %v7129_v4, %v3846_v52 }
 0xcce   :  { %v3848_v58 = vadd.f32 %v7129_v4, %v3847_v3  ;;  %4232 = vperm.xlu0 %6806, %v10169_v44  }
 0xcd0   :  { %v3852_v22 = vsel %vm3851_vm12, %v7129_v4, %v3848_v58 }
 0xcd1   :  { %v3857_v20 = vsel %vm3854_vm2, %v3856_v15, %v3852_v22 }
 0xcd2   :  { %v3858_v1 = vmul.f32 %v3857_v20, %v3746_v37 }
 0xcd4   :  { %v3863_v39 = vadd.f32 %v10069_v34, %v3858_v1 }
 0xcd6   :  { %6687 = vmatmul.msk.f32.gmra.mxu3 %vm12421_vm11, %v3863_v39  ;;  %6810 = vset.pattern.permute.xlu0 %v12423_v31 }
 0xcd9   :  { %v3894_v40 = vpop.f32.mrf.mxu3 }
 0xcda   :  { %v3895_v11 = vadd.f32 %v6883_v32, %v3894_v40 }
 0xcdc   :  { %v3906_v55 = vmax.f32 %v3895_v11, 0.0  ;;  %v6693_v11 = vld [vmem:[%s12110_s6 + $0x38] sm:$0xff] }
 0xcdd   :  { %4180 = vmatpush.msrb.mxu1 %v6693_v11 }
 0xcde   :  { %6688 = vmatmul.msk.f32.vlgmr.msrb.gmra.mxu0 %vm3910_vm15, %v3906_v55  ;;  %v6692_v55 = vld [vmem:[%s12110_s6 + $0x30] sm:$0xff] }
 0xcdf   :  { %4181 = vmatpush.msrb.mxu1 %v6692_v55 }
 0xcf4   :  { %v10201_v2 = vpop.permute.xlu2 %4217 }
 0xcf7   :  { %v10178_v28 = vpop.permute.xlu1 %4202 }
 0xcff   :  { %v10185_v62 = vpop.permute.xlu1 %4222 }
 0xd01   :  { %v3897_v34 = vpop.f32.mrf.mxu3 }
 0xd02   :  { %v3898_v61 = vadd.f32 %v6883_v32, %v3897_v34 }
 0xd03   :  { %v10203_v52 = vpop.permute.xlu2 %4227 }
 0xd04   :  { %v3907_v13 = vmax.f32 %v3898_v61, 0.0 }
 0xd06   :  { %6689 = vmatmul.msk.f32.gmra.mxu0 %vm3910_vm15, %v3907_v13 }
 0xd2a   :  { %v3900_v38 = vpop.f32.mrf.mxu3 }
 0xd2b   :  { %v3901_v63 = vadd.f32 %v6883_v32, %v3900_v38 }
 0xd2d   :  { %v3908_v59 = vmax.f32 %v3901_v63, 0.0 }
 0xd2f   :  { %6690 = vmatmul.msk.f32.gmra.mxu0 %vm3910_vm15, %v3908_v59 }
 0xd30   :  { %v10212_v15 = vpop.permute.xlu0 %4197 }
 0xd38   :  { %v10214_v37 = vpop.permute.xlu0 %4207 }
 0xd40   :  { %v10216_v22 = vpop.permute.xlu0 %4232 }
 0xd59   :  { %v3903_v5 = vpop.f32.mrf.mxu3 }
 0xd5a   :  { %v3904_v60 = vadd.f32 %v6883_v32, %v3903_v5 }
 0xd5b   :  { %v3940_v54 = vpop.f32.mrf.mxu0 }
 0xd5c   :  { %v3909_v9 = vmax.f32 %v3904_v60, 0.0  ;;  %v3952_v30 = vadd.f32 %v3940_v54, %v10010_v33 }
 0xd5e   :  { %v10161_v17 = vadd.f32 %v3956_v8, %v3952_v30  ;;  %6691 = vmatmul.msk.f32.gmra.mxu0 %vm3910_vm15, %v3909_v9 }
 0xd60   :  { %12424 = vst [vmem:[#allocation10_spill] sm:$0xff] %v10161_v17  ;;  %v3991_v21 = vsel %vm12425_vm10, %v10161_v17, 0.0 }
 0xd61   :  { %3992 = vadd.xlane.f32.xlu1 %v3991_v21 }
 0xd83   :  { %v3943_v43 = vpop.f32.mrf.mxu0 }
 0xd84   :  { %v3953_v33 = vadd.f32 %v3943_v43, %v10015_v18  ;;  %v10187_v18 = vpop.permute.xlu1 %4212 }
 0xd86   :  { %v10174_v49 = vadd.f32 %v3956_v8, %v3953_v33 }
 0xd88   :  { %12426 = vst [vmem:[#allocation4_spill] sm:$0xff] %v10174_v49  ;;  %v3994_v45 = vsel %vm12427_vm0, %v10174_v49, 0.0 }
 0xd89   :  { %3995 = vadd.xlane.f32.xlu2 %v3994_v45 }
 0xdac   :  { %v3946_v10 = vpop.f32.mrf.mxu0 }
 0xdad   :  { %v3954_v24 = vadd.f32 %v3946_v10, %v10020_v46 }
 0xdaf   :  { %v10181_v50 = vadd.f32 %v3956_v8, %v3954_v24 }
 0xdb1   :  { %12428 = vst [vmem:[#allocation5_spill] sm:$0xff] %v10181_v50  ;;  %v3997_v19 = vsel %vm12429_vm5, %v10181_v50, 0.0 }
 0xdb2   :  { %3998 = vadd.xlane.f32.xlu0 %v3997_v19 }
 0xdd4   :  { %v3993_v27 = vpop.xlane.xlu1 %3992 }
 0xdd5   :  { %v4003_v42 = vmul.f32 %v3993_v27, %v12412_v56 }
 0xdd7   :  { %v10191_v0 = vsub.f32 %v10161_v17, %v4003_v42  ;;  %v6717_v42 = vld [vmem:[%s12111_s9 + $0x88] sm:$0x1f] }
 0xdd9   :  { %v4011_v47 = vmul.f32 %v10191_v0, %v10191_v0 }
 0xddb   :  { %v3949_v46 = vpop.f32.mrf.mxu0  ;;  %v4015_v53 = vsel %vm12430_vm13, %v4011_v47, 0.0  ;;  %vm12436_vm13 = vmmov %vm12434_vm1 }
 0xddc   :  { %v3955_v16 = vadd.f32 %v3949_v46, %v10028_v48  ;;  %4016 = vadd.xlane.f32.xlu2 %v4015_v53  ;;  %v10241_v53 = vperm.slane %v6717_v42, 1 }
 0xdde   :  { %v10197_v57 = vadd.f32 %v3956_v8, %v3955_v16 }
 0xde0   :  { %12431 = vst [vmem:[#allocation7_spill] sm:$0xff] %v10197_v57  ;;  %v4000_v4 = vsel %vm12432_vm14, %v10197_v57, 0.0 }
 0xde1   :  { %4001 = vadd.xlane.f32.xlu1 %v4000_v4 }
 0xdfc   :  { %v3996_v12 = vpop.xlane.xlu2 %3995 }
 0xdfd   :  { %v4004_v3 = vmul.f32 %v3996_v12, %v12412_v56 }
 0xdff   :  { %v10207_v36 = vsub.f32 %v10174_v49, %v4004_v3 }
 0xe01   :  { %v4012_v48 = vmul.f32 %v10207_v36, %v10207_v36 }
 0xe03   :  { %v4018_v58 = vsel %vm12433_vm9, %v4012_v48, 0.0  ;;  %v4032_v48 = vmul.f32 %v10241_v53, %v10191_v0 }
 0xe04   :  { %4019 = vadd.xlane.f32.xlu0 %v4018_v58 }
 0xe25   :  { %v3999_v20 = vpop.xlane.xlu0 %3998 }
 0xe26   :  { %v4005_v1 = vmul.f32 %v3999_v20, %v12412_v56  ;;  %v10245_v20 = vperm.slane %v6717_v42, 2 }
 0xe28   :  { %v10220_v39 = vsub.f32 %v10181_v50, %v4005_v1 }
 0xe2a   :  { %v4013_v32 = vmul.f32 %v10220_v39, %v10220_v39 }
 0xe2c   :  { %v4021_v40 = vsel %vm12434_vm1, %v4013_v32, 0.0 }
 0xe2d   :  { %4022 = vadd.xlane.f32.xlu1 %v4021_v40 }
 0xe4f   :  { %v4017_v34 = vpop.xlane.xlu2 %4016 }
 0xe50   :  { %v4027_v61 = vmul.f32 0.06666667, %v4017_v34 }
 0xe52   :  { %7130 = vrsqrt.f32 %v4027_v61  ;;  %vm4043_vm12 = vcmp.eq.f32.partialorder %v4027_v61, inf  ;;  %v4046_v33 = vand.u32 2147483648, %v4027_v61  ;;  %vm4045_vm2 = vcmp.eq.f32.partialorder %v4027_v61, 0.0 }
 0xe54   :  { %v4002_v13 = vpop.xlane.xlu1 %4001 }
 0xe55   :  { %v4006_v38 = vmul.f32 %v4002_v13, %v12412_v56 }
 0xe57   :  { %v10233_v63 = vsub.f32 %v10197_v57, %v4006_v38 }
 0xe58   :  { %v7131_v59 = vpop.eup %7130 }
 0xe59   :  { %v4037_v5 = vmul.f32 %v7131_v59, %v4027_v61  ;;  %v4014_v60 = vmul.f32 %v10233_v63, %v10233_v63 }
 0xe5b   :  { %v4038_v8 = vmul.f32 %v7131_v59, %v4037_v5  ;;  %v4024_v54 = vsel %vm12435_vm4, %v4014_v60, 0.0 }
 0xe5c   :  { %4025 = vadd.xlane.f32.xlu2 %v4024_v54 }
 0xe5d   :  { %v4039_v9 = vmul.f32 0.5, %v4038_v8 }
 0xe5f   :  { %v4040_v30 = vsub.f32 1.5, %v4039_v9 }
 0xe61   :  { %v4041_v21 = vmul.f32 %v7131_v59, %v4040_v30 }
 0xe63   :  { %v4042_v43 = vmul.f32 %v4041_v21, %v4027_v61 }
 0xe65   :  { %v4044_v45 = vsel %vm4043_vm12, %v4027_v61, %v4042_v43 }
 0xe66   :  { %v4047_v10 = vsel %vm4045_vm2, %v4046_v33, %v4044_v45 }
 0xe67   :  { %v4084_v24 = vadd.f32 1e-06, %v4047_v10 }
 0xe69   :  { %7132 = vrcp.f32 %v4084_v24  ;;  %v4099_v46 = vand.u32 2147483648, %v4084_v24  ;;  %v4097_v4 = vand.u32 2147483647, %v4084_v24  ;;  %vm4093_vm10 = vweird.f32 %v4084_v24 }
 0xe6b   :  { %v4100_v3 = vor.u32 1.1754944e-38, %v4099_v46  ;;  %vm4098_vm5 = vcmp.eq.f32.partialorder %v4097_v4, 8.507059e+37 }
 0xe6f   :  { %v7133_v19 = vpop.eup %7132 }
 0xe70   :  { %v4089_v27 = vmul.f32 %v7133_v19, %v4084_v24  ;;  %vm4094_vm11 = vweird.f32 %v7133_v19 }
 0xe71   :  { %vm4095_vm0 = vmor %vm4093_vm10, %vm4094_vm11 }
 0xe72   :  { %v4090_v47 = vsub.f32 1.0, %v4089_v27  ;;  %vm12437_vm11 = vmmov %vm12436_vm13 }
 0xe73   :  { %vm12438_vm10 = vmmov %vm12437_vm11 }
 0xe74   :  { %v4091_v16 = vmul.f32 %v7133_v19, %v4090_v47  ;;  %v4033_v47 = vmul.f32 %v10241_v53, %v10207_v36 }
 0xe76   :  { %v4092_v12 = vadd.f32 %v7133_v19, %v4091_v16 }
 0xe77   :  { %v4020_v40 = vpop.xlane.xlu0 %4019 }
 0xe78   :  { %v4096_v58 = vsel %vm4095_vm0, %v7133_v19, %v4092_v12  ;;  %v4028_v55 = vmul.f32 0.06666667, %v4020_v40  ;;  %vm12439_vm0 = vmmov %vm12438_vm10 }
 0xe79   :  { %v4101_v1 = vsel %vm4098_vm5, %v4100_v3, %v4096_v58  ;;  %vm12440_vm5 = vmmov %vm12439_vm0 }
 0xe7a   :  { %v4102_v32 = vmul.f32 %v4101_v1, %v4032_v48  ;;  %7134 = vrsqrt.f32 %v4028_v55  ;;  %vm4055_vm14 = vcmp.eq.f32.partialorder %v4028_v55, inf  ;;  %v4058_v60 = vand.u32 2147483648, %v4028_v55 }
 0xe7b   :  { %vm4057_vm9 = vcmp.eq.f32.partialorder %v4028_v55, 0.0 }
 0xe7c   :  { %v4149_v11 = vadd.f32 %v10245_v20, %v4102_v32 }
 0xe7e   :  { %6718 = vmatmul.msk.f32.vlgmr.msrb.gmra.mxu1 %vm12436_vm13, %v4149_v11 }
 0xe80   :  { %v7135_v34 = vpop.eup %7134 }
 0xe81   :  { %v4049_v61 = vmul.f32 %v7135_v34, %v4028_v55 }
 0xe83   :  { %v4050_v13 = vmul.f32 %v7135_v34, %v4049_v61 }
 0xe85   :  { %v4051_v38 = vmul.f32 0.5, %v4050_v13 }
 0xe87   :  { %v4052_v59 = vsub.f32 1.5, %v4051_v38 }
 0xe89   :  { %v4053_v5 = vmul.f32 %v7135_v34, %v4052_v59 }
 0xe8b   :  { %v4054_v0 = vmul.f32 %v4053_v5, %v4028_v55 }
 0xe8d   :  { %v4056_v8 = vsel %vm4055_vm14, %v4028_v55, %v4054_v0 }
 0xe8e   :  { %v4059_v54 = vsel %vm4057_vm9, %v4058_v60, %v4056_v8  ;;  %vm12441_vm9 = vmmov %vm12439_vm0 }
 0xe8f   :  { %v4085_v9 = vadd.f32 1e-06, %v4059_v54 }
 0xe91   :  { %7136 = vrcp.f32 %v4085_v9  ;;  %v4114_v10 = vand.u32 2147483648, %v4085_v9  ;;  %v4112_v19 = vand.u32 2147483647, %v4085_v9  ;;  %vm4108_vm4 = vweird.f32 %v4085_v9 }
 0xe93   :  { %v4115_v42 = vor.u32 1.1754944e-38, %v4114_v10  ;;  %vm4113_vm2 = vcmp.eq.f32.partialorder %v4112_v19, 8.507059e+37 }
 0xe97   :  { %v7137_v30 = vpop.eup %7136 }
 0xe98   :  { %v4104_v21 = vmul.f32 %v7137_v30, %v4085_v9  ;;  %vm4109_vm1 = vweird.f32 %v7137_v30 }
 0xe99   :  { %vm4110_vm12 = vmor %vm4108_vm4, %vm4109_vm1 }
 0xe9a   :  { %v4105_v45 = vsub.f32 1.0, %v4104_v21  ;;  %vm12442_vm1 = vmmov %vm12439_vm0 }
 0xe9c   :  { %v4106_v24 = vmul.f32 %v7137_v30, %v4105_v45 }
 0xe9e   :  { %v4107_v27 = vadd.f32 %v7137_v30, %v4106_v24 }
 0xea0   :  { %v4023_v43 = vpop.xlane.xlu1 %4022  ;;  %v4111_v46 = vsel %vm4110_vm12, %v7137_v30, %v4107_v27 }
 0xea1   :  { %v4029_v33 = vmul.f32 0.06666667, %v4023_v43  ;;  %v4116_v16 = vsel %vm4113_vm2, %v4115_v42, %v4111_v46 }
 0xea2   :  { %v4117_v12 = vmul.f32 %v4116_v16, %v4033_v47 }
 0xea3   :  { %7138 = vrsqrt.f32 %v4029_v33  ;;  %vm4067_vm13 = vcmp.eq.f32.partialorder %v4029_v33, inf  ;;  %v4070_v36 = vand.u32 2147483648, %v4029_v33  ;;  %vm4069_vm14 = vcmp.eq.f32.partialorder %v4029_v33, 0.0 }
 0xea4   :  { %v4150_v48 = vadd.f32 %v10245_v20, %v4117_v12 }
 0xea6   :  { %6719 = vmatmul.msk.f32.gmra.mxu1 %vm12437_vm11, %v4150_v48  ;;  %6722 = vmatpush.xpose.msk.msra.mxu2 %vm12438_vm10, %v4150_v48  ;;  %vm12443_vm10 = vmmov %vm12439_vm0 }
 0xea9   :  { %v7139_v4 = vpop.eup %7138 }
 0xeaa   :  { %v4061_v3 = vmul.f32 %v7139_v4, %v4029_v33  ;;  %6723 = vmatpush.xpose.msk.msra.mxu2 %vm12439_vm0, %v4149_v11 }
 0xeac   :  { %v4062_v58 = vmul.f32 %v7139_v4, %v4061_v3 }
 0xead   :  { %6724 = vmatmul.msk.f32.vlgmr.msra.gmra.mxu2 %vm12440_vm5, %v10149_v25 }
 0xeae   :  { %v4063_v1 = vmul.f32 0.5, %v4062_v58 }
 0xeb0   :  { %v4064_v32 = vsub.f32 1.5, %v4063_v1 }
 0xeb2   :  { %v4065_v40 = vmul.f32 %v7139_v4, %v4064_v32 }
 0xeb4   :  { %v4066_v55 = vmul.f32 %v4065_v40, %v4029_v33  ;;  %v4035_v40 = vmul.f32 %v10241_v53, %v10233_v63 }
 0xeb5   :  { %6725 = vmatmul.msk.f32.gmra.mxu2 %vm12441_vm9, %v10116_v51  ;;  %v4034_v51 = vmul.f32 %v10241_v53, %v10220_v39 }
 0xeb6   :  { %v4068_v34 = vsel %vm4067_vm13, %v4029_v33, %v4066_v55 }
 0xeb7   :  { %v4071_v61 = vsel %vm4069_vm14, %v4070_v36, %v4068_v34  ;;  %v10272_v34 = vld [vmem:[%s12110_s6 + $0x40] ss:$0 sm:$0xff] }
 0xeb8   :  { %v4086_v13 = vadd.f32 1e-06, %v4071_v61 }
 0xeba   :  { %7140 = vrcp.f32 %v4086_v13  ;;  %v4129_v60 = vand.u32 2147483648, %v4086_v13  ;;  %v4127_v8 = vand.u32 2147483647, %v4086_v13  ;;  %vm4123_vm12 = vweird.f32 %v4086_v13 }
 0xebc   :  { %v4130_v9 = vor.u32 1.1754944e-38, %v4129_v60  ;;  %vm4128_vm11 = vcmp.eq.f32.partialorder %v4127_v8, 8.507059e+37 }
 0xebd   :  { %6726 = vmatmul.msk.f32.gmra.mxu2 %vm12442_vm1, %v10155_v6 }
 0xec0   :  { %v7141_v38 = vpop.eup %7140 }
 0xec1   :  { %v4119_v59 = vmul.f32 %v7141_v38, %v4086_v13  ;;  %vm4124_vm4 = vweird.f32 %v7141_v38 }
 0xec2   :  { %vm4125_vm2 = vmor %vm4123_vm12, %vm4124_vm4 }
 0xec3   :  { %v4120_v0 = vsub.f32 1.0, %v4119_v59  ;;  %vm12444_vm12 = vmmov %vm12439_vm0 }
 0xec5   :  { %v4121_v25 = vmul.f32 %v7141_v38, %v4120_v0  ;;  %6727 = vmatmul.msk.f32.gmra.mxu2 %vm12443_vm10, %v10129_v23  ;;  %vm12447_vm10 = vmmov %vm12439_vm0 }
 0xec7   :  { %v4122_v54 = vadd.f32 %v7141_v38, %v4121_v25 }
 0xec9   :  { %v4126_v30 = vsel %vm4125_vm2, %v7141_v38, %v4122_v54  ;;  %vm12445_vm2 = vmmov %vm12439_vm0 }
 0xeca   :  { %v4131_v21 = vsel %vm4128_vm11, %v4130_v9, %v4126_v30  ;;  %vm12446_vm11 = vmmov %vm12439_vm0 }
 0xecb   :  { %v4132_v33 = vmul.f32 %v4131_v21, %v4034_v51 }
 0xecd   :  { %v4151_v45 = vadd.f32 %v10245_v20, %v4132_v33 }
 0xecf   :  { %v4026_v5 = vpop.xlane.xlu2 %4025  ;;  %6720 = vmatmul.msk.f32.gmra.mxu1 %vm12439_vm0, %v4151_v45 }
 0xed0   :  { %v4030_v11 = vmul.f32 0.06666667, %v4026_v5 }
 0xed2   :  { %7142 = vrsqrt.f32 %v4030_v11  ;;  %vm4079_vm5 = vcmp.eq.f32.partialorder %v4030_v11, inf  ;;  %v4082_v39 = vand.u32 2147483648, %v4030_v11  ;;  %vm4081_vm13 = vcmp.eq.f32.partialorder %v4030_v11, 0.0 }
 0xed8   :  { %v7143_v43 = vpop.eup %7142 }
 0xed9   :  { %v4073_v6 = vmul.f32 %v7143_v43, %v4030_v11 }
 0xedb   :  { %v4074_v10 = vmul.f32 %v7143_v43, %v4073_v6 }
 0xedd   :  { %v4075_v24 = vmul.f32 0.5, %v4074_v10 }
 0xedf   :  { %v4076_v19 = vsub.f32 1.5, %v4075_v24 }
 0xee1   :  { %v4077_v27 = vmul.f32 %v7143_v43, %v4076_v19 }
 0xee3   :  { %v4078_v42 = vmul.f32 %v4077_v27, %v4030_v11 }
 0xee5   :  { %v4080_v47 = vsel %vm4079_vm5, %v4030_v11, %v4078_v42  ;;  %vm12448_vm5 = vmmov %vm12439_vm0 }
 0xee6   :  { %v4083_v46 = vsel %vm4081_vm13, %v4082_v39, %v4080_v47  ;;  %vm12449_vm13 = vmmov %vm12439_vm0 }
 0xee7   :  { %v4087_v16 = vadd.f32 1e-06, %v4083_v46 }
 0xee9   :  { %7144 = vrcp.f32 %v4087_v16  ;;  %v4144_v3 = vand.u32 2147483648, %v4087_v16  ;;  %v4142_v58 = vand.u32 2147483647, %v4087_v16  ;;  %vm4138_vm9 = vweird.f32 %v4087_v16 }
 0xeeb   :  { %v4145_v32 = vor.u32 1.1754944e-38, %v4144_v3  ;;  %vm4143_vm4 = vcmp.eq.f32.partialorder %v4142_v58, 8.507059e+37 }
 0xeef   :  { %v7145_v4 = vpop.eup %7144 }
 0xef0   :  { %v4134_v12 = vmul.f32 %v7145_v4, %v4087_v16  ;;  %vm4139_vm14 = vweird.f32 %v7145_v4 }
 0xef1   :  { %vm4140_vm1 = vmor %vm4138_vm9, %vm4139_vm14 }
 0xef2   :  { %v4135_v23 = vsub.f32 1.0, %v4134_v12  ;;  %vm12450_vm14 = vmmov %vm12439_vm0 }
 0xef3   :  { %vm12451_vm9 = vmmov %vm12439_vm0 }
 0xef4   :  { %v4136_v48 = vmul.f32 %v7145_v4, %v4135_v23 }
 0xef6   :  { %v4137_v1 = vadd.f32 %v7145_v4, %v4136_v48 }
 0xef8   :  { %v4141_v55 = vsel %vm4140_vm1, %v7145_v4, %v4137_v1  ;;  %vm12452_vm1 = vmmov %vm12439_vm0 }
 0xef9   :  { %v4146_v36 = vsel %vm4143_vm4, %v4145_v32, %v4141_v55  ;;  %vm12453_vm4 = vmmov %vm12439_vm0 }
 0xefa   :  { %v4147_v61 = vmul.f32 %v4146_v36, %v4035_v40 }
 0xefb   :  { %v4183_v38 = vpop.f32.mrf.mxu1 }
 0xefc   :  { %v4152_v13 = vadd.f32 %v10245_v20, %v4147_v61  ;;  %v4184_v59 = vadd.f32 %v10272_v34, %v4183_v38 }
 0xefe   :  { %6721 = vmatmul.msk.f32.gmra.mxu1 %vm12444_vm12, %v4152_v13  ;;  %6728 = vmatpush.xpose.msk.msrb.mxu3 %vm12445_vm2, %v4152_v13  ;;  %v4316_v5 = vperm.slane %v4184_v59, 1  ;;  %v4309_v63 = vperm.slane %v4184_v59, 0  ;;  %v4323_v53 = vperm.slane %v4184_v59, 2  ;;  %v4330_v20 = vperm.slane %v4184_v59, 3  ;;  %vm12454_vm12 = vmmov %vm12439_vm0 }
 0xeff   :  { %v4337_v0 = vperm.slane %v4184_v59, 4  ;;  %v4358_v60 = vperm.slane %v4184_v59, 7  ;;  %vm12455_vm2 = vmmov %vm12439_vm0 }
 0xf00   :  { %4321 = vperm.xlu0 %6810, %v4316_v5   ;;  %4569 = vperm.xlu1 %6811, %v4309_v63  }
 0xf01   :  { %4314 = vperm.xlu2 %6809, %v4309_v63  }
 0xf02   :  { %6729 = vmatpush.xpose.msk.msrb.mxu3 %vm12446_vm11, %v4151_v45  ;;  %vm12456_vm11 = vmmov %vm12439_vm0 }
 0xf05   :  { %6730 = vmatmul.msk.f32.vlgmr.msrb.gmra.mxu3 %vm12447_vm10, %v10135_v41  ;;  %v4344_v41 = vperm.slane %v4184_v59, 5  ;;  %vm12457_vm10 = vmmov %vm12439_vm0 }
 0xf08   :  { %4328 = vperm.xlu0 %6810, %v4323_v53   ;;  %4581 = vperm.xlu1 %6811, %v4323_v53  }
 0xf09   :  { %6812 = vset.pattern.permute.xlu2 %v12422_v14 }
 0xf0d   :  { %6731 = vmatmul.msk.f32.gmra.mxu3 %vm12439_vm0, %v10122_v26  ;;  %v4351_v26 = vperm.slane %v4184_v59, 6 }
 0xf10   :  { %6814 = vset.pattern.permute.xlu0 %v12422_v14  ;;  %6815 = vset.pattern.permute.xlu1 %v12423_v31 }
 0xf11   :  { %4575 = vperm.xlu2 %6812, %v4316_v5  }
 0xf15   :  { %6732 = vmatmul.msk.f32.gmra.mxu3 %vm12448_vm5, %v10143_v29  ;;  %vm12458_vm5 = vmmov %vm12439_vm0 }
 0xf18   :  { %4587 = vperm.xlu0 %6814, %v4330_v20   ;;  %4342 = vperm.xlu1 %6815, %v4337_v0  }
 0xf19   :  { %6813 = vset.pattern.permute.xlu2 %v12423_v31 }
 0xf1d   :  { %6733 = vmatmul.msk.f32.gmra.mxu3 %vm12449_vm13, %v10169_v44  ;;  %vm12459_vm13 = vmmov %vm12439_vm0 }
 0xf20   :  { %6817 = vset.pattern.permute.xlu0 %v12423_v31  ;;  %4349 = vperm.xlu1 %6815, %v4344_v41  }
 0xf21   :  { %4335 = vperm.xlu2 %6813, %v4330_v20  }
 0xf23   :  { %v4186_v29 = vpop.f32.mrf.mxu1 }
 0xf24   :  { %v4187_v11 = vadd.f32 %v10272_v34, %v4186_v29 }
 0xf26   :  { %v4372_v25 = vperm.slane %v4187_v11, 1  ;;  %v4365_v44 = vperm.slane %v4187_v11, 0  ;;  %v4379_v8 = vperm.slane %v4187_v11, 2  ;;  %v4386_v54 = vperm.slane %v4187_v11, 3 }
 0xf27   :  { %v4393_v9 = vperm.slane %v4187_v11, 4  ;;  %v4400_v51 = vperm.slane %v4187_v11, 5  ;;  %v4407_v30 = vperm.slane %v4187_v11, 6  ;;  %v4414_v21 = vperm.slane %v4187_v11, 7 }
 0xf28   :  { %4356 = vperm.xlu0 %6817, %v4351_v26   ;;  %6818 = vset.pattern.permute.xlu1 %v12422_v14 }
 0xf29   :  { %6816 = vset.pattern.permute.xlu2 %v12422_v14 }
 0xf30   :  { %4605 = vperm.xlu1 %6818, %v4351_v26   ;;  %4377 = vperm.xlu0 %6817, %v4372_v25   ;;  %v4260_v53 = vpop.f32.mrf.mxu2 }
 0xf31   :  { %4593 = vperm.xlu2 %6816, %v4337_v0  }
 0xf38   :  { %4611 = vperm.xlu1 %6818, %v4358_v60   ;;  %4384 = vperm.xlu0 %6817, %v4379_v8  }
 0xf39   :  { %4599 = vperm.xlu2 %6816, %v4344_v41  }
 0xf40   :  { %4617 = vperm.xlu1 %6818, %v4365_v44   ;;  %6822 = vset.pattern.permute.xlu0 %v12422_v14 }
 0xf41   :  { %6819 = vset.pattern.permute.xlu2 %v12423_v31 }
 0xf48   :  { %4629 = vperm.xlu1 %6818, %v4379_v8   ;;  %4635 = vperm.xlu0 %6822, %v4386_v54   ;;  %v10373_v8 = vadd.f32 %v4260_v53, %v10212_v15 }
 0xf49   :  { %4363 = vperm.xlu2 %6819, %v4358_v60   ;;  %v4263_v60 = vpop.f32.mrf.mxu2 }
 0xf4c   :  { %v4189_v43 = vpop.f32.mrf.mxu1 }
 0xf4d   :  { %v10306_v33 = vadd.f32 %v10272_v34, %v4189_v43 }
 0xf4f   :  { %v4421_v6 = vperm.slane %v10306_v33, 0  ;;  %v4435_v45 = vperm.slane %v10306_v33, 2  ;;  %v4449_v10 = vperm.slane %v10306_v33, 4  ;;  %v4442_v19 = vperm.slane %v10306_v33, 3 }
 0xf50   :  { %6823 = vset.pattern.permute.xlu1 %v12423_v31  ;;  %6825 = vset.pattern.permute.xlu0 %v12423_v31  ;;  %v4428_v27 = vperm.slane %v10306_v33, 1  ;;  %v4470_v42 = vperm.slane %v10306_v33, 7  ;;  %v4456_v12 = vperm.slane %v10306_v33, 5  ;;  %v4463_v58 = vperm.slane %v10306_v33, 6 }
 0xf51   :  { %4370 = vperm.xlu2 %6819, %v4365_v44  }
 0xf58   :  { %4398 = vperm.xlu1 %6823, %v4393_v9   ;;  %4412 = vperm.xlu0 %6825, %v4407_v30  }
 0xf59   :  { %6820 = vset.pattern.permute.xlu2 %v12422_v14 }
 0xf5b   :  { %v10322_v47 = vpop.permute.xlu2 %4314 }
 0xf60   :  { %4405 = vperm.xlu1 %6823, %v4400_v51   ;;  %6828 = vset.pattern.permute.xlu0 %v12422_v14 }
 0xf61   :  { %4623 = vperm.xlu2 %6820, %v4372_v25  }
 0xf68   :  { %6826 = vset.pattern.permute.xlu1 %v12422_v14  ;;  %4659 = vperm.xlu0 %6828, %v4414_v21  }
 0xf69   :  { %6821 = vset.pattern.permute.xlu2 %v12423_v31 }
 0xf6b   :  { %v10333_v3 = vpop.permute.xlu2 %4575 }
 0xf70   :  { %4653 = vperm.xlu1 %6826, %v4407_v30   ;;  %6832 = vset.pattern.permute.xlu0 %v12423_v31 }
 0xf71   :  { %4391 = vperm.xlu2 %6821, %v4386_v54   ;;  %v10376_v54 = vadd.f32 %v4263_v60, %v10178_v28 }
 0xf72   :  { %v10315_v24 = vpop.permute.xlu1 %4569  ;;  %v10346_v36 = vpop.permute.xlu0 %4321 }
 0xf78   :  { %6829 = vset.pattern.permute.xlu1 %v12423_v31  ;;  %4440 = vperm.xlu0 %6832, %v4435_v45  }
 0xf79   :  { %6824 = vset.pattern.permute.xlu2 %v12422_v14 }
 0xf7a   :  { %v4582_v39 = vpop.permute.xlu1 %4581  ;;  %v4329_v13 = vpop.permute.xlu0 %4328 }
 0xf7b   :  { %v4192_v46 = vpop.f32.mrf.mxu1  ;;  %v10338_v1 = vpop.permute.xlu2 %4335 }
 0xf7c   :  { %v10327_v16 = vadd.f32 %v10272_v34, %v4192_v46 }
 0xf7e   :  { %v4484_v23 = vperm.slane %v10327_v16, 1  ;;  %v4505_v40 = vperm.slane %v10327_v16, 4  ;;  %v4519_v38 = vperm.slane %v10327_v16, 6  ;;  %v4491_v26 = vperm.slane %v10327_v16, 2 }
 0xf7f   :  { %v4498_v25 = vperm.slane %v10327_v16, 3  ;;  %v4477_v33 = vperm.slane %v10327_v16, 0  ;;  %v4512_v53 = vperm.slane %v10327_v16, 5 }
 0xf80   :  { %4426 = vperm.xlu1 %6829, %v4421_v6   ;;  %6834 = vset.pattern.permute.xlu0 %v12422_v14 }
 0xf81   :  { %4641 = vperm.xlu2 %6824, %v4393_v9   ;;  %v4535_v9 = vmul.f32 %v4329_v13, %v10373_v8 }
 0xf88   :  { %6830 = vset.pattern.permute.xlu1 %v12422_v14  ;;  %4689 = vperm.xlu0 %6834, %v4449_v10  }
 0xf89   :  { %4647 = vperm.xlu2 %6824, %v4400_v51   ;;  %v4759_v51 = vmul.f32 %v4582_v39, %v10376_v54 }
 0xf8a   :  { %v10329_v4 = vpop.permute.xlu1 %4342  ;;  %v10362_v63 = vpop.permute.xlu0 %4587 }
 0xf8b   :  { %v10344_v55 = vpop.permute.xlu2 %4593  ;;  %v4791_v43 = vadd.f32 %v4759_v51, %v4535_v9 }
 0xf8d   :  { %v4823_v28 = vmul.f32 0.70710677, %v4791_v43 }
 0xf90   :  { %4665 = vperm.xlu1 %6830, %v4421_v6   ;;  %6837 = vset.pattern.permute.xlu0 %v12423_v31 }
 0xf91   :  { %6827 = vset.pattern.permute.xlu2 %v12423_v31 }
 0xf92   :  { %v10335_v48 = vpop.permute.xlu1 %4349 }
 0xf93   :  { %v10351_v61 = vpop.permute.xlu2 %4599 }
 0xf98   :  { %4677 = vperm.xlu1 %6830, %v4435_v45   ;;  %4475 = vperm.xlu0 %6837, %v4470_v42  }
 0xf99   :  { %4419 = vperm.xlu2 %6827, %v4414_v21  }
 0xf9a   :  { %v4357_v41 = vpop.permute.xlu0 %4356 }
 0xf9b   :  { %v4539_v45 = vmul.f32 %v4357_v41, %v10373_v8 }
 0xfa0   :  { %4683 = vperm.xlu1 %6830, %v4442_v19   ;;  %6842 = vset.pattern.permute.xlu0 %v12422_v14 }
 0xfa1   :  { %4433 = vperm.xlu2 %6827, %v4428_v27  }
 0xfa2   :  { %v4606_v32 = vpop.permute.xlu1 %4605  ;;  %v4378_v44 = vpop.permute.xlu0 %4377 }
 0xfa3   :  { %v10360_v5 = vpop.permute.xlu2 %4363  ;;  %v4763_v6 = vmul.f32 %v4606_v32, %v10376_v54  ;;  %v4542_v32 = vmul.f32 %v4378_v44, %v10373_v8 }
 0xfa8   :  { %6835 = vset.pattern.permute.xlu1 %v12423_v31  ;;  %4719 = vperm.xlu0 %6842, %v4484_v23  }
 0xfa9   :  { %6831 = vset.pattern.permute.xlu2 %v12422_v14 }
 0xfaa   :  { %v10348_v34 = vpop.permute.xlu1 %4611  ;;  %v10387_v15 = vpop.permute.xlu0 %4384 }
 0xfab   :  { %v10366_v0 = vpop.permute.xlu2 %4370 }
 0xfb0   :  { %4461 = vperm.xlu1 %6835, %v4456_v12   ;;  %6843 = vset.pattern.permute.xlu0 %v12423_v31 }
 0xfb1   :  { %4671 = vperm.xlu2 %6831, %v4428_v27   ;;  %v4795_v27 = vadd.f32 %v4763_v6, %v4539_v45 }
 0xfb2   :  { %v10356_v59 = vpop.permute.xlu1 %4617 }
 0xfb8   :  { %4468 = vperm.xlu1 %6835, %v4463_v58   ;;  %4510 = vperm.xlu0 %6843, %v4505_v40  }
 0xfb9   :  { %6833 = vset.pattern.permute.xlu2 %v12423_v31 }
 0xfba   :  { %v10364_v20 = vpop.permute.xlu1 %4629  ;;  %v10399_v46 = vpop.permute.xlu0 %4635 }
 0xfbb   :  { %v4624_v11 = vpop.permute.xlu2 %4623 }
 0xfc0   :  { %6838 = vset.pattern.permute.xlu1 %v12422_v14  ;;  %6846 = vset.pattern.permute.xlu0 %v12422_v14 }
 0xfc1   :  { %4447 = vperm.xlu2 %6833, %v4442_v19  }
 0xfc8   :  { %4707 = vperm.xlu1 %6838, %v4470_v42   ;;  %4749 = vperm.xlu0 %6846, %v4519_v38   ;;  %v7307_v42 = vld [vmem:[%s12112_s1 + $0x2] ss:$0 sm:$0xff] }
 0xfc9   :  { %4454 = vperm.xlu2 %6833, %v4449_v10   ;;  %v10396_v39 = vadd.f32 %v7307_v42, %v4823_v28  ;;  %v4297_v28 = vpop.f32.mrf.mxu3 }
 0xfca   :  { %v4399_v29 = vpop.permute.xlu1 %4398 }
 0xfcb   :  { %v10381_v30 = vpop.permute.xlu2 %4391  ;;  %v4545_v6 = vmul.f32 %v4399_v29, %v10373_v8 }
 0xfd0   :  { %6840 = vset.pattern.permute.xlu1 %v12423_v31 }
 0xfd1   :  { %6836 = vset.pattern.permute.xlu2 %v12422_v14 }
 0xfd2   :  { %v10383_v21 = vpop.permute.xlu1 %4405 }
 0xfd8   :  { %4489 = vperm.xlu1 %6840, %v4484_v23   ;;  %v4766_v23 = vmul.f32 %v4624_v11, %v10376_v54  ;;  %v10415_v11 = vpop.permute.xlu0 %4412 }
 0xfd9   :  { %4695 = vperm.xlu2 %6836, %v4456_v12   ;;  %v4827_v12 = vmul.f32 0.70710677, %v4795_v27 }
 0xfda   :  { %v4798_v41 = vadd.f32 %v4766_v23, %v4542_v32 }
 0xfdb   :  { %v4642_v10 = vpop.permute.xlu2 %4641 }
 0xfdc   :  { %v4830_v51 = vmul.f32 0.70710677, %v4798_v41  ;;  %v4769_v44 = vmul.f32 %v4642_v10, %v10376_v54  ;;  %v4300_v41 = vpop.f32.mrf.mxu3 }
 0xfde   :  { %v4801_v27 = vadd.f32 %v4769_v44, %v4545_v6  ;;  %v10440_v6 = vadd.f32 %v4300_v41, %v10185_v62 }
 0xfe0   :  { %4496 = vperm.xlu1 %6840, %v4491_v26   ;;  %v4660_v10 = vpop.permute.xlu0 %4659  ;;  %v4833_v23 = vmul.f32 0.70710677, %v4801_v27 }
 0xfe1   :  { %4701 = vperm.xlu2 %6836, %v4463_v58   ;;  %v4891_v58 = vsel %vm12450_vm14, %v10396_v39, -inf  ;;  %v4772_v32 = vmul.f32 %v4660_v10, %v10376_v54  ;;  %vm12460_vm14 = vmmov %vm12439_vm0 }
 0xfe2   :  { %v10391_v19 = vpop.permute.xlu1 %4653 }
 0xfe3   :  { %v10408_v60 = vpop.permute.xlu2 %4647 }
 0xfe8   :  { %4503 = vperm.xlu1 %6840, %v4498_v25  }
 0xfe9   :  { %6839 = vset.pattern.permute.xlu2 %v12423_v31 }
 0xff0   :  { %6844 = vset.pattern.permute.xlu1 %v12422_v14 }
 0xff1   :  { %4482 = vperm.xlu2 %6839, %v4477_v33  }
 0xff2   :  { %4892 = vmax.xlane.f32.xlu0 %v4891_v58  ;;  %v10405_v13 = vpop.permute.xlu1 %4426 }
 0xff3   :  { %v4420_v42 = vpop.permute.xlu2 %4419 }
 0xff4   :  { %v4548_v58 = vmul.f32 %v4420_v42, %v10373_v8  ;;  %v4441_v42 = vpop.permute.xlu0 %4440 }
 0xff6   :  { %v4804_v44 = vadd.f32 %v4772_v32, %v4548_v58  ;;  %v7311_v32 = vld [vmem:[%s12112_s1 + $0xf] ss:$0 sm:$0xff] }
 0xff8   :  { %4737 = vperm.xlu1 %6844, %v4505_v40   ;;  %v7308_v40 = vld [vmem:[%s12112_s1 + $0x6] ss:$0 sm:$0xff]  ;;  %v4836_v10 = vmul.f32 0.70710677, %v4804_v44  ;;  %v7312_v44 = vld [vmem:[%s12112_s1 + $0x12] ss:$0 sm:$0xff] }
 0xff9   :  { %6841 = vset.pattern.permute.xlu2 %v12422_v14  ;;  %v10413_v9 = vadd.f32 %v7308_v40, %v4827_v12  ;;  %v4526_v40 = vperm.slane %v10327_v16, 7 }
 0xffa   :  { %v10456_v41 = vadd.f32 %v7311_v32, %v4836_v10  ;;  %v4761_v32 = vmul.f32 %v10344_v55, %v10376_v54  ;;  %v4764_v55 = vmul.f32 %v10348_v34, %v10376_v54  ;;  %v7315_v34 = vld [vmem:[%s12112_s1 + $0x4] ss:$0 sm:$0xff] }
 0xffb   :  { %v4903_v43 = vsel %vm12451_vm9, %v10413_v9, -inf  ;;  %v10442_v27 = vpop.permute.xlu2 %4433  ;;  %vm12461_vm9 = vmmov %vm12439_vm0 }
 0xffc   :  { %4904 = vmax.xlane.f32.xlu0 %v4903_v43 }
0x1000   :  { %4743 = vperm.xlu1 %6844, %v4512_v53  }
0x1001   :  { %4713 = vperm.xlu2 %6841, %v4477_v33   ;;  %v7309_v33 = vld [vmem:[%s12112_s1 + $0x9] ss:$0 sm:$0xff] }
0x1002   :  { %v10421_v45 = vpop.permute.xlu1 %4665  ;;  %v10426_v12 = vadd.f32 %v7309_v33, %v4830_v51  ;;  %v7310_v51 = vld [vmem:[%s12112_s1 + $0xc] ss:$0 sm:$0xff]  ;;  %v10447_v33 = vadd.f32 %v4297_v28, %v10201_v2  ;;  %v4930_v28 = vsel %vm12454_vm12, %v10456_v41, -inf  ;;  %vm12464_vm12 = vmmov %vm12439_vm0 }
0x1003   :  { %v10437_v43 = vadd.f32 %v7310_v51, %v4833_v23 }
0x1004   :  { %v4912_v29 = vsel %vm12452_vm1, %v10426_v12, -inf  ;;  %vm12462_vm1 = vmmov %vm12439_vm0 }
0x1005   :  { %4913 = vmax.xlane.f32.xlu0 %v4912_v29  ;;  %v4921_v23 = vsel %vm12453_vm4, %v10437_v43, -inf  ;;  %v4551_v29 = vmul.f32 %v4441_v42, %v10447_v33  ;;  %vm12463_vm4 = vmmov %vm12439_vm0 }
0x1008   :  { %6847 = vset.pattern.permute.xlu1 %v12423_v31 }
0x1009   :  { %4725 = vperm.xlu2 %6841, %v4491_v26  }
0x100a   :  { %v4678_v26 = vpop.permute.xlu1 %4677 }
0x100b   :  { %v4775_v58 = vmul.f32 %v4678_v26, %v10440_v6 }
0x100d   :  { %4922 = vmax.xlane.f32.xlu0 %v4921_v23  ;;  %v4807_v62 = vadd.f32 %v4775_v58, %v4551_v29  ;;  %v4533_v58 = vmul.f32 %v10322_v47, %v10373_v8  ;;  %v7313_v47 = vld [vmem:[%s12112_s1] ss:$0 sm:$0xff] }
0x100f   :  { %v4839_v2 = vmul.f32 0.70710677, %v4807_v62 }
0x1010   :  { %4531 = vperm.xlu1 %6847, %v4526_v40  }
0x1011   :  { %4731 = vperm.xlu2 %6841, %v4498_v25   ;;  %v10458_v25 = vpop.permute.xlu2 %4671  ;;  %v10466_v51 = vadd.f32 %v7312_v44, %v4839_v2 }
0x1012   :  { %v10474_v10 = vpop.permute.xlu1 %4683 }
0x1013   :  { %v4939_v42 = vsel %vm12455_vm2, %v10466_v51, -inf  ;;  %vm12465_vm2 = vmmov %vm12439_vm0 }
0x1015   :  { %4931 = vmax.xlane.f32.xlu0 %v4930_v28 }
0x1019   :  { %6845 = vset.pattern.permute.xlu2 %v12423_v31  ;;  %v4757_v31 = vmul.f32 %v10315_v24, %v10376_v54 }
0x101b   :  { %v10468_v26 = vpop.permute.xlu2 %4447  ;;  %v4789_v29 = vadd.f32 %v4757_v31, %v4533_v58  ;;  %v7314_v58 = vld [vmem:[%s12112_s1 + $0x15] ss:$0 sm:$0xff] }
0x101d   :  { %4940 = vmax.xlane.f32.xlu0 %v4939_v42  ;;  %v4821_v62 = vmul.f32 0.70710677, %v4789_v29 }
0x101f   :  { %v10492_v44 = vadd.f32 %v7313_v47, %v4821_v62  ;;  %v4540_v62 = vmul.f32 %v10360_v5, %v10373_v8  ;;  %v4543_v5 = vmul.f32 %v10387_v15, %v10373_v8  ;;  %v7316_v47 = vld [vmem:[%s12112_s1 + $0x7] ss:$0 sm:$0xff]  ;;  %v4546_v15 = vmul.f32 %v10383_v21, %v10373_v8 }
0x1020   :  { %v4758_v21 = vmul.f32 %v10333_v3, %v10376_v54  ;;  %v4552_v3 = vmul.f32 %v10468_v26, %v10447_v33  ;;  %v7319_v26 = vld [vmem:[%s12112_s1 + $0x1] ss:$0 sm:$0xff] }
0x1021   :  { %4517 = vperm.xlu2 %6845, %v4512_v53   ;;  %v4537_v53 = vmul.f32 %v10329_v4, %v10373_v8 }
0x1022   :  { %v4462_v2 = vpop.permute.xlu1 %4461 }
0x1023   :  { %v10480_v23 = vpop.permute.xlu2 %4454  ;;  %v4554_v16 = vmul.f32 %v4462_v2, %v10447_v33  ;;  %v4793_v28 = vadd.f32 %v4761_v32, %v4537_v53  ;;  %v4796_v32 = vadd.f32 %v4764_v55, %v4540_v62  ;;  %v7317_v62 = vld [vmem:[%s12112_s1 + $0xa] ss:$0 sm:$0xff] }
0x1025   :  { %v4825_v31 = vmul.f32 0.70710677, %v4793_v28  ;;  %v4828_v2 = vmul.f32 0.70710677, %v4796_v32 }
0x1029   :  { %4524 = vperm.xlu2 %6845, %v4519_v38  }
0x1031   :  { %6848 = vset.pattern.permute.xlu2 %v12422_v14  ;;  %v4885_v14 = vsel %vm12456_vm11, %v10492_v44, -inf  ;;  %vm12466_vm11 = vmmov %vm12439_vm0 }
0x1033   :  { %v4696_v24 = vpop.permute.xlu2 %4695 }
0x1034   :  { %v4778_v38 = vmul.f32 %v4696_v24, %v10440_v6  ;;  %v4767_v24 = vmul.f32 %v10364_v20, %v10376_v54 }
0x1036   :  { %v4810_v42 = vadd.f32 %v4778_v38, %v4554_v16  ;;  %v4469_v38 = vpop.permute.xlu1 %4468  ;;  %v4799_v28 = vadd.f32 %v4767_v24, %v4543_v5 }
0x1038   :  { %v4842_v4 = vmul.f32 0.70710677, %v4810_v42  ;;  %v10521_v42 = vadd.f32 %v7316_v47, %v4828_v2 }
0x1039   :  { %4755 = vperm.xlu2 %6848, %v4526_v40   ;;  %v10510_v40 = vadd.f32 %v7315_v34, %v4825_v31  ;;  %v4770_v31 = vmul.f32 %v10408_v60, %v10376_v54  ;;  %v4534_v60 = vmul.f32 %v10346_v36, %v10373_v8  ;;  %v4773_v34 = vmul.f32 %v10421_v45, %v10440_v6  ;;  %v7318_v36 = vld [vmem:[%s12112_s1 + $0xd] ss:$0 sm:$0xff] }
0x103a   :  { %4886 = vmax.xlane.f32.xlu1 %v4885_v14  ;;  %v10501_v29 = vadd.f32 %v7314_v58, %v4842_v4  ;;  %v4831_v4 = vmul.f32 0.70710677, %v4799_v28  ;;  %v4906_v20 = vsel %vm12458_vm5, %v10521_v42, -inf  ;;  %v4760_v45 = vmul.f32 %v10362_v63, %v10376_v54  ;;  %vm12468_vm5 = vmmov %vm12439_vm0 }
0x103b   :  { %v4897_v16 = vsel %vm12439_vm0, %v10510_v40, -inf  ;;  %v4702_v14 = vpop.permute.xlu2 %4701  ;;  %v4802_v58 = vadd.f32 %v4770_v31, %v4546_v15  ;;  %v4790_v28 = vadd.f32 %v4758_v21, %v4534_v60  ;;  %v10553_v31 = vpop.permute.xlu0 %4689 }
0x103c   :  { %v4948_v53 = vsel %vm12457_vm10, %v10501_v29, -inf  ;;  %vm12467_vm10 = vmmov %vm12439_vm0 }
0x103d   :  { %4949 = vmax.xlane.f32.xlu0 %v4948_v53  ;;  %v10534_v53 = vadd.f32 %v7317_v62, %v4831_v4  ;;  %v4834_v32 = vmul.f32 0.70710677, %v4802_v58  ;;  %v4536_v58 = vmul.f32 %v10338_v1, %v10373_v8  ;;  %v4776_v62 = vmul.f32 %v10474_v10, %v10440_v6  ;;  %v7320_v1 = vld [vmem:[%s12112_s1 + $0x10] ss:$0 sm:$0xff] }
0x103e   :  { %v10527_v55 = vpop.permute.xlu1 %4707 }
0x103f   :  { %v4915_v2 = vsel %vm12459_vm13, %v10534_v53, -inf  ;;  %v10549_v4 = vadd.f32 %v7318_v36, %v4834_v32  ;;  %v4792_v32 = vadd.f32 %v4760_v45, %v4536_v58  ;;  %v4808_v21 = vadd.f32 %v4776_v62, %v4552_v3  ;;  %vm12469_vm13 = vmmov %vm12439_vm0 }
0x1040   :  { %v4762_v36 = vmul.f32 %v10351_v61, %v10376_v54  ;;  %v4555_v61 = vmul.f32 %v4469_v38, %v10447_v33 }
0x1042   :  { %4898 = vmax.xlane.f32.xlu1 %v4897_v16  ;;  %v4549_v16 = vmul.f32 %v10405_v13, %v10447_v33  ;;  %v4924_v13 = vsel %vm12460_vm14, %v10549_v4, -inf  ;;  %vm12470_vm14 = vmmov %vm12439_vm0 }
0x1043   :  { %v10581_v45 = vpop.permute.xlu0 %4475 }
0x1044   :  { %v4805_v47 = vadd.f32 %v4773_v34, %v4549_v16 }
0x1046   :  { %v4837_v15 = vmul.f32 0.70710677, %v4805_v47  ;;  %v4824_v47 = vmul.f32 0.70710677, %v4792_v32 }
0x1048   :  { %v10575_v10 = vadd.f32 %v7320_v1, %v4837_v15 }
0x104a   :  { %4907 = vmax.xlane.f32.xlu1 %v4906_v20  ;;  %v4490_v24 = vpop.permute.xlu1 %4489  ;;  %v4822_v20 = vmul.f32 0.70710677, %v4790_v28  ;;  %v4933_v15 = vsel %vm12462_vm1, %v10575_v10, -inf  ;;  %vm12472_vm1 = vmmov %vm12439_vm0 }
0x104b   :  { %v4483_v5 = vpop.permute.xlu2 %4482 }
0x104c   :  { %v4557_v63 = vmul.f32 %v4483_v5, %v10447_v33  ;;  %v10570_v16 = vadd.f32 %v7319_v26, %v4822_v20  ;;  %v4538_v5 = vmul.f32 %v10335_v48, %v10373_v8  ;;  %v4779_v20 = vmul.f32 %v4702_v14, %v10440_v6  ;;  %v7321_v48 = vld [vmem:[%s12112_s1 + $0x18] ss:$0 sm:$0xff]  ;;  %v7323_v26 = vld [vmem:[%s12112_s1 + $0x13] ss:$0 sm:$0xff] }
0x104e   :  { %v4888_v58 = vsel %vm12461_vm9, %v10570_v16, -inf  ;;  %v4794_v32 = vadd.f32 %v4762_v36, %v4538_v5  ;;  %v4720_v5 = vpop.permute.xlu0 %4719  ;;  %vm12471_vm9 = vmmov %vm12439_vm0 }
0x1052   :  { %4916 = vmax.xlane.f32.xlu1 %v4915_v2  ;;  %v10564_v34 = vpop.permute.xlu1 %4496 }
0x105a   :  { %4925 = vmax.xlane.f32.xlu1 %v4924_v13  ;;  %v4840_v13 = vmul.f32 0.70710677, %v4808_v21  ;;  %v4811_v21 = vadd.f32 %v4779_v20, %v4555_v61  ;;  %v4504_v38 = vpop.permute.xlu1 %4503 }
0x105b   :  { %v4714_v60 = vpop.permute.xlu2 %4713  ;;  %v4560_v61 = vmul.f32 %v4504_v38, %v10447_v33  ;;  %v4544_v38 = vmul.f32 %v10381_v30, %v10373_v8  ;;  %v7326_v30 = vld [vmem:[%s12112_s1 + $0x1b] ss:$0 sm:$0xff] }
0x105c   :  { %v4781_v2 = vmul.f32 %v4714_v60, %v10440_v6  ;;  %v10606_v1 = vadd.f32 %v7323_v26, %v4840_v13  ;;  %v4541_v13 = vmul.f32 %v10366_v0, %v10373_v8 }
0x105e   :  { %v4813_v28 = vadd.f32 %v4781_v2, %v4557_v63  ;;  %v7322_v63 = vld [vmem:[%s12112_s1 + $0x3] ss:$0 sm:$0xff]  ;;  %v4942_v20 = vsel %vm12465_vm2, %v10606_v1, -inf  ;;  %vm12475_vm2 = vmmov %vm12439_vm0 }
0x105f   :  { %v10601_v2 = vadd.f32 %v7322_v63, %v4824_v47  ;;  %v4558_v47 = vmul.f32 %v4490_v24, %v10447_v33 }
0x1060   :  { %v4845_v3 = vmul.f32 0.70710677, %v4813_v28  ;;  %v4826_v28 = vmul.f32 0.70710677, %v4794_v32 }
0x1061   :  { %v4894_v36 = vsel %vm12464_vm12, %v10601_v2, -inf  ;;  %vm12474_vm12 = vmmov %vm12439_vm0 }
0x1062   :  { %4889 = vmax.xlane.f32.xlu2 %v4888_v58  ;;  %4934 = vmax.xlane.f32.xlu1 %v4933_v15  ;;  %v10591_v62 = vadd.f32 %v7321_v48, %v4845_v3  ;;  %v4765_v3 = vmul.f32 %v10356_v59, %v10376_v54  ;;  %v4843_v58 = vmul.f32 0.70710677, %v4811_v21  ;;  %v4782_v15 = vmul.f32 %v4720_v5, %v10440_v6  ;;  %v7324_v59 = vld [vmem:[%s12112_s1 + $0x5] ss:$0 sm:$0xff]  ;;  %v7325_v21 = vld [vmem:[%s12112_s1 + $0x16] ss:$0 sm:$0xff] }
0x1063   :  { %v10594_v60 = vpop.permute.xlu2 %4725  ;;  %v10623_v24 = vadd.f32 %v7324_v59, %v4826_v28 }
0x1064   :  { %v4957_v14 = vsel %vm12463_vm4, %v10591_v62, -inf  ;;  %v4814_v63 = vadd.f32 %v4782_v15, %v4558_v47  ;;  %v10628_v0 = vadd.f32 %v7325_v21, %v4843_v58  ;;  %v4768_v58 = vmul.f32 %v10399_v46, %v10376_v54  ;;  %v7327_v46 = vld [vmem:[%s12112_s1 + $0x8] ss:$0 sm:$0xff]  ;;  %v7328_v21 = vld [vmem:[%s12112_s1 + $0x19] ss:$0 sm:$0xff]  ;;  %vm12473_vm4 = vmmov %vm12439_vm0 }
0x1065   :  { %4958 = vmax.xlane.f32.xlu0 %v4957_v14  ;;  %v4797_v14 = vadd.f32 %v4765_v3, %v4541_v13 }
0x1066   :  { %v4846_v59 = vmul.f32 0.70710677, %v4814_v63  ;;  %v4951_v47 = vsel %vm12467_vm10, %v10628_v0, -inf  ;;  %vm12477_vm10 = vmmov %vm12439_vm0 }
0x1067   :  { %v4829_v28 = vmul.f32 0.70710677, %v4797_v14 }
0x1069   :  { %v10650_v63 = vadd.f32 %v7327_v46, %v4829_v28  ;;  %v4547_v28 = vmul.f32 %v10415_v11, %v10373_v8 }
0x106a   :  { %4895 = vmax.xlane.f32.xlu2 %v4894_v36  ;;  %4943 = vmax.xlane.f32.xlu1 %v4942_v20  ;;  %v4738_v26 = vpop.permute.xlu1 %4737  ;;  %v4511_v36 = vpop.permute.xlu0 %4510 }
0x106b   :  { %v4732_v48 = vpop.permute.xlu2 %4731  ;;  %v4785_v3 = vmul.f32 %v4738_v26, %v10440_v6  ;;  %v4561_v15 = vmul.f32 %v4511_v36, %v10447_v33  ;;  %v10655_v26 = vadd.f32 %v7328_v21, %v4846_v59 }
0x106c   :  { %v4784_v32 = vmul.f32 %v4732_v48, %v10440_v6  ;;  %v4900_v48 = vsel %vm12466_vm11, %v10623_v24, -inf  ;;  %vm12476_vm11 = vmmov %vm12439_vm0 }
0x106d   :  { %v4817_v14 = vadd.f32 %v4785_v3, %v4561_v15  ;;  %v4774_v15 = vmul.f32 %v10458_v25, %v10440_v6  ;;  %v7331_v25 = vld [vmem:[%s12112_s1 + $0xe] ss:$0 sm:$0xff] }
0x106e   :  { %v4816_v5 = vadd.f32 %v4784_v32, %v4560_v61  ;;  %v4800_v61 = vadd.f32 %v4768_v58, %v4544_v38  ;;  %v4771_v38 = vmul.f32 %v10391_v19, %v10376_v54  ;;  %v7330_v19 = vld [vmem:[%s12112_s1 + $0x1c] ss:$0 sm:$0xff] }
0x106f   :  { %v4849_v36 = vmul.f32 0.70710677, %v4817_v14 }
0x1070   :  { %v4848_v20 = vmul.f32 0.70710677, %v4816_v5  ;;  %v4832_v5 = vmul.f32 0.70710677, %v4800_v61  ;;  %v4803_v59 = vadd.f32 %v4771_v38, %v4547_v28  ;;  %v4553_v28 = vmul.f32 %v10480_v23, %v10447_v33  ;;  %v7333_v23 = vld [vmem:[%s12112_s1 + $0x11] ss:$0 sm:$0xff] }
0x1071   :  { %v10675_v58 = vadd.f32 %v7330_v19, %v4849_v36 }
0x1072   :  { %4901 = vmax.xlane.f32.xlu2 %v4900_v48  ;;  %4952 = vmax.xlane.f32.xlu1 %v4951_v47  ;;  %v10642_v13 = vadd.f32 %v7326_v30, %v4848_v20  ;;  %v4909_v20 = vsel %vm12468_vm5, %v10650_v63, -inf  ;;  %v4960_v48 = vsel %vm12469_vm13, %v10655_v26, -inf  ;;  %v7329_v47 = vld [vmem:[%s12112_s1 + $0xb] ss:$0 sm:$0xff]  ;;  %v4835_v30 = vmul.f32 0.70710677, %v4803_v59  ;;  %v4750_v8 = vpop.permute.xlu0 %4749  ;;  %v4744_v59 = vpop.permute.xlu1 %4743  ;;  %vm12478_vm5 = vmmov %vm12439_vm0 }
0x1073   :  { %v10670_v54 = vadd.f32 %v7329_v47, %v4832_v5  ;;  %v4969_v61 = vsel %vm12471_vm9, %v10675_v58, -inf  ;;  %v4787_v46 = vmul.f32 %v4750_v8, %v10440_v6  ;;  %v7332_v47 = vld [vmem:[%s12112_s1 + $0x1e] ss:$0 sm:$0xff]  ;;  %vm12479_vm13 = vmmov %vm12439_vm0 }
0x1074   :  { %v4966_v32 = vsel %vm12439_vm0, %v10642_v13, -inf  ;;  %v10690_v38 = vadd.f32 %v7331_v25, %v4835_v30  ;;  %v4777_v30 = vmul.f32 %v10553_v31, %v10440_v6  ;;  %vm12481_vm9 = vmmov %vm12439_vm0 }
0x1075   :  { %4967 = vmax.xlane.f32.xlu0 %v4966_v32  ;;  %v4918_v11 = vsel %vm12470_vm14, %v10670_v54, -inf  ;;  %v4550_v32 = vmul.f32 %v10442_v27, %v10447_v33  ;;  %vm12480_vm14 = vmmov %vm12439_vm0 }
0x1076   :  { %v4927_v27 = vsel %vm12472_vm1, %v10690_v38, -inf  ;;  %v4809_v8 = vadd.f32 %v4777_v30, %v4553_v28  ;;  %vm12482_vm1 = vmmov %vm12439_vm0 }
0x1077   :  { %v4806_v5 = vadd.f32 %v4774_v15, %v4550_v32 }
0x1078   :  { %v4841_v32 = vmul.f32 0.70710677, %v4809_v8  ;;  %v7335_v8 = vld [vmem:[%s12112_s1 + $0x1f] ss:$0 sm:$0xff] }
0x107a   :  { %4910 = vmax.xlane.f32.xlu2 %v4909_v20  ;;  %4961 = vmax.xlane.f32.xlu1 %v4960_v48  ;;  %v4838_v48 = vmul.f32 0.70710677, %v4806_v5 }
0x107b   :  { %v10665_v3 = vpop.permute.xlu2 %4517 }
0x1082   :  { %4919 = vmax.xlane.f32.xlu2 %v4918_v11  ;;  %4970 = vmax.xlane.f32.xlu1 %v4969_v61  ;;  %v10708_v11 = vadd.f32 %v7333_v23, %v4838_v48  ;;  %v4893_v61 = vpop.xlane.xlu0 %4892 }
0x1083   :  { %v4525_v14 = vpop.permute.xlu2 %4524  ;;  %v4983_v5 = vsub.f32 %v10396_v39, %v4893_v61  ;;  %v4559_v61 = vmul.f32 %v10564_v34, %v10447_v33 }
0x1084   :  { %v4563_v21 = vmul.f32 %v4525_v14, %v10447_v33  ;;  %v4780_v14 = vmul.f32 %v10527_v55, %v10440_v6  ;;  %v4936_v31 = vsel %vm12474_vm12, %v10708_v11, -inf  ;;  %v7334_v55 = vld [vmem:[%s12112_s1 + $0x14] ss:$0 sm:$0xff]  ;;  %vm12484_vm12 = vmmov %vm12439_vm0 }
0x1085   :  { %v10722_v28 = vadd.f32 %v7334_v55, %v4841_v32 }
0x1086   :  { %v4819_v36 = vadd.f32 %v4787_v46, %v4563_v21  ;;  %v4532_v46 = vpop.permute.xlu1 %4531  ;;  %v4556_v21 = vmul.f32 %v10581_v45, %v10447_v33  ;;  %v4783_v45 = vmul.f32 %v10594_v60, %v10440_v6  ;;  %v7336_v60 = vld [vmem:[%s12112_s1 + $0x17] ss:$0 sm:$0xff] }
0x1087   :  { %v4945_v39 = vsel %vm12475_vm2, %v10722_v28, -inf  ;;  %vm12485_vm2 = vmmov %vm12439_vm0 }
0x1088   :  { %v4851_v20 = vmul.f32 0.70710677, %v4819_v36  ;;  %v4564_v36 = vmul.f32 %v4532_v46, %v10447_v33  ;;  %v4812_v48 = vadd.f32 %v4780_v14, %v4556_v21  ;;  %v4815_v14 = vadd.f32 %v4783_v45, %v4559_v61 }
0x108a   :  { %4928 = vmax.xlane.f32.xlu2 %v4927_v27  ;;  %v10699_v19 = vadd.f32 %v7332_v47, %v4851_v20  ;;  %v5017_v47 = vmul.f32 1.442695, %v4983_v5  ;;  %v4847_v21 = vmul.f32 0.70710677, %v4815_v14  ;;  %v4562_v5 = vmul.f32 %v10665_v3, %v10447_v33  ;;  %v4905_v14 = vpop.xlane.xlu0 %4904 }
0x108c   :  { %v4975_v15 = vsel %vm12473_vm4, %v10699_v19, -inf  ;;  %7146 = vpow2.f32 %v5017_v47  ;;  %vm12483_vm4 = vmmov %vm12439_vm0 }
0x108d   :  { %4976 = vmax.xlane.f32.xlu0 %v4975_v15  ;;  %v4844_v15 = vmul.f32 0.70710677, %v4812_v48  ;;  %v7337_v48 = vld [vmem:[%s12112_s1 + $0x1a] ss:$0 sm:$0xff] }
0x108e   :  { %v10754_v55 = vadd.f32 %v7337_v48, %v4847_v21 }
0x108f   :  { %v10740_v46 = vadd.f32 %v7336_v60, %v4844_v15 }
0x1090   :  { %v4963_v33 = vsel %vm12478_vm5, %v10754_v55, -inf  ;;  %vm12488_vm5 = vmmov %vm12439_vm0 }
0x1091   :  { %v4954_v34 = vsel %vm12477_vm10, %v10740_v46, -inf  ;;  %vm12487_vm10 = vmmov %vm12439_vm0 }
0x1092   :  { %4937 = vmax.xlane.f32.xlu2 %v4936_v31  ;;  %v10742_v31 = vpop.eup %7146 }
0x1093   :  { %v4756_v25 = vpop.permute.xlu2 %4755 }
0x1094   :  { %v4788_v20 = vmul.f32 %v4756_v25, %v10440_v6  ;;  %v4786_v25 = vmul.f32 %v4744_v59, %v10440_v6  ;;  %v7338_v6 = vld [vmem:[%s12112_s1 + $0x1d] ss:$0 sm:$0xff] }
0x1096   :  { %v4820_v27 = vadd.f32 %v4788_v20, %v4564_v36  ;;  %v5083_v36 = vsel %vm12439_vm0, %v10742_v31, 0.0  ;;  %v4818_v20 = vadd.f32 %v4786_v25, %v4562_v5 }
0x1098   :  { %v4852_v30 = vmul.f32 0.70710677, %v4820_v27  ;;  %v4850_v27 = vmul.f32 0.70710677, %v4818_v20  ;;  %v4914_v20 = vpop.xlane.xlu0 %4913 }
0x109a   :  { %4946 = vmax.xlane.f32.xlu2 %v4945_v39  ;;  %v10731_v23 = vadd.f32 %v7335_v8, %v4852_v30  ;;  %v10761_v59 = vadd.f32 %v7338_v6, %v4850_v27  ;;  %v4987_v27 = vsub.f32 %v10413_v9, %v4905_v14 }
0x109c   :  { %v4978_v32 = vsel %vm12476_vm11, %v10731_v23, -inf  ;;  %v4972_v15 = vsel %vm12479_vm13, %v10761_v59, -inf  ;;  %vm12486_vm11 = vmmov %vm12439_vm0 }
0x109d   :  { %4979 = vmax.xlane.f32.xlu1 %v4978_v32  ;;  %vm12489_vm13 = vmmov %vm12439_vm0 }
0x10a0   :  { %v4923_v14 = vpop.xlane.xlu0 %4922 }
0x10a2   :  { %4955 = vmax.xlane.f32.xlu2 %v4954_v34 }
0x10a5   :  { %5084 = vadd.xlane.f32.xlu1 %v5083_v36 }
0x10aa   :  { %4964 = vmax.xlane.f32.xlu2 %v4963_v33 }
0x10ad   :  { %v4887_v3 = vpop.xlane.xlu1 %4886 }
0x10ae   :  { %v4981_v47 = vsub.f32 %v10492_v44, %v4887_v3 }
0x10b0   :  { %v5013_v30 = vmul.f32 1.442695, %v4981_v47 }
0x10b2   :  { %7148 = vpow2.f32 %v5013_v30  ;;  %4973 = vmax.xlane.f32.xlu2 %v4972_v15 }
0x10b5   :  { %v4899_v45 = vpop.xlane.xlu1 %4898 }
0x10b6   :  { %v4985_v5 = vsub.f32 %v10510_v40, %v4899_v45 }
0x10b8   :  { %v10766_v39 = vpop.eup %7148  ;;  %v5021_v25 = vmul.f32 1.442695, %v4985_v5 }
0x10b9   :  { %v5077_v8 = vsel %vm12480_vm14, %v10766_v39, 0.0  ;;  %vm12490_vm14 = vmmov %vm12439_vm0 }
0x10ba   :  { %5078 = vadd.xlane.f32.xlu2 %v5077_v8 }
0x10bd   :  { %v4908_v61 = vpop.xlane.xlu1 %4907 }
0x10be   :  { %v4988_v6 = vsub.f32 %v10521_v42, %v4908_v61 }
0x10c0   :  { %v5027_v30 = vmul.f32 1.442695, %v4988_v6 }
0x10c5   :  { %v4917_v32 = vpop.xlane.xlu1 %4916 }
0x10c6   :  { %v4991_v42 = vsub.f32 %v10534_v53, %v4917_v32  ;;  %v4993_v32 = vsub.f32 %v10437_v43, %v4923_v14 }
0x10c8   :  { %v5037_v43 = vmul.f32 1.442695, %v4993_v32 }
0x10cd   :  { %v4926_v60 = vpop.xlane.xlu1 %4925 }
0x10d5   :  { %v4890_v21 = vpop.xlane.xlu2 %4889  ;;  %v10774_v33 = vpop.xlane.xlu1 %4934 }
0x10d6   :  { %v4982_v44 = vsub.f32 %v10570_v16, %v4890_v21  ;;  %v5025_v16 = vmul.f32 1.442695, %v4987_v27 }
0x10d8   :  { %v5015_v34 = vmul.f32 1.442695, %v4982_v44 }
0x10da   :  { %7150 = vpow2.f32 %v5015_v34 }
0x10db   :  { %7152 = vpow2.f32 %v5021_v25 }
0x10dd   :  { %v4896_v36 = vpop.xlane.xlu2 %4895  ;;  %v10788_v21 = vpop.xlane.xlu1 %4943 }
0x10de   :  { %v4984_v48 = vsub.f32 %v10601_v2, %v4896_v36  ;;  %v4990_v2 = vsub.f32 %v10426_v12, %v4914_v20  ;;  %v5033_v12 = vmul.f32 1.442695, %v4991_v42  ;;  %v4997_v42 = vsub.f32 %v10575_v10, %v10774_v33 }
0x10e0   :  { %v10776_v3 = vpop.eup %7150  ;;  %v5019_v47 = vmul.f32 1.442695, %v4984_v48  ;;  %v4994_v48 = vsub.f32 %v10549_v4, %v4926_v60 }
0x10e1   :  { %v5080_v40 = vsel %vm12481_vm9, %v10776_v3, 0.0  ;;  %v10781_v45 = vpop.eup %7152  ;;  %vm12491_vm9 = vmmov %vm12439_vm0 }
0x10e2   :  { %7154 = vpow2.f32 %v5019_v47  ;;  %5081 = vadd.xlane.f32.xlu0 %v5080_v40  ;;  %v5089_v44 = vsel %vm12482_vm1, %v10781_v45, 0.0  ;;  %vm12492_vm1 = vmmov %vm12439_vm0 }
0x10e3   :  { %7156 = vpow2.f32 %v5025_v16  ;;  %v4932_v16 = vpop.xlane.xlu0 %4931 }
0x10e4   :  { %7158 = vpow2.f32 %v5027_v30  ;;  %v5039_v30 = vmul.f32 1.442695, %v4994_v48 }
0x10e5   :  { %v4902_v15 = vpop.xlane.xlu2 %4901 }
0x10e6   :  { %v4986_v9 = vsub.f32 %v10623_v24, %v4902_v15  ;;  %v5031_v24 = vmul.f32 1.442695, %v4990_v2  ;;  %v4996_v2 = vsub.f32 %v10456_v41, %v4932_v16 }
0x10e8   :  { %v10785_v8 = vpop.eup %7154  ;;  %v5023_v61 = vmul.f32 1.442695, %v4986_v9  ;;  %v5043_v41 = vmul.f32 1.442695, %v4996_v2 }
0x10e9   :  { %v5086_v5 = vsel %vm12483_vm4, %v10785_v8, 0.0  ;;  %v10794_v34 = vpop.eup %7156  ;;  %vm12493_vm4 = vmmov %vm12439_vm0 }
0x10ea   :  { %7160 = vpow2.f32 %v5023_v61  ;;  %5090 = vadd.xlane.f32.xlu0 %v5089_v44  ;;  %5087 = vadd.xlane.f32.xlu2 %v5086_v5  ;;  %v10796_v36 = vpop.eup %7158  ;;  %v5095_v47 = vsel %vm12485_vm2, %v10794_v34, 0.0  ;;  %vm12495_vm2 = vmmov %vm12439_vm0 }
0x10eb   :  { %7162 = vpow2.f32 %v5031_v24  ;;  %v5098_v6 = vsel %vm12484_vm12, %v10796_v36, 0.0  ;;  %vm12494_vm12 = vmmov %vm12439_vm0 }
0x10ec   :  { %7164 = vpow2.f32 %v5033_v12  ;;  %v5045_v12 = vmul.f32 1.442695, %v4997_v42  ;;  %v5000_v42 = vsub.f32 %v10606_v1, %v10788_v21 }
0x10ed   :  { %v4911_v25 = vpop.xlane.xlu2 %4910 }
0x10ee   :  { %v4989_v53 = vsub.f32 %v10650_v63, %v4911_v25  ;;  %v4953_v63 = vpop.xlane.xlu1 %4952 }
0x10f0   :  { %v10800_v20 = vpop.eup %7160  ;;  %v5029_v27 = vmul.f32 1.442695, %v4989_v53 }
0x10f1   :  { %v5092_v40 = vsel %vm12486_vm11, %v10800_v20, 0.0  ;;  %v10809_v15 = vpop.eup %7162  ;;  %vm12496_vm11 = vmmov %vm12439_vm0 }
0x10f2   :  { %7166 = vpow2.f32 %v5029_v27  ;;  %5099 = vadd.xlane.f32.xlu0 %v5098_v6  ;;  %5096 = vadd.xlane.f32.xlu2 %v5095_v47  ;;  %v10811_v60 = vpop.eup %7164  ;;  %v5104_v5 = vsel %vm12439_vm0, %v10809_v15, 0.0 }
0x10f3   :  { %5093 = vadd.xlane.f32.xlu1 %v5092_v40  ;;  %7168 = vpow2.f32 %v5037_v43  ;;  %v5107_v44 = vsel %vm12487_vm10, %v10811_v60, 0.0  ;;  %vm12497_vm10 = vmmov %vm12439_vm0 }
0x10f4   :  { %7170 = vpow2.f32 %v5039_v30 }
0x10f5   :  { %v4920_v4 = vpop.xlane.xlu2 %4919 }
0x10f6   :  { %v4992_v9 = vsub.f32 %v10670_v54, %v4920_v4  ;;  %v4941_v54 = vpop.xlane.xlu0 %4940  ;;  %v4962_v10 = vpop.xlane.xlu1 %4961 }
0x10f7   :  { %v4999_v48 = vsub.f32 %v10466_v51, %v4941_v54  ;;  %v5006_v6 = vsub.f32 %v10655_v26, %v4962_v10 }
0x10f8   :  { %v10815_v14 = vpop.eup %7166  ;;  %v5035_v61 = vmul.f32 1.442695, %v4992_v9 }
0x10f9   :  { %v5101_v24 = vsel %vm12488_vm5, %v10815_v14, 0.0  ;;  %v10825_v25 = vpop.eup %7168  ;;  %v5063_v51 = vmul.f32 1.442695, %v5006_v6  ;;  %vm12498_vm5 = vmmov %vm12439_vm0 }
0x10fa   :  { %7172 = vpow2.f32 %v5035_v61  ;;  %5108 = vadd.xlane.f32.xlu0 %v5107_v44  ;;  %5105 = vadd.xlane.f32.xlu2 %v5104_v5  ;;  %v10827_v53 = vpop.eup %7170  ;;  %v5113_v16 = vsel %vm12490_vm14, %v10825_v25, 0.0  ;;  %v5003_v44 = vsub.f32 %v10628_v0, %v4953_v63  ;;  %vm12500_vm14 = vmmov %vm12439_vm0 }
0x10fb   :  { %5102 = vadd.xlane.f32.xlu1 %v5101_v24  ;;  %7174 = vpow2.f32 %v5043_v41  ;;  %v5116_v40 = vsel %vm12489_vm13, %v10827_v53, 0.0  ;;  %vm12499_vm13 = vmmov %vm12439_vm0 }
0x10fc   :  { %7176 = vpow2.f32 %v5045_v12  ;;  %v5057_v1 = vmul.f32 1.442695, %v5003_v44 }
0x10fd   :  { %v4929_v33 = vpop.xlane.xlu2 %4928 }
0x10fe   :  { %v4995_v32 = vsub.f32 %v10690_v38, %v4929_v33  ;;  %v5049_v38 = vmul.f32 1.442695, %v4999_v48  ;;  %v4950_v6 = vpop.xlane.xlu0 %4949 }
0x1100   :  { %v10831_v27 = vpop.eup %7172  ;;  %v5041_v47 = vmul.f32 1.442695, %v4995_v32 }
0x1101   :  { %v5110_v43 = vsel %vm12491_vm9, %v10831_v27, 0.0  ;;  %v10840_v30 = vpop.eup %7174  ;;  %vm12501_vm9 = vmmov %vm12439_vm0 }
0x1102   :  { %7178 = vpow2.f32 %v5041_v47  ;;  %5117 = vadd.xlane.f32.xlu0 %v5116_v40  ;;  %5114 = vadd.xlane.f32.xlu2 %v5113_v16  ;;  %v10842_v26 = vpop.eup %7176  ;;  %v5122_v24 = vsel %vm12493_vm4, %v10840_v30, 0.0  ;;  %vm12504_vm4 = vmmov %vm12439_vm0 }
0x1103   :  { %5111 = vadd.xlane.f32.xlu1 %v5110_v43  ;;  %7180 = vpow2.f32 %v5049_v38  ;;  %v5125_v5 = vsel %vm12492_vm1, %v10842_v26, 0.0  ;;  %vm12502_vm1 = vmmov %vm12439_vm0 }
0x1104   :  { %7182 = vpow2.f32 %v5063_v51 }
0x1105   :  { %v4938_v4 = vpop.xlane.xlu2 %4937 }
0x1106   :  { %v4998_v9 = vsub.f32 %v10708_v11, %v4938_v4  ;;  %v5051_v11 = vmul.f32 1.442695, %v5000_v42  ;;  %v10878_v4 = vpop.xlane.xlu1 %4970  ;;  %v4959_v44 = vpop.xlane.xlu0 %4958 }
0x1108   :  { %v10845_v2 = vpop.eup %7178  ;;  %v5047_v61 = vmul.f32 1.442695, %v4998_v9 }
0x1109   :  { %v5119_v41 = vsel %vm12494_vm12, %v10845_v2, 0.0  ;;  %v10856_v54 = vpop.eup %7180 }
0x110a   :  { %7184 = vpow2.f32 %v5047_v61  ;;  %5126 = vadd.xlane.f32.xlu0 %v5125_v5  ;;  %5123 = vadd.xlane.f32.xlu2 %v5122_v24  ;;  %v10858_v12 = vpop.eup %7182  ;;  %v5131_v33 = vsel %vm12496_vm11, %v10856_v54, 0.0 }
0x110b   :  { %5120 = vadd.xlane.f32.xlu1 %v5119_v41  ;;  %7186 = vpow2.f32 %v5051_v11  ;;  %v5152_v10 = vsel %vm12495_vm2, %v10858_v12, 0.0  ;;  %vm12505_vm2 = vmmov %vm12439_vm0 }
0x110c   :  { %7188 = vpow2.f32 %v5057_v1 }
0x110d   :  { %v4947_v21 = vpop.xlane.xlu2 %4946 }
0x110e   :  { %v5001_v63 = vsub.f32 %v10722_v28, %v4947_v21  ;;  %v5002_v28 = vsub.f32 %v10501_v29, %v4950_v6  ;;  %v5005_v21 = vsub.f32 %v10591_v62, %v4959_v44 }
0x1110   :  { %v10860_v0 = vpop.eup %7184  ;;  %v5053_v48 = vmul.f32 1.442695, %v5001_v63  ;;  %v5055_v51 = vmul.f32 1.442695, %v5002_v28  ;;  %v4980_v24 = vpop.xlane.xlu1 %4979 }
0x1111   :  { %v5128_v32 = vsel %vm12497_vm10, %v10860_v0, 0.0  ;;  %v10869_v40 = vpop.eup %7186  ;;  %v5012_v63 = vsub.f32 %v10731_v23, %v4980_v24 }
0x1112   :  { %5153 = vadd.xlane.f32.xlu0 %v5152_v10  ;;  %5132 = vadd.xlane.f32.xlu2 %v5131_v33  ;;  %v10871_v16 = vpop.eup %7188  ;;  %7190 = vpow2.f32 %v5053_v48  ;;  %v5134_v43 = vsel %vm12439_vm0, %v10869_v40, 0.0  ;;  %v5061_v33 = vmul.f32 1.442695, %v5005_v21 }
0x1113   :  { %5129 = vadd.xlane.f32.xlu1 %v5128_v32  ;;  %v5143_v38 = vsel %vm12498_vm5, %v10871_v16, 0.0  ;;  %7192 = vpow2.f32 %v5055_v51  ;;  %v5075_v32 = vmul.f32 1.442695, %v5012_v63  ;;  %v4968_v51 = vpop.xlane.xlu0 %4967  ;;  %vm12506_vm5 = vmmov %vm12502_vm1 }
0x1115   :  { %v4956_v47 = vpop.xlane.xlu2 %4955 }
0x1116   :  { %v5004_v61 = vsub.f32 %v10740_v46, %v4956_v47 }
0x1118   :  { %v10880_v42 = vpop.eup %7190  ;;  %v5059_v5 = vmul.f32 1.442695, %v5004_v61  ;;  %v5085_v44 = vpop.xlane.xlu1 %5084 }
0x1119   :  { %v5137_v29 = vsel %vm12499_vm13, %v10880_v42, 0.0  ;;  %v10885_v11 = vpop.eup %7192  ;;  %vm12507_vm13 = vmmov %vm12502_vm1 }
0x111a   :  { %5135 = vadd.xlane.f32.xlu2 %v5134_v43  ;;  %7194 = vpow2.f32 %v5059_v5  ;;  %v5140_v46 = vsel %vm12500_vm14, %v10885_v11, 0.0  ;;  %vm12508_vm14 = vmmov %vm12502_vm1 }
0x111b   :  { %5144 = vadd.xlane.f32.xlu1 %v5143_v38 }
0x111d   :  { %v4965_v9 = vpop.xlane.xlu2 %4964 }
0x111e   :  { %v5007_v62 = vsub.f32 %v10754_v55, %v4965_v9  ;;  %v5008_v55 = vsub.f32 %v10642_v13, %v4968_v51 }
0x1120   :  { %v10892_v6 = vpop.eup %7194  ;;  %v5065_v43 = vmul.f32 1.442695, %v5007_v62 }
0x1121   :  { %v5146_v23 = vsel %vm12501_vm9, %v10892_v6, 0.0 }
0x1122   :  { %5138 = vadd.xlane.f32.xlu2 %v5137_v29 }
0x1125   :  { %v4974_v41 = vpop.xlane.xlu2 %4973 }
0x1126   :  { %v5010_v1 = vsub.f32 %v10761_v59, %v4974_v41 }
0x1128   :  { %v5071_v10 = vmul.f32 1.442695, %v5010_v1 }
0x112a   :  { %7196 = vpow2.f32 %v5071_v10  ;;  %5141 = vadd.xlane.f32.xlu2 %v5140_v46  ;;  %v4266_v10 = vpop.f32.mrf.mxu2  ;;  %v5067_v46 = vmul.f32 1.442695, %v5008_v55  ;;  %v4977_v55 = vpop.xlane.xlu0 %4976 }
0x112d   :  { %v5079_v48 = vpop.xlane.xlu2 %5078 }
0x112e   :  { %7198 = vrcp.f32 %v5079_v48  ;;  %v5184_v9 = vand.u32 2147483648, %v5079_v48  ;;  %v5182_v1 = vand.u32 2147483647, %v5079_v48  ;;  %vm5178_vm11 = vweird.f32 %v5079_v48 }
0x112f   :  { %7200 = vpow2.f32 %v5061_v33 }
0x1130   :  { %v10894_v47 = vpop.eup %7196  ;;  %7202 = vpow2.f32 %v5075_v32  ;;  %v5185_v13 = vor.u32 1.1754944e-38, %v5184_v9  ;;  %vm5183_vm0 = vcmp.eq.f32.partialorder %v5182_v1, 8.507059e+37 }
0x1131   :  { %v5164_v59 = vsel %vm12502_vm1, %v10894_v47, 0.0  ;;  %7204 = vpow2.f32 %v5065_v43  ;;  %vm5208_vm1 = vweird.f32 %v5085_v44 }
0x1132   :  { %5147 = vadd.xlane.f32.xlu2 %v5146_v23  ;;  %5165 = vadd.xlane.f32.xlu1 %v5164_v59  ;;  %7206 = vrcp.f32 %v5085_v44  ;;  %v10913_v23 = vadd.f32 %v4266_v10, %v10214_v37  ;;  %v5212_v10 = vand.u32 2147483647, %v5085_v44 }
0x1133   :  { %7208 = vpow2.f32 %v5067_v46 }
0x1134   :  { %v7199_v28 = vpop.eup %7198 }
0x1135   :  { %v10901_v38 = vpop.eup %7200  ;;  %v5174_v61 = vmul.f32 %v7199_v28, %v5079_v48  ;;  %vm5179_vm12 = vweird.f32 %v7199_v28  ;;  %v5009_v48 = vsub.f32 %v10675_v58, %v10878_v4 }
0x1136   :  { %v10903_v29 = vpop.eup %7202  ;;  %v5149_v24 = vsel %vm12504_vm4, %v10901_v38, 0.0  ;;  %vm5180_vm10 = vmor %vm5178_vm11, %vm5179_vm12 }
0x1137   :  { %12503 = vst [vmem:[#allocation6_spill] sm:$0xff] %v10903_v29  ;;  %v5175_v5 = vsub.f32 1.0, %v5174_v61  ;;  %v5170_v21 = vsel %vm12505_vm2, %v10903_v29, 0.0  ;;  %v10910_v32 = vpop.eup %7204  ;;  %v5069_v37 = vmul.f32 1.442695, %v5009_v48  ;;  %vm12509_vm4 = vmmov %vm12505_vm2  ;;  %vm5213_vm2 = vcmp.eq.f32.partialorder %v5212_v10, 8.507059e+37 }
0x1138   :  { %v7207_v43 = vpop.eup %7206  ;;  %v5155_v51 = vsel %vm12506_vm5, %v10910_v32, 0.0  ;;  %vm12510_vm11 = vmmov %vm12509_vm4 }
0x1139   :  { %v5176_v41 = vmul.f32 %v7199_v28, %v5175_v5  ;;  %v5204_v61 = vmul.f32 %v7207_v43, %v5085_v44  ;;  %7210 = vpow2.f32 %v5069_v37  ;;  %vm5209_vm9 = vweird.f32 %v7207_v43 }
0x113a   :  { %5150 = vadd.xlane.f32.xlu2 %v5149_v24  ;;  %5171 = vadd.xlane.f32.xlu1 %v5170_v21  ;;  %v5011_v24 = vsub.f32 %v10699_v19, %v4977_v55  ;;  %vm5210_vm12 = vmor %vm5208_vm1, %vm5209_vm9 }
0x113b   :  { %v5177_v63 = vadd.f32 %v7199_v28, %v5176_v41  ;;  %v5205_v9 = vsub.f32 1.0, %v5204_v61  ;;  %vm12512_vm9 = vmmov %vm12509_vm4 }
0x113c   :  { %v5073_v41 = vmul.f32 1.442695, %v5011_v24  ;;  %vm12513_vm1 = vmmov %vm12509_vm4 }
0x113d   :  { %v5181_v33 = vsel %vm5180_vm10, %v7199_v28, %v5177_v63  ;;  %v5206_v4 = vmul.f32 %v7207_v43, %v5205_v9  ;;  %v5214_v63 = vand.u32 2147483648, %v5085_v44  ;;  %vm12511_vm10 = vmmov %vm12509_vm4 }
0x113e   :  { %v5186_v62 = vsel %vm5183_vm0, %v5185_v13, %v5181_v33  ;;  %7212 = vpow2.f32 %v5073_v41 }
0x113f   :  { %v10916_v59 = vmul.f32 %v10766_v39, %v5186_v62  ;;  %v10925_v39 = vpop.eup %7208  ;;  %v5207_v21 = vadd.f32 %v7207_v43, %v5206_v4  ;;  %v5215_v13 = vor.u32 1.1754944e-38, %v5214_v63 }
0x1140   :  { %v5158_v58 = vsel %vm12508_vm14, %v10925_v39, 0.0  ;;  %v10930_v1 = vpop.eup %7210 }
0x1141   :  { %v5653_v28 = vmul.f32 %v10916_v59, %v10913_v23  ;;  %v5161_v46 = vsel %vm12509_vm4, %v10930_v1, 0.0  ;;  %v5211_v19 = vsel %vm5210_vm12, %v7207_v43, %v5207_v21  ;;  %vm12514_vm12 = vmmov %vm12513_vm1 }
0x1142   :  { %5156 = vadd.xlane.f32.xlu2 %v5155_v51  ;;  %v5216_v48 = vsel %vm5213_vm2, %v5215_v13, %v5211_v19 }
0x1143   :  { %v5685_v5 = vsel %vm12507_vm13, %v5653_v28, 0.0  ;;  %v10939_v28 = vmul.f32 %v10742_v31, %v5216_v48 }
0x1144   :  { %5686 = vadd.xlane.f32.xlu1 %v5685_v5  ;;  %v10934_v62 = vpop.eup %7212 }
0x1145   :  { %v5167_v51 = vsel %vm12510_vm11, %v10934_v62, 0.0  ;;  %v5655_v43 = vmul.f32 %v10939_v28, %v10913_v23 }
0x1147   :  { %v5691_v24 = vsel %vm12511_vm10, %v5655_v43, 0.0 }
0x114a   :  { %5159 = vadd.xlane.f32.xlu2 %v5158_v58 }
0x1152   :  { %5162 = vadd.xlane.f32.xlu2 %v5161_v46  ;;  %v4269_v46 = vpop.f32.mrf.mxu2 }
0x1155   :  { %v5082_v33 = vpop.xlane.xlu0 %5081 }
0x1156   :  { %7214 = vrcp.f32 %v5082_v33  ;;  %v5199_v4 = vand.u32 2147483648, %v5082_v33  ;;  %vm5193_vm5 = vweird.f32 %v5082_v33  ;;  %v5197_v21 = vand.u32 2147483647, %v5082_v33 }
0x1158   :  { %v5200_v19 = vor.u32 1.1754944e-38, %v5199_v4  ;;  %vm5198_vm14 = vcmp.eq.f32.partialorder %v5197_v21, 8.507059e+37 }
0x115a   :  { %5168 = vadd.xlane.f32.xlu2 %v5167_v51  ;;  %v10956_v51 = vadd.f32 %v4269_v46, %v10187_v18 }
0x115c   :  { %v7215_v44 = vpop.eup %7214  ;;  %v5781_v46 = vmul.f32 %v10916_v59, %v10956_v51 }
0x115d   :  { %v5189_v61 = vmul.f32 %v7215_v44, %v5082_v33  ;;  %v10941_v5 = vpop.xlane.xlu0 %5090  ;;  %v10943_v37 = vpop.xlane.xlu2 %5087  ;;  %vm5194_vm0 = vweird.f32 %v7215_v44 }
0x115e   :  { %vm5195_vm13 = vmor %vm5193_vm5, %vm5194_vm0 }
0x115f   :  { %v5190_v55 = vsub.f32 1.0, %v5189_v61 }
0x1161   :  { %v5191_v9 = vmul.f32 %v7215_v44, %v5190_v55 }
0x1162   :  { %5692 = vadd.xlane.f32.xlu2 %v5691_v24 }
0x1163   :  { %v5192_v58 = vadd.f32 %v7215_v44, %v5191_v9 }
0x1165   :  { %v10948_v31 = vpop.xlane.xlu0 %5099  ;;  %v10950_v41 = vpop.xlane.xlu2 %5096  ;;  %v5196_v10 = vsel %vm5195_vm13, %v7215_v44, %v5192_v58 }
0x1166   :  { %7216 = vrcp.f32 %v10948_v31  ;;  %v5094_v63 = vpop.xlane.xlu1 %5093  ;;  %v5201_v13 = vsel %vm5198_vm14, %v5200_v19, %v5196_v10  ;;  %vm5283_vm0 = vweird.f32 %v10948_v31  ;;  %vm12517_vm14 = vmmov %vm12513_vm1 }
0x1167   :  { %7218 = vrcp.f32 %v5094_v63  ;;  %v5202_v61 = vmul.f32 %v10776_v3, %v5201_v13  ;;  %vm5253_vm2 = vweird.f32 %v5094_v63 }
0x1168   :  { %7220 = vrcp.f32 %v10943_v37 }
0x1169   :  { %v5782_v9 = vmul.f32 %v5202_v61, %v10956_v51  ;;  %v5654_v44 = vmul.f32 %v5202_v61, %v10913_v23  ;;  %7222 = vrcp.f32 %v10950_v41 }
0x116b   :  { %v5816_v58 = vsel %vm12512_vm9, %v5782_v9, 0.0  ;;  %v5688_v18 = vsel %vm12513_vm1, %v5654_v44, 0.0  ;;  %v5259_v44 = vand.u32 2147483648, %v5094_v63 }
0x116c   :  { %v10953_v48 = vpop.eup %7216  ;;  %5817 = vadd.xlane.f32.xlu0 %v5816_v58  ;;  %5689 = vadd.xlane.f32.xlu1 %v5688_v18  ;;  %v5257_v18 = vand.u32 2147483647, %v5094_v63 }
0x116d   :  { %v7219_v43 = vpop.eup %7218  ;;  %v10960_v33 = vpop.xlane.xlu2 %5105  ;;  %v5279_v24 = vmul.f32 %v10953_v48, %v10948_v31  ;;  %vm5284_vm11 = vweird.f32 %v10953_v48 }
0x116e   :  { %v5249_v55 = vmul.f32 %v7219_v43, %v5094_v63  ;;  %v10969_v3 = vpop.eup %7220  ;;  %v10977_v61 = vpop.xlane.xlu1 %5102  ;;  %vm5254_vm4 = vweird.f32 %v7219_v43  ;;  %vm5258_vm5 = vcmp.eq.f32.partialorder %v5257_v18, 8.507059e+37  ;;  %v5287_v63 = vand.u32 2147483647, %v10948_v31  ;;  %vm10995_vm13 = vmor %vm5283_vm0, %vm5284_vm11 }
0x116f   :  { %v5280_v21 = vsub.f32 1.0, %v5279_v24  ;;  %v5219_v19 = vmul.f32 %v10969_v3, %v10943_v37  ;;  %v10975_v13 = vpop.eup %7222  ;;  %v5813_v24 = vsel %vm12514_vm12, %v5781_v46, 0.0  ;;  %7224 = vrcp.f32 %v10977_v61  ;;  %vm5255_vm10 = vmor %vm5253_vm2, %vm5254_vm4 }
0x1170   :  { %v5250_v4 = vsub.f32 1.0, %v5249_v55  ;;  %v5264_v59 = vmul.f32 %v10975_v13, %v10950_v41  ;;  %7226 = vrcp.f32 %v10960_v33  ;;  %v5289_v46 = vand.u32 2147483648, %v10948_v31  ;;  %vm12518_vm4 = vmmov %vm12514_vm12 }
0x1171   :  { %v5281_v9 = vmul.f32 %v10953_v48, %v5280_v21  ;;  %v5260_v21 = vor.u32 1.1754944e-38, %v5259_v44  ;;  %v10999_v44 = vpop.xlane.xlu0 %5108  ;;  %7228 = vrcp.f32 %v10941_v5  ;;  %v5229_v18 = vand.u32 2147483648, %v10943_v37  ;;  %vm12519_vm12 = vmmov %vm12518_vm4 }
0x1172   :  { %v5251_v10 = vmul.f32 %v7219_v43, %v5250_v4  ;;  %v5220_v4 = vsub.f32 1.0, %v5219_v19  ;;  %v5265_v56 = vsub.f32 1.0, %v5264_v59  ;;  %vm5224_vm9 = vweird.f32 %v10969_v3 }
0x1173   :  { %v5282_v57 = vadd.f32 %v10953_v48, %v5281_v9  ;;  %vm5288_vm1 = vcmp.eq.f32.partialorder %v5287_v63, 8.507059e+37  ;;  %v5227_v9 = vand.u32 2147483647, %v10943_v37  ;;  %7230 = vrcp.f32 %v10999_v44 }
0x1174   :  { %v5252_v58 = vadd.f32 %v7219_v43, %v5251_v10  ;;  %5814 = vadd.xlane.f32.xlu1 %v5813_v24  ;;  %v5783_v10 = vmul.f32 %v10939_v28, %v10956_v51  ;;  %v5221_v24 = vmul.f32 %v10969_v3, %v5220_v4  ;;  %v5290_v4 = vor.u32 1.1754944e-38, %v5289_v46 }
0x1175   :  { %v10979_v55 = vpop.xlane.xlu2 %5114  ;;  %v11002_v49 = vpop.eup %7224  ;;  %v5286_v31 = vsel %vm10995_vm13, %v10953_v48, %v5282_v57  ;;  %vm5223_vm2 = vweird.f32 %v10943_v37  ;;  %vm5268_vm0 = vweird.f32 %v10950_v41 }
0x1176   :  { %v5256_v19 = vsel %vm5255_vm10, %v7219_v43, %v5252_v58  ;;  %v5819_v43 = vsel %vm12517_vm14, %v5783_v10, 0.0  ;;  %v11009_v58 = vpop.eup %7226  ;;  %v5266_v10 = vmul.f32 %v10975_v13, %v5265_v56  ;;  %v5294_v57 = vmul.f32 %v11002_v49, %v10977_v61  ;;  %vm11033_vm11 = vmor %vm5223_vm2, %vm5224_vm9 }
0x1177   :  { %v5261_v50 = vsel %vm5258_vm5, %v5260_v21, %v5256_v19  ;;  %v5291_v19 = vsel %vm5288_vm1, %v5290_v4, %v5286_v31  ;;  %v5274_v56 = vand.u32 2147483648, %v10950_v41  ;;  %v11029_v63 = vpop.eup %7228  ;;  %vm5269_vm10 = vweird.f32 %v10975_v13  ;;  %v11040_v4 = vpop.xlane.xlu1 %5111  ;;  %vm12522_vm9 = vmmov %vm12518_vm4 }
0x1178   :  { %v5262_v28 = vmul.f32 %v10800_v20, %v5261_v50  ;;  %v5222_v20 = vadd.f32 %v10969_v3, %v5221_v24  ;;  %v5309_v24 = vmul.f32 %v11009_v58, %v10960_v33  ;;  %v5272_v31 = vand.u32 2147483647, %v10950_v41  ;;  %vm5270_vm13 = vmor %vm5268_vm0, %vm5269_vm10 }
0x1179   :  { %v11043_v37 = vmul.f32 %v10796_v36, %v5291_v19  ;;  %vm5228_vm5 = vcmp.eq.f32.partialorder %v5227_v9, 8.507059e+37  ;;  %v5234_v17 = vmul.f32 %v11029_v63, %v10941_v5  ;;  %v5275_v35 = vor.u32 1.1754944e-38, %v5274_v56  ;;  %v11053_v36 = vpop.xlane.xlu0 %5117  ;;  %vm12523_vm1 = vmmov %vm12518_vm4 }
0x117a   :  { %v5658_v59 = vmul.f32 %v5262_v28, %v10913_v23  ;;  %v5786_v21 = vmul.f32 %v5262_v28, %v10956_v51  ;;  %7232 = vrcp.f32 %v11040_v4  ;;  %vm5273_vm14 = vcmp.eq.f32.partialorder %v5272_v31, 8.507059e+37  ;;  %vm12524_vm2 = vmmov %vm12523_vm1 }
0x117b   :  { %7234 = vrcp.f32 %v11053_v36  ;;  %vm5313_vm0 = vweird.f32 %v10960_v33 }
0x117c   :  { %5820 = vadd.xlane.f32.xlu1 %v5819_v43  ;;  %v5700_v48 = vsel %vm12518_vm4, %v5658_v59, 0.0  ;;  %v5828_v46 = vsel %vm12519_vm12, %v5786_v21, 0.0  ;;  %v5267_v43 = vadd.f32 %v10975_v13, %v5266_v10  ;;  %v5230_v59 = vor.u32 1.1754944e-38, %v5229_v18 }
0x117d   :  { %v11014_v50 = vpop.xlane.xlu2 %5123  ;;  %5701 = vadd.xlane.f32.xlu0 %v5700_v48  ;;  %5829 = vadd.xlane.f32.xlu2 %v5828_v46  ;;  %v5295_v21 = vsub.f32 1.0, %v5294_v57  ;;  %v5226_v48 = vsel %vm11033_vm11, %v10969_v3, %v5222_v20  ;;  %v5310_v46 = vsub.f32 1.0, %v5309_v24  ;;  %v5660_v10 = vmul.f32 %v11043_v37, %v10913_v23  ;;  %v11056_v57 = vpop.eup %7230 }
0x117e   :  { %v5231_v18 = vsel %vm5228_vm5, %v5230_v59, %v5226_v48  ;;  %v5271_v41 = vsel %vm5270_vm13, %v10975_v13, %v5267_v43  ;;  %v5324_v13 = vmul.f32 %v11056_v57, %v10999_v44  ;;  %v5302_v43 = vand.u32 2147483647, %v10977_v61 }
0x117f   :  { %v5232_v3 = vmul.f32 %v10785_v8, %v5231_v18  ;;  %v5296_v20 = vmul.f32 %v11002_v49, %v5295_v21  ;;  %v5706_v19 = vsel %vm12522_vm9, %v5660_v10, 0.0  ;;  %v5276_v9 = vsel %vm5273_vm14, %v5275_v35, %v5271_v41  ;;  %vm12525_vm9 = vmmov %vm12523_vm1 }
0x1180   :  { %v5311_v56 = vmul.f32 %v11009_v58, %v5310_v46  ;;  %v11068_v59 = vmul.f32 %v10794_v34, %v5276_v9  ;;  %v5235_v8 = vsub.f32 1.0, %v5234_v17  ;;  %v5304_v35 = vand.u32 2147483648, %v10977_v61  ;;  %v11077_v48 = vpop.eup %7232 }
0x1181   :  { %v5656_v28 = vmul.f32 %v5232_v3, %v10913_v23  ;;  %v5297_v46 = vadd.f32 %v11002_v49, %v5296_v20  ;;  %vm5299_vm4 = vweird.f32 %v11002_v49  ;;  %v5319_v17 = vand.u32 2147483648, %v10960_v33  ;;  %v11088_v20 = vpop.eup %7234 }
0x1182   :  { %v5787_v21 = vmul.f32 %v11068_v59, %v10956_v51  ;;  %7236 = vrcp.f32 %v10979_v55  ;;  %v5312_v34 = vadd.f32 %v11009_v58, %v5311_v56  ;;  %vm5314_vm12 = vweird.f32 %v11009_v58 }
0x1183   :  { %v5694_v31 = vsel %vm12523_vm1, %v5656_v28, 0.0  ;;  %v5317_v10 = vand.u32 2147483647, %v10960_v33  ;;  %v5325_v41 = vsub.f32 1.0, %v5324_v13  ;;  %vm5298_vm11 = vweird.f32 %v10977_v61  ;;  %vm5315_vm5 = vmor %vm5313_vm0, %vm5314_vm12 }
0x1184   :  { %5695 = vadd.xlane.f32.xlu1 %v5694_v31  ;;  %v5831_v18 = vsel %vm12524_vm2, %v5787_v21, 0.0  ;;  %vm5300_vm10 = vmor %vm5298_vm11, %vm5299_vm4  ;;  %v5305_v9 = vor.u32 1.1754944e-38, %v5304_v35  ;;  %v5339_v56 = vmul.f32 %v11077_v48, %v11040_v4  ;;  %v5320_v28 = vor.u32 1.1754944e-38, %v5319_v17  ;;  %v11094_v31 = vpop.xlane.xlu1 %5120 }
0x1185   :  { %v11062_v24 = vpop.xlane.xlu2 %5132  ;;  %5707 = vadd.xlane.f32.xlu2 %v5706_v19  ;;  %5832 = vadd.xlane.f32.xlu0 %v5831_v18  ;;  %v5236_v19 = vmul.f32 %v11029_v63, %v5235_v8  ;;  %v5784_v13 = vmul.f32 %v5232_v3, %v10956_v51  ;;  %v5301_v61 = vsel %vm5300_vm10, %v11002_v49, %v5297_v46  ;;  %vm5303_vm13 = vcmp.eq.f32.partialorder %v5302_v43, 8.507059e+37  ;;  %vm12528_vm0 = vmmov %vm12524_vm2 }
0x1186   :  { %v5244_v21 = vand.u32 2147483648, %v10941_v5  ;;  %v5306_v18 = vsel %vm5303_vm13, %v5305_v9, %v5301_v61  ;;  %v5316_v8 = vsel %vm5315_vm5, %v11009_v58, %v5312_v34  ;;  %vm5318_vm14 = vcmp.eq.f32.partialorder %v5317_v10, 8.507059e+37 }
0x1187   :  { %v5326_v33 = vmul.f32 %v11056_v57, %v5325_v41  ;;  %v5369_v17 = vmul.f32 %v11088_v20, %v11053_v36  ;;  %v11106_v7 = vmul.f32 %v10815_v14, %v5306_v18  ;;  %v5321_v3 = vsel %vm5318_vm14, %v5320_v28, %v5316_v8  ;;  %v11132_v18 = vpop.xlane.xlu0 %5126 }
0x1188   :  { %v11100_v35 = vpop.eup %7236  ;;  %v5340_v49 = vsub.f32 1.0, %v5339_v56  ;;  %7238 = vrcp.f32 %v11094_v31  ;;  %v5822_v43 = vsel %vm12525_vm9, %v5784_v13, 0.0  ;;  %v5322_v58 = vmul.f32 %v10809_v15, %v5321_v3 }
0x1189   :  { %v5237_v46 = vadd.f32 %v11029_v63, %v5236_v19  ;;  %vm5239_vm1 = vweird.f32 %v11029_v63  ;;  %v5334_v34 = vand.u32 2147483648, %v10999_v44  ;;  %v5661_v14 = vmul.f32 %v11106_v7, %v10913_v23 }
0x118a   :  { %vm5238_vm4 = vweird.f32 %v10941_v5  ;;  %v5242_v10 = vand.u32 2147483647, %v10941_v5  ;;  %v5354_v41 = vmul.f32 %v11100_v35, %v10979_v55  ;;  %v5327_v9 = vadd.f32 %v11056_v57, %v5326_v33 }
0x118b   :  { %vm5329_vm12 = vweird.f32 %v11056_v57  ;;  %v5709_v15 = vsel %vm12524_vm2, %v5661_v14, 0.0  ;;  %v5662_v19 = vmul.f32 %v5322_v58, %v10913_v23  ;;  %vm11126_vm11 = vmor %vm5238_vm4, %vm5239_vm1  ;;  %v5245_v28 = vor.u32 1.1754944e-38, %v5244_v21 }
0x118c   :  { %5823 = vadd.xlane.f32.xlu1 %v5822_v43  ;;  %v5332_v13 = vand.u32 2147483647, %v10999_v44  ;;  %v5370_v61 = vsub.f32 1.0, %v5369_v17  ;;  %v5341_v5 = vmul.f32 %v11077_v48, %v5340_v49  ;;  %vm5328_vm10 = vweird.f32 %v10999_v44  ;;  %vm12533_vm2 = vmmov %vm12528_vm0 }
0x118d   :  { %v11108_v29 = vpop.xlane.xlu2 %5135  ;;  %5710 = vadd.xlane.f32.xlu0 %v5709_v15  ;;  %v5335_v8 = vor.u32 1.1754944e-38, %v5334_v34  ;;  %v5712_v33 = vsel %vm12528_vm0, %v5662_v19, 0.0  ;;  %v5241_v3 = vsel %vm11126_vm11, %v11029_v63, %v5237_v46  ;;  %vm11143_vm5 = vmor %vm5328_vm10, %vm5329_vm12  ;;  %vm5344_vm13 = vweird.f32 %v11077_v48 }
0x118e   :  { %v11139_v43 = vpop.eup %7238  ;;  %v5349_v17 = vand.u32 2147483648, %v11040_v4  ;;  %v5355_v44 = vsub.f32 1.0, %v5354_v41  ;;  %5713 = vadd.xlane.f32.xlu2 %v5712_v33  ;;  %vm5243_vm14 = vcmp.eq.f32.partialorder %v5242_v10, 8.507059e+37  ;;  %7240 = vrcp.f32 %v11132_v18  ;;  %vm12534_vm10 = vmmov %vm12528_vm0 }
0x118f   :  { %v5246_v49 = vsel %vm5243_vm14, %v5245_v28, %v5241_v3  ;;  %v5790_v63 = vmul.f32 %v5322_v58, %v10956_v51  ;;  %v5331_v46 = vsel %vm11143_vm5, %v11056_v57, %v5327_v9  ;;  %v5371_v34 = vmul.f32 %v11088_v20, %v5370_v61  ;;  %v11166_v9 = vpop.xlane.xlu1 %5129 }
0x1190   :  { %v5342_v14 = vadd.f32 %v11077_v48, %v5341_v5  ;;  %v5247_v15 = vmul.f32 %v10781_v45, %v5246_v49  ;;  %vm5333_vm9 = vcmp.eq.f32.partialorder %v5332_v13, 8.507059e+37  ;;  %v5347_v41 = vand.u32 2147483647, %v11040_v4 }
0x1191   :  { %v5384_v10 = vmul.f32 %v11139_v43, %v11094_v31  ;;  %7242 = vrcp.f32 %v11014_v50  ;;  %v5336_v19 = vsel %vm5333_vm9, %v5335_v8, %v5331_v46  ;;  %vm5373_vm1 = vweird.f32 %v11053_v36 }
0x1192   :  { %vm5343_vm4 = vweird.f32 %v11040_v4  ;;  %v5356_v57 = vmul.f32 %v11100_v35, %v5355_v44  ;;  %v5657_v45 = vmul.f32 %v5247_v15, %v10913_v23  ;;  %v5379_v56 = vand.u32 2147483648, %v11053_v36 }
0x1193   :  { %vm11172_vm12 = vmor %vm5343_vm4, %vm5344_vm13  ;;  %v5350_v13 = vor.u32 1.1754944e-38, %v5349_v17  ;;  %v5840_v61 = vsel %vm12533_vm2, %v5790_v63, 0.0  ;;  %v11178_v5 = vmul.f32 %v10811_v60, %v5336_v19  ;;  %v5372_v4 = vadd.f32 %v11088_v20, %v5371_v34 }
0x1194   :  { %vm5374_vm11 = vweird.f32 %v11088_v20  ;;  %v5697_v8 = vsel %vm12534_vm10, %v5657_v45, 0.0  ;;  %v5346_v33 = vsel %vm11172_vm12, %v11077_v48, %v5342_v14  ;;  %v11186_v3 = vpop.eup %7240  ;;  %v5385_v21 = vsub.f32 1.0, %v5384_v10  ;;  %vm12535_vm13 = vmmov %vm12533_vm2 }
0x1195   :  { %v11161_v58 = vpop.xlane.xlu2 %5138  ;;  %5841 = vadd.xlane.f32.xlu0 %v5840_v61  ;;  %7244 = vrcp.f32 %v11166_v9  ;;  %5698 = vadd.xlane.f32.xlu1 %v5697_v8  ;;  %v5663_v60 = vmul.f32 %v11178_v5, %v10913_v23  ;;  %vm5348_vm0 = vcmp.eq.f32.partialorder %v5347_v41, 8.507059e+37  ;;  %v5357_v17 = vadd.f32 %v11100_v35, %v5356_v57  ;;  %vm11204_vm14 = vmor %vm5373_vm1, %vm5374_vm11 }
0x1196   :  { %vm5359_vm5 = vweird.f32 %v11100_v35  ;;  %v5364_v44 = vand.u32 2147483648, %v10979_v55  ;;  %v5351_v49 = vsel %vm5348_vm0, %v5350_v13, %v5346_v33  ;;  %v5377_v48 = vand.u32 2147483647, %v11053_v36  ;;  %vm12540_vm1 = vmmov %vm12533_vm2 }
0x1197   :  { %v11194_v63 = vpop.eup %7242  ;;  %v5362_v46 = vand.u32 2147483647, %v10979_v55  ;;  %v5715_v34 = vsel %vm12535_vm13, %v5663_v60, 0.0  ;;  %v5352_v14 = vmul.f32 %v10831_v27, %v5351_v49  ;;  %vm5358_vm9 = vweird.f32 %v10979_v55  ;;  %vm12541_vm11 = vmmov %vm12540_vm1 }
0x1198   :  { %5716 = vadd.xlane.f32.xlu2 %v5715_v34  ;;  %v5785_v10 = vmul.f32 %v5247_v15, %v10956_v51  ;;  %vm11210_vm4 = vmor %vm5358_vm9, %vm5359_vm5  ;;  %v5414_v27 = vmul.f32 %v11186_v3, %v11132_v18  ;;  %v5386_v57 = vmul.f32 %v11139_v43, %v5385_v21  ;;  %v5376_v45 = vsel %vm11204_vm14, %v11088_v20, %v5372_v4 }
0x1199   :  { %v5664_v36 = vmul.f32 %v5352_v14, %v10913_v23  ;;  %v5380_v28 = vor.u32 1.1754944e-38, %v5379_v56  ;;  %v5365_v55 = vor.u32 1.1754944e-38, %v5364_v44  ;;  %v5399_v15 = vmul.f32 %v11194_v63, %v11014_v50  ;;  %vm12542_vm5 = vmmov %vm12540_vm1 }
0x119a   :  { %v5361_v13 = vsel %vm11210_vm4, %v11100_v35, %v5357_v17  ;;  %v5792_v33 = vmul.f32 %v5352_v14, %v10956_v51  ;;  %vm5378_vm12 = vcmp.eq.f32.partialorder %v5377_v48, 8.507059e+37  ;;  %vm5363_vm2 = vcmp.eq.f32.partialorder %v5362_v46, 8.507059e+37  ;;  %vm12545_vm14 = vmmov %vm12540_vm1 }
0x119b   :  { %v11226_v61 = vpop.eup %7244  ;;  %v5718_v8 = vsel %vm12540_vm1, %v5664_v36, 0.0  ;;  %7246 = vrcp.f32 %v11062_v24  ;;  %v5825_v20 = vsel %vm12541_vm11, %v5785_v10, 0.0  ;;  %v5381_v56 = vsel %vm5378_vm12, %v5380_v28, %v5376_v45  ;;  %vm12546_vm4 = vmmov %vm12540_vm1 }
0x119c   :  { %v5366_v4 = vsel %vm5363_vm2, %v5365_v55, %v5361_v13  ;;  %v5415_v60 = vsub.f32 1.0, %v5414_v27  ;;  %v5387_v35 = vadd.f32 %v11139_v43, %v5386_v57  ;;  %vm5389_vm10 = vweird.f32 %v11139_v43  ;;  %vm12547_vm2 = vmmov %vm12546_vm4 }
0x119d   :  { %v11230_v21 = vpop.xlane.xlu2 %5141  ;;  %5719 = vadd.xlane.f32.xlu0 %v5718_v8  ;;  %5826 = vadd.xlane.f32.xlu1 %v5825_v20  ;;  %v11237_v17 = vmul.f32 %v10825_v25, %v5366_v4  ;;  %vm5388_vm0 = vweird.f32 %v11094_v31  ;;  %v5394_v44 = vand.u32 2147483648, %v11094_v31  ;;  %v5429_v49 = vmul.f32 %v11226_v61, %v11166_v9 }
0x119e   :  { %v5392_v48 = vand.u32 2147483647, %v11094_v31  ;;  %v5846_v46 = vsel %vm12542_vm5, %v5792_v33, 0.0  ;;  %v11246_v34 = vmul.f32 %v10827_v53, %v5381_v56  ;;  %vm11250_vm13 = vmor %vm5388_vm0, %vm5389_vm10  ;;  %v5400_v41 = vsub.f32 1.0, %v5399_v15  ;;  %v4303_v15 = vpop.f32.mrf.mxu3 }
0x119f   :  { %v5793_v14 = vmul.f32 %v11237_v17, %v10956_v51  ;;  %7248 = vrcp.f32 %v11108_v29  ;;  %v5659_v10 = vmul.f32 %v11068_v59, %v10913_v23  ;;  %v5416_v31 = vmul.f32 %v11186_v3, %v5415_v60 }
0x11a0   :  { %5847 = vadd.xlane.f32.xlu2 %v5846_v46  ;;  %v5391_v53 = vsel %vm11250_vm13, %v11139_v43, %v5387_v35  ;;  %v5395_v27 = vor.u32 1.1754944e-38, %v5394_v44  ;;  %v5430_v57 = vsub.f32 1.0, %v5429_v49  ;;  %v5424_v36 = vand.u32 2147483648, %v11132_v18 }
0x11a1   :  { %v11261_v19 = vpop.eup %7246  ;;  %v5666_v45 = vmul.f32 %v11246_v34, %v10913_v23  ;;  %v5849_v28 = vsel %vm12545_vm14, %v5793_v14, 0.0  ;;  %vm5393_vm9 = vcmp.eq.f32.partialorder %v5392_v48, 8.507059e+37  ;;  %v5401_v59 = vmul.f32 %v11194_v63, %v5400_v41  ;;  %vm12552_vm14 = vmmov %vm12547_vm2 }
0x11a2   :  { %7250 = vrcp.f32 %v11161_v58  ;;  %v5703_v55 = vsel %vm12546_vm4, %v5659_v10, 0.0  ;;  %v5396_v43 = vsel %vm5393_vm9, %v5395_v27, %v5391_v53  ;;  %v5417_v13 = vadd.f32 %v11186_v3, %v5416_v31  ;;  %vm12553_vm4 = vmmov %vm12547_vm2 }
0x11a3   :  { %vm5419_vm1 = vweird.f32 %v11186_v3  ;;  %v5444_v8 = vmul.f32 %v11261_v19, %v11062_v24  ;;  %v5397_v20 = vmul.f32 %v10845_v2, %v5396_v43  ;;  %v5409_v4 = vand.u32 2147483648, %v11014_v50 }
0x11a4   :  { %v5431_v60 = vmul.f32 %v11226_v61, %v5430_v57  ;;  %vm5418_vm12 = vweird.f32 %v11132_v18  ;;  %v5422_v35 = vand.u32 2147483647, %v11132_v18  ;;  %v5724_v44 = vsel %vm12547_vm2, %v5666_v45, 0.0 }
0x11a5   :  { %5850 = vadd.xlane.f32.xlu0 %v5849_v28  ;;  %5704 = vadd.xlane.f32.xlu1 %v5703_v55  ;;  %v11274_v33 = vpop.xlane.xlu2 %5147  ;;  %v11277_v56 = vpop.eup %7248  ;;  %v5667_v49 = vmul.f32 %v5397_v20, %v10913_v23  ;;  %vm11285_vm11 = vmor %vm5418_vm12, %vm5419_vm1  ;;  %v5402_v2 = vadd.f32 %v11194_v63, %v5401_v59  ;;  %vm5404_vm10 = vweird.f32 %v11194_v63  ;;  %v5407_v46 = vand.u32 2147483647, %v11014_v50 }
0x11a6   :  { %v5788_v14 = vmul.f32 %v11043_v37, %v10956_v51  ;;  %v5425_v25 = vor.u32 1.1754944e-38, %v5424_v36  ;;  %v5445_v18 = vsub.f32 1.0, %v5444_v8  ;;  %v5459_v41 = vmul.f32 %v11277_v56, %v11108_v29 }
0x11a7   :  { %v5421_v10 = vsel %vm11285_vm11, %v11186_v3, %v5417_v13  ;;  %vm5403_vm0 = vweird.f32 %v11014_v50  ;;  %v5410_v53 = vor.u32 1.1754944e-38, %v5409_v4  ;;  %v5432_v27 = vadd.f32 %v11226_v61, %v5431_v60  ;;  %v11311_v3 = vpop.xlane.xlu1 %5144  ;;  %v4306_v4 = vpop.f32.mrf.mxu3 }
0x11a8   :  { %5725 = vadd.xlane.f32.xlu2 %v5724_v44  ;;  %v11299_v31 = vpop.eup %7250  ;;  %vm5434_vm5 = vweird.f32 %v11226_v61  ;;  %vm11304_vm13 = vmor %vm5403_vm0, %vm5404_vm10  ;;  %7252 = vrcp.f32 %v11230_v21  ;;  %v5795_v57 = vmul.f32 %v5397_v20, %v10956_v51  ;;  %v5727_v36 = vsel %vm12552_vm14, %v5667_v49, 0.0 }
0x11a9   :  { %vm5423_vm9 = vcmp.eq.f32.partialorder %v5422_v35, 8.507059e+37  ;;  %v5834_v50 = vsel %vm12553_vm4, %v5788_v14, 0.0  ;;  %v5406_v28 = vsel %vm11304_vm13, %v11194_v63, %v5402_v2  ;;  %vm5408_vm1 = vcmp.eq.f32.partialorder %v5407_v46, 8.507059e+37  ;;  %vm12559_vm4 = vmmov %vm12547_vm2 }
0x11aa   :  { %v5426_v45 = vsel %vm5423_vm9, %v5425_v25, %v5421_v10  ;;  %v5446_v59 = vmul.f32 %v11261_v19, %v5445_v18  ;;  %v5460_v55 = vsub.f32 1.0, %v5459_v41  ;;  %v5474_v43 = vmul.f32 %v11299_v31, %v11161_v58 }
0x11ab   :  { %v5411_v13 = vsel %vm5408_vm1, %v5410_v53, %v5406_v28  ;;  %vm5433_vm12 = vweird.f32 %v11166_v9  ;;  %v5439_v8 = vand.u32 2147483648, %v11166_v9  ;;  %v5437_v60 = vand.u32 2147483647, %v11166_v9 }
0x11ac   :  { %v11323_v20 = vmul.f32 %v10840_v30, %v5411_v13  ;;  %7254 = vrcp.f32 %v11311_v3  ;;  %v5855_v63 = vsel %vm12547_vm2, %v5795_v57, 0.0  ;;  %v5427_v44 = vmul.f32 %v10842_v26, %v5426_v45  ;;  %vm11336_vm11 = vmor %vm5433_vm12, %vm5434_vm5 }
0x11ad   :  { %5728 = vadd.xlane.f32.xlu0 %v5727_v36  ;;  %5835 = vadd.xlane.f32.xlu1 %v5834_v50  ;;  %v11328_v35 = vpop.xlane.xlu2 %5150  ;;  %v11332_v49 = vadd.f32 %v4303_v15, %v10203_v52  ;;  %vm5449_vm10 = vweird.f32 %v11261_v19  ;;  %v5789_v30 = vmul.f32 %v11106_v7, %v10956_v51  ;;  %v5447_v52 = vadd.f32 %v11261_v19, %v5446_v59  ;;  %vm12556_vm5 = vmmov %vm12547_vm2 }
0x11ae   :  { %v5796_v9 = vmul.f32 %v11323_v20, %v10956_v51  ;;  %v11345_v2 = vpop.eup %7252  ;;  %v5461_v26 = vmul.f32 %v11277_v56, %v5460_v55  ;;  %v5475_v15 = vsub.f32 1.0, %v5474_v43  ;;  %v5436_v46 = vsel %vm11336_vm11, %v11226_v61, %v5432_v27  ;;  %v11371_v27 = vpop.xlane.xlu0 %5153  ;;  %vm12560_vm12 = vmmov %vm12547_vm2 }
0x11af   :  { %v11353_v14 = vadd.f32 %v4306_v4, %v10216_v22  ;;  %v5440_v25 = vor.u32 1.1754944e-38, %v5439_v8  ;;  %vm5448_vm0 = vweird.f32 %v11062_v24  ;;  %v5454_v7 = vand.u32 2147483648, %v11062_v24 }
0x11b0   :  { %5856 = vadd.xlane.f32.xlu2 %v5855_v63  ;;  %v5452_v18 = vand.u32 2147483647, %v11062_v24  ;;  %v5669_v41 = vmul.f32 %v5427_v44, %v11332_v49  ;;  %v5858_v10 = vsel %vm12556_vm5, %v5796_v9, 0.0  ;;  %vm5438_vm13 = vcmp.eq.f32.partialorder %v5437_v60, 8.507059e+37  ;;  %vm11362_vm14 = vmor %vm5448_vm0, %vm5449_vm10 }
0x11b1   :  { %vm5464_vm9 = vweird.f32 %v11277_v56  ;;  %7256 = vrcp.f32 %v11274_v33  ;;  %v5837_v22 = vsel %vm12559_vm4, %v5789_v30, 0.0  ;;  %v5441_v61 = vsel %vm5438_vm13, %v5440_v25, %v5436_v46  ;;  %vm12563_vm5 = vmmov %vm12559_vm4 }
0x11b2   :  { %v11369_v24 = vpop.eup %7254  ;;  %v5462_v37 = vadd.f32 %v11277_v56, %v5461_v26  ;;  %v5476_v57 = vmul.f32 %v11299_v31, %v5475_v15  ;;  %v5489_v36 = vmul.f32 %v11345_v2, %v11230_v21  ;;  %v5451_v50 = vsel %vm11362_vm14, %v11261_v19, %v5447_v52 }
0x11b3   :  { %v5455_v45 = vor.u32 1.1754944e-38, %v5454_v7  ;;  %vm5463_vm1 = vweird.f32 %v11108_v29  ;;  %v5467_v28 = vand.u32 2147483647, %v11108_v29  ;;  %v5469_v59 = vand.u32 2147483648, %v11108_v29 }
0x11b4   :  { %v5733_v55 = vsel %vm12560_vm12, %v5669_v41, 0.0  ;;  %v11385_v43 = vmul.f32 %v10860_v0, %v5441_v61  ;;  %v5797_v13 = vmul.f32 %v5427_v44, %v11353_v14  ;;  %vm5453_vm2 = vcmp.eq.f32.partialorder %v5452_v18, 8.507059e+37  ;;  %vm11393_vm11 = vmor %vm5463_vm1, %vm5464_vm9  ;;  %v11423_v18 = vpop.xlane.xlu1 %5165 }
0x11b5   :  { %5859 = vadd.xlane.f32.xlu0 %v5858_v10  ;;  %5838 = vadd.xlane.f32.xlu1 %v5837_v22  ;;  %7258 = vrcp.f32 %v11371_v27  ;;  %v5504_v19 = vmul.f32 %v11369_v24, %v11311_v3  ;;  %v5791_v29 = vmul.f32 %v11178_v5, %v10956_v51  ;;  %v5456_v0 = vsel %vm5453_vm2, %v5455_v45, %v5451_v50  ;;  %v11401_v63 = vpop.xlane.xlu2 %5156  ;;  %vm12566_vm9 = vmmov %vm12559_vm4 }
0x11b6   :  { %v5477_v4 = vadd.f32 %v11299_v31, %v5476_v57  ;;  %vm5479_vm10 = vweird.f32 %v11299_v31  ;;  %v5490_v60 = vsub.f32 1.0, %v5489_v36  ;;  %v5466_v44 = vsel %vm11393_vm11, %v11277_v56, %v5462_v37  ;;  %vm12567_vm11 = vmmov %vm12559_vm4 }
0x11b7   :  { %v11406_v48 = vpop.eup %7256  ;;  %v5470_v30 = vor.u32 1.1754944e-38, %v5469_v59  ;;  %vm5478_vm0 = vweird.f32 %v11161_v58  ;;  %v5482_v9 = vand.u32 2147483647, %v11161_v58  ;;  %v5484_v5 = vand.u32 2147483648, %v11161_v58 }
0x11b8   :  { %5734 = vadd.xlane.f32.xlu2 %v5733_v55  ;;  %v5798_v52 = vmul.f32 %v11385_v43, %v11353_v14  ;;  %v5861_v26 = vsel %vm12563_vm5, %v5797_v13, 0.0  ;;  %v11415_v15 = vmul.f32 %v10856_v54, %v5456_v0  ;;  %vm5468_vm13 = vcmp.eq.f32.partialorder %v5467_v28, 8.507059e+37  ;;  %vm11417_vm14 = vmor %vm5478_vm0, %vm5479_vm10 }
0x11b9   :  { %v5843_v46 = vsel %vm12566_vm9, %v5791_v29, 0.0  ;;  %v5471_v25 = vsel %vm5468_vm13, %v5470_v30, %v5466_v44  ;;  %v5505_v7 = vsub.f32 1.0, %v5504_v19  ;;  %v5491_v58 = vmul.f32 %v11345_v2, %v5490_v60  ;;  %vm12570_vm0 = vmmov %vm12559_vm4 }
0x11ba   :  { %v5519_v41 = vmul.f32 %v11406_v48, %v11274_v33  ;;  %v5481_v54 = vsel %vm11417_vm14, %v11299_v31, %v5477_v4  ;;  %v5485_v53 = vor.u32 1.1754944e-38, %v5484_v5  ;;  %v5864_v22 = vsel %vm12559_vm4, %v5798_v52, 0.0  ;;  %vm12571_vm14 = vmmov %vm12570_vm0 }
0x11bb   :  { %v11430_v10 = vpop.eup %7258  ;;  %v5799_v61 = vmul.f32 %v11415_v15, %v11353_v14  ;;  %v11436_v37 = vmul.f32 %v10869_v40, %v5471_v25  ;;  %vm5483_vm1 = vcmp.eq.f32.partialorder %v5482_v9, 8.507059e+37  ;;  %7260 = vrcp.f32 %v11328_v35 }
0x11bc   :  { %v5665_v57 = vmul.f32 %v11237_v17, %v10913_v23  ;;  %v5486_v36 = vsel %vm5483_vm1, %v5485_v53, %v5481_v54  ;;  %v5506_v31 = vmul.f32 %v11369_v24, %v5505_v7  ;;  %v5492_v50 = vadd.f32 %v11345_v2, %v5491_v58  ;;  %v11472_v9 = vpop.xlane.xlu1 %5171 }
0x11bd   :  { %5862 = vadd.xlane.f32.xlu0 %v5861_v26  ;;  %5844 = vadd.xlane.f32.xlu1 %v5843_v46  ;;  %vm5494_vm12 = vweird.f32 %v11345_v2  ;;  %v5520_v45 = vsub.f32 1.0, %v5519_v41  ;;  %vm5493_vm2 = vweird.f32 %v11230_v21  ;;  %v5499_v40 = vand.u32 2147483648, %v11230_v21  ;;  %v11447_v59 = vpop.xlane.xlu2 %5159 }
0x11be   :  { %v5497_v28 = vand.u32 2147483647, %v11230_v21  ;;  %v5867_v55 = vsel %vm12567_vm11, %v5799_v61, 0.0  ;;  %v5672_v17 = vmul.f32 %v11436_v37, %v11332_v49  ;;  %v5487_v13 = vmul.f32 %v10880_v42, %v5486_v36  ;;  %vm11455_vm10 = vmor %vm5493_vm2, %vm5494_vm12 }
0x11bf   :  { %v5549_v19 = vmul.f32 %v11430_v10, %v11371_v27  ;;  %7262 = vrcp.f32 %v11401_v63  ;;  %v5721_v21 = vsel %vm12570_vm0, %v5665_v57, 0.0  ;;  %v5507_v29 = vadd.f32 %v11369_v24, %v5506_v31  ;;  %vm12574_vm2 = vmmov %vm12570_vm0 }
0x11c0   :  { %5865 = vadd.xlane.f32.xlu2 %v5864_v22  ;;  %vm5509_vm5 = vweird.f32 %v11369_v24  ;;  %v5521_v0 = vmul.f32 %v11406_v48, %v5520_v45  ;;  %v5496_v42 = vsel %vm11455_vm10, %v11345_v2, %v5492_v50  ;;  %vm5508_vm13 = vweird.f32 %v11311_v3 }
0x11c1   :  { %v11467_v4 = vpop.eup %7260  ;;  %v5514_v60 = vand.u32 2147483648, %v11311_v3  ;;  %v5500_v44 = vor.u32 1.1754944e-38, %v5499_v40  ;;  %v5512_v30 = vand.u32 2147483647, %v11311_v3  ;;  %v5742_v5 = vsel %vm12571_vm14, %v5672_v17, 0.0  ;;  %vm11476_vm4 = vmor %vm5508_vm13, %vm5509_vm5 }
0x11c2   :  { %v5673_v52 = vmul.f32 %v5487_v13, %v11332_v49  ;;  %vm5498_vm9 = vcmp.eq.f32.partialorder %v5497_v28, 8.507059e+37  ;;  %v5550_v26 = vsub.f32 1.0, %v5549_v19  ;;  %v5794_v2 = vmul.f32 %v11246_v34, %v10956_v51  ;;  %vm12577_vm5 = vmmov %vm12570_vm0 }
0x11c3   :  { %v5501_v46 = vsel %vm5498_vm9, %v5500_v44, %v5496_v42  ;;  %v5522_v25 = vadd.f32 %v11406_v48, %v5521_v0  ;;  %vm5524_vm1 = vweird.f32 %v11406_v48  ;;  %v5534_v3 = vmul.f32 %v11467_v4, %v11328_v35 }
0x11c4   :  { %v5511_v7 = vsel %vm11476_vm4, %v11369_v24, %v5507_v29  ;;  %v5515_v41 = vor.u32 1.1754944e-38, %v5514_v60  ;;  %vm5523_vm12 = vweird.f32 %v11274_v33  ;;  %v5527_v54 = vand.u32 2147483647, %v11274_v33  ;;  %v11513_v40 = vpop.xlane.xlu1 %5686  ;;  %vm12578_vm4 = vmmov %vm12570_vm0 }
0x11c5   :  { %5868 = vadd.xlane.f32.xlu0 %v5867_v55  ;;  %5722 = vadd.xlane.f32.xlu1 %v5721_v21  ;;  %v11489_v58 = vpop.eup %7262  ;;  %v5529_v51 = vand.u32 2147483648, %v11274_v33  ;;  %v5801_v34 = vmul.f32 %v5487_v13, %v11353_v14  ;;  %v5745_v53 = vsel %vm12574_vm2, %v5673_v52, 0.0  ;;  %vm5513_vm11 = vcmp.eq.f32.partialorder %v5512_v30, 8.507059e+37  ;;  %vm11499_vm10 = vmor %vm5523_vm12, %vm5524_vm1  ;;  %v11508_v50 = vpop.xlane.xlu2 %5162 }
0x11c6   :  { %v11497_v22 = vmul.f32 %v10885_v11, %v5501_v46  ;;  %7264 = vrcp.f32 %v11447_v59  ;;  %v5852_v24 = vsel %vm12570_vm0, %v5794_v2, 0.0  ;;  %v5516_v57 = vsel %vm5513_vm11, %v5515_v41, %v5511_v7  ;;  %vm12581_vm2 = vmmov %vm12570_vm0 }
0x11c7   :  { %v5551_v33 = vmul.f32 %v11430_v10, %v5550_v26  ;;  %v5535_v36 = vsub.f32 1.0, %v5534_v3  ;;  %v5564_v31 = vmul.f32 %v11489_v58, %v11401_v63  ;;  %v5526_v11 = vsel %vm11499_vm10, %v11406_v48, %v5522_v25  ;;  %vm12582_vm10 = vmmov %vm12570_vm0 }
0x11c8   :  { %5743 = vadd.xlane.f32.xlu2 %v5742_v5  ;;  %v5530_v45 = vor.u32 1.1754944e-38, %v5529_v51  ;;  %v5873_v28 = vsel %vm12577_vm5, %v5801_v34, 0.0  ;;  %v11517_v55 = vmul.f32 %v10871_v16, %v5516_v57  ;;  %v5802_v17 = vmul.f32 %v11497_v22, %v11353_v14 }
0x11c9   :  { %vm5528_vm13 = vcmp.eq.f32.partialorder %v5527_v54, 8.507059e+37  ;;  %7266 = vrcp.f32 %v11508_v50  ;;  %v5668_v13 = vmul.f32 %v11323_v20, %v10913_v23  ;;  %v5552_v48 = vadd.f32 %v11430_v10, %v5551_v33 }
0x11ca   :  { %v5531_v19 = vsel %vm5528_vm13, %v5530_v45, %v5526_v11  ;;  %vm5554_vm14 = vweird.f32 %v11430_v10  ;;  %v5536_v8 = vmul.f32 %v11467_v4, %v5535_v36  ;;  %v5565_v21 = vsub.f32 1.0, %v5564_v31 }
0x11cb   :  { %vm5553_vm9 = vweird.f32 %v11371_v27  ;;  %v5557_v29 = vand.u32 2147483647, %v11371_v27  ;;  %v5559_v0 = vand.u32 2147483648, %v11371_v27  ;;  %7268 = vrcp.f32 %v11423_v18 }
0x11cc   :  { %v11527_v16 = vpop.eup %7264  ;;  %v5675_v23 = vmul.f32 %v11517_v55, %v11332_v49  ;;  %v5876_v20 = vsel %vm12578_vm4, %v5802_v17, 0.0  ;;  %v5532_v42 = vmul.f32 %v10892_v6, %v5531_v19  ;;  %vm11537_vm1 = vmor %vm5553_vm9, %vm5554_vm14  ;;  %vm5539_vm12 = vweird.f32 %v11467_v4 }
0x11cd   :  { %5746 = vadd.xlane.f32.xlu0 %v5745_v53  ;;  %5853 = vadd.xlane.f32.xlu1 %v5852_v24  ;;  %v5730_v44 = vsel %vm12581_vm2, %v5668_v13, 0.0  ;;  %v5537_v27 = vadd.f32 %v11467_v4, %v5536_v8  ;;  %v5566_v30 = vmul.f32 %v11489_v58, %v5565_v21  ;;  %v5579_v5 = vmul.f32 %v11527_v16, %v11447_v59  ;;  %v11573_v53 = vpop.xlane.xlu2 %5168  ;;  %vm12585_vm9 = vmmov %vm12581_vm2 }
0x11ce   :  { %v5556_v6 = vsel %vm11537_vm1, %v11430_v10, %v5552_v48  ;;  %v5560_v26 = vor.u32 1.1754944e-38, %v5559_v0  ;;  %vm5538_vm11 = vweird.f32 %v11328_v35  ;;  %v5544_v56 = vand.u32 2147483648, %v11328_v35 }
0x11cf   :  { %v11550_v52 = vpop.eup %7266  ;;  %v5542_v2 = vand.u32 2147483647, %v11328_v35  ;;  %v5751_v46 = vsel %vm12582_vm10, %v5675_v23, 0.0  ;;  %v5676_v25 = vmul.f32 %v5532_v42, %v11332_v49  ;;  %vm5558_vm0 = vcmp.eq.f32.partialorder %v5557_v29, 8.507059e+37  ;;  %vm11561_vm5 = vmor %vm5538_vm11, %vm5539_vm12 }
0x11d0   :  { %5874 = vadd.xlane.f32.xlu2 %v5873_v28  ;;  %vm5569_vm13 = vweird.f32 %v11489_v58  ;;  %v5670_v7 = vmul.f32 %v11385_v43, %v11332_v49  ;;  %v5561_v35 = vsel %vm5558_vm0, %v5560_v26, %v5556_v6  ;;  %v5567_v54 = vadd.f32 %v11489_v58, %v5566_v30  ;;  %vm12588_vm12 = vmmov %vm12581_vm2 }
0x11d1   :  { %v11568_v41 = vpop.eup %7268  ;;  %v5580_v51 = vsub.f32 1.0, %v5579_v5  ;;  %v5594_v34 = vmul.f32 %v11550_v52, %v11508_v50  ;;  %v5541_v61 = vsel %vm11561_vm5, %v11467_v4, %v5537_v27  ;;  %v5545_v24 = vor.u32 1.1754944e-38, %v5544_v56  ;;  %vm12589_vm5 = vmmov %vm12581_vm2 }
0x11d2   :  { %vm5568_vm14 = vweird.f32 %v11401_v63  ;;  %v5572_v43 = vand.u32 2147483647, %v11401_v63  ;;  %v5574_v57 = vand.u32 2147483648, %v11401_v63  ;;  %v5804_v33 = vmul.f32 %v5532_v42, %v11353_v14 }
0x11d3   :  { %v5754_v36 = vsel %vm12585_vm9, %v5676_v25, 0.0  ;;  %v11584_v31 = vmul.f32 %v10858_v12, %v5561_v35  ;;  %vm5543_vm4 = vcmp.eq.f32.partialorder %v5542_v2, 8.507059e+37  ;;  %v5609_v11 = vmul.f32 %v11568_v41, %v11423_v18  ;;  %vm11590_vm1 = vmor %vm5568_vm14, %vm5569_vm13 }
0x11d4   :  { %7270 = vrcp.f32 %v11573_v53  ;;  %v5736_v63 = vsel %vm12588_vm12, %v5670_v7, 0.0  ;;  %v5546_v45 = vsel %vm5543_vm4, %v5545_v24, %v5541_v61  ;;  %v5581_v28 = vmul.f32 %v11527_v16, %v5580_v51  ;;  %vm12592_vm14 = vmmov %vm12581_vm2 }
0x11d5   :  { %5877 = vadd.xlane.f32.xlu0 %v5876_v20  ;;  %5731 = vadd.xlane.f32.xlu1 %v5730_v44  ;;  %v5595_v12 = vsub.f32 1.0, %v5594_v34  ;;  %v5571_v17 = vsel %vm11590_vm1, %v11489_v58, %v5567_v54  ;;  %v5575_v13 = vor.u32 1.1754944e-38, %v5574_v57  ;;  %v5882_v19 = vsel %vm12581_vm2, %v5804_v33, 0.0  ;;  %vm12593_vm1 = vmmov %vm12581_vm2 }
0x11d6   :  { %v5678_v48 = vmul.f32 %v11584_v31, %v11332_v49  ;;  %v11604_v8 = vmul.f32 %v10901_v38, %v5546_v45  ;;  %vm5573_vm11 = vcmp.eq.f32.partialorder %v5572_v43, 8.507059e+37  ;;  %v5610_v21 = vsub.f32 1.0, %v5609_v11 }
0x11d7   :  { %7272 = vrcp.f32 %v11472_v9  ;;  %v5671_v29 = vmul.f32 %v11415_v15, %v11332_v49  ;;  %v5576_v58 = vsel %vm5573_vm11, %v5575_v13, %v5571_v17  ;;  %v5582_v23 = vadd.f32 %v11527_v16, %v5581_v28 }
0x11d8   :  { %5752 = vadd.xlane.f32.xlu2 %v5751_v46  ;;  %vm5584_vm10 = vweird.f32 %v11527_v16  ;;  %v5596_v20 = vmul.f32 %v11550_v52, %v5595_v12  ;;  %vm5583_vm0 = vweird.f32 %v11447_v59  ;;  %v5589_v38 = vand.u32 2147483648, %v11447_v59 }
0x11d9   :  { %v5587_v60 = vand.u32 2147483647, %v11447_v59  ;;  %v5760_v44 = vsel %vm12589_vm5, %v5678_v48, 0.0  ;;  %v5805_v15 = vmul.f32 %v11604_v8, %v11353_v14  ;;  %v5577_v27 = vmul.f32 %v10910_v32, %v5576_v58  ;;  %vm11624_vm13 = vmor %vm5583_vm0, %vm5584_vm10 }
0x11da   :  { %v11614_v42 = vpop.eup %7270  ;;  %v5611_v30 = vmul.f32 %v11568_v41, %v5610_v21  ;;  %v5739_v6 = vsel %vm12592_vm14, %v5671_v29, 0.0  ;;  %v5597_v26 = vadd.f32 %v11550_v52, %v5596_v20  ;;  %vm5599_vm9 = vweird.f32 %v11550_v52  ;;  %vm12596_vm0 = vmmov %vm12593_vm1 }
0x11db   :  { %v5624_v59 = vmul.f32 %v11614_v42, %v11573_v53  ;;  %v5586_v32 = vsel %vm11624_vm13, %v11527_v16, %v5582_v23  ;;  %v5590_v2 = vor.u32 1.1754944e-38, %v5589_v38  ;;  %vm5598_vm4 = vweird.f32 %v11508_v50  ;;  %vm12599_vm14 = vmmov %vm12596_vm0 }
0x11dc   :  { %v5604_v46 = vand.u32 2147483648, %v11508_v50  ;;  %v5602_v25 = vand.u32 2147483647, %v11508_v50  ;;  %v5885_v10 = vsel %vm12593_vm1, %v5805_v15, 0.0  ;;  %v5679_v7 = vmul.f32 %v5577_v27, %v11332_v49  ;;  %vm11644_vm11 = vmor %vm5598_vm4, %vm5599_vm9 }
0x11dd   :  { %5755 = vadd.xlane.f32.xlu0 %v5754_v36  ;;  %5737 = vadd.xlane.f32.xlu1 %v5736_v63  ;;  %v11636_v56 = vpop.eup %7272  ;;  %vm5588_vm12 = vcmp.eq.f32.partialorder %v5587_v60, 8.507059e+37  ;;  %vm5614_vm2 = vweird.f32 %v11568_v41  ;;  %v5800_v16 = vmul.f32 %v11436_v37, %v11353_v14  ;;  %v5612_v51 = vadd.f32 %v11568_v41, %v5611_v30  ;;  %vm12600_vm9 = vmmov %vm12596_vm0 }
0x11de   :  { %v5591_v54 = vsel %vm5588_vm12, %v5590_v2, %v5586_v32  ;;  %v5639_v50 = vmul.f32 %v11636_v56, %v11472_v9  ;;  %v5625_v34 = vsub.f32 1.0, %v5624_v59  ;;  %v5601_v61 = vsel %vm11644_vm11, %v11550_v52, %v5597_v26 }
0x11df   :  { %v11557_v3 = vpop.xlane.xlu1 %5689  ;;  %vm5613_vm10 = vweird.f32 %v11423_v18  ;;  %v5617_v24 = vand.u32 2147483647, %v11423_v18  ;;  %v5619_v43 = vand.u32 2147483648, %v11423_v18  ;;  %v5605_v57 = vor.u32 1.1754944e-38, %v5604_v46  ;;  %v11661_v37 = vpop.xlane.xlu0 %5817 }
0x11e0   :  { %5883 = vadd.xlane.f32.xlu2 %v5882_v19  ;;  %v5807_v36 = vmul.f32 %v5577_v27, %v11353_v14  ;;  %v5763_v11 = vsel %vm12596_vm0, %v5679_v7, 0.0  ;;  %v11666_v4 = vmul.f32 %v10925_v39, %v5591_v54  ;;  %vm5603_vm5 = vcmp.eq.f32.partialorder %v5602_v25, 8.507059e+37  ;;  %vm11670_vm13 = vmor %vm5613_vm10, %vm5614_vm2  ;;  %v11674_v18 = vpop.xlane.xlu2 %5692 }
0x11e1   :  { %v5870_v63 = vsel %vm12599_vm14, %v5800_v16, 0.0  ;;  %v5606_v45 = vsel %vm5603_vm5, %v5605_v57, %v5601_v61  ;;  %v5640_v28 = vsub.f32 1.0, %v5639_v50  ;;  %v5626_v12 = vmul.f32 %v11614_v42, %v5625_v34  ;;  %vm12601_vm2 = vmmov %vm12596_vm0  ;;  %v12608_v50 = vld [vmem:[#allocation6_spill] sm:$0xff] }
0x11e2   :  { %v5616_v39 = vsel %vm11670_vm13, %v11568_v41, %v5612_v51  ;;  %v5620_v17 = vor.u32 1.1754944e-38, %v5619_v43  ;;  %v5891_v13 = vsel %vm12600_vm9, %v5807_v36, 0.0  ;;  %v5808_v19 = vmul.f32 %v11666_v4, %v11353_v14  ;;  %vm12604_vm10 = vmmov %vm12596_vm0  ;;  %v6696_v36 = vld [vmem:[%s12110_s6 + $0x50] sm:$0xff] }
0x11e3   :  { %v11685_v48 = vmul.f32 %v10930_v1, %v5606_v45  ;;  %vm5618_vm4 = vcmp.eq.f32.partialorder %v5617_v24, 8.507059e+37  ;;  %v5674_v21 = vmul.f32 %v11497_v22, %v11332_v49  ;;  %v5641_v58 = vmul.f32 %v11636_v56, %v5640_v28  ;;  %vm12605_vm13 = vmmov %vm12601_vm2  ;;  %6131 = vmatpush.msra.mxu0 %v6696_v36 }
0x11e4   :  { %v5621_v29 = vsel %vm5618_vm4, %v5620_v17, %v5616_v39  ;;  %v5627_v23 = vadd.f32 %v11614_v42, %v5626_v12  ;;  %vm5629_vm1 = vweird.f32 %v11614_v42  ;;  %vm5628_vm12 = vweird.f32 %v11573_v53  ;;  %vm12606_vm4 = vmmov %vm12601_vm2 }
0x11e5   :  { %5761 = vadd.xlane.f32.xlu0 %v5760_v44  ;;  %5740 = vadd.xlane.f32.xlu1 %v5739_v6  ;;  %v5634_v41 = vand.u32 2147483648, %v11573_v53  ;;  %v5632_v20 = vand.u32 2147483647, %v11573_v53  ;;  %v5894_v38 = vsel %vm12601_vm2, %v5808_v19, 0.0  ;;  %v5681_v22 = vmul.f32 %v11685_v48, %v11332_v49  ;;  %vm11701_vm11 = vmor %vm5628_vm12, %vm5629_vm1 }
0x11e6   :  { %v5622_v60 = vmul.f32 %v10894_v47, %v5621_v29  ;;  %v5748_v27 = vsel %vm12604_vm10, %v5674_v21, 0.0  ;;  %v5642_v53 = vadd.f32 %v11636_v56, %v5641_v58  ;;  %vm5644_vm0 = vweird.f32 %v11636_v56  ;;  %vm12607_vm12 = vmmov %vm12601_vm2  ;;  %v12613_v21 = vld [vmem:[#allocation3_spill] sm:$0xff] }
0x11e7   :  { %v11609_v0 = vpop.xlane.xlu1 %5814  ;;  %v5631_v47 = vsel %vm11701_vm11, %v11614_v42, %v5627_v23  ;;  %vm5643_vm5 = vweird.f32 %v11472_v9  ;;  %v5649_v5 = vand.u32 2147483648, %v11472_v9  ;;  %v5635_v6 = vor.u32 1.1754944e-38, %v5634_v41  ;;  %vm12609_vm11 = vmmov %vm12601_vm2 }
0x11e8   :  { %5886 = vadd.xlane.f32.xlu2 %v5885_v10  ;;  %v5647_v26 = vand.u32 2147483647, %v11472_v9  ;;  %v5769_v59 = vsel %vm12605_vm13, %v5681_v22, 0.0  ;;  %v5682_v32 = vmul.f32 %v5622_v60, %v11332_v49  ;;  %vm5633_vm14 = vcmp.eq.f32.partialorder %v5632_v20, 8.507059e+37  ;;  %vm5645_vm9 = vmor %vm5643_vm5, %vm5644_vm0 }
0x11e9   :  { %v5803_v2 = vmul.f32 %v11517_v55, %v11353_v14  ;;  %v5636_v46 = vsel %vm5633_vm14, %v5635_v6, %v5631_v47  ;;  %v5646_v42 = vsel %vm5645_vm9, %v11636_v56, %v5642_v53  ;;  %v5650_v25 = vor.u32 1.1754944e-38, %v5649_v5  ;;  %vm12610_vm10 = vmmov %vm12601_vm2 }
0x11ea   :  { %v5772_v10 = vsel %vm12606_vm4, %v5682_v32, 0.0  ;;  %v5810_v7 = vmul.f32 %v5622_v60, %v11353_v14  ;;  %vm5648_vm1 = vcmp.eq.f32.partialorder %v5647_v26, 8.507059e+37  ;;  %v11726_v9 = vmul.f32 %v10934_v62, %v5636_v46  ;;  %vm12611_vm0 = vmmov %vm12601_vm2 }
0x11eb   :  { %v5879_v35 = vsel %vm12607_vm12, %v5803_v2, 0.0  ;;  %v5651_v16 = vsel %vm5648_vm1, %v5650_v25, %v5646_v42  ;;  %v5677_v62 = vmul.f32 %v11604_v8, %v11332_v49  ;;  %v5806_v28 = vmul.f32 %v11584_v31, %v11353_v14  ;;  %vm12612_vm5 = vmmov %vm12611_vm0  ;;  %v12615_v31 = vld [vmem:[#allocation11_spill] sm:$0xff] }
0x11ec   :  { %v5900_v56 = vsel %vm12601_vm2, %v5810_v7, 0.0  ;;  %v11735_v34 = vmul.f32 %v12608_v50, %v5651_v16  ;;  %v5811_v61 = vmul.f32 %v11726_v9, %v11353_v14  ;;  %v5680_v17 = vmul.f32 %v11666_v4, %v11332_v49  ;;  %vm12614_vm13 = vmmov %vm12611_vm0 }
0x11ed   :  { %5764 = vadd.xlane.f32.xlu0 %v5763_v11  ;;  %5871 = vadd.xlane.f32.xlu1 %v5870_v63  ;;  %v5757_v57 = vsel %vm12610_vm10, %v5677_v62, 0.0  ;;  %v6695_v11 = vld [vmem:[%s12110_s6 + $0x48] sm:$0xff]  ;;  %v5888_v12 = vsel %vm12612_vm5, %v5806_v28, 0.0  ;;  %v5942_v29 = vperm.slane %v11557_v3, %v12613_v21  ;;  %v5941_v23 = vperm.slane %v11513_v40, %v12613_v21  ;;  %vm12616_vm14 = vmmov %vm12611_vm0 }
0x11ee   :  { %v5684_v24 = vmul.f32 %v11735_v34, %v11332_v49  ;;  %v5903_v43 = vsel %vm12609_vm11, %v5811_v61, 0.0  ;;  %6132 = vmatpush.msra.mxu0 %v6695_v11  ;;  %v5766_v58 = vsel %vm12614_vm13, %v5680_v17, 0.0  ;;  %v6037_v41 = vperm.slane %v11609_v0, %v12615_v31  ;;  %vm12623_vm10 = vmmov %vm12611_vm0 }
0x11ef   :  { %v11659_v33 = vpop.xlane.xlu1 %5820  ;;  %v6038_v4 = vperm.slane %v11661_v37, %v12615_v31  ;;  %v5943_v40 = vperm.slane %v11674_v18, %v12613_v21  ;;  %vm12617_vm9 = vcmask 1045509   ;;  %vm12619_vm1 = vcmask 1046534   ;;  %vm12625_vm13 = vmmov %vm12612_vm5 }
0x11f0   :  { %5892 = vadd.xlane.f32.xlu2 %v5891_v13  ;;  %v11695_v1 = vpop.xlane.xlu0 %5701  ;;  %v11705_v15 = vpop.xlane.xlu2 %5829  ;;  %v5778_v8 = vsel %vm12611_vm0, %v5684_v24, 0.0  ;;  %v6039_v20 = vperm.slane %v11659_v33, %v12615_v31  ;;  %v5809_v33 = vmul.f32 %v11685_v48, %v11353_v14  ;;  %vm12618_vm4 = vmmov %vm12617_vm9  ;;  %vm12621_vm2 = vcmask 1047559  }
0x11f1   :  { %v6069_v37 = vsel %vm664_vm3, %v6038_v4, %v6037_v41  ;;  %v5946_v32 = vperm.slane %v11695_v1, %v12613_v21  ;;  %v6042_v2 = vperm.slane %v11705_v15, %v12615_v31  ;;  %vm12620_vm12 = vmmov %vm12619_vm1  ;;  %vm12624_vm0 = vcmask 64512  }
0x11f2   :  { %v5897_v48 = vsel %vm12616_vm14, %v5809_v33, 0.0  ;;  %vm12622_vm11 = vmmov %vm12621_vm2 }
0x11f3   :  { %vm12626_vm14 = vmmov %vm12618_vm4 }
0x11f5   :  { %5895 = vadd.xlane.f32.xlu0 %v5894_v38  ;;  %5749 = vadd.xlane.f32.xlu1 %v5748_v27  ;;  %v5973_v38 = vsel %vm664_vm3, %v5942_v29, %v5941_v23  ;;  %v6070_v27 = vsel %vm666_vm6, %v6039_v20, %v6069_v37 }
0x11f6   :  { %v5974_v53 = vsel %vm666_vm6, %v5943_v40, %v5973_v38 }
0x11f7   :  { %v11708_v30 = vpop.xlane.xlu1 %5695 }
0x11f8   :  { %5770 = vadd.xlane.f32.xlu2 %v5769_v59  ;;  %v11729_v54 = vpop.xlane.xlu0 %5832  ;;  %v11731_v55 = vpop.xlane.xlu2 %5707  ;;  %v5944_v3 = vperm.slane %v11708_v30, %v12613_v21 }
0x11f9   :  { %v6043_v25 = vperm.slane %v11729_v54, %v12615_v31  ;;  %v5948_v1 = vperm.slane %v11731_v55, %v12613_v21  ;;  %v5812_v55 = vmul.f32 %v11735_v34, %v11353_v14 }
0x11fa   :  { %v5975_v30 = vsel %vm668_vm7, %v5944_v3, %v5974_v53 }
0x11fb   :  { %v5906_v62 = vsel %vm12625_vm13, %v5812_v55, 0.0 }
0x11fd   :  { %5773 = vadd.xlane.f32.xlu0 %v5772_v10  ;;  %5880 = vadd.xlane.f32.xlu1 %v5879_v35  ;;  %v5683_v35 = vmul.f32 %v11726_v9, %v11332_v49 }
0x11ff   :  { %v5824_v51 = vpop.xlane.xlu1 %5823  ;;  %v5775_v50 = vsel %vm12623_vm10, %v5683_v35, 0.0  ;;  %vm12631_vm10 = vmmov %vm12612_vm5 }
0x1200   :  { %5901 = vadd.xlane.f32.xlu2 %v5900_v56  ;;  %v11751_v52 = vpop.xlane.xlu0 %5710  ;;  %v6040_v22 = vperm.slane %v5824_v51, %v12615_v31 }
0x1201   :  { %v11754_v63 = vpop.xlane.xlu2 %5713 }
0x1202   :  { %v6071_v47 = vsel %vm668_vm7, %v6040_v22, %v6070_v27  ;;  %v5950_v14 = vperm.slane %v11754_v63, %v12613_v21 }
0x1205   :  { %5904 = vadd.xlane.f32.xlu0 %v5903_v43  ;;  %5758 = vadd.xlane.f32.xlu1 %v5757_v57 }
0x1208   :  { %5779 = vadd.xlane.f32.xlu2 %v5778_v8  ;;  %v5699_v45 = vpop.xlane.xlu1 %5698  ;;  %v11761_v13 = vpop.xlane.xlu0 %5841 }
0x1209   :  { %v5945_v60 = vperm.slane %v5699_v45, %v12613_v21 }
0x120b   :  { %v11763_v19 = vpop.xlane.xlu2 %5716  ;;  %v5976_v18 = vsel %vm670_vm8, %v5945_v60, %v5975_v30 }
0x120c   :  { %v5977_v42 = vsel %vm12618_vm4, %v5946_v32, %v5976_v18  ;;  %v5951_v17 = vperm.slane %v11763_v19, %v12613_v21 }
0x120d   :  { %5889 = vadd.xlane.f32.xlu1 %v5888_v12  ;;  %v6046_v12 = vperm.slane %v11761_v13, %v12615_v31 }
0x1210   :  { %v5827_v39 = vpop.xlane.xlu1 %5826  ;;  %v5720_v5 = vpop.xlane.xlu0 %5719 }
0x1211   :  { %v6041_v0 = vperm.slane %v5827_v39, %v12615_v31  ;;  %v5949_v39 = vperm.slane %v11751_v52, %v12613_v21 }
0x1213   :  { %v6072_v6 = vsel %vm670_vm8, %v6041_v0, %v6071_v47  ;;  %v5848_v26 = vpop.xlane.xlu2 %5847  ;;  %v5980_v20 = vsel %vm664_vm3, %v5950_v14, %v5949_v39 }
0x1214   :  { %v6073_v46 = vsel %vm12617_vm9, %v6042_v2, %v6072_v6  ;;  %v6048_v23 = vperm.slane %v5848_v26, %v12615_v31  ;;  %v5981_v4 = vsel %vm666_vm6, %v5951_v17, %v5980_v20  ;;  %vm12627_vm9 = vmmov %vm12618_vm4 }
0x1215   :  { %5767 = vadd.xlane.f32.xlu1 %v5766_v58  ;;  %v6074_v15 = vsel %vm12620_vm12, %v6043_v25, %v6073_v46  ;;  %v5952_v58 = vperm.slane %v5720_v5, %v12613_v21  ;;  %vm12628_vm4 = vmmov %vm12619_vm1 }
0x1216   :  { %vm12629_vm12 = vmmov %vm12621_vm2 }
0x1217   :  { %v5982_v19 = vsel %vm668_vm7, %v5952_v58, %v5981_v4 }
0x1218   :  { %v5705_v44 = vpop.xlane.xlu1 %5704  ;;  %v5851_v61 = vpop.xlane.xlu0 %5850 }
0x1219   :  { %v5947_v59 = vperm.slane %v5705_v44, %v12613_v21  ;;  %v6049_v38 = vperm.slane %v5851_v61, %v12615_v31 }
0x121b   :  { %v5978_v10 = vsel %vm12619_vm1, %v5947_v59, %v5977_v42  ;;  %v5726_v49 = vpop.xlane.xlu2 %5725 }
0x121c   :  { %v5979_v51 = vsel %vm12621_vm2, %v5948_v1, %v5978_v10  ;;  %v5954_v0 = vperm.slane %v5726_v49, %v12613_v21 }
0x121d   :  { %5898 = vadd.xlane.f32.xlu1 %v5897_v48 }
0x1220   :  { %v5836_v7 = vpop.xlane.xlu1 %5835  ;;  %v5729_v24 = vpop.xlane.xlu0 %5728 }
0x1221   :  { %v6044_v16 = vperm.slane %v5836_v7, %v12615_v31  ;;  %v5955_v27 = vperm.slane %v5729_v24, %v12613_v21 }
0x1223   :  { %v6075_v56 = vsel %vm12622_vm11, %v6044_v16, %v6074_v15  ;;  %v5857_v43 = vpop.xlane.xlu2 %5856  ;;  %vm12630_vm11 = vmmov %vm12624_vm0 }
0x1224   :  { %v6101_v54 = vsel %vm12624_vm0, %v5979_v51, %v6075_v56  ;;  %v6051_v33 = vperm.slane %v5857_v43, %v12615_v31  ;;  %vm12632_vm0 = vmmov %vm12627_vm9 }
0x1225   :  { %5776 = vadd.xlane.f32.xlu1 %v5775_v50  ;;  %6734 = vmatmul.msk.f32.vlgmr.msra.gmra.mxu0 %vm12612_vm5, %v6101_v54  ;;  %vm12633_vm5 = vmmov %vm12619_vm1 }
0x1226   :  { %vm12634_vm13 = vmmov %vm12632_vm0 }
0x1228   :  { %v5839_v9 = vpop.xlane.xlu1 %5838  ;;  %v5860_v8 = vpop.xlane.xlu0 %5859 }
0x1229   :  { %v6045_v11 = vperm.slane %v5839_v9, %v12615_v31  ;;  %v6052_v47 = vperm.slane %v5860_v8, %v12615_v31 }
0x122b   :  { %v5735_v45 = vpop.xlane.xlu2 %5734  ;;  %v6076_v34 = vsel %vm664_vm3, %v6046_v12, %v6045_v11 }
0x122c   :  { %v5957_v15 = vperm.slane %v5735_v45, %v12613_v21 }
0x122d   :  { %5907 = vadd.xlane.f32.xlu1 %v5906_v62 }
0x1230   :  { %v5845_v57 = vpop.xlane.xlu1 %5844  ;;  %v5863_v3 = vpop.xlane.xlu0 %5862 }
0x1231   :  { %v6047_v28 = vperm.slane %v5845_v57, %v12615_v31  ;;  %v6053_v51 = vperm.slane %v5863_v3, %v12615_v31 }
0x1233   :  { %v6077_v29 = vsel %vm666_vm6, %v6047_v28, %v6076_v34  ;;  %v5866_v22 = vpop.xlane.xlu2 %5865 }
0x1234   :  { %v6078_v52 = vsel %vm668_vm7, %v6048_v23, %v6077_v29  ;;  %v6054_v56 = vperm.slane %v5866_v22, %v12615_v31 }
0x1235   :  { %v6079_v60 = vsel %vm670_vm8, %v6049_v38, %v6078_v52 }
0x1236   :  { %v6083_v62 = vsel %vm664_vm3, %v6054_v56, %v6053_v51 }
0x1238   :  { %v5723_v36 = vpop.xlane.xlu1 %5722  ;;  %v5869_v48 = vpop.xlane.xlu0 %5868 }
0x1239   :  { %v5953_v41 = vperm.slane %v5723_v36, %v12613_v21  ;;  %v6055_v54 = vperm.slane %v5869_v48, %v12615_v31 }
0x123b   :  { %v5983_v40 = vsel %vm670_vm8, %v5953_v41, %v5982_v19  ;;  %v5744_v32 = vpop.xlane.xlu2 %5743  ;;  %v6084_v57 = vsel %vm666_vm6, %v6055_v54, %v6083_v62 }
0x123c   :  { %v5984_v37 = vsel %vm12627_vm9, %v5954_v0, %v5983_v40  ;;  %v5960_v49 = vperm.slane %v5744_v32, %v12613_v21  ;;  %vm12636_vm9 = vmmov %vm12621_vm2 }
0x123d   :  { %v5985_v18 = vsel %vm12619_vm1, %v5955_v27, %v5984_v37 }
0x1240   :  { %v5854_v13 = vpop.xlane.xlu1 %5853  ;;  %v5747_v46 = vpop.xlane.xlu0 %5746 }
0x1241   :  { %v6050_v63 = vperm.slane %v5854_v13, %v12615_v31  ;;  %v5961_v36 = vperm.slane %v5747_v46, %v12613_v21 }
0x1243   :  { %v6080_v44 = vsel %vm12626_vm14, %v6050_v63, %v6079_v60  ;;  %v5875_v42 = vpop.xlane.xlu2 %5874  ;;  %vm12635_vm14 = vmmov %vm12619_vm1 }
0x1244   :  { %v6081_v30 = vsel %vm12628_vm4, %v6051_v33, %v6080_v44  ;;  %v6057_v28 = vperm.slane %v5875_v42, %v12615_v31  ;;  %vm12637_vm4 = vmmov %vm12621_vm2 }
0x1245   :  { %v6082_v26 = vsel %vm12621_vm2, %v6052_v47, %v6081_v30  ;;  %vm12638_vm1 = vmmov %vm12630_vm11 }
0x1246   :  { %vm12642_vm2 = vmmov %vm12633_vm5 }
0x1248   :  { %v5732_v53 = vpop.xlane.xlu1 %5731  ;;  %v5878_v7 = vpop.xlane.xlu0 %5877 }
0x1249   :  { %v5956_v5 = vperm.slane %v5732_v53, %v12613_v21  ;;  %v6058_v17 = vperm.slane %v5878_v7, %v12615_v31 }
0x124b   :  { %v5986_v6 = vsel %vm12629_vm12, %v5956_v5, %v5985_v18  ;;  %v5753_v35 = vpop.xlane.xlu2 %5752  ;;  %vm12639_vm12 = vmmov %vm12631_vm10 }
0x124c   :  { %v6102_v59 = vsel %vm12630_vm11, %v5986_v6, %v6082_v26  ;;  %v5963_v14 = vperm.slane %v5753_v35, %v12613_v21  ;;  %vm12646_vm11 = vmmov %vm12637_vm4 }
0x124d   :  { %6735 = vmatmul.msk.f32.gmra.mxu0 %vm12631_vm10, %v6102_v59  ;;  %vm12647_vm10 = vmmov %vm12638_vm1 }
0x1250   :  { %v5738_v2 = vpop.xlane.xlu1 %5737  ;;  %v5756_v11 = vpop.xlane.xlu0 %5755 }
0x1251   :  { %v5958_v1 = vperm.slane %v5738_v2, %v12613_v21  ;;  %v5964_v41 = vperm.slane %v5756_v11, %v12613_v21  ;;  %v6885_v11 = vld [vmem:[%s12110_s6 + $0x58] ss:$0 sm:$0xff] }
0x1253   :  { %v5987_v50 = vsel %vm664_vm3, %v5958_v1, %v5957_v15  ;;  %v5884_v8 = vpop.xlane.xlu2 %5883 }
0x1254   :  { %v6060_v13 = vperm.slane %v5884_v8, %v12615_v31 }
0x1258   :  { %v5741_v25 = vpop.xlane.xlu1 %5740  ;;  %v5762_v38 = vpop.xlane.xlu0 %5761 }
0x1259   :  { %v5959_v16 = vperm.slane %v5741_v25, %v12613_v21  ;;  %v5966_v47 = vperm.slane %v5762_v38, %v12613_v21 }
0x125b   :  { %v5988_v61 = vsel %vm666_vm6, %v5959_v16, %v5987_v50  ;;  %v5887_v3 = vpop.xlane.xlu2 %5886 }
0x125c   :  { %v5989_v24 = vsel %vm668_vm7, %v5960_v49, %v5988_v61  ;;  %v6061_v5 = vperm.slane %v5887_v3, %v12615_v31 }
0x125d   :  { %v5990_v12 = vsel %vm670_vm8, %v5961_v36, %v5989_v24 }
0x1260   :  { %v5872_v10 = vpop.xlane.xlu1 %5871  ;;  %v5765_v40 = vpop.xlane.xlu0 %5764 }
0x1261   :  { %v6056_v9 = vperm.slane %v5872_v10, %v12615_v31  ;;  %v5967_v32 = vperm.slane %v5765_v40, %v12613_v21 }
0x1263   :  { %v6085_v45 = vsel %vm668_vm7, %v6056_v9, %v6084_v57  ;;  %v5893_v60 = vpop.xlane.xlu2 %5892 }
0x1264   :  { %v6086_v34 = vsel %vm670_vm8, %v6057_v28, %v6085_v45  ;;  %v6063_v2 = vperm.slane %v5893_v60, %v12615_v31  ;;  %v12644_v28 = vld [vmem:[#allocation10_spill] sm:$0xff] }
0x1265   :  { %v6087_v20 = vsel %vm12634_vm13, %v6058_v17, %v6086_v34 }
0x1268   :  { %v5750_v55 = vpop.xlane.xlu1 %5749  ;;  %v5896_v33 = vpop.xlane.xlu0 %5895 }
0x1269   :  { %v5962_v43 = vperm.slane %v5750_v55, %v12613_v21  ;;  %v6064_v7 = vperm.slane %v5896_v33, %v12615_v31 }
0x126b   :  { %v5991_v39 = vsel %vm12632_vm0, %v5962_v43, %v5990_v12  ;;  %v5771_v37 = vpop.xlane.xlu2 %5770 }
0x126c   :  { %v5992_v23 = vsel %vm12633_vm5, %v5963_v14, %v5991_v39  ;;  %v5969_v1 = vperm.slane %v5771_v37, %v12613_v21 }
0x126d   :  { %v5993_v63 = vsel %vm12636_vm9, %v5964_v41, %v5992_v23 }
0x1270   :  { %v5881_v29 = vpop.xlane.xlu1 %5880  ;;  %v5774_v18 = vpop.xlane.xlu0 %5773 }
0x1271   :  { %v6059_v58 = vperm.slane %v5881_v29, %v12615_v31  ;;  %v5970_v50 = vperm.slane %v5774_v18, %v12613_v21  ;;  %v12650_v29 = vld [vmem:[#allocation4_spill] sm:$0xff] }
0x1273   :  { %v6088_v52 = vsel %vm12635_vm14, %v6059_v58, %v6087_v20  ;;  %v5902_v6 = vpop.xlane.xlu2 %5901  ;;  %v12652_v20 = vld [vmem:[#allocation5_spill] sm:$0xff] }
0x1274   :  { %v6089_v4 = vsel %vm12637_vm4, %v6060_v13, %v6088_v52  ;;  %v6066_v54 = vperm.slane %v5902_v6, %v12615_v31 }
0x1275   :  { %v6103_v19 = vsel %vm12638_vm1, %v5993_v63, %v6089_v4 }
0x1276   :  { %6736 = vmatmul.msk.f32.gmra.mxu0 %vm12639_vm12, %v6103_v19  ;;  %v12654_v19 = vld [vmem:[#allocation8_spill] sm:$0xff] }
0x1278   :  { %v5759_v22 = vpop.xlane.xlu1 %5758  ;;  %v5905_v61 = vpop.xlane.xlu0 %5904 }
0x1279   :  { %v5965_v53 = vperm.slane %v5759_v22, %v12613_v21  ;;  %v6067_v62 = vperm.slane %v5905_v61, %v12615_v31 }
0x127b   :  { %v5994_v26 = vsel %vm664_vm3, %v5966_v47, %v5965_v53  ;;  %v5780_v49 = vpop.xlane.xlu2 %5779 }
0x127c   :  { %v5995_v42 = vsel %vm666_vm6, %v5967_v32, %v5994_v26  ;;  %v5972_v57 = vperm.slane %v5780_v49, %v12613_v21 }
0x1280   :  { %v5890_v0 = vpop.xlane.xlu1 %5889 }
0x1281   :  { %v6062_v30 = vperm.slane %v5890_v0, %v12615_v31 }
0x1283   :  { %v6090_v59 = vsel %vm664_vm3, %v6062_v30, %v6061_v5  ;;  %vm12640_vm3 = vmmov %vm12632_vm0 }
0x1284   :  { %v6091_v46 = vsel %vm666_vm6, %v6063_v2, %v6090_v59  ;;  %vm12641_vm6 = vmmov %vm12632_vm0 }
0x1285   :  { %v6092_v16 = vsel %vm668_vm7, %v6064_v7, %v6091_v46  ;;  %vm12648_vm0 = vmmov %vm12639_vm12 }
0x1286   :  { %vm12649_vm5 = vmmov %vm12648_vm0 }
0x1287   :  { %vm12651_vm13 = vmmov %vm12648_vm0 }
0x1288   :  { %v5768_v44 = vpop.xlane.xlu1 %5767  ;;  %vm12653_vm14 = vmmov %vm12648_vm0 }
0x1289   :  { %v5968_v48 = vperm.slane %v5768_v44, %v12613_v21  ;;  %vm12655_vm9 = vmmov %vm12648_vm0  ;;  %v12656_v44 = vld [vmem:[#allocation7_spill] sm:$0xff] }
0x128a   :  { %vm12658_vm1 = vmmov %vm12648_vm0 }
0x128b   :  { %v5996_v35 = vsel %vm668_vm7, %v5968_v48, %v5995_v42  ;;  %vm12643_vm7 = vmmov %vm12642_vm2 }
0x128c   :  { %v5997_v15 = vsel %vm670_vm8, %v5969_v1, %v5996_v35  ;;  %vm12659_vm12 = vmmov %vm12648_vm0 }
0x128d   :  { %v5998_v55 = vsel %vm12641_vm6, %v5970_v50, %v5997_v15 }
0x1290   :  { %v5899_v27 = vpop.xlane.xlu1 %5898 }
0x1291   :  { %v6065_v25 = vperm.slane %v5899_v27, %v12615_v31 }
0x1293   :  { %v6093_v51 = vsel %vm670_vm8, %v6065_v25, %v6092_v16  ;;  %vm12645_vm8 = vmmov %vm12637_vm4 }
0x1294   :  { %v6094_v9 = vsel %vm12640_vm3, %v6066_v54, %v6093_v51  ;;  %vm12657_vm4 = vmmov %vm12648_vm0 }
0x1295   :  { %v6095_v45 = vsel %vm12643_vm7, %v6067_v62, %v6094_v9  ;;  %vm12660_vm3 = vmmov %vm12648_vm0  ;;  %v6707_v62 = vld [vmem:[%s12113_s8 + $0x20] sm:$0xff] }
0x1296   :  { %6344 = vmatpush.msra.mxu1 %v6707_v62 }
0x1298   :  { %v5777_v10 = vpop.xlane.xlu1 %5776 }
0x1299   :  { %v5971_v56 = vperm.slane %v5777_v10, %v12613_v21 }
0x129b   :  { %v5999_v24 = vsel %vm12642_vm2, %v5971_v56, %v5998_v55 }
0x129c   :  { %v6000_v39 = vsel %vm12645_vm8, %v5972_v57, %v5999_v24  ;;  %v6706_v24 = vld [vmem:[%s12113_s8 + $0x18] sm:$0xff] }
0x129d   :  { %6345 = vmatpush.msra.mxu1 %v6706_v24 }
0x12a0   :  { %v5908_v43 = vpop.xlane.xlu1 %5907 }
0x12a1   :  { %v6068_v36 = vperm.slane %v5908_v43, %v12615_v31 }
0x12a2   :  { %v6134_v8 = vpop.f32.mrf.mxu0 }
0x12a3   :  { %v6146_v12 = vadd.f32 %v6134_v8, %v12644_v28  ;;  %v6096_v14 = vsel %vm12646_vm11, %v6068_v36, %v6095_v45 }
0x12a4   :  { %v6104_v34 = vsel %vm12647_vm10, %v6000_v39, %v6096_v14 }
0x12a5   :  { %v11921_v17 = vadd.f32 %v6885_v11, %v6146_v12  ;;  %6737 = vmatmul.msk.f32.gmra.mxu0 %vm12648_vm0, %v6104_v34 }
0x12a7   :  { %v6155_v21 = vsel %vm12649_vm5, %v11921_v17, 0.0 }
0x12a8   :  { %6156 = vadd.xlane.f32.xlu0 %v6155_v21 }
0x12ca   :  { %v6137_v31 = vpop.f32.mrf.mxu0 }
0x12cb   :  { %v6147_v58 = vadd.f32 %v6137_v31, %v12650_v29 }
0x12cd   :  { %v11927_v23 = vadd.f32 %v6885_v11, %v6147_v58 }
0x12cf   :  { %v6158_v41 = vsel %vm12651_vm13, %v11927_v23, 0.0 }
0x12d0   :  { %6159 = vadd.xlane.f32.xlu2 %v6158_v41 }
0x12f3   :  { %v6140_v13 = vpop.f32.mrf.mxu0 }
0x12f4   :  { %v6148_v52 = vadd.f32 %v6140_v13, %v12652_v20 }
0x12f6   :  { %v11932_v63 = vadd.f32 %v6885_v11, %v6148_v52 }
0x12f8   :  { %v6161_v4 = vsel %vm12653_vm14, %v11932_v63, 0.0 }
0x12f9   :  { %6162 = vadd.xlane.f32.xlu1 %v6161_v4 }
0x131b   :  { %v6157_v38 = vpop.xlane.xlu0 %6156 }
0x131c   :  { %v6167_v3 = vmul.f32 %v6157_v38, %v12654_v19 }
0x131e   :  { %v6171_v22 = vsub.f32 %v11921_v17, %v6167_v3 }
0x1320   :  { %v6175_v40 = vmul.f32 %v6171_v22, %v6171_v22 }
0x1322   :  { %v6143_v60 = vpop.f32.mrf.mxu0  ;;  %v6179_v0 = vsel %vm12655_vm9, %v6175_v40, 0.0 }
0x1323   :  { %v6149_v33 = vadd.f32 %v6143_v60, %v12656_v44  ;;  %6180 = vadd.xlane.f32.xlu2 %v6179_v0 }
0x1325   :  { %v11940_v37 = vadd.f32 %v6885_v11, %v6149_v33  ;;  %v11974_v11 = vld [vmem:[%s12111_s9 + $0x88] sm:$0x1f] }
0x1326   :  { %v11977_v8 = vperm.slane %v11974_v11, 3  ;;  %v11981_v58 = vperm.slane %v11974_v11, 4 }
0x1327   :  { %v6164_v27 = vsel %vm12657_vm4, %v11940_v37, 0.0 }
0x1328   :  { %6165 = vadd.xlane.f32.xlu0 %v6164_v27  ;;  %v6196_v14 = vmul.f32 %v11977_v8, %v6171_v22 }
0x1343   :  { %v6160_v53 = vpop.xlane.xlu2 %6159 }
0x1344   :  { %v6168_v30 = vmul.f32 %v6160_v53, %v12654_v19 }
0x1346   :  { %v11946_v47 = vsub.f32 %v11927_v23, %v6168_v30 }
0x1348   :  { %v6176_v5 = vmul.f32 %v11946_v47, %v11946_v47 }
0x134a   :  { %v6182_v18 = vsel %vm12658_vm1, %v6176_v5, 0.0 }
0x134b   :  { %6183 = vadd.xlane.f32.xlu1 %v6182_v18 }
0x136c   :  { %v6163_v6 = vpop.xlane.xlu1 %6162 }
0x136d   :  { %v6169_v26 = vmul.f32 %v6163_v6, %v12654_v19 }
0x136f   :  { %v11953_v59 = vsub.f32 %v11932_v63, %v6169_v26 }
0x1371   :  { %v6177_v48 = vmul.f32 %v11953_v59, %v11953_v59 }
0x1373   :  { %v6185_v32 = vsel %vm12659_vm12, %v6177_v48, 0.0  ;;  %vm12661_vm12 = vmmov %vm12648_vm0 }
0x1374   :  { %6186 = vadd.xlane.f32.xlu0 %v6185_v32 }
0x1396   :  { %v6181_v2 = vpop.xlane.xlu2 %6180 }
0x1397   :  { %v6191_v46 = vmul.f32 0.06666667, %v6181_v2 }
0x1399   :  { %7274 = vrsqrt.f32 %v6191_v46  ;;  %vm6207_vm6 = vcmp.eq.f32.partialorder %v6191_v46, inf  ;;  %v6210_v61 = vand.u32 2147483648, %v6191_v46  ;;  %vm6209_vm2 = vcmp.eq.f32.partialorder %v6191_v46, 0.0 }
0x139b   :  { %v6166_v42 = vpop.xlane.xlu0 %6165 }
0x139c   :  { %v6170_v25 = vmul.f32 %v6166_v42, %v12654_v19  ;;  %v6197_v42 = vmul.f32 %v11977_v8, %v11946_v47 }
0x139e   :  { %v11960_v10 = vsub.f32 %v11940_v37, %v6170_v25 }
0x139f   :  { %v7275_v7 = vpop.eup %7274 }
0x13a0   :  { %v6201_v35 = vmul.f32 %v7275_v7, %v6191_v46  ;;  %v6178_v1 = vmul.f32 %v11960_v10, %v11960_v10 }
0x13a2   :  { %v6202_v16 = vmul.f32 %v7275_v7, %v6201_v35  ;;  %v6188_v15 = vsel %vm12660_vm3, %v6178_v1, 0.0 }
0x13a3   :  { %6189 = vadd.xlane.f32.xlu2 %v6188_v15 }
0x13a4   :  { %v6203_v51 = vmul.f32 0.5, %v6202_v16 }
0x13a6   :  { %v6204_v56 = vsub.f32 1.5, %v6203_v51 }
0x13a8   :  { %v6205_v50 = vmul.f32 %v7275_v7, %v6204_v56 }
0x13aa   :  { %v6206_v54 = vmul.f32 %v6205_v50, %v6191_v46 }
0x13ac   :  { %v6208_v49 = vsel %vm6207_vm6, %v6191_v46, %v6206_v54 }
0x13ad   :  { %v6211_v9 = vsel %vm6209_vm2, %v6210_v61, %v6208_v49 }
0x13ae   :  { %v6248_v55 = vadd.f32 1e-06, %v6211_v9 }
0x13b0   :  { %7276 = vrcp.f32 %v6248_v55  ;;  %v6263_v45 = vand.u32 2147483648, %v6248_v55  ;;  %v6261_v12 = vand.u32 2147483647, %v6248_v55  ;;  %vm6257_vm8 = vweird.f32 %v6248_v55 }
0x13b2   :  { %v6264_v21 = vor.u32 1.1754944e-38, %v6263_v45  ;;  %vm6262_vm10 = vcmp.eq.f32.partialorder %v6261_v12, 8.507059e+37 }
0x13b6   :  { %v7277_v43 = vpop.eup %7276 }
0x13b7   :  { %v6253_v57 = vmul.f32 %v7277_v43, %v6248_v55  ;;  %vm6258_vm7 = vweird.f32 %v7277_v43 }
0x13b8   :  { %vm6259_vm11 = vmor %vm6257_vm8, %vm6258_vm7 }
0x13b9   :  { %v6254_v36 = vsub.f32 1.0, %v6253_v57  ;;  %v6716_v57 = vld [vmem:[%s12111_s9 + $0x80] sm:$0xff] }
0x13ba   :  { %6383 = vmatpush.msrb.mxu2 %v6716_v57 }
0x13bb   :  { %v6255_v28 = vmul.f32 %v7277_v43, %v6254_v36  ;;  %v6715_v36 = vld [vmem:[%s12111_s9 + $0x78] sm:$0xff] }
0x13bc   :  { %6384 = vmatpush.msrb.mxu2 %v6715_v36 }
0x13bd   :  { %v6256_v39 = vadd.f32 %v7277_v43, %v6255_v28 }
0x13be   :  { %v6184_v34 = vpop.xlane.xlu1 %6183 }
0x13bf   :  { %v6192_v31 = vmul.f32 0.06666667, %v6184_v34  ;;  %v6260_v29 = vsel %vm6259_vm11, %v7277_v43, %v6256_v39  ;;  %v6714_v39 = vld [vmem:[%s12111_s9 + $0x70] sm:$0xff]  ;;  %v6713_v34 = vld [vmem:[%s12111_s9 + $0x68] sm:$0xff] }
0x13c0   :  { %v6265_v41 = vsel %vm6262_vm10, %v6264_v21, %v6260_v29  ;;  %6385 = vmatpush.msrb.mxu2 %v6714_v39  ;;  %vm12662_vm10 = vmmov %vm12648_vm0 }
0x13c1   :  { %7278 = vrsqrt.f32 %v6192_v31  ;;  %v6266_v13 = vmul.f32 %v6265_v41, %v6196_v14  ;;  %vm6219_vm5 = vcmp.eq.f32.partialorder %v6192_v31, inf  ;;  %v6222_v0 = vand.u32 2147483648, %v6192_v31  ;;  %v6712_v41 = vld [vmem:[%s12111_s9 + $0x60] sm:$0xff] }
0x13c2   :  { %vm6221_vm13 = vcmp.eq.f32.partialorder %v6192_v31, 0.0  ;;  %6386 = vmatpush.msrb.mxu2 %v6713_v34 }
0x13c3   :  { %v6313_v20 = vadd.f32 %v11981_v58, %v6266_v13 }
0x13c4   :  { %6387 = vmatpush.msrb.mxu2 %v6712_v41 }
0x13c5   :  { %6738 = vmatmul.msk.f32.vlgmr.msra.gmra.mxu1 %vm12648_vm0, %v6313_v20 }
0x13c7   :  { %v7279_v52 = vpop.eup %7278 }
0x13c8   :  { %v6213_v4 = vmul.f32 %v7279_v52, %v6192_v31 }
0x13ca   :  { %v6214_v38 = vmul.f32 %v7279_v52, %v6213_v4 }
0x13cc   :  { %v6215_v3 = vmul.f32 0.5, %v6214_v38 }
0x13ce   :  { %v6216_v22 = vsub.f32 1.5, %v6215_v3 }
0x13d0   :  { %v6217_v40 = vmul.f32 %v7279_v52, %v6216_v22 }
0x13d2   :  { %v6218_v60 = vmul.f32 %v6217_v40, %v6192_v31 }
0x13d4   :  { %v6220_v44 = vsel %vm6219_vm5, %v6192_v31, %v6218_v60  ;;  %v6198_v31 = vmul.f32 %v11977_v8, %v11953_v59  ;;  %v6711_v60 = vld [vmem:[%s12111_s9 + $0x58] sm:$0xff] }
0x13d5   :  { %v6223_v33 = vsel %vm6221_vm13, %v6222_v0, %v6220_v44  ;;  %v6710_v0 = vld [vmem:[%s12111_s9 + $0x50] sm:$0xff]  ;;  %6388 = vmatpush.msrb.mxu2 %v6711_v60 }
0x13d6   :  { %v6249_v27 = vadd.f32 1e-06, %v6223_v33  ;;  %v6709_v33 = vld [vmem:[%s12111_s9 + $0x48] sm:$0xff] }
0x13d7   :  { %6389 = vmatpush.msrb.mxu2 %v6710_v0 }
0x13d8   :  { %7280 = vrcp.f32 %v6249_v27  ;;  %v6278_v26 = vand.u32 2147483648, %v6249_v27  ;;  %v6276_v32 = vand.u32 2147483647, %v6249_v27  ;;  %vm6272_vm9 = vweird.f32 %v6249_v27 }
0x13d9   :  { %6390 = vmatpush.msrb.mxu2 %v6709_v33 }
0x13da   :  { %v6279_v46 = vor.u32 1.1754944e-38, %v6278_v26  ;;  %vm6277_vm1 = vcmp.eq.f32.partialorder %v6276_v32, 8.507059e+37 }
0x13de   :  { %v7281_v53 = vpop.eup %7280 }
0x13df   :  { %v6268_v30 = vmul.f32 %v7281_v53, %v6249_v27  ;;  %vm6273_vm14 = vweird.f32 %v7281_v53 }
0x13e0   :  { %vm6274_vm4 = vmor %vm6272_vm9, %vm6273_vm14 }
0x13e1   :  { %v6269_v6 = vsub.f32 1.0, %v6268_v30 }
0x13e3   :  { %v6270_v48 = vmul.f32 %v7281_v53, %v6269_v6 }
0x13e5   :  { %v6271_v2 = vadd.f32 %v7281_v53, %v6270_v48 }
0x13e7   :  { %v6187_v5 = vpop.xlane.xlu0 %6186  ;;  %v6275_v25 = vsel %vm6274_vm4, %v7281_v53, %v6271_v2 }
0x13e8   :  { %v6193_v18 = vmul.f32 0.06666667, %v6187_v5  ;;  %v6280_v7 = vsel %vm6277_vm1, %v6279_v46, %v6275_v25  ;;  %vm12663_vm1 = vmmov %vm12662_vm10 }
0x13e9   :  { %v6281_v1 = vmul.f32 %v6280_v7, %v6197_v42 }
0x13ea   :  { %7282 = vrsqrt.f32 %v6193_v18  ;;  %vm6231_vm3 = vcmp.eq.f32.partialorder %v6193_v18, inf  ;;  %v6234_v49 = vand.u32 2147483648, %v6193_v18  ;;  %vm6233_vm6 = vcmp.eq.f32.partialorder %v6193_v18, 0.0 }
0x13eb   :  { %v6314_v15 = vadd.f32 %v11981_v58, %v6281_v1  ;;  %v6886_v1 = vld [vmem:[%s12113_s8 + $0x28] ss:$0 sm:$0xff] }
0x13ed   :  { %6739 = vmatmul.msk.f32.gmra.mxu1 %vm12661_vm12, %v6314_v15  ;;  %vm12664_vm12 = vmmov %vm12663_vm1 }
0x13f0   :  { %v7283_v35 = vpop.eup %7282 }
0x13f1   :  { %v6225_v16 = vmul.f32 %v7283_v35, %v6193_v18 }
0x13f3   :  { %v6226_v51 = vmul.f32 %v7283_v35, %v6225_v16 }
0x13f5   :  { %v6227_v56 = vmul.f32 0.5, %v6226_v51 }
0x13f7   :  { %v6228_v50 = vsub.f32 1.5, %v6227_v56 }
0x13f9   :  { %v6229_v54 = vmul.f32 %v7283_v35, %v6228_v50  ;;  %v6199_v35 = vmul.f32 %v11977_v8, %v11960_v10 }
0x13fb   :  { %v6230_v61 = vmul.f32 %v6229_v54, %v6193_v18 }
0x13fd   :  { %v6232_v9 = vsel %vm6231_vm3, %v6193_v18, %v6230_v61  ;;  %vm12665_vm3 = vmmov %vm12663_vm1 }
0x13fe   :  { %v6235_v47 = vsel %vm6233_vm6, %v6234_v49, %v6232_v9  ;;  %vm12667_vm6 = vmmov %vm12663_vm1 }
0x13ff   :  { %v6250_v55 = vadd.f32 1e-06, %v6235_v47 }
0x1401   :  { %7284 = vrcp.f32 %v6250_v55  ;;  %v6293_v45 = vand.u32 2147483648, %v6250_v55  ;;  %v6291_v12 = vand.u32 2147483647, %v6250_v55  ;;  %vm6287_vm7 = vweird.f32 %v6250_v55 }
0x1403   :  { %v6294_v21 = vor.u32 1.1754944e-38, %v6293_v45  ;;  %vm6292_vm11 = vcmp.eq.f32.partialorder %v6291_v12, 8.507059e+37 }
0x1407   :  { %v7285_v62 = vpop.eup %7284 }
0x1408   :  { %v6283_v24 = vmul.f32 %v7285_v62, %v6250_v55  ;;  %vm6288_vm2 = vweird.f32 %v7285_v62 }
0x1409   :  { %vm6289_vm8 = vmor %vm6287_vm7, %vm6288_vm2 }
0x140a   :  { %v6284_v43 = vsub.f32 1.0, %v6283_v24  ;;  %vm12668_vm2 = vmmov %vm12663_vm1 }
0x140b   :  { %vm12669_vm7 = vmmov %vm12663_vm1 }
0x140c   :  { %v6285_v28 = vmul.f32 %v7285_v62, %v6284_v43 }
0x140e   :  { %v6286_v14 = vadd.f32 %v7285_v62, %v6285_v28 }
0x1410   :  { %v6290_v29 = vsel %vm6289_vm8, %v7285_v62, %v6286_v14  ;;  %vm12670_vm8 = vmmov %vm12663_vm1 }
0x1411   :  { %v6295_v13 = vsel %vm6292_vm11, %v6294_v21, %v6290_v29  ;;  %vm12671_vm11 = vmmov %vm12663_vm1 }
0x1412   :  { %v6296_v20 = vmul.f32 %v6295_v13, %v6198_v31 }
0x1414   :  { %v6315_v52 = vadd.f32 %v11981_v58, %v6296_v20 }
0x1416   :  { %6740 = vmatmul.msk.f32.gmra.mxu1 %vm12662_vm10, %v6315_v52  ;;  %v6190_v4 = vpop.xlane.xlu2 %6189 }
0x1417   :  { %v6194_v38 = vmul.f32 0.06666667, %v6190_v4 }
0x1419   :  { %7286 = vrsqrt.f32 %v6194_v38  ;;  %vm6243_vm0 = vcmp.eq.f32.partialorder %v6194_v38, inf  ;;  %v6246_v30 = vand.u32 2147483648, %v6194_v38  ;;  %vm6245_vm5 = vcmp.eq.f32.partialorder %v6194_v38, 0.0 }
0x141f   :  { %v7287_v3 = vpop.eup %7286 }
0x1420   :  { %v6237_v22 = vmul.f32 %v7287_v3, %v6194_v38 }
0x1422   :  { %v6238_v59 = vmul.f32 %v7287_v3, %v6237_v22 }
0x1424   :  { %v6239_v40 = vmul.f32 0.5, %v6238_v59 }
0x1426   :  { %v6240_v44 = vsub.f32 1.5, %v6239_v40 }
0x1428   :  { %v6241_v27 = vmul.f32 %v7287_v3, %v6240_v44 }
0x142a   :  { %v6242_v53 = vmul.f32 %v6241_v27, %v6194_v38 }
0x142c   :  { %v6244_v5 = vsel %vm6243_vm0, %v6194_v38, %v6242_v53 }
0x142d   :  { %v6247_v18 = vsel %vm6245_vm5, %v6246_v30, %v6244_v5 }
0x142e   :  { %v6251_v6 = vadd.f32 1e-06, %v6247_v18 }
0x1430   :  { %7288 = vrcp.f32 %v6251_v6  ;;  %v6308_v2 = vand.u32 2147483648, %v6251_v6  ;;  %v6306_v42 = vand.u32 2147483647, %v6251_v6  ;;  %vm6302_vm14 = vweird.f32 %v6251_v6 }
0x1432   :  { %v6309_v7 = vor.u32 1.1754944e-38, %v6308_v2  ;;  %vm6307_vm4 = vcmp.eq.f32.partialorder %v6306_v42, 8.507059e+37 }
0x1436   :  { %v7289_v26 = vpop.eup %7288 }
0x1437   :  { %v6298_v48 = vmul.f32 %v7289_v26, %v6251_v6  ;;  %vm6303_vm13 = vweird.f32 %v7289_v26 }
0x1438   :  { %vm6304_vm9 = vmor %vm6302_vm14, %vm6303_vm13 }
0x1439   :  { %v6299_v32 = vsub.f32 1.0, %v6298_v48 }
0x143b   :  { %v6300_v46 = vmul.f32 %v7289_v26, %v6299_v32 }
0x143d   :  { %v6301_v25 = vadd.f32 %v7289_v26, %v6300_v46 }
0x143f   :  { %v6305_v16 = vsel %vm6304_vm9, %v7289_v26, %v6301_v25 }
0x1440   :  { %v6310_v15 = vsel %vm6307_vm4, %v6309_v7, %v6305_v16  ;;  %vm12672_vm4 = vmmov %vm12663_vm1 }
0x1441   :  { %v6311_v51 = vmul.f32 %v6310_v15, %v6199_v35 }
0x1442   :  { %v6347_v56 = vpop.f32.mrf.mxu1 }
0x1443   :  { %v6348_v50 = vadd.f32 %v6886_v1, %v6347_v56  ;;  %v6316_v54 = vadd.f32 %v11981_v58, %v6311_v51  ;;  %v6408_v58 = vperm.slane %v11974_v11, 0  ;;  %v50_v56 = vld [vmem:[%s12105_s2 + $0x48] sm:$0xff] }
0x1444   :  { %6602 = vmatpush.msra.mxu3 %v50_v56 }
0x1445   :  { %v6359_v61 = vmax.f32 %v6348_v50, 0.0  ;;  %6741 = vmatmul.msk.f32.gmra.mxu1 %vm12663_vm1, %v6316_v54  ;;  %v49_v50 = vld [vmem:[%s12105_s2 + $0x40] sm:$0xff] }
0x1446   :  { %6603 = vmatpush.msra.mxu3 %v49_v50 }
0x1447   :  { %6742 = vmatmul.msk.f32.vlgmr.msrb.gmra.mxu2 %vm3910_vm15, %v6359_v61  ;;  %v57_v61 = vld [vmem:[%s12109_s5 + $0x20] sm:$0x3] }
0x146a   :  { %v6350_v49 = vpop.f32.mrf.mxu1 }
0x146b   :  { %v6351_v9 = vadd.f32 %v6886_v1, %v6350_v49 }
0x146d   :  { %v6360_v10 = vmax.f32 %v6351_v9, 0.0 }
0x146f   :  { %6743 = vmatmul.msk.f32.gmra.mxu2 %vm3910_vm15, %v6360_v10  ;;  %v12066_v10 = vperm.slane %v57_v61, 0 }
0x1493   :  { %v6353_v8 = vpop.f32.mrf.mxu1 }
0x1494   :  { %v6354_v47 = vadd.f32 %v6886_v1, %v6353_v8 }
0x1496   :  { %v6361_v55 = vmax.f32 %v6354_v47, 0.0 }
0x1498   :  { %6744 = vmatmul.msk.f32.gmra.mxu2 %vm3910_vm15, %v6361_v55 }
0x14c2   :  { %v6356_v62 = vpop.f32.mrf.mxu1 }
0x14c3   :  { %v6357_v24 = vadd.f32 %v6886_v1, %v6356_v62 }
0x14c5   :  { %v6362_v43 = vmax.f32 %v6357_v24, 0.0  ;;  %v12068_v24 = vperm.slane %v57_v61, 1 }
0x14c7   :  { %6745 = vmatmul.msk.f32.gmra.mxu2 %vm3910_vm15, %v6362_v43  ;;  %vm12666_vm15 = vmmov %vm12663_vm1 }
0x14ca   :  { %v6392_v57 = vpop.f32.mrf.mxu2 }
0x14cb   :  { %v6404_v36 = vadd.f32 %v6392_v57, %v11921_v17 }
0x14cd   :  { %v6409_v45 = vadd.f32 %v6408_v58, %v6404_v36 }
0x14cf   :  { %v6413_v28 = vsel %vm12664_vm12, %v6409_v45, 0.0 }
0x14d0   :  { %6414 = vadd.xlane.f32.xlu1 %v6413_v28 }
0x14f2   :  { %v6395_v12 = vpop.f32.mrf.mxu2 }
0x14f3   :  { %v6405_v39 = vadd.f32 %v6395_v12, %v11927_v23 }
0x14f5   :  { %v6410_v14 = vadd.f32 %v6408_v58, %v6405_v39 }
0x14f7   :  { %v6416_v34 = vsel %vm12665_vm3, %v6410_v14, 0.0 }
0x14f8   :  { %6417 = vadd.xlane.f32.xlu0 %v6416_v34 }
0x151b   :  { %v6398_v21 = vpop.f32.mrf.mxu2 }
0x151c   :  { %v6406_v31 = vadd.f32 %v6398_v21, %v11932_v63 }
0x151e   :  { %v6411_v29 = vadd.f32 %v6408_v58, %v6406_v31 }
0x1520   :  { %v6419_v11 = vsel %vm12666_vm15, %v6411_v29, 0.0 }
0x1521   :  { %6420 = vadd.xlane.f32.xlu2 %v6419_v11 }
0x1543   :  { %v6415_v41 = vpop.xlane.xlu1 %6414 }
0x1544   :  { %v6425_v17 = vmul.f32 %v6415_v41, %v12654_v19 }
0x1546   :  { %v6429_v13 = vsub.f32 %v6409_v45, %v6425_v17 }
0x1548   :  { %v6433_v20 = vmul.f32 %v6429_v13, %v6429_v13  ;;  %v6454_v43 = vmul.f32 %v12066_v10, %v6429_v13 }
0x154a   :  { %v6401_v52 = vpop.f32.mrf.mxu2  ;;  %v6437_v4 = vsel %vm12667_vm6, %v6433_v20, 0.0 }
0x154b   :  { %v6407_v23 = vadd.f32 %v6401_v52, %v11940_v37  ;;  %6438 = vadd.xlane.f32.xlu0 %v6437_v4 }
0x154d   :  { %v6412_v38 = vadd.f32 %v6408_v58, %v6407_v23 }
0x154f   :  { %v6422_v3 = vsel %vm12668_vm2, %v6412_v38, 0.0 }
0x1550   :  { %6423 = vadd.xlane.f32.xlu1 %v6422_v3 }
0x156b   :  { %v6418_v63 = vpop.xlane.xlu0 %6417 }
0x156c   :  { %v6426_v22 = vmul.f32 %v6418_v63, %v12654_v19 }
0x156e   :  { %v12040_v59 = vsub.f32 %v6410_v14, %v6426_v22 }
0x1570   :  { %v6434_v40 = vmul.f32 %v12040_v59, %v12040_v59 }
0x1572   :  { %v6440_v60 = vsel %vm12669_vm7, %v6434_v40, 0.0  ;;  %vm12673_vm7 = vmmov %vm12672_vm4 }
0x1573   :  { %6441 = vadd.xlane.f32.xlu2 %v6440_v60 }
0x1594   :  { %v6421_v0 = vpop.xlane.xlu2 %6420 }
0x1595   :  { %v6427_v44 = vmul.f32 %v6421_v0, %v12654_v19 }
0x1597   :  { %v12046_v37 = vsub.f32 %v6411_v29, %v6427_v44  ;;  %v6455_v44 = vmul.f32 %v12066_v10, %v12040_v59 }
0x1599   :  { %v6435_v33 = vmul.f32 %v12046_v37, %v12046_v37 }
0x159b   :  { %v6443_v27 = vsel %vm12670_vm8, %v6435_v33, 0.0 }
0x159c   :  { %6444 = vadd.xlane.f32.xlu1 %v6443_v27 }
0x15be   :  { %v6439_v53 = vpop.xlane.xlu0 %6438 }
0x15bf   :  { %v6449_v30 = vmul.f32 0.06666667, %v6439_v53 }
0x15c1   :  { %7290 = vrsqrt.f32 %v6449_v30  ;;  %vm6465_vm10 = vcmp.eq.f32.partialorder %v6449_v30, inf  ;;  %v6468_v1 = vand.u32 2147483648, %v6449_v30  ;;  %vm6467_vm0 = vcmp.eq.f32.partialorder %v6449_v30, 0.0 }
0x15c3   :  { %v6424_v5 = vpop.xlane.xlu1 %6423 }
0x15c4   :  { %v6428_v18 = vmul.f32 %v6424_v5, %v12654_v19 }
0x15c6   :  { %v12052_v6 = vsub.f32 %v6412_v38, %v6428_v18 }
0x15c7   :  { %v7291_v26 = vpop.eup %7290 }
0x15c8   :  { %v6459_v48 = vmul.f32 %v7291_v26, %v6449_v30  ;;  %v6436_v32 = vmul.f32 %v12052_v6, %v12052_v6 }
0x15ca   :  { %v6460_v2 = vmul.f32 %v7291_v26, %v6459_v48  ;;  %v6446_v46 = vsel %vm12671_vm11, %v6436_v32, 0.0 }
0x15cb   :  { %6447 = vadd.xlane.f32.xlu0 %v6446_v46 }
0x15cc   :  { %v6461_v42 = vmul.f32 0.5, %v6460_v2 }
0x15ce   :  { %v6462_v25 = vsub.f32 1.5, %v6461_v42 }
0x15d0   :  { %v6463_v7 = vmul.f32 %v7291_v26, %v6462_v25 }
0x15d2   :  { %v6464_v35 = vmul.f32 %v6463_v7, %v6449_v30 }
0x15d4   :  { %v6466_v16 = vsel %vm6465_vm10, %v6449_v30, %v6464_v35 }
0x15d5   :  { %v6469_v19 = vsel %vm6467_vm0, %v6468_v1, %v6466_v16 }
0x15d6   :  { %v6506_v15 = vadd.f32 1e-06, %v6469_v19 }
0x15d8   :  { %7292 = vrcp.f32 %v6506_v15  ;;  %v6521_v9 = vand.u32 2147483648, %v6506_v15  ;;  %v6519_v47 = vand.u32 2147483647, %v6506_v15  ;;  %vm6515_vm13 = vweird.f32 %v6506_v15 }
0x15da   :  { %v6522_v62 = vor.u32 1.1754944e-38, %v6521_v9  ;;  %vm6520_vm9 = vcmp.eq.f32.partialorder %v6519_v47, 8.507059e+37 }
0x15de   :  { %v7293_v51 = vpop.eup %7292 }
0x15df   :  { %v6511_v54 = vmul.f32 %v7293_v51, %v6506_v15  ;;  %vm6516_vm5 = vweird.f32 %v7293_v51 }
0x15e0   :  { %vm6517_vm14 = vmor %vm6515_vm13, %vm6516_vm5 }
0x15e1   :  { %v6512_v49 = vsub.f32 1.0, %v6511_v54 }
0x15e3   :  { %v6513_v8 = vmul.f32 %v7293_v51, %v6512_v49  ;;  %v6456_v49 = vmul.f32 %v12066_v10, %v12046_v37 }
0x15e5   :  { %v6514_v55 = vadd.f32 %v7293_v51, %v6513_v8 }
0x15e6   :  { %v6442_v36 = vpop.xlane.xlu2 %6441 }
0x15e7   :  { %v6518_v58 = vsel %vm6517_vm14, %v7293_v51, %v6514_v55  ;;  %v6450_v28 = vmul.f32 0.06666667, %v6442_v36  ;;  %vm12674_vm14 = vmmov %vm12672_vm4 }
0x15e8   :  { %v6523_v57 = vsel %vm6520_vm9, %v6522_v62, %v6518_v58 }
0x15e9   :  { %v6524_v45 = vmul.f32 %v6523_v57, %v6454_v43  ;;  %7294 = vrsqrt.f32 %v6450_v28  ;;  %vm6477_vm1 = vcmp.eq.f32.partialorder %v6450_v28, inf  ;;  %v6480_v17 = vand.u32 2147483648, %v6450_v28 }
0x15ea   :  { %vm6479_vm12 = vcmp.eq.f32.partialorder %v6450_v28, 0.0 }
0x15eb   :  { %v6571_v12 = vadd.f32 %v12068_v24, %v6524_v45 }
0x15ed   :  { %6746 = vmatmul.msk.f32.vlgmr.msra.gmra.mxu3 %vm12672_vm4, %v6571_v12 }
0x15ef   :  { %v7295_v39 = vpop.eup %7294 }
0x15f0   :  { %v6471_v14 = vmul.f32 %v7295_v39, %v6450_v28 }
0x15f2   :  { %v6472_v34 = vmul.f32 %v7295_v39, %v6471_v14 }
0x15f4   :  { %v6473_v21 = vmul.f32 0.5, %v6472_v34 }
0x15f6   :  { %v6474_v31 = vsub.f32 1.5, %v6473_v21 }
0x15f8   :  { %v6475_v29 = vmul.f32 %v7295_v39, %v6474_v31 }
0x15fa   :  { %v6476_v11 = vmul.f32 %v6475_v29, %v6450_v28 }
0x15fc   :  { %v6478_v41 = vsel %vm6477_vm1, %v6450_v28, %v6476_v11 }
0x15fd   :  { %v6481_v13 = vsel %vm6479_vm12, %v6480_v17, %v6478_v41 }
0x15fe   :  { %v6507_v20 = vadd.f32 1e-06, %v6481_v13 }
0x1600   :  { %7296 = vrcp.f32 %v6507_v20  ;;  %v6536_v63 = vand.u32 2147483648, %v6507_v20  ;;  %v6534_v40 = vand.u32 2147483647, %v6507_v20  ;;  %vm6530_vm15 = vweird.f32 %v6507_v20 }
0x1602   :  { %v6537_v0 = vor.u32 1.1754944e-38, %v6536_v63  ;;  %vm6535_vm2 = vcmp.eq.f32.partialorder %v6534_v40, 8.507059e+37 }
0x1606   :  { %v7297_v52 = vpop.eup %7296 }
0x1607   :  { %v6526_v23 = vmul.f32 %v7297_v52, %v6507_v20  ;;  %vm6531_vm3 = vweird.f32 %v7297_v52  ;;  %v6457_v20 = vmul.f32 %v12066_v10, %v12052_v6 }
0x1608   :  { %vm6532_vm6 = vmor %vm6530_vm15, %vm6531_vm3 }
0x1609   :  { %v6527_v3 = vsub.f32 1.0, %v6526_v23 }
0x160b   :  { %v6528_v22 = vmul.f32 %v7297_v52, %v6527_v3  ;;  %v6887_v3 = vld [vmem:[%s12105_s2 + $0x58] ss:$0 sm:$0xff] }
0x160d   :  { %v6529_v60 = vadd.f32 %v7297_v52, %v6528_v22 }
0x160f   :  { %v6445_v4 = vpop.xlane.xlu1 %6444  ;;  %v6533_v33 = vsel %vm6532_vm6, %v7297_v52, %v6529_v60  ;;  %vm12675_vm6 = vmmov %vm12673_vm7 }
0x1610   :  { %v6451_v38 = vmul.f32 0.06666667, %v6445_v4  ;;  %v6538_v53 = vsel %vm6535_vm2, %v6537_v0, %v6533_v33  ;;  %vm12676_vm2 = vcmask 64512  }
0x1611   :  { %v6539_v5 = vmul.f32 %v6538_v53, %v6455_v44 }
0x1612   :  { %7298 = vrsqrt.f32 %v6451_v38  ;;  %vm6489_vm8 = vcmp.eq.f32.partialorder %v6451_v38, inf  ;;  %v6492_v25 = vand.u32 2147483648, %v6451_v38  ;;  %vm6491_vm11 = vcmp.eq.f32.partialorder %v6451_v38, 0.0 }
0x1613   :  { %v6572_v18 = vadd.f32 %v12068_v24, %v6539_v5 }
0x1615   :  { %6747 = vmatmul.msk.f32.gmra.mxu3 %vm12673_vm7, %v6572_v18  ;;  %vm12677_vm7 = vmmov %vm12676_vm2 }
0x1618   :  { %v7299_v27 = vpop.eup %7298 }
0x1619   :  { %v6483_v30 = vmul.f32 %v7299_v27, %v6451_v38 }
0x161b   :  { %v6484_v26 = vmul.f32 %v7299_v27, %v6483_v30 }
0x161d   :  { %v6485_v48 = vmul.f32 0.5, %v6484_v26 }
0x161f   :  { %v6486_v32 = vsub.f32 1.5, %v6485_v48 }
0x1621   :  { %v6487_v2 = vmul.f32 %v7299_v27, %v6486_v32 }
0x1623   :  { %v6488_v46 = vmul.f32 %v6487_v2, %v6451_v38 }
0x1625   :  { %v6490_v42 = vsel %vm6489_vm8, %v6451_v38, %v6488_v46  ;;  %vm12678_vm8 = vmmov %vm12676_vm2 }
0x1626   :  { %v6493_v59 = vsel %vm6491_vm11, %v6492_v25, %v6490_v42  ;;  %vm12679_vm11 = vmmov %vm12676_vm2 }
0x1627   :  { %v6508_v7 = vadd.f32 1e-06, %v6493_v59 }
0x1629   :  { %7300 = vrcp.f32 %v6508_v7  ;;  %v6551_v51 = vand.u32 2147483648, %v6508_v7  ;;  %v6549_v50 = vand.u32 2147483647, %v6508_v7  ;;  %vm6545_vm0 = vweird.f32 %v6508_v7 }
0x162b   :  { %v6552_v61 = vor.u32 1.1754944e-38, %v6551_v51  ;;  %vm6550_vm13 = vcmp.eq.f32.partialorder %v6549_v50, 8.507059e+37 }
0x162f   :  { %v7301_v35 = vpop.eup %7300 }
0x1630   :  { %v6541_v16 = vmul.f32 %v7301_v35, %v6508_v7  ;;  %vm6546_vm10 = vweird.f32 %v7301_v35 }
0x1631   :  { %vm6547_vm5 = vmor %vm6545_vm0, %vm6546_vm10 }
0x1632   :  { %v6542_v15 = vsub.f32 1.0, %v6541_v16 }
0x1634   :  { %v6543_v56 = vmul.f32 %v7301_v35, %v6542_v15 }
0x1636   :  { %v6544_v54 = vadd.f32 %v7301_v35, %v6543_v56 }
0x1638   :  { %v6548_v9 = vsel %vm6547_vm5, %v7301_v35, %v6544_v54 }
0x1639   :  { %v6553_v47 = vsel %vm6550_vm13, %v6552_v61, %v6548_v9 }
0x163a   :  { %v6554_v62 = vmul.f32 %v6553_v47, %v6456_v49 }
0x163c   :  { %v6573_v58 = vadd.f32 %v12068_v24, %v6554_v62 }
0x163e   :  { %v6448_v1 = vpop.xlane.xlu0 %6447  ;;  %6748 = vmatmul.msk.f32.gmra.mxu3 %vm12674_vm14, %v6573_v58 }
0x163f   :  { %v6452_v19 = vmul.f32 0.06666667, %v6448_v1 }
0x1641   :  { %7302 = vrsqrt.f32 %v6452_v19  ;;  %vm6501_vm9 = vcmp.eq.f32.partialorder %v6452_v19, inf  ;;  %v6504_v12 = vand.u32 2147483648, %v6452_v19  ;;  %vm6503_vm4 = vcmp.eq.f32.partialorder %v6452_v19, 0.0 }
0x1647   :  { %v7303_v8 = vpop.eup %7302 }
0x1648   :  { %v6495_v55 = vmul.f32 %v7303_v8, %v6452_v19 }
0x164a   :  { %v6496_v43 = vmul.f32 %v7303_v8, %v6495_v55 }
0x164c   :  { %v6497_v57 = vmul.f32 0.5, %v6496_v43 }
0x164e   :  { %v6498_v36 = vsub.f32 1.5, %v6497_v57 }
0x1650   :  { %v6499_v45 = vmul.f32 %v7303_v8, %v6498_v36 }
0x1652   :  { %v6500_v28 = vmul.f32 %v6499_v45, %v6452_v19 }
0x1654   :  { %v6502_v39 = vsel %vm6501_vm9, %v6452_v19, %v6500_v28 }
0x1655   :  { %v6505_v37 = vsel %vm6503_vm4, %v6504_v12, %v6502_v39 }
0x1656   :  { %v6509_v14 = vadd.f32 1e-06, %v6505_v37 }
0x1658   :  { %7304 = vrcp.f32 %v6509_v14  ;;  %v6566_v29 = vand.u32 2147483648, %v6509_v14  ;;  %v6564_v41 = vand.u32 2147483647, %v6509_v14  ;;  %vm6560_vm12 = vweird.f32 %v6509_v14 }
0x165a   :  { %v6567_v13 = vor.u32 1.1754944e-38, %v6566_v29  ;;  %vm6565_vm15 = vcmp.eq.f32.partialorder %v6564_v41, 8.507059e+37 }
0x165e   :  { %v7305_v34 = vpop.eup %7304 }
0x165f   :  { %v6556_v21 = vmul.f32 %v7305_v34, %v6509_v14  ;;  %vm6561_vm1 = vweird.f32 %v7305_v34 }
0x1660   :  { %vm6562_vm3 = vmor %vm6560_vm12, %vm6561_vm1 }
0x1661   :  { %v6557_v31 = vsub.f32 1.0, %v6556_v21 }
0x1663   :  { %v6558_v11 = vmul.f32 %v7305_v34, %v6557_v31 }
0x1665   :  { %v6559_v17 = vadd.f32 %v7305_v34, %v6558_v11 }
0x1667   :  { %v6563_v52 = vsel %vm6562_vm3, %v7305_v34, %v6559_v17 }
0x1668   :  { %v6568_v4 = vsel %vm6565_vm15, %v6567_v13, %v6563_v52 }
0x1669   :  { %v6569_v23 = vmul.f32 %v6568_v4, %v6457_v20 }
0x166b   :  { %v6574_v38 = vadd.f32 %v12068_v24, %v6569_v23 }
0x166d   :  { %6749 = vmatmul.msk.f32.gmra.mxu3 %vm12675_vm6, %v6574_v38 }
0x1670   :  { %v6605_v63 = vpop.f32.mrf.mxu3 }
0x1671   :  { %v6606_v22 = vadd.f32 %v6887_v3, %v6605_v63 }
0x1673   :  { %6617 = vst.msk [vmem:[%s12114_s10] sm:$0xff] %vm12676_vm2, %v6606_v22 }
0x1698   :  { %v6608_v6 = vpop.f32.mrf.mxu3 }
0x1699   :  { %v6609_v10 = vadd.f32 %v6887_v3, %v6608_v6 }
0x169b   :  { %6618 = vst.msk [vmem:[%s12114_s10 + $0x8] sm:$0xff] %vm12677_vm7, %v6609_v10 }
0x16c1   :  { %v6611_v24 = vpop.f32.mrf.mxu3 }
0x16c2   :  { %v6612_v40 = vadd.f32 %v6887_v3, %v6611_v24 }
0x16c4   :  { %6619 = vst.msk [vmem:[%s12114_s10 + $0x10] sm:$0xff] %vm12678_vm8, %v6612_v40 }
0x16f0   :  { %v6614_v60 = vpop.f32.mrf.mxu3 }
0x16f1   :  { %v6615_v0 = vadd.f32 %v6887_v3, %v6614_v60 }
0x16f3   :  { %6620 = vst.msk [vmem:[%s12114_s10 + $0x18] sm:$0xff] %vm12679_vm11, %v6615_v0 }

</bundles_post_ra>
